<compile_context>
chip_gen: v6e
topology: v6e:2x2x1
jax: 0.10.0
libtpu: 0.0.40
codegen_flags: <defaults>
</compile_context>

<pallas_src>
import functools

import jax
import jax.numpy as jnp
from jax.experimental import pallas as pl
from jax.experimental.pallas import tpu as pltpu


_LANE = 128      # channel lane width
_SUBLANE = 16    # bf16 sublane pack along the second-minor (W) axis


def _round_up(x, m):
    return (x + m - 1) // m * m


def _pick_var_chunks(m):
    # Chunk count for the centered variance pass; chunk rows stay a multiple of 8.
    for n in (8, 4, 2):
        if m % (8 * n) == 0:
            return n
    return 1


def _conv_block_kernel(x_ref, w1_ref, g1_ref, bt1_ref, w2_ref, g2_ref, bt2_ref,
                       o_ref, halo_ref, *, dilation, pad_left, eps,
                       layer1_packed, var_chunks):
    """Fused ConvBlock: (conv3x3 -> BN(train) -> ReLU) x 2, all resident in VMEM.

    x_ref   : packed path: (N, H, W, K1p) bf16 wrapper-built im2col (K1p = 128)
              halo  path : (N, H, W, Cin_p) bf16 channel-padded NHWC input
    w1_ref  : (K1p, Cout_p) or (9*Cin_p, Cout_p) bf16, tap-major / channel-minor
    w2_ref  : (9*Cout_p, Cout_p) bf16
    g*/bt*  : (1, Cout_p) f32 BN gamma / beta (zero in padded channels)
    o_ref   : (N, H, W, Cout_p) bf16 lane-dense output
    halo_ref: (N, H+2d, Wp, C_scr) bf16 shared 'same'-halo scratch (both layers)
    """
    N, H, W, Cout_p = o_ref.shape
    d = dilation
    w0 = pad_left
    Hp = halo_ref.shape[1]
    Wp = halo_ref.shape[2]
    M = N * H * W
    inv_m = 1.0 / M

    def halo_view(cp):
        return halo_ref if cp == halo_ref.shape[-1] else halo_ref.at[:, :, :, :cp]

    def fill_halo(pad_ref, interior):
        # Zero only the halo border; the interior is overwritten right after.
        cp = pad_ref.shape[-1]
        dt = pad_ref.dtype
        pad_ref[:, 0:d, :, :] = jnp.zeros((N, d, Wp, cp), dt)
        pad_ref[:, d + H:Hp, :, :] = jnp.zeros((N, Hp - H - d, Wp, cp), dt)
        pad_ref[:, d:d + H, 0:w0, :] = jnp.zeros((N, H, w0, cp), dt)
        pad_ref[:, d:d + H, w0 + W:Wp, :] = jnp.zeros((N, H, Wp - w0 - W, cp), dt)
        pad_ref[:, d:d + H, w0:w0 + W, :] = interior

    def conv_halo(pad_ref, w_ref, cp):
        # 3x3 dilated conv as 9 accumulating K=cp MXU matmuls (no 9x im2col
        # concat).  Only the 3 W-shifted variants are materialized; the 3 ky
        # taps of each variant are free H-offset reads.
        # TODO(synk): produce the +-d variants with pltpu.roll (XLU sublane
        # rotate) instead of the two sublane-misaligned slices below.
        full = pad_ref[...]                                      # (N, Hp, Wp, cp)
        shifted = [full[:, :, w0 - d:w0 - d + W, :],             # kx = -1
                   full[:, :, w0:w0 + W, :],                     # kx =  0
                   full[:, :, w0 + d:w0 + d + W, :]]             # kx = +1
        acc = None
        for ky in range(3):
            for kx in range(3):
                win = shifted[kx][:, ky * d:ky * d + H, :, :].reshape(M, cp)
                t = ky * 3 + kx
                part = jnp.dot(win, w_ref[t * cp:(t + 1) * cp, :],
                               preferred_element_type=jnp.float32)
                acc = part if acc is None else acc + part
        return acc                                               # (M, Cout_p) f32

    def bn_relu(acc, gamma_ref, beta_ref):
        # Training-mode BatchNorm2d (biased batch variance over N,H,W).
        # Centered, chunked variance pass: no full-size acc^2 temp, no
        # E[x^2]-E[x]^2 cancellation.  Normalize+affine folded into one
        # per-channel FMA, fused with the ReLU.
        mean = jnp.sum(acc, axis=0, keepdims=True) * inv_m
        rows = M // var_chunks
        vsum = jnp.zeros((1, Cout_p), jnp.float32)
        for c in range(var_chunks):
            ch = acc[c * rows:(c + 1) * rows, :] - mean
            vsum = vsum + jnp.sum(ch * ch, axis=0, keepdims=True)
        var = vsum * inv_m
        scale = gamma_ref[...] * jax.lax.rsqrt(var + eps)
        shift = beta_ref[...] - mean * scale
        return jnp.maximum(acc * scale + shift, 0.0)             # (M, Cout_p) f32

    # ---- layer 1: conv1 -> bn1 -> relu ---------------------------------------
    if layer1_packed:
        k1p = x_ref.shape[-1]
        acc1 = jnp.dot(x_ref[...].reshape(M, k1p), w1_ref[...],
                       preferred_element_type=jnp.float32)
    else:
        cin_p = x_ref.shape[-1]
        v1 = halo_view(cin_p)
        fill_halo(v1, x_ref[...])
        acc1 = conv_halo(v1, w1_ref, cin_p)
    h1 = bn_relu(acc1, g1_ref, bt1_ref)

    # ---- layer 2: conv2 -> bn2 -> relu (intermediate never leaves VMEM) ------
    v2 = halo_view(Cout_p)
    fill_halo(v2, h1.reshape(N, H, W, Cout_p).astype(halo_ref.dtype))
    h2 = bn_relu(conv_halo(v2, w2_ref, Cout_p), g2_ref, bt2_ref)

    o_ref[...] = h2.reshape(N, H, W, Cout_p).astype(o_ref.dtype)


def conv_block_forward(x_nchw, params, *, dilation=1, eps=1e-5):
    """Forward of ConvBlock.  x_nchw: (N, Cin, H, W) float32, like PyTorch."""
    N, Cin, H, W = x_nchw.shape
    Cout = params["w1"].shape[0]
    d = dilation

    Cout_p = _round_up(Cout, _LANE)
    pad_l = _round_up(d, _SUBLANE)          # sublane-aligned left halo offset
    Hp, Wp = H + 2 * d, pad_l + W + d
    M = N * H * W

    x_nhwc = jnp.transpose(x_nchw, (0, 2, 3, 1))

    def prep_w_taps(w, cin_p):
        # (Cout, Cin, 3, 3) -> (9*cin_p, Cout_p), tap-major / channel-minor.
        co, ci = w.shape[0], w.shape[1]
        wt = jnp.transpose(w, (2, 3, 1, 0))
        wt = jnp.pad(wt, ((0, 0), (0, 0), (0, cin_p - ci), (0, Cout_p - co)))
        return wt.reshape(9 * cin_p, Cout_p).astype(jnp.bfloat16)

    def prep_v(v):
        return jnp.pad(v, (0, Cout_p - Cout)).reshape(1, Cout_p).astype(jnp.float32)

    # Entry-layer packing: for small Cin, build the layer-1 im2col channel-minor
    # in the wrapper so K = round_up(9*Cin, 128) instead of 9*round_up(Cin, 128).
    layer1_packed = (9 * Cin <= _LANE)
    if layer1_packed:
        K1, K1p = 9 * Cin, _round_up(9 * Cin, _LANE)
        xp = jnp.pad(x_nhwc, ((0, 0), (d, d), (d, d), (0, 0)))
        taps = [xp[:, ky * d:ky * d + H, kx * d:kx * d + W, :]
                for ky in range(3) for kx in range(3)]
        x_in = jnp.concatenate(taps, axis=-1)
        x_in = jnp.pad(x_in, ((0, 0), (0, 0), (0, 0),
                              (0, K1p - K1))).astype(jnp.bfloat16)
        w1 = jnp.transpose(params["w1"], (2, 3, 1, 0)).reshape(K1, Cout)
        w1 = jnp.pad(w1, ((0, K1p - K1), (0, Cout_p - Cout))).astype(jnp.bfloat16)
        c_scr = Cout_p                       # halo scratch only needed by layer 2
    else:
        Cin_p = _round_up(Cin, _LANE)
        x_in = jnp.pad(x_nhwc, ((0, 0), (0, 0), (0, 0),
                                (0, Cin_p - Cin))).astype(jnp.bfloat16)
        w1 = prep_w_taps(params["w1"], Cin_p)
        c_scr = max(Cin_p, Cout_p)           # one halo scratch shared by both layers

    w2 = prep_w_taps(params["w2"], Cout_p)
    g1, bt1 = prep_v(params["gamma1"]), prep_v(params["beta1"])
    g2, bt2 = prep_v(params["gamma2"]), prep_v(params["beta2"])
    # NOTE: conv biases params["b1"]/["b2"] are intentionally NOT passed to the
    # kernel: training-mode BatchNorm subtracts the per-channel batch mean right
    # after the conv, so a constant per-channel bias cancels exactly.

    # Per-generation VMEM budget (v5e/v6e: 128 MiB, v7x: 64 MiB per TensorCore).
    try:
        phys_vmem = int(getattr(pltpu.get_tpu_info(), "vmem_capacity_bytes",
                                64 * 1024 * 1024))
    except Exception:                        # interpret mode / query failure
        phys_vmem = 64 * 1024 * 1024
    vmem_limit = min(phys_vmem * 3 // 4, 100 * 1024 * 1024)

    vmem_est = (
        x_in.size * 2 + (w1.size + w2.size) * 2             # resident bf16 inputs
        + N * Hp * Wp * c_scr * 2                            # shared halo scratch
        + 3 * N * Hp * W * c_scr * 2                         # 3 W-shifted variants
        + 2 * M * Cout_p * 4                                 # f32 acc + live h1
        + M * Cout_p * 2)                                    # bf16 output
    # TODO(synk): for large UNet shapes (e.g. 256x256 spatial, 256 channels) this
    # single fused program exceeds the budget; add a row-tiled grid with a
    # two-pass, cross-tile-accumulated BatchNorm (stats must stay global over
    # N,H,W) and mark the row axis "parallel" so v7x's two TensorCores share it.
    assert vmem_est < vmem_limit, (
        f"fused ConvBlock needs ~{vmem_est / 2**20:.1f} MiB VMEM "
        f"(budget {vmem_limit / 2**20:.0f} MiB on this TPU); a row-tiled grid "
        "with two-pass BatchNorm is required at this size")

    kernel = functools.partial(
        _conv_block_kernel, dilation=d, pad_left=pad_l, eps=eps,
        layer1_packed=layer1_packed, var_chunks=_pick_var_chunks(M))
    vmem = pl.BlockSpec(memory_space=pltpu.MemorySpace.VMEM)

    out = pl.pallas_call(
        kernel,
        out_shape=jax.ShapeDtypeStruct((N, H, W, Cout_p), jnp.bfloat16),
        in_specs=[vmem] * 7,
        out_specs=vmem,
        scratch_shapes=[pltpu.VMEM((N, Hp, Wp, c_scr), jnp.bfloat16)],
        compiler_params=pltpu.CompilerParams(vmem_limit_bytes=vmem_limit),
    )(x_in, w1, g1, bt1, w2, g2, bt2)

    # Drop the channel padding, back to NCHW float32 (PyTorch layout/dtype).
    return jnp.transpose(out[..., :Cout].astype(jnp.float32), (0, 3, 1, 2))


def init_params(key, channel_in, channel_out):
    k1, k2, k3, k4 = jax.random.split(key, 4)
    # Deterministic synthetic init (shapes match nn.Conv2d / nn.BatchNorm2d).
    w1 = 0.1 * jax.random.normal(k1, (channel_out, channel_in, 3, 3), jnp.float32)
    b1 = 0.1 * jax.random.normal(k2, (channel_out,), jnp.float32)
    w2 = 0.1 * jax.random.normal(k3, (channel_out, channel_out, 3, 3), jnp.float32)
    b2 = 0.1 * jax.random.normal(k4, (channel_out,), jnp.float32)
    return dict(
        w1=w1, b1=b1, gamma1=jnp.ones((channel_out,)), beta1=jnp.zeros((channel_out,)),
        w2=w2, b2=b2, gamma2=jnp.ones((channel_out,)), beta2=jnp.zeros((channel_out,)),
    )


def _reference(x_nchw, params, *, dilation=1, eps=1e-5):
    """Pure-JAX f32 reference (lax conv + training-mode BN + ReLU), NCHW."""
    def layer(x, w, b, g, bt):
        y = jax.lax.conv_general_dilated(
            x, w, window_strides=(1, 1), padding="SAME",
            rhs_dilation=(dilation, dilation),
            dimension_numbers=("NCHW", "OIHW", "NCHW"))
        y = y + b[None, :, None, None]
        mean = jnp.mean(y, axis=(0, 2, 3), keepdims=True)
        var = jnp.mean((y - mean) ** 2, axis=(0, 2, 3), keepdims=True)
        y = (y - mean) * jax.lax.rsqrt(var + eps)
        y = y * g[None, :, None, None] + bt[None, :, None, None]
        return jnp.maximum(y, 0.0)

    h = layer(x_nchw, params["w1"], params["b1"], params["gamma1"], params["beta1"])
    h = layer(h, params["w2"], params["b2"], params["gamma2"], params["beta2"])
    return h


if __name__ == "__main__":
    key = jax.random.PRNGKey(0)
    k_x, k_p = jax.random.split(key)

    N, C_IN, C_OUT, H, W = 2, 4, 8, 16, 16
    DILATION = 1

    x = jax.random.normal(k_x, (N, C_IN, H, W), jnp.float32)
    params = init_params(k_p, C_IN, C_OUT)

    out = jax.block_until_ready(conv_block_forward(x, params, dilation=DILATION))
    ref = _reference(x, params, dilation=DILATION)

    assert out.shape == (N, C_OUT, H, W), out.shape
    # bf16 matmul operands + bf16 output store (f32 accumulation / BN math)
    # -> relaxed tolerance vs f32 reference.
    assert jnp.allclose(out, ref, atol=5e-2, rtol=5e-2), \
        float(jnp.max(jnp.abs(out - ref)))

    print("KERNEL_OK")
</pallas_src>

<mosaic_0001>
module attributes {stable_mosaic.version = 11 : i64} {
  func.func @_conv_block_kernel(%arg0: memref<2x16x16x128xbf16, #tpu.memory_space<vmem>>, %arg1: memref<128x128xbf16, #tpu.memory_space<vmem>>, %arg2: memref<1x128xf32, #tpu.memory_space<vmem>>, %arg3: memref<1x128xf32, #tpu.memory_space<vmem>>, %arg4: memref<1152x128xbf16, #tpu.memory_space<vmem>>, %arg5: memref<1x128xf32, #tpu.memory_space<vmem>>, %arg6: memref<1x128xf32, #tpu.memory_space<vmem>>, %arg7: memref<2x16x16x128xbf16, #tpu.memory_space<vmem>>, %arg8: memref<2x18x33x128xbf16, #tpu.memory_space<vmem>>) attributes {dimension_semantics = [], scalar_prefetch = 0 : i64, scratch_operands = 1 : i64, tpu.core_type = #tpu.core_type<tc>} {
    %c0 = arith.constant 0 : index
    %c0_0 = arith.constant 0 : index
    %c0_1 = arith.constant 0 : index
    %c0_2 = arith.constant 0 : index
    %0 = vector.load %arg0[%c0, %c0_0, %c0_1, %c0_2] : memref<2x16x16x128xbf16, #tpu.memory_space<vmem>>, vector<2x16x16x128xbf16>
    %1 = vector.shape_cast %0 : vector<2x16x16x128xbf16> to vector<512x128xbf16>
    %c0_3 = arith.constant 0 : index
    %c0_4 = arith.constant 0 : index
    %2 = vector.load %arg1[%c0_3, %c0_4] : memref<128x128xbf16, #tpu.memory_space<vmem>>, vector<128x128xbf16>
    %cst = arith.constant dense<0.000000e+00> : vector<512x128xf32>
    %3 = tpu.matmul %1, %2, %cst {dimension_numbers = #tpu.dot_dimension_numbers<[1], [0], [0], [1], [0, 0, 1, 1], [], []>} : vector<512x128xbf16>, vector<128x128xbf16>, vector<512x128xf32> -> vector<512x128xf32>
    %cst_5 = arith.constant dense<0.000000e+00> : vector<128xf32>
    %4 = vector.multi_reduction <add>, %3, %cst_5 [0] : vector<512x128xf32> to vector<128xf32>
    %5 = vector.shape_cast %4 : vector<128xf32> to vector<1x128xf32>
    %cst_6 = arith.constant 0.001953125 : f32
    %6 = vector.broadcast %cst_6 : f32 to vector<1x128xf32>
    %7 = arith.mulf %5, %6 : vector<1x128xf32>
    %cst_7 = arith.constant 0.000000e+00 : f32
    %8 = vector.broadcast %cst_7 : f32 to vector<1x128xf32>
    %9 = vector.extract_strided_slice %3 {offsets = [0, 0], sizes = [64, 128], strides = [1, 1]} : vector<512x128xf32> to vector<64x128xf32>
    %10 = vector.broadcast %7 : vector<1x128xf32> to vector<64x128xf32>
    %11 = arith.subf %9, %10 : vector<64x128xf32>
    %12 = arith.mulf %11, %11 : vector<64x128xf32>
    %cst_8 = arith.constant dense<0.000000e+00> : vector<128xf32>
    %13 = vector.multi_reduction <add>, %12, %cst_8 [0] : vector<64x128xf32> to vector<128xf32>
    %14 = vector.shape_cast %13 : vector<128xf32> to vector<1x128xf32>
    %15 = arith.addf %8, %14 : vector<1x128xf32>
    %16 = vector.extract_strided_slice %3 {offsets = [64, 0], sizes = [64, 128], strides = [1, 1]} : vector<512x128xf32> to vector<64x128xf32>
    %17 = vector.broadcast %7 : vector<1x128xf32> to vector<64x128xf32>
    %18 = arith.subf %16, %17 : vector<64x128xf32>
    %19 = arith.mulf %18, %18 : vector<64x128xf32>
    %cst_9 = arith.constant dense<0.000000e+00> : vector<128xf32>
    %20 = vector.multi_reduction <add>, %19, %cst_9 [0] : vector<64x128xf32> to vector<128xf32>
    %21 = vector.shape_cast %20 : vector<128xf32> to vector<1x128xf32>
    %22 = arith.addf %15, %21 : vector<1x128xf32>
    %23 = vector.extract_strided_slice %3 {offsets = [128, 0], sizes = [64, 128], strides = [1, 1]} : vector<512x128xf32> to vector<64x128xf32>
    %24 = vector.broadcast %7 : vector<1x128xf32> to vector<64x128xf32>
    %25 = arith.subf %23, %24 : vector<64x128xf32>
    %26 = arith.mulf %25, %25 : vector<64x128xf32>
    %cst_10 = arith.constant dense<0.000000e+00> : vector<128xf32>
    %27 = vector.multi_reduction <add>, %26, %cst_10 [0] : vector<64x128xf32> to vector<128xf32>
    %28 = vector.shape_cast %27 : vector<128xf32> to vector<1x128xf32>
    %29 = arith.addf %22, %28 : vector<1x128xf32>
    %30 = vector.extract_strided_slice %3 {offsets = [192, 0], sizes = [64, 128], strides = [1, 1]} : vector<512x128xf32> to vector<64x128xf32>
    %31 = vector.broadcast %7 : vector<1x128xf32> to vector<64x128xf32>
    %32 = arith.subf %30, %31 : vector<64x128xf32>
    %33 = arith.mulf %32, %32 : vector<64x128xf32>
    %cst_11 = arith.constant dense<0.000000e+00> : vector<128xf32>
    %34 = vector.multi_reduction <add>, %33, %cst_11 [0] : vector<64x128xf32> to vector<128xf32>
    %35 = vector.shape_cast %34 : vector<128xf32> to vector<1x128xf32>
    %36 = arith.addf %29, %35 : vector<1x128xf32>
    %37 = vector.extract_strided_slice %3 {offsets = [256, 0], sizes = [64, 128], strides = [1, 1]} : vector<512x128xf32> to vector<64x128xf32>
    %38 = vector.broadcast %7 : vector<1x128xf32> to vector<64x128xf32>
    %39 = arith.subf %37, %38 : vector<64x128xf32>
    %40 = arith.mulf %39, %39 : vector<64x128xf32>
    %cst_12 = arith.constant dense<0.000000e+00> : vector<128xf32>
    %41 = vector.multi_reduction <add>, %40, %cst_12 [0] : vector<64x128xf32> to vector<128xf32>
    %42 = vector.shape_cast %41 : vector<128xf32> to vector<1x128xf32>
    %43 = arith.addf %36, %42 : vector<1x128xf32>
    %44 = vector.extract_strided_slice %3 {offsets = [320, 0], sizes = [64, 128], strides = [1, 1]} : vector<512x128xf32> to vector<64x128xf32>
    %45 = vector.broadcast %7 : vector<1x128xf32> to vector<64x128xf32>
    %46 = arith.subf %44, %45 : vector<64x128xf32>
    %47 = arith.mulf %46, %46 : vector<64x128xf32>
    %cst_13 = arith.constant dense<0.000000e+00> : vector<128xf32>
    %48 = vector.multi_reduction <add>, %47, %cst_13 [0] : vector<64x128xf32> to vector<128xf32>
    %49 = vector.shape_cast %48 : vector<128xf32> to vector<1x128xf32>
    %50 = arith.addf %43, %49 : vector<1x128xf32>
    %51 = vector.extract_strided_slice %3 {offsets = [384, 0], sizes = [64, 128], strides = [1, 1]} : vector<512x128xf32> to vector<64x128xf32>
    %52 = vector.broadcast %7 : vector<1x128xf32> to vector<64x128xf32>
    %53 = arith.subf %51, %52 : vector<64x128xf32>
    %54 = arith.mulf %53, %53 : vector<64x128xf32>
    %cst_14 = arith.constant dense<0.000000e+00> : vector<128xf32>
    %55 = vector.multi_reduction <add>, %54, %cst_14 [0] : vector<64x128xf32> to vector<128xf32>
    %56 = vector.shape_cast %55 : vector<128xf32> to vector<1x128xf32>
    %57 = arith.addf %50, %56 : vector<1x128xf32>
    %58 = vector.extract_strided_slice %3 {offsets = [448, 0], sizes = [64, 128], strides = [1, 1]} : vector<512x128xf32> to vector<64x128xf32>
    %59 = vector.broadcast %7 : vector<1x128xf32> to vector<64x128xf32>
    %60 = arith.subf %58, %59 : vector<64x128xf32>
    %61 = arith.mulf %60, %60 : vector<64x128xf32>
    %cst_15 = arith.constant dense<0.000000e+00> : vector<128xf32>
    %62 = vector.multi_reduction <add>, %61, %cst_15 [0] : vector<64x128xf32> to vector<128xf32>
    %63 = vector.shape_cast %62 : vector<128xf32> to vector<1x128xf32>
    %64 = arith.addf %57, %63 : vector<1x128xf32>
    %cst_16 = arith.constant 0.001953125 : f32
    %65 = vector.broadcast %cst_16 : f32 to vector<1x128xf32>
    %66 = arith.mulf %64, %65 : vector<1x128xf32>
    %c0_17 = arith.constant 0 : index
    %c0_18 = arith.constant 0 : index
    %67 = vector.load %arg2[%c0_17, %c0_18] : memref<1x128xf32, #tpu.memory_space<vmem>>, vector<1x128xf32>
    %cst_19 = arith.constant 9.99999974E-6 : f32
    %68 = vector.broadcast %cst_19 : f32 to vector<1x128xf32>
    %69 = arith.addf %66, %68 : vector<1x128xf32>
    %70 = math.rsqrt %69 : vector<1x128xf32>
    %71 = arith.mulf %67, %70 : vector<1x128xf32>
    %c0_20 = arith.constant 0 : index
    %c0_21 = arith.constant 0 : index
    %72 = vector.load %arg3[%c0_20, %c0_21] : memref<1x128xf32, #tpu.memory_space<vmem>>, vector<1x128xf32>
    %73 = arith.mulf %7, %71 : vector<1x128xf32>
    %74 = arith.subf %72, %73 : vector<1x128xf32>
    %75 = vector.broadcast %71 : vector<1x128xf32> to vector<512x128xf32>
    %76 = arith.mulf %3, %75 : vector<512x128xf32>
    %77 = vector.broadcast %74 : vector<1x128xf32> to vector<512x128xf32>
    %78 = arith.addf %76, %77 : vector<512x128xf32>
    %cst_22 = arith.constant 0.000000e+00 : f32
    %79 = vector.broadcast %cst_22 : f32 to vector<512x128xf32>
    %80 = arith.maximumf %78, %79 : vector<512x128xf32>
    %81 = vector.shape_cast %80 : vector<512x128xf32> to vector<2x16x16x128xf32>
    %82 = arith.truncf %81 : vector<2x16x16x128xf32> to vector<2x16x16x128xbf16>
    %cst_23 = arith.constant 0.000000e+00 : bf16
    %83 = vector.broadcast %cst_23 : bf16 to vector<2x1x33x128xbf16>
    %c0_24 = arith.constant 0 : index
    %c0_25 = arith.constant 0 : index
    %c0_26 = arith.constant 0 : index
    %c0_27 = arith.constant 0 : index
    %84 = vector.load %arg8[%c0_24, %c0_25, %c0_26, %c0_27] : memref<2x18x33x128xbf16, #tpu.memory_space<vmem>>, vector<2x1x33x128xbf16>
    tpu.vector_store %arg8[%c0_24, %c0_25, %c0_26, %c0_27], %83 {strides = array<i32>} : memref<2x18x33x128xbf16, #tpu.memory_space<vmem>>, vector<2x1x33x128xbf16>,
    %cst_28 = arith.constant 0.000000e+00 : bf16
    %85 = vector.broadcast %cst_28 : bf16 to vector<2x1x33x128xbf16>
    %c0_29 = arith.constant 0 : index
    %c17 = arith.constant 17 : index
    %c0_30 = arith.constant 0 : index
    %c0_31 = arith.constant 0 : index
    %86 = vector.load %arg8[%c0_29, %c17, %c0_30, %c0_31] : memref<2x18x33x128xbf16, #tpu.memory_space<vmem>>, vector<2x1x33x128xbf16>
    tpu.vector_store %arg8[%c0_29, %c17, %c0_30, %c0_31], %85 {strides = array<i32>} : memref<2x18x33x128xbf16, #tpu.memory_space<vmem>>, vector<2x1x33x128xbf16>,
    %cst_32 = arith.constant 0.000000e+00 : bf16
    %87 = vector.broadcast %cst_32 : bf16 to vector<2x16x16x128xbf16>
    %c0_33 = arith.constant 0 : index
    %c1 = arith.constant 1 : index
    %c0_34 = arith.constant 0 : index
    %c0_35 = arith.constant 0 : index
    %88 = vector.load %arg8[%c0_33, %c1, %c0_34, %c0_35] : memref<2x18x33x128xbf16, #tpu.memory_space<vmem>>, vector<2x16x16x128xbf16>
    tpu.vector_store %arg8[%c0_33, %c1, %c0_34, %c0_35], %87 {strides = array<i32>} : memref<2x18x33x128xbf16, #tpu.memory_space<vmem>>, vector<2x16x16x128xbf16>,
    %cst_36 = arith.constant 0.000000e+00 : bf16
    %89 = vector.broadcast %cst_36 : bf16 to vector<2x16x1x128xbf16>
    %c0_37 = arith.constant 0 : index
    %c1_38 = arith.constant 1 : index
    %c32 = arith.constant 32 : index
    %c0_39 = arith.constant 0 : index
    %90 = vector.load %arg8[%c0_37, %c1_38, %c32, %c0_39] : memref<2x18x33x128xbf16, #tpu.memory_space<vmem>>, vector<2x16x1x128xbf16>
    tpu.vector_store %arg8[%c0_37, %c1_38, %c32, %c0_39], %89 {strides = array<i32>} : memref<2x18x33x128xbf16, #tpu.memory_space<vmem>>, vector<2x16x1x128xbf16>,
    %c0_40 = arith.constant 0 : index
    %c1_41 = arith.constant 1 : index
    %c16 = arith.constant 16 : index
    %c0_42 = arith.constant 0 : index
    %91 = vector.load %arg8[%c0_40, %c1_41, %c16, %c0_42] : memref<2x18x33x128xbf16, #tpu.memory_space<vmem>>, vector<2x16x16x128xbf16>
    tpu.vector_store %arg8[%c0_40, %c1_41, %c16, %c0_42], %82 {strides = array<i32>} : memref<2x18x33x128xbf16, #tpu.memory_space<vmem>>, vector<2x16x16x128xbf16>,
    %c0_43 = arith.constant 0 : index
    %c0_44 = arith.constant 0 : index
    %c0_45 = arith.constant 0 : index
    %c0_46 = arith.constant 0 : index
    %92 = vector.load %arg8[%c0_43, %c0_44, %c0_45, %c0_46] : memref<2x18x33x128xbf16, #tpu.memory_space<vmem>>, vector<2x18x33x128xbf16>
    %93 = vector.extract_strided_slice %92 {offsets = [0, 0, 15, 0], sizes = [2, 18, 16, 128], strides = [1, 1, 1, 1]} : vector<2x18x33x128xbf16> to vector<2x18x16x128xbf16>
    %94 = vector.extract_strided_slice %92 {offsets = [0, 0, 16, 0], sizes = [2, 18, 16, 128], strides = [1, 1, 1, 1]} : vector<2x18x33x128xbf16> to vector<2x18x16x128xbf16>
    %95 = vector.extract_strided_slice %92 {offsets = [0, 0, 17, 0], sizes = [2, 18, 16, 128], strides = [1, 1, 1, 1]} : vector<2x18x33x128xbf16> to vector<2x18x16x128xbf16>
    %96 = vector.extract_strided_slice %93 {offsets = [0, 0, 0, 0], sizes = [2, 16, 16, 128], strides = [1, 1, 1, 1]} : vector<2x18x16x128xbf16> to vector<2x16x16x128xbf16>
    %97 = vector.shape_cast %96 : vector<2x16x16x128xbf16> to vector<512x128xbf16>
    %c0_47 = arith.constant 0 : index
    %c0_48 = arith.constant 0 : index
    %98 = vector.load %arg4[%c0_47, %c0_48] : memref<1152x128xbf16, #tpu.memory_space<vmem>>, vector<128x128xbf16>
    %cst_49 = arith.constant dense<0.000000e+00> : vector<512x128xf32>
    %99 = tpu.matmul %97, %98, %cst_49 {dimension_numbers = #tpu.dot_dimension_numbers<[1], [0], [0], [1], [0, 0, 1, 1], [], []>} : vector<512x128xbf16>, vector<128x128xbf16>, vector<512x128xf32> -> vector<512x128xf32>
    %100 = vector.extract_strided_slice %94 {offsets = [0, 0, 0, 0], sizes = [2, 16, 16, 128], strides = [1, 1, 1, 1]} : vector<2x18x16x128xbf16> to vector<2x16x16x128xbf16>
    %101 = vector.shape_cast %100 : vector<2x16x16x128xbf16> to vector<512x128xbf16>
    %c128 = arith.constant 128 : index
    %c0_50 = arith.constant 0 : index
    %102 = vector.load %arg4[%c128, %c0_50] : memref<1152x128xbf16, #tpu.memory_space<vmem>>, vector<128x128xbf16>
    %cst_51 = arith.constant dense<0.000000e+00> : vector<512x128xf32>
    %103 = tpu.matmul %101, %102, %cst_51 {dimension_numbers = #tpu.dot_dimension_numbers<[1], [0], [0], [1], [0, 0, 1, 1], [], []>} : vector<512x128xbf16>, vector<128x128xbf16>, vector<512x128xf32> -> vector<512x128xf32>
    %104 = arith.addf %99, %103 : vector<512x128xf32>
    %105 = vector.extract_strided_slice %95 {offsets = [0, 0, 0, 0], sizes = [2, 16, 16, 128], strides = [1, 1, 1, 1]} : vector<2x18x16x128xbf16> to vector<2x16x16x128xbf16>
    %106 = vector.shape_cast %105 : vector<2x16x16x128xbf16> to vector<512x128xbf16>
    %c256 = arith.constant 256 : index
    %c0_52 = arith.constant 0 : index
    %107 = vector.load %arg4[%c256, %c0_52] : memref<1152x128xbf16, #tpu.memory_space<vmem>>, vector<128x128xbf16>
    %cst_53 = arith.constant dense<0.000000e+00> : vector<512x128xf32>
    %108 = tpu.matmul %106, %107, %cst_53 {dimension_numbers = #tpu.dot_dimension_numbers<[1], [0], [0], [1], [0, 0, 1, 1], [], []>} : vector<512x128xbf16>, vector<128x128xbf16>, vector<512x128xf32> -> vector<512x128xf32>
    %109 = arith.addf %104, %108 : vector<512x128xf32>
    %110 = vector.extract_strided_slice %93 {offsets = [0, 1, 0, 0], sizes = [2, 16, 16, 128], strides = [1, 1, 1, 1]} : vector<2x18x16x128xbf16> to vector<2x16x16x128xbf16>
    %111 = vector.shape_cast %110 : vector<2x16x16x128xbf16> to vector<512x128xbf16>
    %c384 = arith.constant 384 : index
    %c0_54 = arith.constant 0 : index
    %112 = vector.load %arg4[%c384, %c0_54] : memref<1152x128xbf16, #tpu.memory_space<vmem>>, vector<128x128xbf16>
    %cst_55 = arith.constant dense<0.000000e+00> : vector<512x128xf32>
    %113 = tpu.matmul %111, %112, %cst_55 {dimension_numbers = #tpu.dot_dimension_numbers<[1], [0], [0], [1], [0, 0, 1, 1], [], []>} : vector<512x128xbf16>, vector<128x128xbf16>, vector<512x128xf32> -> vector<512x128xf32>
    %114 = arith.addf %109, %113 : vector<512x128xf32>
    %115 = vector.extract_strided_slice %94 {offsets = [0, 1, 0, 0], sizes = [2, 16, 16, 128], strides = [1, 1, 1, 1]} : vector<2x18x16x128xbf16> to vector<2x16x16x128xbf16>
    %116 = vector.shape_cast %115 : vector<2x16x16x128xbf16> to vector<512x128xbf16>
    %c512 = arith.constant 512 : index
    %c0_56 = arith.constant 0 : index
    %117 = vector.load %arg4[%c512, %c0_56] : memref<1152x128xbf16, #tpu.memory_space<vmem>>, vector<128x128xbf16>
    %cst_57 = arith.constant dense<0.000000e+00> : vector<512x128xf32>
    %118 = tpu.matmul %116, %117, %cst_57 {dimension_numbers = #tpu.dot_dimension_numbers<[1], [0], [0], [1], [0, 0, 1, 1], [], []>} : vector<512x128xbf16>, vector<128x128xbf16>, vector<512x128xf32> -> vector<512x128xf32>
    %119 = arith.addf %114, %118 : vector<512x128xf32>
    %120 = vector.extract_strided_slice %95 {offsets = [0, 1, 0, 0], sizes = [2, 16, 16, 128], strides = [1, 1, 1, 1]} : vector<2x18x16x128xbf16> to vector<2x16x16x128xbf16>
    %121 = vector.shape_cast %120 : vector<2x16x16x128xbf16> to vector<512x128xbf16>
    %c640 = arith.constant 640 : index
    %c0_58 = arith.constant 0 : index
    %122 = vector.load %arg4[%c640, %c0_58] : memref<1152x128xbf16, #tpu.memory_space<vmem>>, vector<128x128xbf16>
    %cst_59 = arith.constant dense<0.000000e+00> : vector<512x128xf32>
    %123 = tpu.matmul %121, %122, %cst_59 {dimension_numbers = #tpu.dot_dimension_numbers<[1], [0], [0], [1], [0, 0, 1, 1], [], []>} : vector<512x128xbf16>, vector<128x128xbf16>, vector<512x128xf32> -> vector<512x128xf32>
    %124 = arith.addf %119, %123 : vector<512x128xf32>
    %125 = vector.extract_strided_slice %93 {offsets = [0, 2, 0, 0], sizes = [2, 16, 16, 128], strides = [1, 1, 1, 1]} : vector<2x18x16x128xbf16> to vector<2x16x16x128xbf16>
    %126 = vector.shape_cast %125 : vector<2x16x16x128xbf16> to vector<512x128xbf16>
    %c768 = arith.constant 768 : index
    %c0_60 = arith.constant 0 : index
    %127 = vector.load %arg4[%c768, %c0_60] : memref<1152x128xbf16, #tpu.memory_space<vmem>>, vector<128x128xbf16>
    %cst_61 = arith.constant dense<0.000000e+00> : vector<512x128xf32>
    %128 = tpu.matmul %126, %127, %cst_61 {dimension_numbers = #tpu.dot_dimension_numbers<[1], [0], [0], [1], [0, 0, 1, 1], [], []>} : vector<512x128xbf16>, vector<128x128xbf16>, vector<512x128xf32> -> vector<512x128xf32>
    %129 = arith.addf %124, %128 : vector<512x128xf32>
    %130 = vector.extract_strided_slice %94 {offsets = [0, 2, 0, 0], sizes = [2, 16, 16, 128], strides = [1, 1, 1, 1]} : vector<2x18x16x128xbf16> to vector<2x16x16x128xbf16>
    %131 = vector.shape_cast %130 : vector<2x16x16x128xbf16> to vector<512x128xbf16>
    %c896 = arith.constant 896 : index
    %c0_62 = arith.constant 0 : index
    %132 = vector.load %arg4[%c896, %c0_62] : memref<1152x128xbf16, #tpu.memory_space<vmem>>, vector<128x128xbf16>
    %cst_63 = arith.constant dense<0.000000e+00> : vector<512x128xf32>
    %133 = tpu.matmul %131, %132, %cst_63 {dimension_numbers = #tpu.dot_dimension_numbers<[1], [0], [0], [1], [0, 0, 1, 1], [], []>} : vector<512x128xbf16>, vector<128x128xbf16>, vector<512x128xf32> -> vector<512x128xf32>
    %134 = arith.addf %129, %133 : vector<512x128xf32>
    %135 = vector.extract_strided_slice %95 {offsets = [0, 2, 0, 0], sizes = [2, 16, 16, 128], strides = [1, 1, 1, 1]} : vector<2x18x16x128xbf16> to vector<2x16x16x128xbf16>
    %136 = vector.shape_cast %135 : vector<2x16x16x128xbf16> to vector<512x128xbf16>
    %c1024 = arith.constant 1024 : index
    %c0_64 = arith.constant 0 : index
    %137 = vector.load %arg4[%c1024, %c0_64] : memref<1152x128xbf16, #tpu.memory_space<vmem>>, vector<128x128xbf16>
    %cst_65 = arith.constant dense<0.000000e+00> : vector<512x128xf32>
    %138 = tpu.matmul %136, %137, %cst_65 {dimension_numbers = #tpu.dot_dimension_numbers<[1], [0], [0], [1], [0, 0, 1, 1], [], []>} : vector<512x128xbf16>, vector<128x128xbf16>, vector<512x128xf32> -> vector<512x128xf32>
    %139 = arith.addf %134, %138 : vector<512x128xf32>
    %cst_66 = arith.constant dense<0.000000e+00> : vector<128xf32>
    %140 = vector.multi_reduction <add>, %139, %cst_66 [0] : vector<512x128xf32> to vector<128xf32>
    %141 = vector.shape_cast %140 : vector<128xf32> to vector<1x128xf32>
    %cst_67 = arith.constant 0.001953125 : f32
    %142 = vector.broadcast %cst_67 : f32 to vector<1x128xf32>
    %143 = arith.mulf %141, %142 : vector<1x128xf32>
    %cst_68 = arith.constant 0.000000e+00 : f32
    %144 = vector.broadcast %cst_68 : f32 to vector<1x128xf32>
    %145 = vector.extract_strided_slice %139 {offsets = [0, 0], sizes = [64, 128], strides = [1, 1]} : vector<512x128xf32> to vector<64x128xf32>
    %146 = vector.broadcast %143 : vector<1x128xf32> to vector<64x128xf32>
    %147 = arith.subf %145, %146 : vector<64x128xf32>
    %148 = arith.mulf %147, %147 : vector<64x128xf32>
    %cst_69 = arith.constant dense<0.000000e+00> : vector<128xf32>
    %149 = vector.multi_reduction <add>, %148, %cst_69 [0] : vector<64x128xf32> to vector<128xf32>
    %150 = vector.shape_cast %149 : vector<128xf32> to vector<1x128xf32>
    %151 = arith.addf %144, %150 : vector<1x128xf32>
    %152 = vector.extract_strided_slice %139 {offsets = [64, 0], sizes = [64, 128], strides = [1, 1]} : vector<512x128xf32> to vector<64x128xf32>
    %153 = vector.broadcast %143 : vector<1x128xf32> to vector<64x128xf32>
    %154 = arith.subf %152, %153 : vector<64x128xf32>
    %155 = arith.mulf %154, %154 : vector<64x128xf32>
    %cst_70 = arith.constant dense<0.000000e+00> : vector<128xf32>
    %156 = vector.multi_reduction <add>, %155, %cst_70 [0] : vector<64x128xf32> to vector<128xf32>
    %157 = vector.shape_cast %156 : vector<128xf32> to vector<1x128xf32>
    %158 = arith.addf %151, %157 : vector<1x128xf32>
    %159 = vector.extract_strided_slice %139 {offsets = [128, 0], sizes = [64, 128], strides = [1, 1]} : vector<512x128xf32> to vector<64x128xf32>
    %160 = vector.broadcast %143 : vector<1x128xf32> to vector<64x128xf32>
    %161 = arith.subf %159, %160 : vector<64x128xf32>
    %162 = arith.mulf %161, %161 : vector<64x128xf32>
    %cst_71 = arith.constant dense<0.000000e+00> : vector<128xf32>
    %163 = vector.multi_reduction <add>, %162, %cst_71 [0] : vector<64x128xf32> to vector<128xf32>
    %164 = vector.shape_cast %163 : vector<128xf32> to vector<1x128xf32>
    %165 = arith.addf %158, %164 : vector<1x128xf32>
    %166 = vector.extract_strided_slice %139 {offsets = [192, 0], sizes = [64, 128], strides = [1, 1]} : vector<512x128xf32> to vector<64x128xf32>
    %167 = vector.broadcast %143 : vector<1x128xf32> to vector<64x128xf32>
    %168 = arith.subf %166, %167 : vector<64x128xf32>
    %169 = arith.mulf %168, %168 : vector<64x128xf32>
    %cst_72 = arith.constant dense<0.000000e+00> : vector<128xf32>
    %170 = vector.multi_reduction <add>, %169, %cst_72 [0] : vector<64x128xf32> to vector<128xf32>
    %171 = vector.shape_cast %170 : vector<128xf32> to vector<1x128xf32>
    %172 = arith.addf %165, %171 : vector<1x128xf32>
    %173 = vector.extract_strided_slice %139 {offsets = [256, 0], sizes = [64, 128], strides = [1, 1]} : vector<512x128xf32> to vector<64x128xf32>
    %174 = vector.broadcast %143 : vector<1x128xf32> to vector<64x128xf32>
    %175 = arith.subf %173, %174 : vector<64x128xf32>
    %176 = arith.mulf %175, %175 : vector<64x128xf32>
    %cst_73 = arith.constant dense<0.000000e+00> : vector<128xf32>
    %177 = vector.multi_reduction <add>, %176, %cst_73 [0] : vector<64x128xf32> to vector<128xf32>
    %178 = vector.shape_cast %177 : vector<128xf32> to vector<1x128xf32>
    %179 = arith.addf %172, %178 : vector<1x128xf32>
    %180 = vector.extract_strided_slice %139 {offsets = [320, 0], sizes = [64, 128], strides = [1, 1]} : vector<512x128xf32> to vector<64x128xf32>
    %181 = vector.broadcast %143 : vector<1x128xf32> to vector<64x128xf32>
    %182 = arith.subf %180, %181 : vector<64x128xf32>
    %183 = arith.mulf %182, %182 : vector<64x128xf32>
    %cst_74 = arith.constant dense<0.000000e+00> : vector<128xf32>
    %184 = vector.multi_reduction <add>, %183, %cst_74 [0] : vector<64x128xf32> to vector<128xf32>
    %185 = vector.shape_cast %184 : vector<128xf32> to vector<1x128xf32>
    %186 = arith.addf %179, %185 : vector<1x128xf32>
    %187 = vector.extract_strided_slice %139 {offsets = [384, 0], sizes = [64, 128], strides = [1, 1]} : vector<512x128xf32> to vector<64x128xf32>
    %188 = vector.broadcast %143 : vector<1x128xf32> to vector<64x128xf32>
    %189 = arith.subf %187, %188 : vector<64x128xf32>
    %190 = arith.mulf %189, %189 : vector<64x128xf32>
    %cst_75 = arith.constant dense<0.000000e+00> : vector<128xf32>
    %191 = vector.multi_reduction <add>, %190, %cst_75 [0] : vector<64x128xf32> to vector<128xf32>
    %192 = vector.shape_cast %191 : vector<128xf32> to vector<1x128xf32>
    %193 = arith.addf %186, %192 : vector<1x128xf32>
    %194 = vector.extract_strided_slice %139 {offsets = [448, 0], sizes = [64, 128], strides = [1, 1]} : vector<512x128xf32> to vector<64x128xf32>
    %195 = vector.broadcast %143 : vector<1x128xf32> to vector<64x128xf32>
    %196 = arith.subf %194, %195 : vector<64x128xf32>
    %197 = arith.mulf %196, %196 : vector<64x128xf32>
    %cst_76 = arith.constant dense<0.000000e+00> : vector<128xf32>
    %198 = vector.multi_reduction <add>, %197, %cst_76 [0] : vector<64x128xf32> to vector<128xf32>
    %199 = vector.shape_cast %198 : vector<128xf32> to vector<1x128xf32>
    %200 = arith.addf %193, %199 : vector<1x128xf32>
    %cst_77 = arith.constant 0.001953125 : f32
    %201 = vector.broadcast %cst_77 : f32 to vector<1x128xf32>
    %202 = arith.mulf %200, %201 : vector<1x128xf32>
    %c0_78 = arith.constant 0 : index
    %c0_79 = arith.constant 0 : index
    %203 = vector.load %arg5[%c0_78, %c0_79] : memref<1x128xf32, #tpu.memory_space<vmem>>, vector<1x128xf32>
    %cst_80 = arith.constant 9.99999974E-6 : f32
    %204 = vector.broadcast %cst_80 : f32 to vector<1x128xf32>
    %205 = arith.addf %202, %204 : vector<1x128xf32>
    %206 = math.rsqrt %205 : vector<1x128xf32>
    %207 = arith.mulf %203, %206 : vector<1x128xf32>
    %c0_81 = arith.constant 0 : index
    %c0_82 = arith.constant 0 : index
    %208 = vector.load %arg6[%c0_81, %c0_82] : memref<1x128xf32, #tpu.memory_space<vmem>>, vector<1x128xf32>
    %209 = arith.mulf %143, %207 : vector<1x128xf32>
    %210 = arith.subf %208, %209 : vector<1x128xf32>
    %211 = vector.broadcast %207 : vector<1x128xf32> to vector<512x128xf32>
    %212 = arith.mulf %139, %211 : vector<512x128xf32>
    %213 = vector.broadcast %210 : vector<1x128xf32> to vector<512x128xf32>
    %214 = arith.addf %212, %213 : vector<512x128xf32>
    %cst_83 = arith.constant 0.000000e+00 : f32
    %215 = vector.broadcast %cst_83 : f32 to vector<512x128xf32>
    %216 = arith.maximumf %214, %215 : vector<512x128xf32>
    %217 = vector.shape_cast %216 : vector<512x128xf32> to vector<2x16x16x128xf32>
    %218 = arith.truncf %217 : vector<2x16x16x128xf32> to vector<2x16x16x128xbf16>
    %c0_84 = arith.constant 0 : index
    %c0_85 = arith.constant 0 : index
    %c0_86 = arith.constant 0 : index
    %c0_87 = arith.constant 0 : index
    %219 = vector.load %arg7[%c0_84, %c0_85, %c0_86, %c0_87] : memref<2x16x16x128xbf16, #tpu.memory_space<vmem>>, vector<2x16x16x128xbf16>
    tpu.vector_store %arg7[%c0_84, %c0_85, %c0_86, %c0_87], %218 {strides = array<i32>} : memref<2x16x16x128xbf16, #tpu.memory_space<vmem>>, vector<2x16x16x128xbf16>,
    return
  }
}

</mosaic_0001>

<bundles_post_ra>
// kernel: tpu_custom_call.1
= control target key start
LH: loop header
LB: loop body
LE: loop exit
PB: predicated region body
PF: predicated region fallthrough
CT: control target
= control target key end

     0   :  { %12 = vsyncpa [#allocation4], 0  ;;  %s15080_s0 = inlined_call_operand.hbm [shape: bf16[2,16,16,128], index: 0, kind: input, shape index: {}]   ;;  %s15081_s1 = inlined_call_operand.hbm [shape: bf16[128,128], index: 1, kind: input, shape index: {}]   ;;  %s15082_s2 = inlined_call_operand.vmem [shape: f32[1,128], index: 2, kind: input, shape index: {}]   ;;  %s15083_s3 = inlined_call_operand.vmem [shape: f32[1,128], index: 3, kind: input, shape index: {}]   ;;  %s15084_s4 = inlined_call_operand.hbm [shape: bf16[1152,128], index: 4, kind: input, shape index: {}]   ;;  %s15085_s5 = inlined_call_operand.vmem [shape: f32[1,128], index: 5, kind: input, shape index: {}]   ;;  %s15086_s6 = inlined_call_operand.vmem [shape: f32[1,128], index: 6, kind: input, shape index: {}]   ;;  %s15087_s7 = inlined_call_operand.hbm [shape: bf16[2,16,16,128], index: 7, kind: output, shape index: {}]  }
   0x1   :  { %13 = vsyncpa [#allocation7], 0 }
   0x2   :  { %14 = vsyncpa [#allocation5], 0  ;;  %s10392_s24 = smov [#allocation6]   ;;  %s10393_s26 = smov [#allocation3]  }
   0x3   :  { %s32_s25 = sshll.u32 %s10392_s24, 4  ;;  %s20_s27 = sshll.u32 %s10393_s26, 4  ;;  %s33_s25 = int_to_ptr.vmem [resolvable:$true] %s32_s25  ;;  %s21_s27 = int_to_ptr.vmem [resolvable:$true] %s20_s27 }
   0x4   :  { %s10314_s28 = scalar_lea.vmem %s33_s25, 1024  ;;  %p10319_p1 = scmp.lt.s32.totalorder %s33_s25, %s33_s25 }
   0x5   :  { %p10315_p0 = scmp.ne.s32.totalorder %s33_s25, %s10314_s28  ;;  %p10320_p2 = scmp.lt.s32.totalorder %s10314_s28, %s10314_s28 }
   0x7   :  { %p10321_p3 = por %p10320_p2, %p10319_p1 }
   0x9   :  { %p10322_p4 = pnand %p10321_p3, %p10315_p0 }
   0xb   :  { %10325 = shalt.err (!%p10322_p4)
}
   0xc   :  { %s10394_s29 = smov 64   ;;  %s10395_s30 = smov 4  }
   0xd   :  { %38 = dma.hbm_to_vmem [thread:$0]  %s15081_s1, 1024, %s33_s25, [#allocation7], %s10394_s29, %s10394_s29, %s10395_s30  }
   0xe   :  { %s10334_s10 = scalar_lea.vmem %s21_s27, 4096  ;;  %p10339_p6 = scmp.lt.s32.totalorder %s21_s27, %s21_s27 }
   0xf   :  { %p10335_p5 = scmp.ne.s32.totalorder %s21_s27, %s10334_s10  ;;  %p10340_p7 = scmp.lt.s32.totalorder %s10334_s10, %s10334_s10 }
  0x11   :  { %p10341_p8 = por %p10340_p7, %p10339_p6 }
  0x13   :  { %p10342_p9 = pnand %p10341_p8, %p10335_p5 }
  0x15   :  { %10345 = shalt.err (!%p10342_p9)
}
  0x16   :  { %26 = dma.hbm_to_vmem [thread:$0]  %s15080_s0, 4096, %s21_s27, [#allocation4], %s10394_s29, %s10394_s29, %s10395_s30  }
  0x17   :  { %s10396_s13 = smov [#allocation8]  }
  0x18   :  { %s48_s14 = sshll.u32 %s10396_s13, 4  ;;  %s49_s14 = int_to_ptr.vmem [resolvable:$true] %s48_s14 }
  0x19   :  { %s10354_s15 = scalar_lea.vmem %s49_s14, 9216  ;;  %p10359_p11 = scmp.lt.s32.totalorder %s49_s14, %s49_s14 }
  0x1a   :  { %p10355_p10 = scmp.ne.s32.totalorder %s49_s14, %s10354_s15  ;;  %p10360_p12 = scmp.lt.s32.totalorder %s10354_s15, %s10354_s15 }
  0x1c   :  { %p10361_p13 = por %p10360_p12, %p10359_p11 }
  0x1e   :  { %p10362_p0 = pnand %p10361_p13, %p10355_p10 }
  0x20   :  { %10365 = shalt.err (!%p10362_p0)
}
  0x21   :  { %54 = dma.hbm_to_vmem [thread:$0]  %s15084_s4, 9216, %s49_s14, [#allocation7], %s10394_s29, %s10394_s29, %s10395_s30  }
  0x22   :  { %10386 = dma.done.wait [#allocation4], 4096  }
  0x23   :  { %10387 = vsyncadd [#allocation4], 4294963200 }
  0x24   :  { %10388 = dma.done.wait [#allocation7], 10240  }
  0x25   :  { %10389 = vsyncadd [#allocation7], 4294957056  ;;  %v10397_v0 = vmov 0   ;;  %v10153_v1 = vld [vmem:[#allocation6 + $0x38] sm:$0xff]   ;;  %v10154_v2 = vld [vmem:[#allocation6 + $0x30] sm:$0xff]   ;;  %vm1236_vm3 = vcmask 1040384  }
  0x26   :  { %1233 = vst [vmem:[#allocation2 + $0x4] sm:$0xf] %v10397_v0  ;;  %1234 = vst [vmem:[#allocation2 + $0x8] sm:$0xf] %v10397_v0  ;;  %9346 = vmatprep.subr.bf16.mxu0 %v10153_v1  ;;  %v10155_v3 = vld [vmem:[#allocation6 + $0x28] sm:$0xff]   ;;  %v10156_v4 = vld [vmem:[#allocation6 + $0x20] sm:$0xff]  }
  0x27   :  { %1235 = vst [vmem:[#allocation2 + $0xc] sm:$0xf] %v10397_v0  ;;  %1243 = vst [vmem:[#allocation2 + $0x16c] sm:$0xf] %v10397_v0  ;;  %9347 = vmatpush3.bf16.msra.mxu0 %v10153_v1  ;;  %v10161_v5 = vld [vmem:[#allocation3] sm:$0xff]   ;;  %v10157_v6 = vld [vmem:[#allocation6 + $0x18] sm:$0xff]  }
  0x28   :  { %1244 = vst [vmem:[#allocation2 + $0x170] sm:$0xf] %v10397_v0  ;;  %1245 = vst [vmem:[#allocation2 + $0x174] sm:$0xf] %v10397_v0  ;;  %9348 = vmatprep.subr.bf16.mxu0 %v10154_v2  ;;  %9362 = vmatprep.mubr.bf16.mxu0 %v10161_v5  ;;  %v10158_v7 = vld [vmem:[#allocation6 + $0x10] sm:$0xff]   ;;  %v10159_v8 = vld [vmem:[#allocation6 + $0x8] sm:$0xff]  }
  0x29   :  { %1251 = vst [vmem:[#allocation2 + $0x158] sm:$0xf] %v10397_v0  ;;  %1252 = vst [vmem:[#allocation2 + $0x15c] sm:$0xf] %v10397_v0  ;;  %v10160_v9 = vld [vmem:[#allocation6] sm:$0xff]   ;;  %v10162_v10 = vld [vmem:[#allocation3 + $0x8] sm:$0xff]  }
  0x2a   :  { %1253 = vst [vmem:[#allocation2 + $0x160] sm:$0xf] %v10397_v0  ;;  %1258 = vst [vmem:[#allocation2 + $0x2c0] sm:$0xf] %v10397_v0  ;;  %v10163_v11 = vld [vmem:[#allocation3 + $0x10] sm:$0xff]   ;;  %v10164_v12 = vld [vmem:[#allocation3 + $0x18] sm:$0xff]  }
  0x2b   :  { %1259 = vst [vmem:[#allocation2 + $0x2c4] sm:$0xf] %v10397_v0  ;;  %1260 = vst [vmem:[#allocation2 + $0x2c8] sm:$0xf] %v10397_v0  ;;  %9349 = vmatpush3.bf16.msra.mxu0 %v10154_v2  ;;  %v10165_v13 = vld [vmem:[#allocation3 + $0x20] sm:$0xff]   ;;  %v10166_v14 = vld [vmem:[#allocation3 + $0x28] sm:$0xff]  }
  0x2c   :  { %1266 = vst [vmem:[#allocation2 + $0x18] sm:$0xf] %v10397_v0  ;;  %1268 = vst [vmem:[#allocation2 + $0x2c] sm:$0xf] %v10397_v0  ;;  %9350 = vmatprep.subr.bf16.mxu0 %v10155_v3  ;;  %v10167_v15 = vld [vmem:[#allocation3 + $0x30] sm:$0xff]   ;;  %v10168_v16 = vld [vmem:[#allocation3 + $0x38] sm:$0xff]  }
  0x2d   :  { %1270 = vst [vmem:[#allocation2 + $0x40] sm:$0xf] %v10397_v0  ;;  %1272 = vst [vmem:[#allocation2 + $0x54] sm:$0xf] %v10397_v0  ;;  %v10169_v17 = vld [vmem:[#allocation3 + $0x40] sm:$0xff]   ;;  %v10170_v18 = vld [vmem:[#allocation3 + $0x48] sm:$0xff]  }
  0x2e   :  { %1274 = vst [vmem:[#allocation2 + $0x68] sm:$0xf] %v10397_v0  ;;  %1276 = vst [vmem:[#allocation2 + $0x7c] sm:$0xf] %v10397_v0  ;;  %v10171_v19 = vld [vmem:[#allocation3 + $0x50] sm:$0xff]   ;;  %v10172_v20 = vld [vmem:[#allocation3 + $0x58] sm:$0xff]  }
  0x2f   :  { %1278 = vst [vmem:[#allocation2 + $0x90] sm:$0xf] %v10397_v0  ;;  %1280 = vst [vmem:[#allocation2 + $0xa4] sm:$0xf] %v10397_v0  ;;  %9351 = vmatpush3.bf16.msra.mxu0 %v10155_v3  ;;  %v10173_v21 = vld [vmem:[#allocation3 + $0x60] sm:$0xff]   ;;  %v10174_v22 = vld [vmem:[#allocation3 + $0x68] sm:$0xff]  }
  0x30   :  { %1282 = vst [vmem:[#allocation2 + $0xb8] sm:$0xf] %v10397_v0  ;;  %1284 = vst [vmem:[#allocation2 + $0xcc] sm:$0xf] %v10397_v0  ;;  %9352 = vmatprep.subr.bf16.mxu0 %v10156_v4  ;;  %v10175_v23 = vld [vmem:[#allocation3 + $0x70] sm:$0xff]   ;;  %v10176_v24 = vld [vmem:[#allocation3 + $0x78] sm:$0xff]  }
  0x31   :  { %1286 = vst [vmem:[#allocation2 + $0xe0] sm:$0xf] %v10397_v0  ;;  %1288 = vst [vmem:[#allocation2 + $0xf4] sm:$0xf] %v10397_v0  ;;  %v10177_v25 = vld [vmem:[#allocation3 + $0x80] sm:$0xff]   ;;  %v10178_v26 = vld [vmem:[#allocation3 + $0x88] sm:$0xff]  }
  0x32   :  { %1290 = vst [vmem:[#allocation2 + $0x108] sm:$0xf] %v10397_v0  ;;  %1292 = vst [vmem:[#allocation2 + $0x11c] sm:$0xf] %v10397_v0  ;;  %v10179_v27 = vld [vmem:[#allocation3 + $0x90] sm:$0xff]   ;;  %v10180_v28 = vld [vmem:[#allocation3 + $0x98] sm:$0xff]  }
  0x33   :  { %1294 = vst [vmem:[#allocation2 + $0x130] sm:$0xf] %v10397_v0  ;;  %1296 = vst [vmem:[#allocation2 + $0x144] sm:$0xf] %v10397_v0  ;;  %9353 = vmatpush3.bf16.msra.mxu0 %v10156_v4  ;;  %v10181_v29 = vld [vmem:[#allocation3 + $0xa0] sm:$0xff]   ;;  %v10182_v30 = vld [vmem:[#allocation3 + $0xa8] sm:$0xff]  }
  0x34   :  { %1298 = vst [vmem:[#allocation2 + $0x180] sm:$0xf] %v10397_v0  ;;  %1300 = vst [vmem:[#allocation2 + $0x194] sm:$0xf] %v10397_v0  ;;  %9354 = vmatprep.subr.bf16.mxu0 %v10157_v6  ;;  %v10183_v31 = vld [vmem:[#allocation3 + $0xb0] sm:$0xff]   ;;  %v10184_v32 = vld [vmem:[#allocation3 + $0xb8] sm:$0xff]  }
  0x35   :  { %1302 = vst [vmem:[#allocation2 + $0x1a8] sm:$0xf] %v10397_v0  ;;  %1304 = vst [vmem:[#allocation2 + $0x1bc] sm:$0xf] %v10397_v0  ;;  %v10185_v33 = vld [vmem:[#allocation3 + $0xc0] sm:$0xff]   ;;  %v10186_v34 = vld [vmem:[#allocation3 + $0xc8] sm:$0xff]  }
  0x36   :  { %1306 = vst [vmem:[#allocation2 + $0x1d0] sm:$0xf] %v10397_v0  ;;  %1308 = vst [vmem:[#allocation2 + $0x1e4] sm:$0xf] %v10397_v0  ;;  %v10187_v35 = vld [vmem:[#allocation3 + $0xd0] sm:$0xff]   ;;  %v10188_v36 = vld [vmem:[#allocation3 + $0xd8] sm:$0xff]  }
  0x37   :  { %1310 = vst [vmem:[#allocation2 + $0x1f8] sm:$0xf] %v10397_v0  ;;  %1312 = vst [vmem:[#allocation2 + $0x20c] sm:$0xf] %v10397_v0  ;;  %9355 = vmatpush3.bf16.msra.mxu0 %v10157_v6  ;;  %v10189_v37 = vld [vmem:[#allocation3 + $0xe0] sm:$0xff]   ;;  %v10190_v38 = vld [vmem:[#allocation3 + $0xe8] sm:$0xff]  }
  0x38   :  { %1314 = vst [vmem:[#allocation2 + $0x220] sm:$0xf] %v10397_v0  ;;  %1316 = vst [vmem:[#allocation2 + $0x234] sm:$0xf] %v10397_v0  ;;  %9356 = vmatprep.subr.bf16.mxu0 %v10158_v7  ;;  %v10191_v39 = vld [vmem:[#allocation3 + $0xf0] sm:$0xff]   ;;  %v10192_v40 = vld [vmem:[#allocation3 + $0xf8] sm:$0xff]  }
  0x39   :  { %1318 = vst [vmem:[#allocation2 + $0x248] sm:$0xf] %v10397_v0  ;;  %1320 = vst [vmem:[#allocation2 + $0x25c] sm:$0xf] %v10397_v0  ;;  %vm1237_vm0 = vsmask.f32 256 }
  0x3a   :  { %1322 = vst [vmem:[#allocation2 + $0x270] sm:$0xf] %v10397_v0  ;;  %1324 = vst [vmem:[#allocation2 + $0x284] sm:$0xf] %v10397_v0  ;;  %vm1857_vm1 = vsmask.f32 4368 }
  0x3b   :  { %1326 = vst [vmem:[#allocation2 + $0x298] sm:$0xf] %v10397_v0  ;;  %1328 = vst [vmem:[#allocation2 + $0x2ac] sm:$0xf] %v10397_v0  ;;  %9357 = vmatpush3.bf16.msra.mxu0 %v10158_v7  ;;  %vm3589_vm5 = vsmask.f32 3328 }
  0x3c   :  { %9358 = vmatprep.subr.bf16.mxu0 %v10159_v8  ;;  %vm10792_vm2 = vmor %vm1237_vm0, %vm1857_vm1  ;;  %vm3590_vm6 = vsmask.f32 7440 }
  0x3d   :  { %vm12292_vm4 = vmand %vm1236_vm3, %vm1237_vm0 }
  0x3e   :  { %vm12300_vm7 = vmor %vm3589_vm5, %vm3590_vm6 }
  0x3f   :  { %9359 = vmatpush3.bf16.msra.mxu0 %v10159_v8 }
  0x40   :  { %9360 = vmatprep.subr.bf16.mxu0 %v10160_v9 }
  0x43   :  { %9361 = vmatpush3.bf16.msra.mxu0 %v10160_v9 }
  0x46   :  { %9363 = vmatmul.mubr.bf16.vlgmr.msra.gmra.mxu0 %v10162_v10 }
  0x47   :  { %9366 = vmatprep.mubr.bf16.mxu0 %v10163_v11 }
  0x4e   :  { %9367 = vmatmul.mubr.bf16.gmra.mxu0 %v10164_v12 }
  0x4f   :  { %9370 = vmatprep.mubr.bf16.mxu0 %v10165_v13 }
  0x56   :  { %9371 = vmatmul.mubr.bf16.gmra.mxu0 %v10166_v14 }
  0x57   :  { %9374 = vmatprep.mubr.bf16.mxu0 %v10167_v15 }
  0x5e   :  { %9375 = vmatmul.mubr.bf16.gmra.mxu0 %v10168_v16 }
  0x5f   :  { %9378 = vmatprep.mubr.bf16.mxu0 %v10169_v17 }
  0x66   :  { %9379 = vmatmul.mubr.bf16.gmra.mxu0 %v10170_v18 }
  0x67   :  { %9382 = vmatprep.mubr.bf16.mxu0 %v10171_v19 }
  0x6e   :  { %9383 = vmatmul.mubr.bf16.gmra.mxu0 %v10172_v20 }
  0x6f   :  { %9386 = vmatprep.mubr.bf16.mxu0 %v10173_v21 }
  0x76   :  { %9387 = vmatmul.mubr.bf16.gmra.mxu0 %v10174_v22 }
  0x77   :  { %9390 = vmatprep.mubr.bf16.mxu0 %v10175_v23 }
  0x7e   :  { %9391 = vmatmul.mubr.bf16.gmra.mxu0 %v10176_v24 }
  0x7f   :  { %9394 = vmatprep.mubr.bf16.mxu0 %v10177_v25 }
  0x86   :  { %9395 = vmatmul.mubr.bf16.gmra.mxu0 %v10178_v26 }
  0x87   :  { %9398 = vmatprep.mubr.bf16.mxu0 %v10179_v27 }
  0x8e   :  { %9399 = vmatmul.mubr.bf16.gmra.mxu0 %v10180_v28 }
  0x8f   :  { %9402 = vmatprep.mubr.bf16.mxu0 %v10181_v29 }
  0x96   :  { %9403 = vmatmul.mubr.bf16.gmra.mxu0 %v10182_v30 }
  0x97   :  { %9406 = vmatprep.mubr.bf16.mxu0 %v10183_v31 }
  0x9e   :  { %9407 = vmatmul.mubr.bf16.gmra.mxu0 %v10184_v32 }
  0x9f   :  { %9410 = vmatprep.mubr.bf16.mxu0 %v10185_v33 }
  0xa6   :  { %9411 = vmatmul.mubr.bf16.gmra.mxu0 %v10186_v34 }
  0xa7   :  { %9414 = vmatprep.mubr.bf16.mxu0 %v10187_v35 }
  0xae   :  { %9415 = vmatmul.mubr.bf16.gmra.mxu0 %v10188_v36 }
  0xaf   :  { %9418 = vmatprep.mubr.bf16.mxu0 %v10189_v37 }
  0xb6   :  { %9419 = vmatmul.mubr.bf16.gmra.mxu0 %v10190_v38 }
  0xb7   :  { %9422 = vmatprep.mubr.bf16.mxu0 %v10191_v39 }
  0xbe   :  { %9423 = vmatmul.mubr.bf16.gmra.mxu0 %v10192_v40 }
 0x106   :  { %v10457_v41 = vpop.f32.mrf.mxu0 }
 0x107   :  { %15439 = vst [vmem:[#allocation13_spill] sm:$0xff] %v10457_v41 }
 0x108   :  { %v10459_v42 = vpop.f32.mrf.mxu0 }
 0x10a   :  { %v10461_v43 = vpop.f32.mrf.mxu0 }
 0x10b   :  { %15440 = vst [vmem:[#allocation14_spill] sm:$0xff] %v10461_v43 }
 0x10c   :  { %v10463_v44 = vpop.f32.mrf.mxu0 }
 0x10d   :  { %15441 = vst [vmem:[#allocation15_spill] sm:$0xff] %v10463_v44  ;;  %v678_v45 = vadd.f32 %v10463_v44, %v10459_v42 }
 0x10e   :  { %v10467_v46 = vpop.f32.mrf.mxu0 }
 0x10f   :  { %15442 = vst [vmem:[#allocation16_spill] sm:$0xff] %v10467_v46  ;;  %v679_v47 = vadd.f32 %v10457_v41, %v678_v45 }
 0x110   :  { %v10470_v48 = vpop.f32.mrf.mxu0 }
 0x111   :  { %15443 = vst [vmem:[#allocation17_spill] sm:$0xff] %v10470_v48  ;;  %v680_v49 = vadd.f32 %v10461_v43, %v679_v47 }
 0x112   :  { %v10473_v50 = vpop.f32.mrf.mxu0 }
 0x113   :  { %15444 = vst [vmem:[#allocation18_spill] sm:$0xff] %v10473_v50  ;;  %v681_v51 = vadd.f32 %v680_v49, %v10470_v48 }
 0x114   :  { %v10476_v52 = vpop.f32.mrf.mxu0 }
 0x115   :  { %15445 = vst [vmem:[#allocation19_spill] sm:$0xff] %v10476_v52  ;;  %v682_v53 = vadd.f32 %v681_v51, %v10476_v52 }
 0x116   :  { %v10479_v54 = vpop.f32.mrf.mxu0 }
 0x117   :  { %15446 = vst [vmem:[#allocation20_spill] sm:$0xff] %v10479_v54  ;;  %v683_v55 = vadd.f32 %v10467_v46, %v682_v53 }
 0x118   :  { %v10482_v56 = vpop.f32.mrf.mxu0 }
 0x119   :  { %15447 = vst [vmem:[#allocation21_spill] sm:$0xff] %v10482_v56  ;;  %v684_v57 = vadd.f32 %v10473_v50, %v683_v55 }
 0x11a   :  { %v10485_v58 = vpop.f32.mrf.mxu0 }
 0x11b   :  { %15448 = vst [vmem:[#allocation22_spill] sm:$0xff] %v10485_v58  ;;  %v685_v59 = vadd.f32 %v684_v57, %v10482_v56 }
 0x11c   :  { %v10488_v60 = vpop.f32.mrf.mxu0 }
 0x11d   :  { %15449 = vst [vmem:[#allocation23_spill] sm:$0xff] %v10488_v60  ;;  %v686_v61 = vadd.f32 %v685_v59, %v10488_v60 }
 0x11e   :  { %v10491_v62 = vpop.f32.mrf.mxu0 }
 0x11f   :  { %15450 = vst [vmem:[#allocation24_spill] sm:$0xff] %v10491_v62  ;;  %v687_v63 = vadd.f32 %v10479_v54, %v686_v61 }
 0x120   :  { %v10494_v0 = vpop.f32.mrf.mxu0 }
 0x121   :  { %v688_v1 = vadd.f32 %v10485_v58, %v687_v63 }
 0x122   :  { %v10497_v2 = vpop.f32.mrf.mxu0 }
 0x123   :  { %15451 = vst [vmem:[#allocation25_spill] sm:$0xff] %v10497_v2  ;;  %v689_v3 = vadd.f32 %v688_v1, %v10494_v0 }
 0x124   :  { %v10500_v4 = vpop.f32.mrf.mxu0 }
 0x125   :  { %15452 = vst [vmem:[#allocation26_spill] sm:$0xff] %v10500_v4  ;;  %v690_v5 = vadd.f32 %v689_v3, %v10500_v4 }
 0x126   :  { %v10503_v6 = vpop.f32.mrf.mxu0 }
 0x127   :  { %15453 = vst [vmem:[#allocation27_spill] sm:$0xff] %v10503_v6  ;;  %v691_v7 = vadd.f32 %v10491_v62, %v690_v5 }
 0x128   :  { %v10506_v8 = vpop.f32.mrf.mxu0 }
 0x129   :  { %15454 = vst [vmem:[#allocation28_spill] sm:$0xff] %v10506_v8  ;;  %v692_v9 = vadd.f32 %v10497_v2, %v691_v7 }
 0x12a   :  { %v10509_v10 = vpop.f32.mrf.mxu0 }
 0x12b   :  { %v693_v11 = vadd.f32 %v692_v9, %v10506_v8 }
 0x12c   :  { %v10512_v12 = vpop.f32.mrf.mxu0 }
 0x12d   :  { %15455 = vst [vmem:[#allocation29_spill] sm:$0xff] %v10512_v12  ;;  %v694_v13 = vadd.f32 %v693_v11, %v10512_v12 }
 0x12e   :  { %v10515_v14 = vpop.f32.mrf.mxu0 }
 0x12f   :  { %v695_v15 = vadd.f32 %v10503_v6, %v694_v13 }
 0x130   :  { %v10518_v16 = vpop.f32.mrf.mxu0 }
 0x131   :  { %15456 = vst [vmem:[#allocation30_spill] sm:$0xff] %v10518_v16  ;;  %v696_v17 = vadd.f32 %v10509_v10, %v695_v15 }
 0x132   :  { %v10521_v18 = vpop.f32.mrf.mxu0 }
 0x133   :  { %v697_v19 = vadd.f32 %v696_v17, %v10518_v16 }
 0x134   :  { %v10524_v20 = vpop.f32.mrf.mxu0 }
 0x135   :  { %v698_v21 = vadd.f32 %v697_v19, %v10524_v20 }
 0x136   :  { %v10527_v22 = vpop.f32.mrf.mxu0 }
 0x137   :  { %v699_v23 = vadd.f32 %v10515_v14, %v698_v21 }
 0x138   :  { %v10530_v24 = vpop.f32.mrf.mxu0 }
 0x139   :  { %v700_v25 = vadd.f32 %v10521_v18, %v699_v23 }
 0x13a   :  { %v10533_v26 = vpop.f32.mrf.mxu0 }
 0x13b   :  { %v701_v27 = vadd.f32 %v700_v25, %v10530_v24 }
 0x13c   :  { %v10536_v28 = vpop.f32.mrf.mxu0 }
 0x13d   :  { %v702_v29 = vadd.f32 %v701_v27, %v10536_v28 }
 0x13e   :  { %v10539_v30 = vpop.f32.mrf.mxu0 }
 0x13f   :  { %15457 = vst [vmem:[#allocation31_spill] sm:$0xff] %v10539_v30  ;;  %v703_v31 = vadd.f32 %v10527_v22, %v702_v29 }
 0x140   :  { %v10542_v32 = vpop.f32.mrf.mxu0 }
 0x141   :  { %v704_v33 = vadd.f32 %v10533_v26, %v703_v31 }
 0x142   :  { %v10545_v34 = vpop.f32.mrf.mxu0 }
 0x143   :  { %v705_v35 = vadd.f32 %v704_v33, %v10542_v32 }
 0x144   :  { %v10548_v36 = vpop.f32.mrf.mxu0 }
 0x145   :  { %v706_v37 = vadd.f32 %v705_v35, %v10548_v36 }
 0x146   :  { %v10551_v38 = vpop.f32.mrf.mxu0 }
 0x147   :  { %v707_v39 = vadd.f32 %v10539_v30, %v706_v37 }
 0x148   :  { %v10554_v40 = vpop.f32.mrf.mxu0 }
 0x149   :  { %v708_v45 = vadd.f32 %v10545_v34, %v707_v39 }
 0x14a   :  { %v10557_v47 = vpop.f32.mrf.mxu0 }
 0x14b   :  { %v709_v49 = vadd.f32 %v708_v45, %v10554_v40 }
 0x14c   :  { %v10560_v51 = vpop.f32.mrf.mxu0 }
 0x14d   :  { %15458 = vst [vmem:[#allocation32_spill] sm:$0xff] %v10560_v51  ;;  %v710_v53 = vadd.f32 %v709_v49, %v10560_v51 }
 0x14e   :  { %v10563_v55 = vpop.f32.mrf.mxu0 }
 0x14f   :  { %v711_v57 = vadd.f32 %v10551_v38, %v710_v53 }
 0x150   :  { %v10566_v59 = vpop.f32.mrf.mxu0 }
 0x151   :  { %v712_v61 = vadd.f32 %v10557_v47, %v711_v57 }
 0x152   :  { %v10569_v63 = vpop.f32.mrf.mxu0 }
 0x153   :  { %15459 = vst [vmem:[#allocation33_spill] sm:$0xff] %v10569_v63  ;;  %v713_v1 = vadd.f32 %v712_v61, %v10566_v59 }
 0x154   :  { %v10572_v3 = vpop.f32.mrf.mxu0 }
 0x155   :  { %v714_v5 = vadd.f32 %v713_v1, %v10572_v3 }
 0x156   :  { %v10575_v7 = vpop.f32.mrf.mxu0 }
 0x157   :  { %v715_v9 = vadd.f32 %v10563_v55, %v714_v5 }
 0x158   :  { %v10578_v11 = vpop.f32.mrf.mxu0 }
 0x159   :  { %15460 = vst [vmem:[#allocation34_spill] sm:$0xff] %v10578_v11  ;;  %v716_v13 = vadd.f32 %v10569_v63, %v715_v9 }
 0x15a   :  { %v10581_v15 = vpop.f32.mrf.mxu0 }
 0x15b   :  { %v717_v17 = vadd.f32 %v716_v13, %v10578_v11 }
 0x15c   :  { %v10584_v19 = vpop.f32.mrf.mxu0 }
 0x15d   :  { %15461 = vst [vmem:[#allocation35_spill] sm:$0xff] %v10584_v19  ;;  %v718_v21 = vadd.f32 %v717_v17, %v10584_v19 }
 0x15e   :  { %v10587_v23 = vpop.f32.mrf.mxu0 }
 0x15f   :  { %15462 = vst [vmem:[#allocation36_spill] sm:$0xff] %v10587_v23  ;;  %v719_v25 = vadd.f32 %v10575_v7, %v718_v21 }
 0x160   :  { %v10590_v27 = vpop.f32.mrf.mxu0 }
 0x161   :  { %v720_v29 = vadd.f32 %v10581_v15, %v719_v25 }
 0x162   :  { %v10593_v31 = vpop.f32.mrf.mxu0 }
 0x163   :  { %15463 = vst [vmem:[#allocation37_spill] sm:$0xff] %v10593_v31  ;;  %v721_v33 = vadd.f32 %v720_v29, %v10590_v27 }
 0x164   :  { %v10596_v35 = vpop.f32.mrf.mxu0 }
 0x165   :  { %v722_v37 = vadd.f32 %v721_v33, %v10596_v35 }
 0x166   :  { %v10599_v39 = vpop.f32.mrf.mxu0 }
 0x167   :  { %15464 = vst [vmem:[#allocation38_spill] sm:$0xff] %v10599_v39  ;;  %v723_v45 = vadd.f32 %v10587_v23, %v722_v37 }
 0x168   :  { %v10602_v49 = vpop.f32.mrf.mxu0 }
 0x169   :  { %15465 = vst [vmem:[#allocation39_spill] sm:$0xff] %v10602_v49  ;;  %v724_v53 = vadd.f32 %v10593_v31, %v723_v45 }
 0x16a   :  { %v10605_v57 = vpop.f32.mrf.mxu0 }
 0x16b   :  { %15466 = vst [vmem:[#allocation40_spill] sm:$0xff] %v10605_v57  ;;  %v725_v61 = vadd.f32 %v724_v53, %v10602_v49 }
 0x16c   :  { %v10608_v1 = vpop.f32.mrf.mxu0 }
 0x16d   :  { %15467 = vst [vmem:[#allocation41_spill] sm:$0xff] %v10608_v1  ;;  %v726_v5 = vadd.f32 %v725_v61, %v10608_v1 }
 0x16e   :  { %v10611_v9 = vpop.f32.mrf.mxu0 }
 0x16f   :  { %15468 = vst [vmem:[#allocation42_spill] sm:$0xff] %v10611_v9  ;;  %v727_v13 = vadd.f32 %v10599_v39, %v726_v5 }
 0x170   :  { %v10614_v17 = vpop.f32.mrf.mxu0 }
 0x171   :  { %15469 = vst [vmem:[#allocation43_spill] sm:$0xff] %v10614_v17  ;;  %v728_v21 = vadd.f32 %v10605_v57, %v727_v13 }
 0x172   :  { %v10617_v25 = vpop.f32.mrf.mxu0 }
 0x173   :  { %15470 = vst [vmem:[#allocation44_spill] sm:$0xff] %v10617_v25  ;;  %v729_v29 = vadd.f32 %v728_v21, %v10614_v17 }
 0x174   :  { %v10620_v33 = vpop.f32.mrf.mxu0 }
 0x175   :  { %15471 = vst [vmem:[#allocation45_spill] sm:$0xff] %v10620_v33  ;;  %v730_v37 = vadd.f32 %v729_v29, %v10620_v33 }
 0x176   :  { %v10623_v45 = vpop.f32.mrf.mxu0 }
 0x177   :  { %15472 = vst [vmem:[#allocation46_spill] sm:$0xff] %v10623_v45  ;;  %v731_v53 = vadd.f32 %v10611_v9, %v730_v37 }
 0x178   :  { %v10626_v61 = vpop.f32.mrf.mxu0 }
 0x179   :  { %15473 = vst [vmem:[#allocation47_spill] sm:$0xff] %v10626_v61  ;;  %v732_v5 = vadd.f32 %v10617_v25, %v731_v53 }
 0x17a   :  { %v10629_v39 = vpop.f32.mrf.mxu0 }
 0x17b   :  { %15474 = vst [vmem:[#allocation48_spill] sm:$0xff] %v10629_v39  ;;  %v733_v13 = vadd.f32 %v732_v5, %v10626_v61 }
 0x17c   :  { %v10632_v57 = vpop.f32.mrf.mxu0 }
 0x17d   :  { %15475 = vst [vmem:[#allocation49_spill] sm:$0xff] %v10632_v57  ;;  %v734_v21 = vadd.f32 %v733_v13, %v10632_v57 }
 0x17e   :  { %v10635_v17 = vpop.f32.mrf.mxu0 }
 0x17f   :  { %15476 = vst [vmem:[#allocation50_spill] sm:$0xff] %v10635_v17  ;;  %v735_v29 = vadd.f32 %v10623_v45, %v734_v21 }
 0x180   :  { %v10638_v33 = vpop.f32.mrf.mxu0 }
 0x181   :  { %15477 = vst [vmem:[#allocation51_spill] sm:$0xff] %v10638_v33  ;;  %v736_v37 = vadd.f32 %v10629_v39, %v735_v29 }
 0x182   :  { %v10641_v9 = vpop.f32.mrf.mxu0 }
 0x183   :  { %15478 = vst [vmem:[#allocation52_spill] sm:$0xff] %v10641_v9  ;;  %v737_v53 = vadd.f32 %v736_v37, %v10638_v33 }
 0x184   :  { %v10644_v25 = vpop.f32.mrf.mxu0 }
 0x185   :  { %v738_v5 = vadd.f32 %v737_v53, %v10644_v25 }
 0x187   :  { %v739_v61 = vadd.f32 %v10635_v17, %v738_v5 }
 0x189   :  { %v740_v13 = vadd.f32 %v10641_v9, %v739_v61 }
 0x18b   :  { %v741_v57 = vrot.slane %v740_v13, 4 }
 0x18d   :  { %v742_v1 = vadd.f32 %v741_v57, %v740_v13 }
 0x18f   :  { %v743_v49 = vrot.slane %v742_v1, 2 }
 0x191   :  { %v744_v21 = vadd.f32 %v743_v49, %v742_v1 }
 0x193   :  { %v745_v45 = vrot.slane %v744_v21, 1 }
 0x195   :  { %v746_v31 = vadd.f32 %v745_v45, %v744_v21 }
 0x197   :  { %v10649_v23 = vmul.f32 0.001953125, %v746_v31 }
 0x199   :  { %v748_v29 = vsub.f32 %v10459_v42, %v10649_v23  ;;  %v749_v37 = vsub.f32 %v10463_v44, %v10649_v23  ;;  %v750_v53 = vsub.f32 %v10457_v41, %v10649_v23  ;;  %v751_v61 = vsub.f32 %v10461_v43, %v10649_v23 }
 0x19a   :  { %v752_v57 = vsub.f32 %v10470_v48, %v10649_v23  ;;  %v753_v49 = vsub.f32 %v10476_v52, %v10649_v23  ;;  %v754_v45 = vsub.f32 %v10467_v46, %v10649_v23  ;;  %v755_v5 = vsub.f32 %v10473_v50, %v10649_v23 }
 0x19b   :  { %v756_v31 = vmul.f32 %v748_v29, %v748_v29  ;;  %v757_v1 = vmul.f32 %v749_v37, %v749_v37  ;;  %v758_v13 = vmul.f32 %v750_v53, %v750_v53  ;;  %v778_v41 = vsub.f32 %v10482_v56, %v10649_v23 }
 0x19c   :  { %v779_v43 = vsub.f32 %v10488_v60, %v10649_v23  ;;  %v780_v48 = vsub.f32 %v10479_v54, %v10649_v23  ;;  %v759_v52 = vmul.f32 %v751_v61, %v751_v61  ;;  %v760_v29 = vmul.f32 %v752_v57, %v752_v57 }
 0x19d   :  { %v764_v21 = vadd.f32 %v757_v1, %v756_v31  ;;  %v761_v37 = vmul.f32 %v753_v49, %v753_v49  ;;  %v781_v46 = vsub.f32 %v10485_v58, %v10649_v23  ;;  %v782_v53 = vsub.f32 %v10494_v0, %v10649_v23 }
 0x19e   :  { %v786_v31 = vmul.f32 %v778_v41, %v778_v41  ;;  %v787_v1 = vmul.f32 %v779_v43, %v779_v43  ;;  %v762_v50 = vmul.f32 %v754_v45, %v754_v45  ;;  %v763_v56 = vmul.f32 %v755_v5, %v755_v5 }
 0x19f   :  { %v765_v44 = vadd.f32 %v764_v21, %v758_v13  ;;  %v783_v60 = vsub.f32 %v10500_v4, %v10649_v23  ;;  %v784_v54 = vsub.f32 %v10491_v62, %v10649_v23  ;;  %v785_v57 = vsub.f32 %v10497_v2, %v10649_v23 }
 0x1a0   :  { %v788_v49 = vmul.f32 %v780_v48, %v780_v48  ;;  %v794_v58 = vadd.f32 %v787_v1, %v786_v31  ;;  %v789_v13 = vmul.f32 %v781_v46, %v781_v46  ;;  %v808_v21 = vsub.f32 %v10506_v8, %v10649_v23  ;;  %v10193_v1 = vld [vmem:[#allocation8 + $0x78] sm:$0xff]  }
 0x1a1   :  { %v766_v61 = vadd.f32 %v765_v44, %v759_v52  ;;  %v809_v41 = vsub.f32 %v10512_v12, %v10649_v23  ;;  %v810_v43 = vsub.f32 %v10503_v6, %v10649_v23  ;;  %v790_v5 = vmul.f32 %v782_v53, %v782_v53  ;;  %9426 = vmatprep.subr.bf16.mxu1 %v10193_v1 }
 0x1a2   :  { %v795_v4 = vadd.f32 %v794_v58, %v788_v49  ;;  %v811_v44 = vsub.f32 %v10509_v10, %v10649_v23  ;;  %v812_v48 = vsub.f32 %v10518_v16, %v10649_v23  ;;  %v813_v46 = vsub.f32 %v10524_v20, %v10649_v23  ;;  %9427 = vmatpush3.bf16.msra.mxu1 %v10193_v1 }
 0x1a3   :  { %v767_v45 = vadd.f32 %v766_v61, %v760_v29  ;;  %v816_v52 = vmul.f32 %v808_v21, %v808_v21  ;;  %v817_v31 = vmul.f32 %v809_v41, %v809_v41  ;;  %v791_v12 = vmul.f32 %v783_v60, %v783_v60 }
 0x1a4   :  { %v792_v2 = vmul.f32 %v784_v54, %v784_v54  ;;  %v796_v62 = vadd.f32 %v795_v4, %v789_v13  ;;  %v793_v6 = vmul.f32 %v785_v57, %v785_v57  ;;  %v814_v58 = vsub.f32 %v10515_v14, %v10649_v23  ;;  %v10194_v57 = vld [vmem:[#allocation8 + $0x70] sm:$0xff]  }
 0x1a5   :  { %v768_v8 = vadd.f32 %v767_v45, %v761_v37  ;;  %v815_v29 = vsub.f32 %v10521_v18, %v10649_v23  ;;  %v818_v53 = vmul.f32 %v810_v43, %v810_v43  ;;  %v824_v16 = vadd.f32 %v817_v31, %v816_v52  ;;  %9428 = vmatprep.subr.bf16.mxu1 %v10194_v57 }
 0x1a6   :  { %v797_v49 = vadd.f32 %v796_v62, %v790_v5  ;;  %v838_v21 = vsub.f32 %v10530_v24, %v10649_v23  ;;  %v819_v37 = vmul.f32 %v811_v44, %v811_v44  ;;  %v820_v60 = vmul.f32 %v812_v48, %v812_v48  ;;  %9429 = vmatpush3.bf16.msra.mxu1 %v10194_v57 }
 0x1a7   :  { %v769_v61 = vadd.f32 %v768_v8, %v762_v50  ;;  %v821_v54 = vmul.f32 %v813_v46, %v813_v46  ;;  %v839_v4 = vsub.f32 %v10536_v28, %v10649_v23  ;;  %v825_v45 = vadd.f32 %v824_v16, %v818_v53 }
 0x1a8   :  { %v798_v41 = vadd.f32 %v797_v49, %v791_v12  ;;  %v840_v43 = vsub.f32 %v10527_v22, %v10649_v23  ;;  %v822_v50 = vmul.f32 %v814_v58, %v814_v58  ;;  %v841_v62 = vsub.f32 %v10533_v26, %v10649_v23  ;;  %v10195_v58 = vld [vmem:[#allocation8 + $0x68] sm:$0xff]  }
 0x1a9   :  { %v770_v13 = vadd.f32 %v769_v61, %v763_v56  ;;  %v846_v8 = vmul.f32 %v838_v21, %v838_v21  ;;  %v847_v5 = vmul.f32 %v839_v4, %v839_v4  ;;  %v826_v46 = vadd.f32 %v825_v45, %v819_v37  ;;  %v10196_v56 = vld [vmem:[#allocation8 + $0x38] sm:$0xff]   ;;  %9430 = vmatprep.subr.bf16.mxu1 %v10195_v58 }
 0x1aa   :  { %v799_v48 = vadd.f32 %v798_v41, %v792_v2  ;;  %v842_v52 = vsub.f32 %v10542_v32, %v10649_v23  ;;  %v823_v12 = vmul.f32 %v815_v29, %v815_v29  ;;  %v843_v16 = vsub.f32 %v10548_v36, %v10649_v23  ;;  %9506 = vmatprep.subr.bf16.mxu0 %v10196_v56 }
 0x1ab   :  { %v771_v44 = vrot.slane %v770_v13, 4  ;;  %v844_v31 = vsub.f32 %v10539_v30, %v10649_v23  ;;  %v845_v1 = vsub.f32 %v10545_v34, %v10649_v23  ;;  %v827_v2 = vadd.f32 %v826_v46, %v820_v60  ;;  %9431 = vmatpush3.bf16.msra.mxu1 %v10195_v58  ;;  %9507 = vmatpush3.bf16.msra.mxu0 %v10196_v56 }
 0x1ac   :  { %v800_v61 = vadd.f32 %v799_v48, %v793_v6  ;;  %v848_v49 = vmul.f32 %v840_v43, %v840_v43  ;;  %v849_v21 = vmul.f32 %v841_v62, %v841_v62  ;;  %v854_v37 = vadd.f32 %v847_v5, %v846_v8  ;;  %v10197_v8 = vld [vmem:[#allocation8 + $0x60] sm:$0xff]  }
 0x1ad   :  { %v772_v53 = vadd.f32 %v771_v44, %v770_v13  ;;  %v868_v29 = vsub.f32 %v10554_v40, %v10649_v23  ;;  %v869_v4 = vsub.f32 %v10560_v51, %v10649_v23  ;;  %v828_v45 = vadd.f32 %v827_v2, %v821_v54  ;;  %v10198_v13 = vld [vmem:[#allocation8 + $0x30] sm:$0xff]   ;;  %9432 = vmatprep.subr.bf16.mxu1 %v10197_v8 }
 0x1ae   :  { %v801_v41 = vrot.slane %v800_v61, 4  ;;  %v850_v30 = vmul.f32 %v842_v52, %v842_v52  ;;  %v851_v6 = vmul.f32 %v843_v16, %v843_v16  ;;  %v852_v60 = vmul.f32 %v844_v31, %v844_v31  ;;  %9508 = vmatprep.subr.bf16.mxu0 %v10198_v13 }
 0x1af   :  { %v773_v57 = vrot.slane %v772_v53, 2  ;;  %v855_v43 = vadd.f32 %v854_v37, %v848_v49  ;;  %v870_v62 = vsub.f32 %v10551_v38, %v10649_v23  ;;  %v829_v48 = vadd.f32 %v828_v45, %v822_v50  ;;  %9433 = vmatpush3.bf16.msra.mxu1 %v10197_v8  ;;  %9509 = vmatpush3.bf16.msra.mxu0 %v10198_v13  ;;  %v10200_v50 = vld [vmem:[#allocation8 + $0x28] sm:$0xff]  }
 0x1b0   :  { %v802_v44 = vadd.f32 %v801_v41, %v800_v61  ;;  %v871_v46 = vsub.f32 %v10557_v47, %v10649_v23  ;;  %v853_v51 = vmul.f32 %v845_v1, %v845_v1  ;;  %v876_v52 = vmul.f32 %v868_v29, %v868_v29  ;;  %9510 = vmatprep.subr.bf16.mxu0 %v10200_v50 }
 0x1b1   :  { %v774_v5 = vadd.f32 %v773_v57, %v772_v53  ;;  %v856_v54 = vadd.f32 %v855_v43, %v849_v21  ;;  %v877_v58 = vmul.f32 %v869_v4, %v869_v4  ;;  %v830_v16 = vadd.f32 %v829_v48, %v823_v12  ;;  %v10199_v21 = vld [vmem:[#allocation8 + $0x58] sm:$0xff]  }
 0x1b2   :  { %v803_v56 = vrot.slane %v802_v44, 2  ;;  %v872_v31 = vsub.f32 %v10566_v59, %v10649_v23  ;;  %v873_v2 = vsub.f32 %v10572_v3, %v10649_v23  ;;  %v874_v1 = vsub.f32 %v10563_v55, %v10649_v23  ;;  %9434 = vmatprep.subr.bf16.mxu1 %v10199_v21 }
 0x1b3   :  { %v775_v53 = vrot.slane %v774_v5, 1  ;;  %v857_v61 = vadd.f32 %v856_v54, %v850_v30  ;;  %v875_v49 = vsub.f32 %v10569_v63, %v10649_v23  ;;  %v831_v12 = vrot.slane %v830_v16, 4  ;;  %9435 = vmatpush3.bf16.msra.mxu1 %v10199_v21  ;;  %9511 = vmatpush3.bf16.msra.mxu0 %v10200_v50 }
 0x1b4   :  { %v804_v37 = vadd.f32 %v803_v56, %v802_v44  ;;  %v878_v29 = vmul.f32 %v870_v62, %v870_v62  ;;  %v879_v4 = vmul.f32 %v871_v46, %v871_v46  ;;  %v884_v41 = vadd.f32 %v877_v58, %v876_v52  ;;  %v10202_v44 = vld [vmem:[#allocation8 + $0x20] sm:$0xff]  }
 0x1b5   :  { %v858_v57 = vadd.f32 %v857_v61, %v851_v6  ;;  %v898_v45 = vsub.f32 %v10578_v11, %v10649_v23  ;;  %v899_v30 = vsub.f32 %v10584_v19, %v10649_v23  ;;  %v832_v43 = vadd.f32 %v831_v12, %v830_v16  ;;  %v10201_v6 = vld [vmem:[#allocation8 + $0x50] sm:$0xff]   ;;  %9512 = vmatprep.subr.bf16.mxu0 %v10202_v44 }
 0x1b6   :  { %v805_v13 = vrot.slane %v804_v37, 1  ;;  %v880_v8 = vmul.f32 %v872_v31, %v872_v31  ;;  %v881_v48 = vmul.f32 %v873_v2, %v873_v2  ;;  %v776_v54 = vadd.f32 %v775_v53, %v774_v5  ;;  %9436 = vmatprep.subr.bf16.mxu1 %v10201_v6  ;;  %v10204_v53 = vld [vmem:[#allocation8 + $0x18] sm:$0xff]  }
 0x1b7   :  { %v859_v62 = vadd.f32 %v858_v57, %v852_v60  ;;  %v882_v46 = vmul.f32 %v874_v1, %v874_v1  ;;  %v885_v56 = vadd.f32 %v884_v41, %v878_v29  ;;  %v833_v58 = vrot.slane %v832_v43, 2  ;;  %9437 = vmatpush3.bf16.msra.mxu1 %v10201_v6  ;;  %9513 = vmatpush3.bf16.msra.mxu0 %v10202_v44  ;;  %v10203_v29 = vld [vmem:[#allocation8 + $0x48] sm:$0xff]  }
 0x1b8   :  { %v806_v52 = vadd.f32 %v805_v13, %v804_v37  ;;  %v883_v61 = vmul.f32 %v875_v49, %v875_v49  ;;  %v900_v11 = vsub.f32 %v10575_v7, %v10649_v23  ;;  %v906_v16 = vmul.f32 %v898_v45, %v898_v45  ;;  %v15480_v37 = vld [vmem:[#allocation37_spill] sm:$0xff]  ;;  %9514 = vmatprep.subr.bf16.mxu0 %v10204_v53  ;;  %v10206_v13 = vld [vmem:[#allocation8 + $0x10] sm:$0xff]  }
 0x1b9   :  { %v860_v19 = vadd.f32 %v859_v62, %v853_v51  ;;  %v886_v63 = vadd.f32 %v885_v56, %v879_v4  ;;  %v907_v31 = vmul.f32 %v899_v30, %v899_v30  ;;  %v834_v2 = vadd.f32 %v833_v58, %v832_v43  ;;  %v15479_v51 = vld [vmem:[#allocation36_spill] sm:$0xff]  ;;  %v10205_v4 = vld [vmem:[#allocation8 + $0x40] sm:$0xff]   ;;  %v15481_v56 = vld [vmem:[#allocation39_spill] sm:$0xff]  ;;  %9438 = vmatprep.subr.bf16.mxu1 %v10203_v29 }
 0x1ba   :  { %v901_v5 = vsub.f32 %v10581_v15, %v10649_v23  ;;  %v902_v60 = vsub.f32 %v10590_v27, %v10649_v23  ;;  %v903_v50 = vsub.f32 %v10596_v35, %v10649_v23  ;;  %v904_v21 = vsub.f32 %v15479_v51, %v10649_v23 }
 0x1bb   :  { %v861_v1 = vrot.slane %v860_v19, 4  ;;  %v887_v49 = vadd.f32 %v886_v63, %v880_v8  ;;  %v905_v12 = vsub.f32 %v15480_v37, %v10649_v23  ;;  %v807_v57 = vadd.f32 %v806_v52, %v776_v54  ;;  %v15482_v8 = vld [vmem:[#allocation41_spill] sm:$0xff]  ;;  %9439 = vmatpush3.bf16.msra.mxu1 %v10203_v29  ;;  %9515 = vmatpush3.bf16.msra.mxu0 %v10204_v53 }
 0x1bc   :  { %v835_v41 = vrot.slane %v834_v2, 1  ;;  %v908_v45 = vmul.f32 %v900_v11, %v900_v11  ;;  %v914_v30 = vadd.f32 %v907_v31, %v906_v16  ;;  %v928_v63 = vsub.f32 %v15481_v56, %v10649_v23  ;;  %v15483_v16 = vld [vmem:[#allocation38_spill] sm:$0xff]  ;;  %9440 = vmatprep.subr.bf16.mxu1 %v10205_v4  ;;  %9516 = vmatprep.subr.bf16.mxu0 %v10206_v13  ;;  %v15487_v53 = vld [vmem:[#allocation45_spill] sm:$0xff] }
 0x1bd   :  { %v862_v43 = vadd.f32 %v861_v1, %v860_v19  ;;  %v888_v62 = vadd.f32 %v887_v49, %v881_v48  ;;  %v929_v6 = vsub.f32 %v15482_v8, %v10649_v23  ;;  %v909_v58 = vmul.f32 %v901_v5, %v901_v5  ;;  %v10753_v19 = vld [vmem:[#allocation8 + $0xb8] sm:$0xff]   ;;  %v15486_v5 = vld [vmem:[#allocation43_spill] sm:$0xff] }
 0x1be   :  { %v910_v37 = vmul.f32 %v902_v60, %v902_v60  ;;  %v911_v44 = vmul.f32 %v903_v50, %v903_v50  ;;  %v915_v51 = vadd.f32 %v914_v30, %v908_v45  ;;  %v912_v11 = vmul.f32 %v904_v21, %v904_v21  ;;  %15484 = vst [vmem:[#allocation53_spill] sm:$0xff] %v10753_v19  ;;  %v15485_v49 = vld [vmem:[#allocation40_spill] sm:$0xff]  ;;  %v10208_v50 = vld [vmem:[#allocation8 + $0x8] sm:$0xff]  }
 0x1bf   :  { %v863_v54 = vrot.slane %v862_v43, 2  ;;  %v889_v52 = vadd.f32 %v888_v62, %v882_v46  ;;  %v930_v31 = vsub.f32 %v15483_v16, %v10649_v23  ;;  %v836_v48 = vadd.f32 %v835_v41, %v834_v2  ;;  %v15488_v2 = vld [vmem:[#allocation42_spill] sm:$0xff]  ;;  %9441 = vmatpush3.bf16.msra.mxu1 %v10205_v4  ;;  %9517 = vmatpush3.bf16.msra.mxu0 %v10206_v13 }
 0x1c0   :  { %v916_v1 = vadd.f32 %v915_v51, %v909_v58  ;;  %v931_v8 = vsub.f32 %v15485_v49, %v10649_v23  ;;  %v932_v60 = vsub.f32 %v15486_v5, %v10649_v23  ;;  %v936_v21 = vmul.f32 %v928_v63, %v928_v63  ;;  %v15489_v5 = vld [vmem:[#allocation44_spill] sm:$0xff]  ;;  %9586 = vmatprep.subr.bf16.mxu1 %v10753_v19 }
 0x1c1   :  { %v864_v29 = vadd.f32 %v863_v54, %v862_v43  ;;  %v890_v46 = vadd.f32 %v889_v52, %v883_v61  ;;  %v937_v45 = vmul.f32 %v929_v6, %v929_v6  ;;  %v913_v30 = vmul.f32 %v905_v12, %v905_v12  ;;  %v15490_v43 = vld [vmem:[#allocation47_spill] sm:$0xff]  ;;  %9518 = vmatprep.subr.bf16.mxu0 %v10208_v50  ;;  %v10212_v6 = vld [vmem:[#allocation8] sm:$0xff]  }
 0x1c2   :  { %v917_v62 = vadd.f32 %v916_v1, %v910_v37  ;;  %v933_v16 = vsub.f32 %v15487_v53, %v10649_v23  ;;  %v934_v51 = vsub.f32 %v15488_v2, %v10649_v23  ;;  %v10763_v41 = vadd.f32 %v836_v48, %v807_v57  ;;  %v15491_v52 = vld [vmem:[#allocation49_spill] sm:$0xff] }
 0x1c3   :  { %v891_v58 = vrot.slane %v890_v46, 4  ;;  %v935_v49 = vsub.f32 %v15489_v5, %v10649_v23  ;;  %v938_v56 = vmul.f32 %v930_v31, %v930_v31  ;;  %v939_v12 = vmul.f32 %v931_v8, %v931_v8  ;;  %9519 = vmatpush3.bf16.msra.mxu0 %v10208_v50 }
 0x1c4   :  { %v918_v61 = vadd.f32 %v917_v62, %v911_v44  ;;  %v944_v37 = vadd.f32 %v937_v45, %v936_v21  ;;  %v958_v63 = vsub.f32 %v15490_v43, %v10649_v23  ;;  %v865_v54 = vrot.slane %v864_v29, 1  ;;  %v15492_v44 = vld [vmem:[#allocation46_spill] sm:$0xff]  ;;  %9520 = vmatprep.subr.bf16.mxu0 %v10212_v6 }
 0x1c5   :  { %v892_v4 = vadd.f32 %v891_v58, %v890_v46  ;;  %v940_v57 = vmul.f32 %v932_v60, %v932_v60  ;;  %v959_v48 = vsub.f32 %v15491_v52, %v10649_v23  ;;  %v941_v5 = vmul.f32 %v933_v16, %v933_v16 }
 0x1c6   :  { %v919_v1 = vadd.f32 %v918_v61, %v912_v11  ;;  %v942_v31 = vmul.f32 %v934_v51, %v934_v51  ;;  %v945_v13 = vadd.f32 %v944_v37, %v938_v56  ;;  %v960_v8 = vsub.f32 %v15492_v44, %v10649_v23  ;;  %v1714_v61 = vld [vmem:[#allocation2 + $0x8] sm:$0xf] }
 0x1c7   :  { %v893_v2 = vrot.slane %v892_v4, 2  ;;  %v961_v21 = vsub.f32 %v10629_v39, %v10649_v23  ;;  %v962_v45 = vsub.f32 %v10638_v33, %v10649_v23  ;;  %v963_v62 = vsub.f32 %v10644_v25, %v10649_v23  ;;  %9521 = vmatpush3.bf16.msra.mxu0 %v10212_v6 }
 0x1c8   :  { %v920_v46 = vadd.f32 %v919_v1, %v913_v30  ;;  %v946_v60 = vadd.f32 %v945_v13, %v939_v12  ;;  %v966_v11 = vmul.f32 %v958_v63, %v958_v63  ;;  %v866_v16 = vadd.f32 %v865_v54, %v864_v29  ;;  %v1715_v30 = vld [vmem:[#allocation2 + $0xc] sm:$0xf] }
 0x1c9   :  { %v943_v56 = vmul.f32 %v935_v49, %v935_v49  ;;  %v964_v51 = vsub.f32 %v10635_v17, %v10649_v23  ;;  %v967_v58 = vmul.f32 %v959_v48, %v959_v48  ;;  %v894_v37 = vadd.f32 %v893_v2, %v892_v4 }
 0x1ca   :  { %v921_v19 = vrot.slane %v920_v46, 4  ;;  %v947_v39 = vadd.f32 %v946_v60, %v940_v57  ;;  %v965_v50 = vsub.f32 %v10641_v9, %v10649_v23  ;;  %v968_v12 = vmul.f32 %v960_v8, %v960_v8 }
 0x1cb   :  { %v969_v1 = vmul.f32 %v961_v21, %v961_v21  ;;  %v970_v13 = vmul.f32 %v962_v45, %v962_v45  ;;  %v974_v33 = vadd.f32 %v967_v58, %v966_v11  ;;  %v971_v49 = vmul.f32 %v963_v62, %v963_v62 }
 0x1cc   :  { %v922_v63 = vadd.f32 %v921_v19, %v920_v46  ;;  %v948_v29 = vadd.f32 %v947_v39, %v941_v5  ;;  %v1865_v54 = vshrl.u32 %v1714_v61, 16  ;;  %v1868_v17 = vshll.u32 %v1714_v61, 16  ;;  %v1713_v39 = vld [vmem:[#allocation2 + $0x4] sm:$0xf] }
 0x1cd   :  { %v975_v44 = vadd.f32 %v974_v33, %v968_v12  ;;  %v1874_v48 = vshrl.u32 %v1715_v30, 16  ;;  %v1877_v52 = vshll.u32 %v1715_v30, 16  ;;  %v8283_v60 = vcombine.low %v1714_v61, %v1715_v30 }
 0x1ce   :  { %v923_v2 = vrot.slane %v922_v63, 2  ;;  %v949_v4 = vadd.f32 %v948_v29, %v942_v31  ;;  %v1867_v57 = vrot.slane %v1865_v54, 7  ;;  %v895_v43 = vrot.slane %v894_v37, 1 }
 0x1cf   :  { %v976_v9 = vadd.f32 %v975_v44, %v969_v1  ;;  %v1876_v53 = vrot.slane %v1874_v48, 7  ;;  %v3592_v8 = vrot.slane %v1865_v54, 4  ;;  %v972_v11 = vmul.f32 %v964_v51, %v964_v51  ;;  %9442 = vmatprep.mubr.bf16.mxu1 %v8283_v60 }
 0x1d0   :  { %v924_v21 = vadd.f32 %v923_v2, %v922_v63  ;;  %v950_v45 = vadd.f32 %v949_v4, %v943_v56  ;;  %v1872_v6 = vrot.slane %v1867_v57, 4  ;;  %v3593_v33 = vrot.slane %v1868_v17, 5 }
 0x1d1   :  { %v977_v19 = vadd.f32 %v976_v9, %v970_v13  ;;  %v1879_v5 = vor.u32 %v1877_v52, %v1876_v53  ;;  %v10784_v46 = vrot.slane %v1877_v52, 5  ;;  %v1870_v58 = vor.u32 %v1868_v17, %v1867_v57 }
 0x1d2   :  { %v951_v62 = vrot.slane %v950_v45, 4  ;;  %v10786_v31 = vrot.slane %v1874_v48, 4  ;;  %v3594_v44 = vor.u32 %v3593_v33, %v3592_v8  ;;  %v1860_v30 = vshrl.u32 %v1713_v39, 16 }
 0x1d3   :  { %15493 = vst [vmem:[#allocation54_spill] sm:$0xff] %v10784_v46  ;;  %v978_v61 = vadd.f32 %v977_v19, %v971_v49  ;;  %v867_v56 = vadd.f32 %v866_v16, %v10763_v41  ;;  %v15494_v9 = vmov 0  ;;  %v973_v53 = vmul.f32 %v965_v50, %v965_v50 }
 0x1d4   :  { %v952_v51 = vadd.f32 %v951_v62, %v950_v45  ;;  %v3599_v12 = vor.u32 %v10786_v31, %v10784_v46  ;;  %v15495_v9 = vsel %vm10792_vm2, 4294967295, %v15494_v9  ;;  %v8251_v52 = vrot.slane %v1860_v30, 11  ;;  %v1721_v31 = vld [vmem:[#allocation2 + $0x2c] sm:$0xf] }
 0x1d5   :  { %15496 = vst [vmem:[#allocation55_spill] sm:$0xff] %v15495_v9  ;;  %v979_v17 = vadd.f32 %v978_v61, %v972_v11  ;;  %v1880_v1 = vsel %vm10792_vm2, %v1872_v6, %v1879_v5  ;;  %v896_v63 = vadd.f32 %v895_v43, %v894_v37  ;;  %v925_v29 = vrot.slane %v924_v21, 1  ;;  %v1725_v61 = vld [vmem:[#allocation2 + $0x40] sm:$0xf]  ;;  %v15550_v9 = vld [vmem:[#allocation45_spill] sm:$0xff] }
 0x1d6   :  { %v953_v13 = vrot.slane %v952_v51, 2  ;;  %v1871_v41 = vsel %vm10792_vm2, %v8251_v52, %v1870_v58  ;;  %v997_v5 = vlaneseq  ;;  %v1717_v58 = vld [vmem:[#allocation2 + $0x18] sm:$0xf]  ;;  %v1741_v52 = vld [vmem:[#allocation2 + $0x90] sm:$0xf] }
 0x1d7   :  { %v980_v49 = vadd.f32 %v979_v17, %v973_v53  ;;  %v8323_v54 = vcombine.low %v1871_v41, %v1880_v1  ;;  %v897_v48 = vadd.f32 %v896_v63, %v867_v56  ;;  %v926_v4 = vadd.f32 %v925_v29, %v924_v21  ;;  %v1729_v21 = vld [vmem:[#allocation2 + $0x54] sm:$0xf]  ;;  %v1733_v56 = vld [vmem:[#allocation2 + $0x68] sm:$0xf]  ;;  %v1737_v17 = vld [vmem:[#allocation2 + $0x7c] sm:$0xf] }
 0x1d8   :  { %v954_v16 = vadd.f32 %v953_v13, %v952_v51  ;;  %v998_v62 = vshrl.u32 %v997_v5, 7  ;;  %v10802_v51 = vrot.slane %v3594_v44, 4  ;;  %v1882_v53 = vshrl.u32 %v1717_v58, 16  ;;  %v1745_v63 = vld [vmem:[#allocation2 + $0xa4] sm:$0xf] }
 0x1d9   :  { %v981_v2 = vrot.slane %v980_v49, 4  ;;  %9522 = vmatprep.mubr.bf16.mxu0 %v8323_v54  ;;  %v927_v60 = vadd.f32 %v926_v4, %v897_v48  ;;  %v1904_v1 = vshrl.u32 %v1721_v31, 16  ;;  %v1926_v13 = vshrl.u32 %v1725_v61, 16  ;;  %v1749_v29 = vld [vmem:[#allocation2 + $0xb8] sm:$0xf] }
 0x1da   :  { %v955_v57 = vrot.slane %v954_v16, 1  ;;  %v10800_v30 = vsub.s32 0, %v998_v62  ;;  %15498 = vst [vmem:[#allocation57_spill] sm:$0xff] %v10802_v51  ;;  %v1970_v41 = vshrl.u32 %v1733_v56, 16  ;;  %v1757_v54 = vld [vmem:[#allocation2 + $0xe0] sm:$0xf] }
 0x1db   :  { %v982_v50 = vadd.f32 %v981_v2, %v980_v49  ;;  %v1948_v49 = vshrl.u32 %v1729_v21, 16  ;;  %v1761_v48 = vld [vmem:[#allocation2 + $0xf4] sm:$0xf]  ;;  %v1765_v2 = vld [vmem:[#allocation2 + $0x108] sm:$0xf]  ;;  %v10813_v62 = vrot.slane %v1926_v13, 11 }
 0x1dc   :  { %v956_v45 = vadd.f32 %v955_v57, %v954_v16  ;;  %15497 = vst [vmem:[#allocation56_spill] sm:$0xff] %v10800_v30  ;;  %v1753_v16 = vld [vmem:[#allocation2 + $0xcc] sm:$0xf]  ;;  %v1769_v4 = vld [vmem:[#allocation2 + $0x11c] sm:$0xf]  ;;  %v1992_v57 = vshrl.u32 %v1737_v17, 16 }
 0x1dd   :  { %v983_v8 = vrot.slane %v982_v50, 2  ;;  %v1773_v44 = vld [vmem:[#allocation2 + $0x130] sm:$0xf]  ;;  %v2146_v5 = vshrl.u32 %v1765_v2, 16  ;;  %15502 = vst [vmem:[#allocation61_spill] sm:$0xff] %v10813_v62  ;;  %v10815_v58 = vrot.slane %v1948_v49, 11 }
 0x1de   :  { %v957_v6 = vadd.f32 %v956_v45, %v927_v60  ;;  %v2036_v60 = vshrl.u32 %v1745_v63, 16  ;;  %v10804_v45 = vrot.slane %v3599_v12, 4  ;;  %v10817_v31 = vrot.slane %v1970_v41, 11  ;;  %v10831_v13 = vld [vmem:[#allocation2 + $0x170] sm:$0xf]  ;;  %v15546_v62 = vld [vmem:[#allocation40_spill] sm:$0xff] }
 0x1df   :  { %v984_v11 = vadd.f32 %v983_v8, %v982_v50  ;;  %v2014_v50 = vshrl.u32 %v1741_v52, 16  ;;  %v2058_v8 = vshrl.u32 %v1749_v29, 16  ;;  %15503 = vst [vmem:[#allocation62_spill] sm:$0xff] %v10815_v58  ;;  %v2190_v12 = vshrl.u32 %v1773_v44, 16  ;;  %15511 = vst [vmem:[#allocation70_spill] sm:$0xff] %v10831_v13  ;;  %v15545_v58 = vld [vmem:[#allocation38_spill] sm:$0xff] }
 0x1e0   :  { %15499 = vst [vmem:[#allocation58_spill] sm:$0xff] %v10804_v45  ;;  %15504 = vst [vmem:[#allocation63_spill] sm:$0xff] %v10817_v31  ;;  %v10819_v21 = vrot.slane %v1992_v57, 11  ;;  %v10833_v29 = vld [vmem:[#allocation2 + $0x174] sm:$0xf] }
 0x1e1   :  { %v985_v39 = vrot.slane %v984_v11, 1  ;;  %v10821_v56 = vrot.slane %v2014_v50, 11  ;;  %v10825_v17 = vrot.slane %v2058_v8, 11  ;;  %15512 = vst [vmem:[#allocation71_spill] sm:$0xff] %v10833_v29  ;;  %v993_v49 = vld [vmem:[%s15083_s3] sm:$0x1] }
 0x1e2   :  { %15505 = vst [vmem:[#allocation64_spill] sm:$0xff] %v10819_v21  ;;  %v10850_v50 = vrot.slane %v2190_v12, 11  ;;  %v15543_v21 = vld [vmem:[#allocation39_spill] sm:$0xff]  ;;  %v15544_v31 = vld [vmem:[#allocation41_spill] sm:$0xff] }
 0x1e3   :  { %v986_v43 = vadd.f32 %v985_v39, %v984_v11  ;;  %v10806_v11 = vrot.slane %v1882_v53, 11  ;;  %v2102_v39 = vshrl.u32 %v1757_v54, 16  ;;  %15506 = vst [vmem:[#allocation65_spill] sm:$0xff] %v10821_v56  ;;  %v10823_v53 = vrot.slane %v2036_v60, 11  ;;  %15508 = vst [vmem:[#allocation67_spill] sm:$0xff] %v10825_v17  ;;  %v15540_v17 = vld [vmem:[#allocation35_spill] sm:$0xff] }
 0x1e4   :  { %15516 = vst [vmem:[#allocation75_spill] sm:$0xff] %v10850_v50  ;;  %v15542_v56 = vld [vmem:[#allocation37_spill] sm:$0xff]  ;;  %v15556_v29 = vld [vmem:[#allocation47_spill] sm:$0xff] }
 0x1e5   :  { %v987_v37 = vadd.f32 %v986_v43, %v957_v6  ;;  %15500 = vst [vmem:[#allocation59_spill] sm:$0xff] %v10806_v11  ;;  %v2080_v6 = vshrl.u32 %v1753_v16, 16  ;;  %v989_v43 = vld [vmem:[%s15082_s2] sm:$0x1]  ;;  %15507 = vst [vmem:[#allocation66_spill] sm:$0xff] %v10823_v53  ;;  %v10829_v63 = vrot.slane %v2102_v39, 11 }
 0x1e6   :  { %v10840_v16 = vrot.slane %v2146_v5, 11  ;;  %v15541_v53 = vld [vmem:[#allocation36_spill] sm:$0xff]  ;;  %v15552_v11 = vld [vmem:[#allocation42_spill] sm:$0xff] }
 0x1e7   :  { %v988_v19 = vmul.f32 0.001953125, %v987_v37  ;;  %v10811_v37 = vrot.slane %v1904_v1, 11  ;;  %v10827_v1 = vrot.slane %v2080_v6, 11  ;;  %15510 = vst [vmem:[#allocation69_spill] sm:$0xff] %v10829_v63 }
 0x1e8   :  { %15514 = vst [vmem:[#allocation73_spill] sm:$0xff] %v10840_v16 }
 0x1e9   :  { %v990_v33 = vadd.f32 1e-05, %v988_v19  ;;  %15501 = vst [vmem:[#allocation60_spill] sm:$0xff] %v10811_v37  ;;  %v2124_v19 = vshrl.u32 %v1761_v48, 16  ;;  %15509 = vst [vmem:[#allocation68_spill] sm:$0xff] %v10827_v1  ;;  %v15142_v48 = vshrl.u32 %v10831_v13, 16 }
 0x1ea   :  { %v15539_v1 = vld [vmem:[#allocation34_spill] sm:$0xff]  ;;  %v15548_v37 = vld [vmem:[#allocation43_spill] sm:$0xff]  ;;  %v15554_v13 = vld [vmem:[#allocation44_spill] sm:$0xff] }
 0x1eb   :  { %10301 = vrsqrt.f32 %v990_v33  ;;  %v2168_v33 = vshrl.u32 %v1769_v4, 16  ;;  %v10838_v41 = vrot.slane %v2124_v19, 11  ;;  %v10854_v60 = vrot.slane %v15142_v48, 7  ;;  %v15518_v19 = vld [vmem:[#allocation15_spill] sm:$0xff] }
 0x1ed   :  { %15513 = vst [vmem:[#allocation72_spill] sm:$0xff] %v10838_v41  ;;  %v10842_v54 = vrot.slane %v2168_v33, 11  ;;  %15517 = vst [vmem:[#allocation76_spill] sm:$0xff] %v10854_v60  ;;  %v15519_v33 = vld [vmem:[#allocation13_spill] sm:$0xff]  ;;  %v15535_v41 = vld [vmem:[#allocation30_spill] sm:$0xff] }
 0x1ef   :  { %15515 = vst [vmem:[#allocation74_spill] sm:$0xff] %v10842_v54 }
 0x1f8   :  { %v10302_v61 = vpop.eup %10301 }
 0x1f9   :  { %v992_v52 = vmul.f32 %v10302_v61, %v989_v43  ;;  %v15520_v61 = vld [vmem:[#allocation14_spill] sm:$0xff] }
 0x1fb   :  { %v994_v2 = vmul.f32 %v992_v52, %v10649_v23  ;;  %v10847_v4 = vrot.slane %v992_v52, %v10800_v30 }
 0x1fd   :  { %v995_v39 = vsub.f32 %v993_v49, %v994_v2  ;;  %v1063_v23 = vmul.f32 %v10847_v4, %v10644_v25  ;;  %v10864_v43 = vmul.f32 %v10847_v4, %v10459_v42  ;;  %v10868_v5 = vmul.f32 %v10847_v4, %v15518_v19  ;;  %v15521_v49 = vld [vmem:[#allocation17_spill] sm:$0xff]  ;;  %v15522_v25 = vld [vmem:[#allocation19_spill] sm:$0xff]  ;;  %v15523_v19 = vld [vmem:[#allocation16_spill] sm:$0xff] }
 0x1fe   :  { %v10872_v12 = vmul.f32 %v15519_v33, %v10847_v4  ;;  %v10876_v52 = vmul.f32 %v15520_v61, %v10847_v4  ;;  %v10880_v2 = vmul.f32 %v10847_v4, %v15521_v49  ;;  %v10884_v42 = vmul.f32 %v10847_v4, %v15522_v25  ;;  %v15524_v33 = vld [vmem:[#allocation18_spill] sm:$0xff]  ;;  %v15525_v61 = vld [vmem:[#allocation21_spill] sm:$0xff]  ;;  %v15526_v49 = vld [vmem:[#allocation23_spill] sm:$0xff] }
 0x1ff   :  { %v10887_v44 = vrot.slane %v995_v39, %v10800_v30  ;;  %v10891_v6 = vmul.f32 %v15523_v19, %v10847_v4  ;;  %v10895_v57 = vmul.f32 %v15524_v33, %v10847_v4  ;;  %v10899_v48 = vmul.f32 %v10847_v4, %v15525_v61  ;;  %v15527_v25 = vld [vmem:[#allocation20_spill] sm:$0xff]  ;;  %v15528_v30 = vld [vmem:[#allocation22_spill] sm:$0xff] }
 0x200   :  { %v10903_v8 = vmul.f32 %v10847_v4, %v15526_v49  ;;  %v10907_v39 = vmul.f32 %v15527_v25, %v10847_v4  ;;  %v10911_v19 = vmul.f32 %v15528_v30, %v10847_v4  ;;  %v10915_v33 = vmul.f32 %v10847_v4, %v10494_v0  ;;  %v15529_v61 = vld [vmem:[#allocation26_spill] sm:$0xff]  ;;  %v15530_v49 = vld [vmem:[#allocation24_spill] sm:$0xff]  ;;  %v15531_v25 = vld [vmem:[#allocation25_spill] sm:$0xff] }
 0x201   :  { %v1133_v45 = vadd.f32 %v10887_v44, %v1063_v23  ;;  %v10920_v51 = vmul.f32 %v10847_v4, %v15529_v61  ;;  %v10924_v46 = vmul.f32 %v15530_v49, %v10847_v4  ;;  %v10928_v60 = vmul.f32 %v15531_v25, %v10847_v4  ;;  %v15532_v30 = vld [vmem:[#allocation28_spill] sm:$0xff]  ;;  %v15533_v0 = vld [vmem:[#allocation29_spill] sm:$0xff]  ;;  %v15534_v23 = vld [vmem:[#allocation27_spill] sm:$0xff] }
 0x202   :  { %v10932_v50 = vmul.f32 %v10847_v4, %v15532_v30  ;;  %v10936_v54 = vmul.f32 %v10847_v4, %v15533_v0  ;;  %v10940_v61 = vmul.f32 %v15534_v23, %v10847_v4  ;;  %v10944_v49 = vmul.f32 %v10509_v10, %v10847_v4 }
 0x203   :  { %v1197_v16 = vmax.f32 %v1133_v45, 0.0  ;;  %v10948_v25 = vmul.f32 %v10847_v4, %v15535_v41  ;;  %v10952_v30 = vmul.f32 %v10847_v4, %v10524_v20  ;;  %v10956_v0 = vmul.f32 %v10515_v14, %v10847_v4 }
 0x204   :  { %v10960_v23 = vmul.f32 %v10521_v18, %v10847_v4  ;;  %v10964_v10 = vmul.f32 %v10847_v4, %v10530_v24  ;;  %v10968_v45 = vmul.f32 %v10847_v4, %v10536_v28  ;;  %v10972_v20 = vmul.f32 %v10527_v22, %v10847_v4  ;;  %v15536_v28 = vld [vmem:[#allocation31_spill] sm:$0xff] }
 0x205   :  { %v8592_v41 = vpack.c.bf16 %v1197_v16, %v1197_v16  ;;  %v10976_v14 = vmul.f32 %v10533_v26, %v10847_v4  ;;  %v10980_v18 = vmul.f32 %v10847_v4, %v10542_v32  ;;  %v10984_v24 = vmul.f32 %v10847_v4, %v10548_v36  ;;  %v15537_v16 = vld [vmem:[#allocation32_spill] sm:$0xff] }
 0x206   :  { %v10988_v63 = vmul.f32 %v15536_v28, %v10847_v4  ;;  %v10992_v22 = vmul.f32 %v10545_v34, %v10847_v4  ;;  %v10996_v26 = vmul.f32 %v10847_v4, %v10554_v40  ;;  %v11000_v32 = vmul.f32 %v10847_v4, %v15537_v16 }
 0x207   :  { %1710 = vst [vmem:[#allocation2 + $0x2a0] sm:$0xf] %v8592_v41  ;;  %v11004_v36 = vmul.f32 %v10551_v38, %v10847_v4  ;;  %v11008_v28 = vmul.f32 %v10557_v47, %v10847_v4  ;;  %v11012_v34 = vmul.f32 %v10847_v4, %v10566_v59  ;;  %v11016_v40 = vmul.f32 %v10847_v4, %v10572_v3  ;;  %v15538_v41 = vld [vmem:[#allocation33_spill] sm:$0xff] }
 0x208   :  { %v11020_v16 = vmul.f32 %v10563_v55, %v10847_v4  ;;  %v11024_v38 = vmul.f32 %v15538_v41, %v10847_v4  ;;  %v11028_v47 = vmul.f32 %v10847_v4, %v15539_v1  ;;  %v11032_v59 = vmul.f32 %v10847_v4, %v15540_v17 }
 0x209   :  { %v11036_v3 = vmul.f32 %v10575_v7, %v10847_v4  ;;  %v11040_v55 = vmul.f32 %v10581_v15, %v10847_v4  ;;  %v11044_v41 = vmul.f32 %v10847_v4, %v10590_v27  ;;  %v11048_v1 = vmul.f32 %v10847_v4, %v10596_v35 }
 0x20a   :  { %v11052_v17 = vmul.f32 %v15541_v53, %v10847_v4  ;;  %v11056_v7 = vmul.f32 %v15542_v56, %v10847_v4  ;;  %v11060_v15 = vmul.f32 %v10847_v4, %v15543_v21  ;;  %v11064_v27 = vmul.f32 %v10847_v4, %v15544_v31 }
 0x20b   :  { %v11068_v35 = vmul.f32 %v15545_v58, %v10847_v4  ;;  %v11072_v53 = vmul.f32 %v15546_v62, %v10847_v4  ;;  %v11076_v56 = vmul.f32 %v10847_v4, %v15548_v37  ;;  %v11080_v21 = vmul.f32 %v10847_v4, %v15550_v9 }
 0x20c   :  { %v11084_v31 = vmul.f32 %v15552_v11, %v10847_v4  ;;  %v11088_v58 = vmul.f32 %v15554_v13, %v10847_v4  ;;  %v11092_v62 = vmul.f32 %v10847_v4, %v15556_v29 }
 0x20d   :  { %15547 = vst [vmem:[#allocation15_spill] sm:$0xff] %v11072_v53  ;;  %15549 = vst [vmem:[#allocation13_spill] sm:$0xff] %v11076_v56  ;;  %v15558_v53 = vld [vmem:[#allocation49_spill] sm:$0xff]  ;;  %v15559_v56 = vld [vmem:[#allocation46_spill] sm:$0xff] }
 0x20e   :  { %15551 = vst [vmem:[#allocation14_spill] sm:$0xff] %v11080_v21  ;;  %15553 = vst [vmem:[#allocation17_spill] sm:$0xff] %v11084_v31  ;;  %v11096_v37 = vmul.f32 %v10847_v4, %v15558_v53  ;;  %v11100_v9 = vmul.f32 %v15559_v56, %v10847_v4  ;;  %v15560_v21 = vld [vmem:[#allocation48_spill] sm:$0xff]  ;;  %v15561_v31 = vld [vmem:[#allocation51_spill] sm:$0xff]  ;;  %v11120_v56 = vadd.f32 %v10887_v44, %v10864_v43 }
 0x20f   :  { %15555 = vst [vmem:[#allocation19_spill] sm:$0xff] %v11088_v58  ;;  %15557 = vst [vmem:[#allocation16_spill] sm:$0xff] %v11092_v62  ;;  %v11104_v11 = vmul.f32 %v15560_v21, %v10847_v4  ;;  %v11108_v13 = vmul.f32 %v10847_v4, %v15561_v31  ;;  %v15562_v58 = vld [vmem:[#allocation50_spill] sm:$0xff]  ;;  %v15563_v62 = vld [vmem:[#allocation52_spill] sm:$0xff]  ;;  %v11124_v21 = vadd.f32 %v10887_v44, %v10868_v5 }
 0x210   :  { %v11112_v29 = vmul.f32 %v15562_v58, %v10847_v4  ;;  %v11116_v53 = vmul.f32 %v15563_v62, %v10847_v4  ;;  %v11128_v31 = vadd.f32 %v10887_v44, %v10872_v12  ;;  %v11132_v58 = vadd.f32 %v10887_v44, %v10876_v52 }
 0x211   :  { %v11136_v4 = vadd.f32 %v10887_v44, %v10880_v2  ;;  %v11140_v43 = vadd.f32 %v10887_v44, %v10884_v42  ;;  %v11144_v5 = vadd.f32 %v10887_v44, %v10891_v6  ;;  %v11148_v12 = vadd.f32 %v10887_v44, %v10895_v57 }
 0x212   :  { %v11152_v52 = vadd.f32 %v10887_v44, %v10899_v48  ;;  %v11156_v2 = vadd.f32 %v10887_v44, %v10903_v8  ;;  %v11160_v42 = vadd.f32 %v10887_v44, %v10907_v39  ;;  %v11164_v6 = vadd.f32 %v10887_v44, %v10911_v19 }
 0x213   :  { %v11168_v57 = vadd.f32 %v10887_v44, %v10915_v33  ;;  %v11172_v48 = vadd.f32 %v10887_v44, %v10920_v51  ;;  %v11176_v8 = vadd.f32 %v10887_v44, %v10924_v46  ;;  %v11180_v39 = vadd.f32 %v10887_v44, %v10928_v60 }
 0x214   :  { %v11184_v19 = vadd.f32 %v10887_v44, %v10932_v50  ;;  %v11188_v33 = vadd.f32 %v10887_v44, %v10936_v54  ;;  %v11192_v51 = vadd.f32 %v10887_v44, %v10940_v61  ;;  %v11196_v46 = vadd.f32 %v10887_v44, %v10944_v49  ;;  %v15574_v62 = vld [vmem:[#allocation15_spill] sm:$0xff] }
 0x215   :  { %v11200_v60 = vadd.f32 %v10887_v44, %v10948_v25  ;;  %v11204_v50 = vadd.f32 %v10887_v44, %v10952_v30  ;;  %v11208_v54 = vadd.f32 %v10887_v44, %v10956_v0  ;;  %v11212_v61 = vadd.f32 %v10887_v44, %v10960_v23 }
 0x216   :  { %v11216_v49 = vadd.f32 %v10887_v44, %v10964_v10  ;;  %v11220_v25 = vadd.f32 %v10887_v44, %v10968_v45  ;;  %v11224_v30 = vadd.f32 %v10887_v44, %v10972_v20  ;;  %v11228_v0 = vadd.f32 %v10887_v44, %v10976_v14 }
 0x217   :  { %v11232_v23 = vadd.f32 %v10887_v44, %v10980_v18  ;;  %v11236_v10 = vadd.f32 %v10887_v44, %v10984_v24  ;;  %v11240_v45 = vadd.f32 %v10887_v44, %v10988_v63  ;;  %v11244_v20 = vadd.f32 %v10887_v44, %v10992_v22 }
 0x218   :  { %v11248_v14 = vadd.f32 %v10887_v44, %v10996_v26  ;;  %v11252_v18 = vadd.f32 %v10887_v44, %v11000_v32  ;;  %v11256_v24 = vadd.f32 %v10887_v44, %v11004_v36  ;;  %v11260_v63 = vadd.f32 %v10887_v44, %v11008_v28 }
 0x219   :  { %v11264_v22 = vadd.f32 %v10887_v44, %v11012_v34  ;;  %v11268_v26 = vadd.f32 %v10887_v44, %v11016_v40  ;;  %v11272_v32 = vadd.f32 %v10887_v44, %v11020_v16  ;;  %v11276_v36 = vadd.f32 %v10887_v44, %v11024_v38 }
 0x21a   :  { %15564 = vst [vmem:[#allocation18_spill] sm:$0xff] %v11256_v24  ;;  %15565 = vst [vmem:[#allocation21_spill] sm:$0xff] %v11260_v63  ;;  %v11280_v28 = vadd.f32 %v10887_v44, %v11028_v47  ;;  %v11284_v34 = vadd.f32 %v10887_v44, %v11032_v59  ;;  %v11288_v40 = vadd.f32 %v10887_v44, %v11036_v3 }
 0x21b   :  { %15566 = vst [vmem:[#allocation23_spill] sm:$0xff] %v11272_v32  ;;  %15567 = vst [vmem:[#allocation20_spill] sm:$0xff] %v11276_v36  ;;  %v11292_v16 = vadd.f32 %v10887_v44, %v11040_v55  ;;  %v11296_v38 = vadd.f32 %v10887_v44, %v11044_v41  ;;  %v11300_v47 = vadd.f32 %v10887_v44, %v11048_v1 }
 0x21c   :  { %v11304_v59 = vadd.f32 %v10887_v44, %v11052_v17  ;;  %v11308_v3 = vadd.f32 %v10887_v44, %v11056_v7  ;;  %v11312_v55 = vadd.f32 %v10887_v44, %v11060_v15  ;;  %v11316_v41 = vadd.f32 %v10887_v44, %v11064_v27 }
 0x21d   :  { %15568 = vst [vmem:[#allocation22_spill] sm:$0xff] %v11292_v16  ;;  %v11320_v1 = vadd.f32 %v10887_v44, %v11068_v35  ;;  %v11324_v17 = vadd.f32 %v10887_v44, %v15574_v62 }
 0x21e   :  { %15569 = vst [vmem:[#allocation26_spill] sm:$0xff] %v11304_v59  ;;  %15570 = vst [vmem:[#allocation24_spill] sm:$0xff] %v11308_v3  ;;  %v15576_v59 = vld [vmem:[#allocation13_spill] sm:$0xff]  ;;  %v15577_v3 = vld [vmem:[#allocation14_spill] sm:$0xff] }
 0x21f   :  { %15571 = vst [vmem:[#allocation25_spill] sm:$0xff] %v11312_v55  ;;  %15572 = vst [vmem:[#allocation28_spill] sm:$0xff] %v11316_v41  ;;  %v11328_v7 = vadd.f32 %v10887_v44, %v15576_v59  ;;  %v11332_v15 = vadd.f32 %v10887_v44, %v15577_v3  ;;  %v15578_v55 = vld [vmem:[#allocation17_spill] sm:$0xff]  ;;  %v15579_v41 = vld [vmem:[#allocation19_spill] sm:$0xff]  ;;  %v11348_v59 = vadd.f32 %v10887_v44, %v11096_v37 }
 0x220   :  { %15573 = vst [vmem:[#allocation29_spill] sm:$0xff] %v11320_v1  ;;  %15575 = vst [vmem:[#allocation27_spill] sm:$0xff] %v11324_v17  ;;  %v11336_v27 = vadd.f32 %v10887_v44, %v15578_v55  ;;  %v11340_v35 = vadd.f32 %v10887_v44, %v15579_v41  ;;  %v15580_v1 = vld [vmem:[#allocation16_spill] sm:$0xff]  ;;  %v11352_v3 = vadd.f32 %v10887_v44, %v11100_v9  ;;  %v1157_v9 = vmax.f32 %v11204_v50, 0.0 }
 0x221   :  { %v11344_v62 = vadd.f32 %v10887_v44, %v15580_v1  ;;  %15581 = vst [vmem:[#allocation30_spill] sm:$0xff] %v11348_v59  ;;  %v11356_v55 = vadd.f32 %v10887_v44, %v11104_v11  ;;  %v11360_v41 = vadd.f32 %v10887_v44, %v11108_v13  ;;  %v11364_v1 = vadd.f32 %v10887_v44, %v11112_v29  ;;  %v11414_v59 = vld [vmem:[#allocation8 + $0xf8] sm:$0xff]  }
 0x222   :  { %15582 = vst [vmem:[#allocation31_spill] sm:$0xff] %v11352_v3  ;;  %v11368_v37 = vadd.f32 %v10887_v44, %v11116_v53  ;;  %v1145_v44 = vmax.f32 %v11156_v2, 0.0  ;;  %v1148_v3 = vmax.f32 %v11168_v57, 0.0  ;;  %v1149_v11 = vmax.f32 %v11172_v48, 0.0  ;;  %15587 = vst [vmem:[#allocation36_spill] sm:$0xff] %v11414_v59  ;;  %9666 = vmatprep.subr.bf16.mxu0 %v11414_v59 }
 0x223   :  { %15583 = vst [vmem:[#allocation32_spill] sm:$0xff] %v11356_v55  ;;  %15584 = vst [vmem:[#allocation33_spill] sm:$0xff] %v11360_v41  ;;  %v1152_v41 = vmax.f32 %v11184_v19, 0.0  ;;  %v1153_v29 = vmax.f32 %v11188_v33, 0.0  ;;  %v1156_v53 = vmax.f32 %v11200_v60, 0.0  ;;  %v1160_v55 = vmax.f32 %v11216_v49, 0.0 }
 0x224   :  { %15585 = vst [vmem:[#allocation34_spill] sm:$0xff] %v11364_v1  ;;  %15586 = vst [vmem:[#allocation35_spill] sm:$0xff] %v11368_v37  ;;  %v1144_v1 = vmax.f32 %v11152_v52, 0.0  ;;  %v1161_v13 = vmax.f32 %v11220_v25, 0.0  ;;  %v1164_v52 = vmax.f32 %v11232_v23, 0.0  ;;  %v1165_v2 = vmax.f32 %v11236_v10, 0.0 }
 0x225   :  { %v1168_v57 = vmax.f32 %v11248_v14, 0.0  ;;  %v1169_v48 = vmax.f32 %v11252_v18, 0.0  ;;  %v1172_v19 = vmax.f32 %v11264_v22, 0.0  ;;  %v1173_v33 = vmax.f32 %v11268_v26, 0.0 }
 0x226   :  { %v1176_v60 = vmax.f32 %v11280_v28, 0.0  ;;  %v1177_v50 = vmax.f32 %v11284_v34, 0.0  ;;  %v1180_v25 = vmax.f32 %v11296_v38, 0.0  ;;  %v1181_v22 = vmax.f32 %v11300_v47, 0.0  ;;  %v15590_v32 = vld [vmem:[#allocation25_spill] sm:$0xff]  ;;  %v15591_v36 = vld [vmem:[#allocation28_spill] sm:$0xff] }
 0x227   :  { %v1184_v10 = vmax.f32 %v15590_v32, 0.0  ;;  %v1185_v28 = vmax.f32 %v15591_v36, 0.0  ;;  %v1188_v18 = vmax.f32 %v11328_v7, 0.0  ;;  %v1189_v38 = vmax.f32 %v11332_v15, 0.0 }
 0x228   :  { %v1192_v23 = vmax.f32 %v11344_v62, 0.0  ;;  %v15593_v63 = vld [vmem:[#allocation30_spill] sm:$0xff]  ;;  %v15598_v15 = vmax.f32 %v11120_v56, 0.0  ;;  %v15599_v26 = vmax.f32 %v11124_v21, 0.0  ;;  %v15601_v34 = vmax.f32 %v11140_v43, 0.0 }
 0x229   :  { %v1193_v32 = vmax.f32 %v15593_v63, 0.0  ;;  %v15600_v63 = vmax.f32 %v11136_v4, 0.0  ;;  %v8539_v16 = vpack.c.bf16 %v1144_v1, %v1144_v1  ;;  %v8540_v59 = vpack.c.bf16 %v1145_v44, %v1145_v44 }
 0x22a   :  { %v15596_v24 = vld [vmem:[#allocation33_spill] sm:$0xff]  ;;  %v8531_v47 = vpack.c.bf16 %v15598_v15, %v15598_v15  ;;  %v8532_v62 = vpack.c.bf16 %v15599_v26, %v15599_v26  ;;  %v8543_v17 = vpack.c.bf16 %v1148_v3, %v1148_v3  ;;  %v8544_v7 = vpack.c.bf16 %v1149_v11, %v1149_v11 }
 0x22b   :  { %v1196_v14 = vmax.f32 %v15596_v24, 0.0  ;;  %v8535_v36 = vpack.c.bf16 %v15600_v63, %v15600_v63  ;;  %v8536_v24 = vpack.c.bf16 %v15601_v34, %v15601_v34  ;;  %v8547_v37 = vpack.c.bf16 %v1152_v41, %v1152_v41  ;;  %1657 = vst [vmem:[#allocation2 + $0x6c] sm:$0xf] %v8539_v16  ;;  %1658 = vst [vmem:[#allocation2 + $0x70] sm:$0xf] %v8540_v59 }
 0x22c   :  { %1649 = vst [vmem:[#allocation2 + $0x1c] sm:$0xf] %v8531_v47  ;;  %v8548_v56 = vpack.c.bf16 %v1153_v29, %v1153_v29  ;;  %v8551_v15 = vpack.c.bf16 %v1156_v53, %v1156_v53  ;;  %v8552_v49 = vpack.c.bf16 %v1157_v9, %v1157_v9  ;;  %v8555_v21 = vpack.c.bf16 %v1160_v55, %v1160_v55  ;;  %v15622_v47 = vld [vmem:[#allocation23_spill] sm:$0xff] }
 0x22d   :  { %1650 = vst [vmem:[#allocation2 + $0x20] sm:$0xf] %v8532_v62  ;;  %1653 = vst [vmem:[#allocation2 + $0x44] sm:$0xf] %v8535_v36  ;;  %v8556_v4 = vpack.c.bf16 %v1161_v13, %v1161_v13  ;;  %v8559_v26 = vpack.c.bf16 %v1164_v52, %v1164_v52  ;;  %v8560_v63 = vpack.c.bf16 %v1165_v2, %v1165_v2  ;;  %v15602_v52 = vmax.f32 %v11128_v31, 0.0  ;;  %v15624_v36 = vld [vmem:[#allocation20_spill] sm:$0xff] }
 0x22e   :  { %1654 = vst [vmem:[#allocation2 + $0x48] sm:$0xf] %v8536_v24  ;;  %v8563_v43 = vpack.c.bf16 %v1168_v57, %v1168_v57  ;;  %1661 = vst [vmem:[#allocation2 + $0x94] sm:$0xf] %v8543_v17  ;;  %v8564_v3 = vpack.c.bf16 %v1169_v48, %v1169_v48  ;;  %v8567_v1 = vpack.c.bf16 %v1172_v19, %v1172_v19  ;;  %v15603_v2 = vmax.f32 %v11132_v58, 0.0 }
 0x22f   :  { %1662 = vst [vmem:[#allocation2 + $0x98] sm:$0xf] %v8544_v7  ;;  %1665 = vst [vmem:[#allocation2 + $0xbc] sm:$0xf] %v8547_v37  ;;  %v8568_v41 = vpack.c.bf16 %v1173_v33, %v1173_v33  ;;  %v8571_v11 = vpack.c.bf16 %v1176_v60, %v1176_v60  ;;  %v8572_v55 = vpack.c.bf16 %v1177_v50, %v1177_v50  ;;  %v15604_v48 = vmax.f32 %v11144_v5, 0.0 }
 0x230   :  { %1666 = vst [vmem:[#allocation2 + $0xc0] sm:$0xf] %v8548_v56  ;;  %1669 = vst [vmem:[#allocation2 + $0xe4] sm:$0xf] %v8551_v15  ;;  %v8575_v9 = vpack.c.bf16 %v1180_v25, %v1180_v25  ;;  %v8576_v29 = vpack.c.bf16 %v1181_v22, %v1181_v22  ;;  %v8579_v16 = vpack.c.bf16 %v1184_v10, %v1184_v10  ;;  %v15605_v19 = vmax.f32 %v11148_v12, 0.0  ;;  %v15618_v22 = vld [vmem:[#allocation18_spill] sm:$0xff] }
 0x231   :  { %1670 = vst [vmem:[#allocation2 + $0xe8] sm:$0xf] %v8552_v49  ;;  %1673 = vst [vmem:[#allocation2 + $0x10c] sm:$0xf] %v8555_v21  ;;  %v8580_v59 = vpack.c.bf16 %v1185_v28, %v1185_v28  ;;  %v8583_v17 = vpack.c.bf16 %v1188_v18, %v1188_v18  ;;  %v8584_v13 = vpack.c.bf16 %v1189_v38, %v1189_v38  ;;  %v15606_v60 = vmax.f32 %v11160_v42, 0.0  ;;  %v15620_v28 = vld [vmem:[#allocation21_spill] sm:$0xff] }
 0x232   :  { %1674 = vst [vmem:[#allocation2 + $0x110] sm:$0xf] %v8556_v4  ;;  %1677 = vst [vmem:[#allocation2 + $0x134] sm:$0xf] %v8559_v26  ;;  %v8587_v37 = vpack.c.bf16 %v1192_v23, %v1192_v23  ;;  %v8588_v44 = vpack.c.bf16 %v1193_v32, %v1193_v32  ;;  %v8591_v53 = vpack.c.bf16 %v1196_v14, %v1196_v14  ;;  %v15607_v50 = vmax.f32 %v11164_v6, 0.0  ;;  %v15629_v15 = vld [vmem:[#allocation26_spill] sm:$0xff] }
 0x233   :  { %1678 = vst [vmem:[#allocation2 + $0x138] sm:$0xf] %v8560_v63  ;;  %1681 = vst [vmem:[#allocation2 + $0x184] sm:$0xf] %v8563_v43  ;;  %v8662_v57 = vpack.c.bf16 %v15603_v2, %v15602_v52  ;;  %v8667_v33 = vpack.c.bf16 %v15605_v19, %v15604_v48  ;;  %v15608_v25 = vmax.f32 %v11176_v8, 0.0  ;;  %v15609_v31 = vmax.f32 %v11180_v39, 0.0 }
 0x234   :  { %1682 = vst [vmem:[#allocation2 + $0x188] sm:$0xf] %v8564_v3  ;;  %1685 = vst [vmem:[#allocation2 + $0x1ac] sm:$0xf] %v8567_v1  ;;  %v8672_v49 = vpack.c.bf16 %v15607_v50, %v15606_v60  ;;  %v15610_v23 = vmax.f32 %v11192_v51, 0.0  ;;  %v15611_v5 = vmax.f32 %v11196_v46, 0.0 }
 0x235   :  { %1686 = vst [vmem:[#allocation2 + $0x1b0] sm:$0xf] %v8568_v41  ;;  %1689 = vst [vmem:[#allocation2 + $0x1d4] sm:$0xf] %v8571_v11  ;;  %v8677_v58 = vpack.c.bf16 %v15609_v31, %v15608_v25  ;;  %v15612_v10 = vmax.f32 %v11208_v54, 0.0  ;;  %v15613_v14 = vmax.f32 %v11212_v61, 0.0 }
 0x236   :  { %1690 = vst [vmem:[#allocation2 + $0x1d8] sm:$0xf] %v8572_v55  ;;  %1693 = vst [vmem:[#allocation2 + $0x1fc] sm:$0xf] %v8575_v9  ;;  %v8682_v12 = vpack.c.bf16 %v15611_v5, %v15610_v23  ;;  %v1718_v42 = vld [vmem:[#allocation2 + $0x1c] sm:$0xf] }
 0x237   :  { %1694 = vst [vmem:[#allocation2 + $0x200] sm:$0xf] %v8576_v29  ;;  %1697 = vst [vmem:[#allocation2 + $0x224] sm:$0xf] %v8579_v16  ;;  %v8687_v18 = vpack.c.bf16 %v15613_v14, %v15612_v10  ;;  %v15614_v6 = vmax.f32 %v11224_v30, 0.0  ;;  %v15615_v8 = vmax.f32 %v11228_v0, 0.0 }
 0x238   :  { %1698 = vst [vmem:[#allocation2 + $0x228] sm:$0xf] %v8580_v59  ;;  %1701 = vst [vmem:[#allocation2 + $0x24c] sm:$0xf] %v8583_v17  ;;  %v15616_v51 = vmax.f32 %v11240_v45, 0.0  ;;  %v15617_v46 = vmax.f32 %v11244_v20, 0.0 }
 0x239   :  { %1702 = vst [vmem:[#allocation2 + $0x250] sm:$0xf] %v8584_v13  ;;  %1705 = vst [vmem:[#allocation2 + $0x274] sm:$0xf] %v8587_v37  ;;  %v8692_v39 = vpack.c.bf16 %v15615_v8, %v15614_v6  ;;  %v15619_v61 = vmax.f32 %v15618_v22, 0.0  ;;  %v15621_v34 = vmax.f32 %v15620_v28, 0.0 }
 0x23a   :  { %8899 = vst [vmem:[#allocation2 + $0x30] sm:$0xff] %v8662_v57   ;;  %8900 = vst [vmem:[#allocation2 + $0x58] sm:$0xff] %v8667_v33   ;;  %v8697_v54 = vpack.c.bf16 %v15617_v46, %v15616_v51  ;;  %v15623_v32 = vmax.f32 %v15622_v47, 0.0  ;;  %v15625_v7 = vmax.f32 %v15624_v36, 0.0  ;;  %v1719_v30 = vld [vmem:[#allocation2 + $0x20] sm:$0xf] }
 0x23b   :  { %v8702_v38 = vpack.c.bf16 %v15621_v34, %v15619_v61  ;;  %1706 = vst [vmem:[#allocation2 + $0x278] sm:$0xf] %v8588_v44  ;;  %1709 = vst [vmem:[#allocation2 + $0x29c] sm:$0xf] %v8591_v53  ;;  %v11488_v0 = vld [vmem:[#allocation2 + $0x44] sm:$0xf]  ;;  %v11514_v19 = vcombine.low %v1718_v42, %v1719_v30 }
 0x23c   :  { %v8707_v62 = vpack.c.bf16 %v15625_v7, %v15623_v32  ;;  %8901 = vst [vmem:[#allocation2 + $0x80] sm:$0xff] %v8672_v49   ;;  %8902 = vst [vmem:[#allocation2 + $0xa8] sm:$0xff] %v8677_v58   ;;  %v15626_v45 = vmax.f32 %v11288_v40, 0.0  ;;  %v15627_v20 = vld [vmem:[#allocation22_spill] sm:$0xff]  ;;  %v15630_v21 = vmax.f32 %v15629_v15, 0.0  ;;  %v15631_v4 = vld [vmem:[#allocation24_spill] sm:$0xff] }
 0x23d   :  { %8903 = vst [vmem:[#allocation2 + $0xd0] sm:$0xff] %v8682_v12   ;;  %8904 = vst [vmem:[#allocation2 + $0xf8] sm:$0xff] %v8687_v18   ;;  %v15628_v24 = vmax.f32 %v15627_v20, 0.0  ;;  %v15632_v26 = vmax.f32 %v15631_v4, 0.0  ;;  %v15633_v43 = vld [vmem:[#allocation29_spill] sm:$0xff]  ;;  %v15635_v1 = vld [vmem:[#allocation27_spill] sm:$0xff]  ;;  %9443 = vmatmul.mubr.bf16.vlgmr.msra.gmra.mxu1 %v11514_v19 }
 0x23e   :  { %v15634_v3 = vmax.f32 %v15633_v43, 0.0  ;;  %v15636_v41 = vmax.f32 %v15635_v1, 0.0  ;;  %v15637_v55 = vmax.f32 %v11336_v27, 0.0  ;;  %v15638_v9 = vmax.f32 %v11340_v35, 0.0  ;;  %8905 = vst [vmem:[#allocation2 + $0x120] sm:$0xff] %v8692_v39   ;;  %8906 = vst [vmem:[#allocation2 + $0x148] sm:$0xff] %v8697_v54  }
 0x23f   :  { %v8712_v56 = vpack.c.bf16 %v15628_v24, %v15626_v45  ;;  %v8717_v63 = vpack.c.bf16 %v15632_v26, %v15630_v21  ;;  %8907 = vst [vmem:[#allocation2 + $0x198] sm:$0xff] %v8702_v38   ;;  %8908 = vst [vmem:[#allocation2 + $0x1c0] sm:$0xff] %v8707_v62   ;;  %v15639_v40 = vld [vmem:[#allocation31_spill] sm:$0xff]  ;;  %v15641_v59 = vld [vmem:[#allocation32_spill] sm:$0xff]  ;;  %v1887_v57 = vshrl.u32 %v1718_v42, 16  ;;  %v1890_v48 = vshll.u32 %v1718_v42, 16 }
 0x240   :  { %v8722_v11 = vpack.c.bf16 %v15636_v41, %v15634_v3  ;;  %v8727_v29 = vpack.c.bf16 %v15638_v9, %v15637_v55  ;;  %v15640_v16 = vmax.f32 %v15639_v40, 0.0  ;;  %v15642_v17 = vmax.f32 %v15641_v59, 0.0  ;;  %v15643_v37 = vld [vmem:[#allocation34_spill] sm:$0xff]  ;;  %v15645_v53 = vld [vmem:[#allocation35_spill] sm:$0xff]  ;;  %15647 = vst [vmem:[#allocation37_spill] sm:$0xff] %v11514_v19  ;;  %v15653_v51 = vld [vmem:[#allocation53_spill] sm:$0xff] }
 0x241   :  { %v15644_v44 = vmax.f32 %v15643_v37, 0.0  ;;  %v15646_v52 = vmax.f32 %v15645_v53, 0.0  ;;  %8909 = vst [vmem:[#allocation2 + $0x1e8] sm:$0xff] %v8712_v56   ;;  %8910 = vst [vmem:[#allocation2 + $0x210] sm:$0xff] %v8717_v63   ;;  %v1896_v27 = vshrl.u32 %v1719_v30, 16  ;;  %v1899_v35 = vshll.u32 %v1719_v30, 16  ;;  %9587 = vmatpush3.bf16.msra.mxu1 %v15653_v51 }
 0x242   :  { %v8732_v13 = vpack.c.bf16 %v15642_v17, %v15640_v16  ;;  %8911 = vst [vmem:[#allocation2 + $0x238] sm:$0xff] %v8722_v11   ;;  %8912 = vst [vmem:[#allocation2 + $0x260] sm:$0xff] %v8727_v29   ;;  %v1931_v33 = vshrl.u32 %v11488_v0, 16  ;;  %v10215_v60 = vld [vmem:[#allocation8 + $0xb0] sm:$0xff]   ;;  %v1889_v50 = vrot.slane %v1887_v57, 7  ;;  %v3606_v49 = vrot.slane %v1887_v57, 4 }
 0x243   :  { %v8737_v2 = vpack.c.bf16 %v15646_v52, %v15644_v44  ;;  %v3607_v25 = vrot.slane %v1890_v48, 5  ;;  %v15648_v31 = vld [vmem:[#allocation71_spill] sm:$0xff]  ;;  %v1898_v5 = vrot.slane %v1896_v27, 7  ;;  %v11522_v12 = vrot.slane %v1899_v35, 5  ;;  %v11524_v14 = vld [vmem:[#allocation2 + $0x48] sm:$0xf]  ;;  %9588 = vmatprep.subr.bf16.mxu1 %v10215_v60 }
 0x244   :  { %8913 = vst [vmem:[#allocation2 + $0x288] sm:$0xff] %v8732_v13   ;;  %v15649_v58 = vshrl.u32 %v15648_v31, 16  ;;  %v3612_v10 = vrot.slane %v1896_v27, 4  ;;  %v15650_v18 = vld [vmem:[#allocation70_spill] sm:$0xff]  ;;  %v1892_v8 = vor.u32 %v1890_v48, %v1889_v50  ;;  %v1934_v46 = vshll.u32 %v11488_v0, 16  ;;  %v15657_v24 = vld [vmem:[#allocation59_spill] sm:$0xff] }
 0x245   :  { %8914 = vst [vmem:[#allocation2 + $0x2b0] sm:$0xff] %v8737_v2   ;;  %v15651_v42 = vshrl.u32 %v15650_v18, 16  ;;  %v3608_v39 = vor.u32 %v3607_v25, %v3606_v49  ;;  %v10220_v54 = vld [vmem:[#allocation8 + $0xa8] sm:$0xff]   ;;  %v15654_v22 = vshll.u32 %v15650_v18, 16  ;;  %v1894_v28 = vrot.slane %v1889_v50, 4  ;;  %9589 = vmatpush3.bf16.msra.mxu1 %v10215_v60  ;;  %v10225_v29 = vld [vmem:[#allocation8 + $0xa0] sm:$0xff]  }
 0x246   :  { %v11519_v23 = vrot.slane %v15649_v58, 7  ;;  %v1901_v34 = vor.u32 %v1899_v35, %v1898_v5  ;;  %v3613_v38 = vor.u32 %v3612_v10, %v11522_v12  ;;  %v1722_v47 = vld [vmem:[#allocation2 + $0x30] sm:$0xf]  ;;  %v11537_v32 = vld [vmem:[#allocation2 + $0x34] sm:$0xf]  ;;  %v11539_v36 = vrot.slane %v1931_v33, 7  ;;  %9590 = vmatprep.subr.bf16.mxu1 %v10220_v54 }
 0x247   :  { %v11528_v6 = vrot.slane %v15651_v42, 4  ;;  %v11534_v61 = vrot.slane %v15654_v22, 5  ;;  %v1909_v7 = vshrl.u32 %v1722_v47, 16  ;;  %v1912_v62 = vshll.u32 %v1722_v47, 16  ;;  %v11558_v1 = vld [vmem:[#allocation2 + $0x58] sm:$0xf] }
 0x248   :  { %v1918_v30 = vshrl.u32 %v11537_v32, 16  ;;  %v1940_v45 = vshrl.u32 %v11524_v14, 16  ;;  %v11544_v20 = vcombine.low %v1722_v47, %v11537_v32  ;;  %v1893_v15 = vsel %vm10792_vm2, %v15657_v24, %v1892_v8  ;;  %v11568_v9 = vld [vmem:[#allocation2 + $0x5c] sm:$0xf]  ;;  %v10246_v13 = vld [vmem:[#allocation8 + $0xf0] sm:$0xff]   ;;  %v15660_v2 = vld [vmem:[#allocation60_spill] sm:$0xff] }
 0x249   :  { %15652 = vst [vmem:[#allocation39_spill] sm:$0xff] %v11528_v6  ;;  %15655 = vst [vmem:[#allocation41_spill] sm:$0xff] %v11534_v61  ;;  %v15171_v21 = vshll.u32 %v11524_v14, 16  ;;  %v11552_v4 = vcombine.low %v11488_v0, %v11524_v14  ;;  %v11554_v26 = vrot.slane %v3608_v39, 4  ;;  %v11556_v63 = vrot.slane %v3613_v38, 4  ;;  %9591 = vmatpush3.bf16.msra.mxu1 %v10220_v54  ;;  %v10230_v5 = vld [vmem:[#allocation8 + $0x98] sm:$0xff]  }
 0x24a   :  { %15656 = vst [vmem:[#allocation38_spill] sm:$0xff] %v11544_v20  ;;  %v1911_v43 = vrot.slane %v1909_v7, 7  ;;  %v1920_v3 = vrot.slane %v1918_v30, 7  ;;  %v15172_v41 = vshll.u32 %v11537_v32, 16  ;;  %9446 = vmatprep.mubr.bf16.mxu1 %v11544_v20  ;;  %v11562_v11 = vrot.slane %v1909_v7, 4  ;;  %9592 = vmatprep.subr.bf16.mxu1 %v10225_v29  ;;  %v15662_v10 = vld [vmem:[#allocation36_spill] sm:$0xff] }
 0x24b   :  { %15659 = vst [vmem:[#allocation40_spill] sm:$0xff] %v11552_v4  ;;  %v11564_v55 = vrot.slane %v1912_v62, 5  ;;  %v1902_v0 = vsel %vm10792_vm2, %v1894_v28, %v1901_v34  ;;  %v11570_v40 = vrot.slane %v1918_v30, 4  ;;  %v1942_v59 = vrot.slane %v1940_v45, 7  ;;  %9447 = vmatmul.mubr.bf16.gmra.mxu1 %v11552_v4  ;;  %v11599_v58 = vld [vmem:[#allocation2 + $0x70] sm:$0xf] }
 0x24c   :  { %v11572_v16 = vcombine.low %v1893_v15, %v1902_v0  ;;  %v1914_v17 = vor.u32 %v1912_v62, %v1911_v43  ;;  %v11575_v37 = vrot.slane %v1931_v33, 4  ;;  %v1916_v44 = vrot.slane %v1911_v43, 4  ;;  %v11590_v33 = vld [vmem:[#allocation2 + $0x6c] sm:$0xf]  ;;  %v10248_v54 = vld [vmem:[#allocation8 + $0xe8] sm:$0xff]   ;;  %v15664_v62 = vld [vmem:[#allocation61_spill] sm:$0xff] }
 0x24d   :  { %v1923_v53 = vor.u32 %v15172_v41, %v1920_v3  ;;  %v1953_v52 = vshrl.u32 %v11558_v1, 16  ;;  %v1956_v48 = vshll.u32 %v11558_v1, 16  ;;  %v1962_v27 = vshrl.u32 %v11568_v9, 16  ;;  %9593 = vmatpush3.bf16.msra.mxu1 %v10225_v29  ;;  %v11631_v3 = vld [vmem:[#allocation2 + $0x84] sm:$0xf] }
 0x24e   :  { %9523 = vmatmul.mubr.bf16.vlgmr.msra.gmra.mxu0 %v11572_v16  ;;  %v1915_v57 = vsel %vm10792_vm2, %v15660_v2, %v1914_v17  ;;  %v11588_v35 = vcombine.low %v11558_v1, %v11568_v9  ;;  %v11592_v60 = vrot.slane %v1934_v46, 5  ;;  %v11594_v50 = vrot.slane %v1940_v45, 4  ;;  %v11621_v45 = vld [vmem:[#allocation2 + $0x80] sm:$0xf]  ;;  %9594 = vmatprep.subr.bf16.mxu1 %v10230_v5 }
 0x24f   :  { %v1924_v49 = vsel %vm10792_vm2, %v1916_v44, %v1923_v53  ;;  %v15170_v25 = vshll.u32 %v11568_v9, 16  ;;  %9667 = vmatpush3.bf16.msra.mxu0 %v15662_v10  ;;  %v1955_v8 = vrot.slane %v1953_v52, 7  ;;  %v11605_v39 = vrot.slane %v1953_v52, 4  ;;  %v10235_v1 = vld [vmem:[#allocation8 + $0x90] sm:$0xff]   ;;  %v10251_v44 = vld [vmem:[#allocation8 + $0xe0] sm:$0xff]  }
 0x250   :  { %15661 = vst [vmem:[#allocation43_spill] sm:$0xff] %v11588_v35  ;;  %v11602_v42 = vcombine.low %v1915_v57, %v1924_v49  ;;  %9450 = vmatprep.mubr.bf16.mxu1 %v11588_v35  ;;  %v1936_v51 = vor.u32 %v1934_v46, %v11539_v36  ;;  %9668 = vmatprep.subr.bf16.mxu0 %v10246_v13  ;;  %v1964_v22 = vrot.slane %v1962_v27, 7  ;;  %v1938_v28 = vrot.slane %v11539_v36, 4  ;;  %v11651_v10 = vld [vmem:[#allocation2 + $0x94] sm:$0xf] }
 0x251   :  { %v1945_v34 = vor.u32 %v15171_v21, %v1942_v59  ;;  %v1975_v38 = vshrl.u32 %v11590_v33, 16  ;;  %v11613_v47 = vrot.slane %v1956_v48, 5  ;;  %v11615_v7 = vrot.slane %v1962_v27, 4  ;;  %9595 = vmatpush3.bf16.msra.mxu1 %v10230_v5 }
 0x252   :  { %15663 = vst [vmem:[#allocation45_spill] sm:$0xff] %v11602_v42  ;;  %9526 = vmatprep.mubr.bf16.mxu0 %v11602_v42  ;;  %v1937_v46 = vsel %vm10792_vm2, %v15664_v62, %v1936_v51  ;;  %v1984_v30 = vshrl.u32 %v11599_v58, 16  ;;  %v1978_v24 = vshll.u32 %v11590_v33, 16  ;;  %v15169_v15 = vshll.u32 %v11599_v58, 16  ;;  %9596 = vmatprep.subr.bf16.mxu1 %v10235_v1 }
 0x253   :  { %v1946_v36 = vsel %vm10792_vm2, %v1938_v28, %v1945_v34  ;;  %v11629_v43 = vcombine.low %v11590_v33, %v11599_v58  ;;  %9669 = vmatpush3.bf16.msra.mxu0 %v10246_v13  ;;  %v1977_v59 = vrot.slane %v1975_v38, 7  ;;  %v11635_v29 = vrot.slane %v1975_v38, 4  ;;  %v15667_v13 = vld [vmem:[#allocation62_spill] sm:$0xff] }
 0x254   :  { %v11633_v0 = vcombine.low %v1937_v46, %v1946_v36  ;;  %v1958_v17 = vor.u32 %v1956_v48, %v1955_v8  ;;  %9670 = vmatprep.subr.bf16.mxu0 %v10248_v54  ;;  %v1986_v53 = vrot.slane %v1984_v30, 7  ;;  %v1960_v52 = vrot.slane %v1955_v8, 4  ;;  %v11660_v34 = vld [vmem:[#allocation2 + $0x98] sm:$0xf] }
 0x255   :  { %15665 = vst [vmem:[#allocation42_spill] sm:$0xff] %v11629_v43  ;;  %9451 = vmatmul.mubr.bf16.gmra.mxu1 %v11629_v43  ;;  %v1967_v2 = vor.u32 %v15170_v25, %v1964_v22  ;;  %v1997_v57 = vshrl.u32 %v11621_v45, 16  ;;  %v2000_v33 = vshll.u32 %v11621_v45, 16  ;;  %v2006_v48 = vshrl.u32 %v11631_v3, 16  ;;  %v10240_v38 = vld [vmem:[#allocation8 + $0x88] sm:$0xff]   ;;  %v10256_v43 = vld [vmem:[#allocation8 + $0x138] sm:$0xff]  }
 0x256   :  { %15666 = vst [vmem:[#allocation44_spill] sm:$0xff] %v11633_v0  ;;  %9527 = vmatmul.mubr.bf16.gmra.mxu0 %v11633_v0  ;;  %v1959_v27 = vsel %vm10792_vm2, %v15667_v13, %v1958_v17  ;;  %v11649_v49 = vcombine.low %v11621_v45, %v11631_v3  ;;  %v11653_v8 = vrot.slane %v1978_v24, 5  ;;  %v11655_v51 = vrot.slane %v1984_v30, 4  ;;  %v10252_v30 = vld [vmem:[#allocation8 + $0xd8] sm:$0xff]   ;;  %9597 = vmatpush3.bf16.msra.mxu1 %v10235_v1 }
 0x257   :  { %v1968_v22 = vsel %vm10792_vm2, %v1960_v52, %v1967_v2  ;;  %v15175_v28 = vshll.u32 %v11631_v3, 16  ;;  %9671 = vmatpush3.bf16.msra.mxu0 %v10248_v54  ;;  %v1999_v46 = vrot.slane %v1997_v57, 7  ;;  %v11665_v5 = vrot.slane %v1997_v57, 4  ;;  %v11689_v25 = vld [vmem:[#allocation2 + $0xac] sm:$0xf]  ;;  %9598 = vmatprep.subr.bf16.mxu1 %v10240_v38 }
 0x258   :  { %15668 = vst [vmem:[#allocation47_spill] sm:$0xff] %v11649_v49  ;;  %v11662_v62 = vcombine.low %v1959_v27, %v1968_v22  ;;  %9454 = vmatprep.mubr.bf16.mxu1 %v11649_v49  ;;  %v1980_v45 = vor.u32 %v1978_v24, %v1977_v59  ;;  %9672 = vmatprep.subr.bf16.mxu0 %v10251_v44  ;;  %v2008_v36 = vrot.slane %v2006_v48, 7  ;;  %v1982_v17 = vrot.slane %v1977_v59, 4  ;;  %v15670_v27 = vld [vmem:[#allocation63_spill] sm:$0xff]  ;;  %v11679_v22 = vld [vmem:[#allocation2 + $0xa8] sm:$0xf] }
 0x259   :  { %v1989_v52 = vor.u32 %v15169_v15, %v1986_v53  ;;  %v2019_v2 = vshrl.u32 %v11651_v10, 16  ;;  %v11671_v54 = vrot.slane %v2000_v33, 5  ;;  %v11673_v13 = vrot.slane %v2006_v48, 4 }
 0x25a   :  { %15669 = vst [vmem:[#allocation49_spill] sm:$0xff] %v11662_v62  ;;  %9530 = vmatprep.mubr.bf16.mxu0 %v11662_v62  ;;  %v1981_v57 = vsel %vm10792_vm2, %v15670_v27, %v1980_v45  ;;  %v2028_v24 = vshrl.u32 %v11660_v34, 16  ;;  %v2022_v53 = vshll.u32 %v11651_v10, 16  ;;  %v11687_v48 = vcombine.low %v11651_v10, %v11660_v34  ;;  %v10247_v45 = vld [vmem:[#allocation8 + $0x80] sm:$0xff]   ;;  %9599 = vmatpush3.bf16.msra.mxu1 %v10240_v38 }
 0x25b   :  { %v1990_v59 = vsel %vm10792_vm2, %v1982_v17, %v1989_v52  ;;  %9673 = vmatpush3.bf16.msra.mxu0 %v10251_v44  ;;  %v2021_v21 = vrot.slane %v2019_v2, 7  ;;  %v11693_v1 = vrot.slane %v2019_v2, 4  ;;  %v2002_v41 = vor.u32 %v2000_v33, %v1999_v46  ;;  %v10254_v17 = vld [vmem:[#allocation8 + $0xd0] sm:$0xff]   ;;  %v15673_v44 = vld [vmem:[#allocation64_spill] sm:$0xff]  ;;  %9600 = vmatprep.subr.bf16.mxu1 %v10247_v45 }
 0x25c   :  { %15671 = vst [vmem:[#allocation46_spill] sm:$0xff] %v11687_v48  ;;  %v11691_v27 = vcombine.low %v1981_v57, %v1990_v59  ;;  %9674 = vmatprep.subr.bf16.mxu0 %v10252_v30  ;;  %v2030_v52 = vrot.slane %v2028_v24, 7  ;;  %v2004_v15 = vrot.slane %v1999_v46, 4  ;;  %v2011_v10 = vor.u32 %v15175_v28, %v2008_v36  ;;  %v11709_v46 = vld [vmem:[#allocation2 + $0xbc] sm:$0xf] }
 0x25d   :  { %9455 = vmatmul.mubr.bf16.gmra.mxu1 %v11687_v48  ;;  %v2041_v49 = vshrl.u32 %v11679_v22, 16  ;;  %v2003_v57 = vsel %vm10792_vm2, %v15673_v44, %v2002_v41  ;;  %v2044_v2 = vshll.u32 %v11679_v22, 16  ;;  %v2050_v33 = vshrl.u32 %v11689_v25, 16  ;;  %v11718_v44 = vld [vmem:[#allocation2 + $0xc0] sm:$0xf] }
 0x25e   :  { %15672 = vst [vmem:[#allocation48_spill] sm:$0xff] %v11691_v27  ;;  %9531 = vmatmul.mubr.bf16.gmra.mxu0 %v11691_v27  ;;  %v11707_v59 = vcombine.low %v11679_v22, %v11689_v25  ;;  %v11711_v36 = vrot.slane %v2022_v53, 5  ;;  %v11713_v28 = vrot.slane %v2028_v24, 4  ;;  %v2012_v48 = vsel %vm10792_vm2, %v2004_v15, %v2011_v10  ;;  %15675 = vst [vmem:[#allocation50_spill] sm:$0xff] %v11718_v44  ;;  %v10255_v24 = vld [vmem:[#allocation8 + $0xc8] sm:$0xff]  }
 0x25f   :  { %9675 = vmatpush3.bf16.msra.mxu0 %v10252_v30  ;;  %v11720_v35 = vcombine.low %v2003_v57, %v2012_v48  ;;  %v2043_v22 = vrot.slane %v2041_v49, 7  ;;  %v11723_v38 = vrot.slane %v2041_v49, 4  ;;  %v2024_v4 = vor.u32 %v2022_v53, %v2021_v21  ;;  %v15679_v57 = vld [vmem:[#allocation65_spill] sm:$0xff]  ;;  %9601 = vmatpush3.bf16.msra.mxu1 %v10247_v45 }
 0x260   :  { %15674 = vst [vmem:[#allocation51_spill] sm:$0xff] %v11707_v59  ;;  %9458 = vmatprep.mubr.bf16.mxu1 %v11707_v59  ;;  %9676 = vmatprep.subr.bf16.mxu0 %v10254_v17  ;;  %v2052_v20 = vrot.slane %v2050_v33, 7  ;;  %v2026_v19 = vrot.slane %v2021_v21, 4  ;;  %v15677_v15 = vshll.u32 %v11660_v34, 16  ;;  %v2063_v41 = vshrl.u32 %v11709_v46, 16 }
 0x261   :  { %15676 = vst [vmem:[#allocation52_spill] sm:$0xff] %v11720_v35  ;;  %9534 = vmatprep.mubr.bf16.mxu0 %v11720_v35  ;;  %v11729_v30 = vrot.slane %v2044_v2, 5  ;;  %v11731_v48 = vrot.slane %v2050_v33, 4  ;;  %v2025_v49 = vsel %vm10792_vm2, %v15679_v57, %v2024_v4  ;;  %v2072_v53 = vshrl.u32 %v11718_v44, 16  ;;  %v1754_v59 = vld [vmem:[#allocation2 + $0xd0] sm:$0xf]  ;;  %9746 = vmatprep.subr.bf16.mxu1 %v10256_v43 }
 0x262   :  { %v2033_v10 = vor.u32 %v15677_v15, %v2030_v52  ;;  %v2066_v52 = vshll.u32 %v11709_v46, 16  ;;  %v11743_v61 = vcombine.low %v11709_v46, %v11718_v44  ;;  %v11745_v33 = vld [vmem:[#allocation2 + $0xd4] sm:$0xf]  ;;  %v2065_v57 = vrot.slane %v2063_v41, 7 }
 0x263   :  { %15678 = vst [vmem:[#allocation15_spill] sm:$0xff] %v11731_v48  ;;  %15681 = vst [vmem:[#allocation14_spill] sm:$0xff] %v11745_v33  ;;  %9677 = vmatpush3.bf16.msra.mxu0 %v10254_v17  ;;  %v11749_v6 = vrot.slane %v2063_v41, 4  ;;  %v2046_v45 = vor.u32 %v2044_v2, %v2043_v22  ;;  %v2048_v15 = vrot.slane %v2043_v22, 4  ;;  %v15684_v35 = vshll.u32 %v11689_v25, 16  ;;  %v15685_v17 = vld [vmem:[#allocation66_spill] sm:$0xff] }
 0x264   :  { %v2034_v21 = vsel %vm10792_vm2, %v2026_v19, %v2033_v10  ;;  %15680 = vst [vmem:[#allocation13_spill] sm:$0xff] %v11743_v61  ;;  %9678 = vmatprep.subr.bf16.mxu0 %v10255_v24  ;;  %v10257_v19 = vld [vmem:[#allocation8 + $0xc0] sm:$0xff]   ;;  %v2074_v10 = vrot.slane %v2072_v53, 7  ;;  %v2085_v27 = vshrl.u32 %v1754_v59, 16  ;;  %v2094_v41 = vshrl.u32 %v11745_v33, 16 }
 0x265   :  { %v11747_v4 = vcombine.low %v2025_v49, %v2034_v21  ;;  %15683 = vst [vmem:[#allocation19_spill] sm:$0xff] %v11749_v6  ;;  %9459 = vmatmul.mubr.bf16.gmra.mxu1 %v11743_v61  ;;  %v2055_v46 = vor.u32 %v15684_v35, %v2052_v20  ;;  %v2047_v43 = vsel %vm10792_vm2, %v15685_v17, %v2046_v45  ;;  %v2088_v49 = vshll.u32 %v1754_v59, 16  ;;  %v1758_v21 = vld [vmem:[#allocation2 + $0xe4] sm:$0xf]  ;;  %v11769_v61 = vld [vmem:[#allocation2 + $0xe8] sm:$0xf] }
 0x266   :  { %v11760_v2 = vcombine.low %v1754_v59, %v11745_v33  ;;  %v11762_v6 = vrot.slane %v2066_v52, 5  ;;  %v11764_v22 = vrot.slane %v2072_v53, 4  ;;  %15689 = vst [vmem:[#allocation30_spill] sm:$0xff] %v11769_v61  ;;  %v2087_v17 = vrot.slane %v2085_v27, 7 }
 0x267   :  { %15682 = vst [vmem:[#allocation17_spill] sm:$0xff] %v11747_v4  ;;  %9535 = vmatmul.mubr.bf16.gmra.mxu0 %v11747_v4  ;;  %v2056_v20 = vsel %vm10792_vm2, %v2048_v15, %v2055_v46  ;;  %v11774_v59 = vrot.slane %v2085_v27, 4  ;;  %v2068_v4 = vor.u32 %v2066_v52, %v2065_v57  ;;  %v2070_v53 = vrot.slane %v2065_v57, 4  ;;  %v1762_v52 = vld [vmem:[#allocation2 + $0xf8] sm:$0xf] }
 0x268   :  { %15686 = vst [vmem:[#allocation16_spill] sm:$0xff] %v11760_v2  ;;  %15687 = vst [vmem:[#allocation25_spill] sm:$0xff] %v11762_v6  ;;  %9679 = vmatpush3.bf16.msra.mxu0 %v10255_v24  ;;  %v11771_v45 = vcombine.low %v2047_v43, %v2056_v20  ;;  %9462 = vmatprep.mubr.bf16.mxu1 %v11760_v2  ;;  %v2096_v6 = vrot.slane %v2094_v41, 7  ;;  %v2107_v15 = vshrl.u32 %v1758_v21, 16  ;;  %v11779_v46 = vrot.slane %v2088_v49, 5  ;;  %v15695_v43 = vld [vmem:[#allocation67_spill] sm:$0xff] }
 0x269   :  { %15688 = vst [vmem:[#allocation28_spill] sm:$0xff] %v11764_v22  ;;  %15691 = vst [vmem:[#allocation18_spill] sm:$0xff] %v11774_v59  ;;  %9680 = vmatprep.subr.bf16.mxu0 %v10257_v19  ;;  %v15692_v22 = vshll.u32 %v11718_v44, 16  ;;  %v11781_v24 = vrot.slane %v2094_v41, 4  ;;  %v2069_v20 = vsel %vm10792_vm2, %v15695_v43, %v2068_v4  ;;  %v2116_v27 = vshrl.u32 %v11769_v61, 16 }
 0x26a   :  { %15690 = vst [vmem:[#allocation33_spill] sm:$0xff] %v11771_v45  ;;  %9538 = vmatprep.mubr.bf16.mxu0 %v11771_v45  ;;  %15693 = vst [vmem:[#allocation21_spill] sm:$0xff] %v11779_v46  ;;  %v2110_v35 = vshll.u32 %v1758_v21, 16  ;;  %v11793_v2 = vld [vmem:[#allocation2 + $0xfc] sm:$0xf]  ;;  %v2109_v45 = vrot.slane %v2107_v15, 7  ;;  %v2090_v4 = vor.u32 %v2088_v49, %v2087_v17 }
 0x26b   :  { %v2077_v62 = vor.u32 %v15692_v22, %v2074_v10  ;;  %15694 = vst [vmem:[#allocation23_spill] sm:$0xff] %v11781_v24  ;;  %v11791_v22 = vcombine.low %v1758_v21, %v11769_v61  ;;  %15697 = vst [vmem:[#allocation22_spill] sm:$0xff] %v11793_v2  ;;  %v11797_v24 = vrot.slane %v2107_v15, 4  ;;  %v2118_v43 = vrot.slane %v2116_v27, 7  ;;  %v15701_v21 = vld [vmem:[#allocation68_spill] sm:$0xff] }
 0x26c   :  { %9681 = vmatpush3.bf16.msra.mxu0 %v10257_v19  ;;  %v2092_v46 = vrot.slane %v2087_v17, 4  ;;  %v2129_v10 = vshrl.u32 %v1762_v52, 16  ;;  %v2091_v19 = vsel %vm10792_vm2, %v15701_v21, %v2090_v4  ;;  %v11808_v15 = vcombine.low %v1762_v52, %v11793_v2  ;;  %v1766_v49 = vld [vmem:[#allocation2 + $0x10c] sm:$0xf] }
 0x26d   :  { %v2078_v57 = vsel %vm10792_vm2, %v2070_v53, %v2077_v62  ;;  %15696 = vst [vmem:[#allocation20_spill] sm:$0xff] %v11791_v22  ;;  %15699 = vst [vmem:[#allocation24_spill] sm:$0xff] %v11797_v24  ;;  %9463 = vmatmul.mubr.bf16.gmra.mxu1 %v11791_v22  ;;  %v15700_v62 = vshll.u32 %v11745_v33, 16  ;;  %v11810_v24 = vrot.slane %v2110_v35, 5  ;;  %v11812_v17 = vrot.slane %v2116_v27, 4 }
 0x26e   :  { %v11795_v41 = vcombine.low %v2069_v20, %v2078_v57  ;;  %v2132_v20 = vshll.u32 %v1762_v52, 16  ;;  %v2138_v57 = vshrl.u32 %v11793_v2, 16  ;;  %15702 = vst [vmem:[#allocation29_spill] sm:$0xff] %v11808_v15  ;;  %v11817_v22 = vld [vmem:[#allocation2 + $0x110] sm:$0xf]  ;;  %v2131_v4 = vrot.slane %v2129_v10, 7  ;;  %9466 = vmatprep.mubr.bf16.mxu1 %v11808_v15 }
 0x26f   :  { %v2099_v53 = vor.u32 %v15700_v62, %v2096_v6  ;;  %15703 = vst [vmem:[#allocation27_spill] sm:$0xff] %v11810_v24  ;;  %15704 = vst [vmem:[#allocation31_spill] sm:$0xff] %v11812_v17  ;;  %v11822_v21 = vrot.slane %v2129_v10, 4  ;;  %v2112_v52 = vor.u32 %v2110_v35, %v2109_v45  ;;  %v2114_v59 = vrot.slane %v2109_v45, 4  ;;  %v1770_v62 = vld [vmem:[#allocation2 + $0x120] sm:$0xf] }
 0x270   :  { %15698 = vst [vmem:[#allocation26_spill] sm:$0xff] %v11795_v41  ;;  %9539 = vmatmul.mubr.bf16.gmra.mxu0 %v11795_v41  ;;  %15705 = vst [vmem:[#allocation32_spill] sm:$0xff] %v11817_v22  ;;  %v2140_v33 = vrot.slane %v2138_v57, 7  ;;  %v15708_v27 = vshll.u32 %v11769_v61, 16  ;;  %v2151_v24 = vshrl.u32 %v1766_v49, 16  ;;  %v2160_v10 = vshrl.u32 %v11817_v22, 16 }
 0x271   :  { %v2100_v6 = vsel %vm10792_vm2, %v2092_v46, %v2099_v53  ;;  %15707 = vst [vmem:[#allocation35_spill] sm:$0xff] %v11822_v21  ;;  %v11827_v46 = vrot.slane %v2132_v20, 5  ;;  %v11829_v53 = vrot.slane %v2138_v57, 4  ;;  %v2154_v45 = vshll.u32 %v1766_v49, 16  ;;  %v11841_v15 = vld [vmem:[#allocation2 + $0x124] sm:$0xf] }
 0x272   :  { %v11819_v41 = vcombine.low %v2091_v19, %v2100_v6  ;;  %v2121_v17 = vor.u32 %v15708_v27, %v2118_v43  ;;  %v15711_v19 = vld [vmem:[#allocation69_spill] sm:$0xff]  ;;  %v11839_v27 = vcombine.low %v1766_v49, %v11817_v22  ;;  %15713 = vst [vmem:[#allocation60_spill] sm:$0xff] %v11841_v15  ;;  %v2173_v21 = vshrl.u32 %v1770_v62, 16  ;;  %v15717_v49 = vld [vmem:[#allocation72_spill] sm:$0xff] }
 0x273   :  { %15709 = vst [vmem:[#allocation70_spill] sm:$0xff] %v11827_v46  ;;  %15710 = vst [vmem:[#allocation53_spill] sm:$0xff] %v11829_v53  ;;  %v2113_v6 = vsel %vm10792_vm2, %v15711_v19, %v2112_v52  ;;  %v11845_v53 = vrot.slane %v2151_v24, 4  ;;  %v2134_v52 = vor.u32 %v2132_v20, %v2131_v4  ;;  %v2162_v19 = vrot.slane %v2160_v10, 7  ;;  %v1774_v20 = vld [vmem:[#allocation2 + $0x134] sm:$0xf] }
 0x274   :  { %15706 = vst [vmem:[#allocation34_spill] sm:$0xff] %v11819_v41  ;;  %9542 = vmatprep.mubr.bf16.mxu0 %v11819_v41  ;;  %v2122_v35 = vsel %vm10792_vm2, %v2114_v59, %v2121_v17  ;;  %15712 = vst [vmem:[#allocation59_spill] sm:$0xff] %v11839_v27  ;;  %v2153_v41 = vrot.slane %v2151_v24, 7  ;;  %v2136_v46 = vrot.slane %v2131_v4, 4  ;;  %v15716_v59 = vshll.u32 %v11793_v2, 16 }
 0x275   :  { %v11843_v57 = vcombine.low %v2113_v6, %v2122_v35  ;;  %15715 = vst [vmem:[#allocation61_spill] sm:$0xff] %v11845_v53  ;;  %9467 = vmatmul.mubr.bf16.gmra.mxu1 %v11839_v27  ;;  %v2135_v43 = vsel %vm10792_vm2, %v15717_v49, %v2134_v52  ;;  %v2176_v6 = vshll.u32 %v1770_v62, 16  ;;  %v2182_v35 = vshrl.u32 %v11841_v15, 16  ;;  %v11865_v27 = vld [vmem:[#allocation2 + $0x138] sm:$0xf] }
 0x276   :  { %v2143_v17 = vor.u32 %v15716_v59, %v2140_v33  ;;  %v11856_v24 = vcombine.low %v1770_v62, %v11841_v15  ;;  %v11858_v53 = vrot.slane %v2154_v45, 5  ;;  %v11860_v4 = vrot.slane %v2160_v10, 4  ;;  %15721 = vst [vmem:[#allocation65_spill] sm:$0xff] %v11865_v27 }
 0x277   :  { %15714 = vst [vmem:[#allocation36_spill] sm:$0xff] %v11843_v57  ;;  %v2175_v52 = vrot.slane %v2173_v21, 7  ;;  %v11870_v49 = vrot.slane %v2173_v21, 4  ;;  %v2156_v62 = vor.u32 %v2154_v45, %v2153_v41  ;;  %v2184_v2 = vrot.slane %v2182_v35, 7 }
 0x278   :  { %9543 = vmatmul.mubr.bf16.gmra.mxu0 %v11843_v57  ;;  %15718 = vst [vmem:[#allocation62_spill] sm:$0xff] %v11856_v24  ;;  %15719 = vst [vmem:[#allocation63_spill] sm:$0xff] %v11858_v53  ;;  %v2144_v33 = vsel %vm10792_vm2, %v2136_v46, %v2143_v17  ;;  %9470 = vmatprep.mubr.bf16.mxu1 %v11856_v24  ;;  %v2158_v61 = vrot.slane %v2153_v41, 4  ;;  %v15724_v10 = vshll.u32 %v11817_v22, 16  ;;  %v2195_v53 = vshrl.u32 %v1774_v20, 16 }
 0x279   :  { %15720 = vst [vmem:[#allocation64_spill] sm:$0xff] %v11860_v4  ;;  %v11867_v57 = vcombine.low %v2135_v43, %v2144_v33  ;;  %15723 = vst [vmem:[#allocation67_spill] sm:$0xff] %v11870_v49  ;;  %v11875_v46 = vrot.slane %v2176_v6, 5  ;;  %v11877_v17 = vrot.slane %v2182_v35, 4  ;;  %v15727_v43 = vld [vmem:[#allocation73_spill] sm:$0xff]  ;;  %v2204_v21 = vshrl.u32 %v11865_v27, 16 }
 0x27a   :  { %v2165_v4 = vor.u32 %v15724_v10, %v2162_v19  ;;  %v2157_v33 = vsel %vm10792_vm2, %v15727_v43, %v2156_v62  ;;  %v2197_v41 = vrot.slane %v2195_v53, 7  ;;  %v2198_v59 = vshll.u32 %v1774_v20, 16  ;;  %v1790_v10 = vld [vmem:[#allocation2 + $0x184] sm:$0xf] }
 0x27b   :  { %15722 = vst [vmem:[#allocation66_spill] sm:$0xff] %v11867_v57  ;;  %9546 = vmatprep.mubr.bf16.mxu0 %v11867_v57  ;;  %15725 = vst [vmem:[#allocation68_spill] sm:$0xff] %v11875_v46  ;;  %v11886_v19 = vcombine.low %v1774_v20, %v11865_v27  ;;  %v2206_v57 = vrot.slane %v2204_v21, 7  ;;  %v15227_v35 = vshll.u32 %v11865_v27, 16  ;;  %v11891_v46 = vld [vmem:[#allocation2 + $0x188] sm:$0xf] }
 0x27c   :  { %15726 = vst [vmem:[#allocation69_spill] sm:$0xff] %v11877_v17  ;;  %v2166_v45 = vsel %vm10792_vm2, %v2158_v61, %v2165_v4  ;;  %v2178_v17 = vor.u32 %v2176_v6, %v2175_v52  ;;  %15730 = vst [vmem:[#allocation77_spill] sm:$0xff] %v11891_v46  ;;  %v11894_v62 = vrot.slane %v2195_v53, 4  ;;  %v2180_v43 = vrot.slane %v2175_v52, 4  ;;  %v15733_v20 = vld [vmem:[#allocation74_spill] sm:$0xff] }
 0x27d   :  { %15728 = vst [vmem:[#allocation72_spill] sm:$0xff] %v11886_v19  ;;  %v11888_v24 = vcombine.low %v2157_v33, %v2166_v45  ;;  %9471 = vmatmul.mubr.bf16.gmra.mxu1 %v11886_v19  ;;  %v15732_v61 = vshll.u32 %v11841_v15, 16  ;;  %v2200_v49 = vor.u32 %v2198_v59, %v2197_v41  ;;  %v15734_v6 = vcombine.low %v15650_v18, %v15648_v31  ;;  %v11928_v27 = vld [vmem:[#allocation2 + $0x19c] sm:$0xf] }
 0x27e   :  { %15731 = vst [vmem:[#allocation78_spill] sm:$0xff] %v11894_v62  ;;  %v2179_v33 = vsel %vm10792_vm2, %v15733_v20, %v2178_v17  ;;  %v2202_v45 = vrot.slane %v2197_v41, 4  ;;  %v2209_v53 = vor.u32 %v15227_v35, %v2206_v57  ;;  %v2239_v19 = vshrl.u32 %v1790_v10, 16  ;;  %v1794_v17 = vld [vmem:[#allocation2 + $0x198] sm:$0xf]  ;;  %15742 = vst [vmem:[#allocation82_spill] sm:$0xff] %v11928_v27 }
 0x27f   :  { %15729 = vst [vmem:[#allocation73_spill] sm:$0xff] %v11888_v24  ;;  %v2187_v4 = vor.u32 %v15732_v61, %v2184_v2  ;;  %9474 = vmatprep.mubr.bf16.mxu1 %v15734_v6  ;;  %v15735_v2 = vld [vmem:[#allocation75_spill] sm:$0xff]  ;;  %v2248_v62 = vshrl.u32 %v11891_v46, 16  ;;  %v11913_v20 = vrot.slane %v2198_v59, 5  ;;  %v11915_v15 = vrot.slane %v2204_v21, 4 }
 0x280   :  { %9547 = vmatmul.mubr.bf16.gmra.mxu0 %v11888_v24  ;;  %v2201_v61 = vsel %vm10792_vm2, %v15735_v2, %v2200_v49  ;;  %v2242_v24 = vshll.u32 %v1790_v10, 16  ;;  %v2210_v57 = vsel %vm10792_vm2, %v2202_v45, %v2209_v53  ;;  %v1785_v6 = vld [vmem:[#allocation2 + $0x16c] sm:$0xf]  ;;  %v2241_v49 = vrot.slane %v2239_v19, 7 }
 0x281   :  { %v2188_v52 = vsel %vm10792_vm2, %v2180_v43, %v2187_v4  ;;  %15736 = vst [vmem:[#allocation74_spill] sm:$0xff] %v11913_v20  ;;  %15737 = vst [vmem:[#allocation75_spill] sm:$0xff] %v11915_v15  ;;  %v15739_v43 = vshrl.u32 %v15648_v31, 16  ;;  %v11925_v35 = vcombine.low %v2201_v61, %v2210_v57  ;;  %v2250_v59 = vrot.slane %v2248_v62, 7  ;;  %v15748_v15 = vld [vmem:[#allocation76_spill] sm:$0xff] }
 0x282   :  { %v11917_v41 = vcombine.low %v2179_v33, %v2188_v52  ;;  %v11932_v21 = vcombine.low %v1790_v10, %v11891_v46  ;;  %v11934_v33 = vrot.slane %v2239_v19, 4  ;;  %v2261_v45 = vshrl.u32 %v1794_v17, 16  ;;  %v11952_v20 = vld [vmem:[#allocation2 + $0x1b0] sm:$0xf] }
 0x283   :  { %v11923_v4 = vrot.slane %v15739_v43, 4  ;;  %15741 = vst [vmem:[#allocation81_spill] sm:$0xff] %v11925_v35  ;;  %v11936_v53 = vrot.slane %v2242_v24, 5  ;;  %v11938_v52 = vrot.slane %v2248_v62, 4  ;;  %v2264_v61 = vshll.u32 %v1794_v17, 16  ;;  %15751 = vst [vmem:[#allocation88_spill] sm:$0xff] %v11952_v20 }
 0x284   :  { %15738 = vst [vmem:[#allocation79_spill] sm:$0xff] %v11917_v41  ;;  %9550 = vmatprep.mubr.bf16.mxu0 %v11917_v41  ;;  %15743 = vst [vmem:[#allocation83_spill] sm:$0xff] %v11932_v21  ;;  %v2212_v57 = vshrl.u32 %v1785_v6, 16  ;;  %v1789_v43 = vld [vmem:[#allocation2 + $0x180] sm:$0xf]  ;;  %v2270_v2 = vshrl.u32 %v11928_v27, 16  ;;  %v11943_v41 = vcombine.low %v1794_v17, %v11928_v27 }
 0x285   :  { %15740 = vst [vmem:[#allocation80_spill] sm:$0xff] %v11923_v4  ;;  %15744 = vst [vmem:[#allocation84_spill] sm:$0xff] %v11934_v33  ;;  %v15749_v10 = vshll.u32 %v15650_v18, 16  ;;  %v1798_v33 = vld [vmem:[#allocation2 + $0x1ac] sm:$0xf]  ;;  %9475 = vmatmul.mubr.bf16.gmra.mxu1 %v11932_v21  ;;  %v11949_v62 = vrot.slane %v2261_v45, 4  ;;  %v2244_v4 = vor.u32 %v2242_v24, %v2241_v49 }
 0x286   :  { %15745 = vst [vmem:[#allocation85_spill] sm:$0xff] %v11936_v53  ;;  %15746 = vst [vmem:[#allocation86_spill] sm:$0xff] %v11938_v52  ;;  %v2263_v53 = vrot.slane %v2261_v45, 7  ;;  %v8267_v52 = vrot.slane %v2212_v57, 11  ;;  %v2224_v6 = vrot.slane %v15748_v15, 4  ;;  %9478 = vmatprep.mubr.bf16.mxu1 %v11943_v41  ;;  %v15752_v17 = vshll.u32 %v15648_v31, 16 }
 0x287   :  { %15747 = vst [vmem:[#allocation87_spill] sm:$0xff] %v11943_v41  ;;  %v2222_v19 = vor.u32 %v15749_v10, %v15748_v15  ;;  %15750 = vst [vmem:[#allocation76_spill] sm:$0xff] %v11949_v62  ;;  %v2234_v10 = vshrl.u32 %v1789_v43, 16  ;;  %v2246_v22 = vrot.slane %v2241_v49, 4  ;;  %v11959_v21 = vrot.slane %v2264_v61, 5 }
 0x288   :  { %9551 = vmatmul.mubr.bf16.gmra.mxu0 %v11925_v35  ;;  %v2231_v18 = vor.u32 %v15752_v17, %v11519_v23  ;;  %v15754_v15 = vshll.u32 %v11891_v46, 16  ;;  %v2283_v62 = vshrl.u32 %v1798_v33, 16  ;;  %v2272_v44 = vrot.slane %v2270_v2, 7  ;;  %v1793_v23 = vld [vmem:[#allocation2 + $0x194] sm:$0xf] }
 0x289   :  { %15753 = vst [vmem:[#allocation89_spill] sm:$0xff] %v11959_v21  ;;  %v2223_v45 = vsel %vm10792_vm2, %v8267_v52, %v2222_v19  ;;  %v8268_v35 = vrot.slane %v2234_v10, 11  ;;  %v2292_v31 = vshrl.u32 %v11952_v20, 16  ;;  %v11968_v43 = vrot.slane %v2270_v2, 4  ;;  %v1802_v52 = vld [vmem:[#allocation2 + $0x1c0] sm:$0xf] }
 0x28a   :  { %v2253_v57 = vor.u32 %v15754_v15, %v2250_v59  ;;  %v2232_v41 = vsel %vm10792_vm2, %v2224_v6, %v2231_v18  ;;  %v2286_v17 = vshll.u32 %v1798_v33, 16  ;;  %v2285_v19 = vrot.slane %v2283_v62, 7  ;;  %v11978_v18 = vld [vmem:[#allocation2 + $0x1c4] sm:$0xf]  ;;  %v1797_v21 = vld [vmem:[#allocation2 + $0x1a8] sm:$0xf] }
 0x28b   :  { %15755 = vst [vmem:[#allocation90_spill] sm:$0xff] %v11968_v43  ;;  %v8339_v24 = vcombine.low %v2223_v45, %v2232_v41  ;;  %v2245_v59 = vsel %vm10792_vm2, %v8268_v35, %v2244_v4  ;;  %v11976_v6 = vcombine.low %v1798_v33, %v11952_v20  ;;  %15757 = vst [vmem:[#allocation92_spill] sm:$0xff] %v11978_v18  ;;  %v2294_v2 = vrot.slane %v2292_v31, 7 }
 0x28c   :  { %v2254_v49 = vsel %vm10792_vm2, %v2246_v22, %v2253_v57  ;;  %v11980_v10 = vrot.slane %v2283_v62, 4  ;;  %v2256_v41 = vshrl.u32 %v1793_v23, 16  ;;  %v2266_v45 = vor.u32 %v2264_v61, %v2263_v53  ;;  %v1806_v23 = vld [vmem:[#allocation2 + $0x1d4] sm:$0xf] }
 0x28d   :  { %15756 = vst [vmem:[#allocation91_spill] sm:$0xff] %v11976_v6  ;;  %9554 = vmatprep.mubr.bf16.mxu0 %v8339_v24  ;;  %v11982_v22 = vcombine.low %v2245_v59, %v2254_v49  ;;  %v2268_v57 = vrot.slane %v2263_v53, 4  ;;  %v15760_v43 = vshll.u32 %v11928_v27, 16  ;;  %v2305_v4 = vshrl.u32 %v1802_v52, 16  ;;  %9479 = vmatmul.mubr.bf16.gmra.mxu1 %v11976_v6  ;;  %v11999_v49 = vld [vmem:[#allocation2 + $0x1d8] sm:$0xf] }
 0x28e   :  { %15758 = vst [vmem:[#allocation93_spill] sm:$0xff] %v11980_v10  ;;  %v11987_v33 = vrot.slane %v2286_v17, 5  ;;  %v8269_v15 = vrot.slane %v2256_v41, 11  ;;  %v2314_v24 = vshrl.u32 %v11978_v18, 16  ;;  %v11991_v62 = vcombine.low %v1802_v52, %v11978_v18  ;;  %15764 = vst [vmem:[#allocation98_spill] sm:$0xff] %v11999_v49 }
 0x28f   :  { %15759 = vst [vmem:[#allocation94_spill] sm:$0xff] %v11982_v22  ;;  %v2275_v35 = vor.u32 %v15760_v43, %v2272_v44  ;;  %v11994_v61 = vrot.slane %v2292_v31, 4  ;;  %v2308_v53 = vshll.u32 %v1802_v52, 16  ;;  %v2307_v41 = vrot.slane %v2305_v4, 7 }
 0x290   :  { %15761 = vst [vmem:[#allocation95_spill] sm:$0xff] %v11987_v33  ;;  %15762 = vst [vmem:[#allocation96_spill] sm:$0xff] %v11991_v62  ;;  %9555 = vmatmul.mubr.bf16.gmra.mxu0 %v11982_v22  ;;  %v2267_v59 = vsel %vm10792_vm2, %v8269_v15, %v2266_v45  ;;  %9482 = vmatprep.mubr.bf16.mxu1 %v11991_v62  ;;  %v12004_v6 = vrot.slane %v2305_v4, 4  ;;  %v2278_v33 = vshrl.u32 %v1797_v21, 16  ;;  %v1801_v22 = vld [vmem:[#allocation2 + $0x1bc] sm:$0xf] }
 0x291   :  { %15763 = vst [vmem:[#allocation97_spill] sm:$0xff] %v11994_v61  ;;  %v2276_v44 = vsel %vm10792_vm2, %v2268_v57, %v2275_v35  ;;  %v2288_v61 = vor.u32 %v2286_v17, %v2285_v19  ;;  %v2290_v10 = vrot.slane %v2285_v19, 4  ;;  %v15767_v52 = vshll.u32 %v11952_v20, 16 }
 0x292   :  { %15765 = vst [vmem:[#allocation99_spill] sm:$0xff] %v12004_v6  ;;  %v12006_v31 = vcombine.low %v2267_v59, %v2276_v44  ;;  %v2316_v35 = vrot.slane %v2314_v24, 7  ;;  %v8270_v43 = vrot.slane %v2278_v33, 11  ;;  %v2327_v27 = vshrl.u32 %v1806_v23, 16  ;;  %v1810_v44 = vld [vmem:[#allocation2 + $0x1e8] sm:$0xf] }
 0x293   :  { %v2297_v57 = vor.u32 %v15767_v52, %v2294_v2  ;;  %v2336_v46 = vshrl.u32 %v11999_v49, 16  ;;  %v12012_v15 = vrot.slane %v2308_v53, 5  ;;  %v2330_v45 = vshll.u32 %v1806_v23, 16  ;;  %v12024_v59 = vld [vmem:[#allocation2 + $0x1ec] sm:$0xf] }
 0x294   :  { %15766 = vst [vmem:[#allocation100_spill] sm:$0xff] %v12006_v31  ;;  %9558 = vmatprep.mubr.bf16.mxu0 %v12006_v31  ;;  %v2300_v4 = vshrl.u32 %v1801_v22, 16  ;;  %v12016_v17 = vrot.slane %v2314_v24, 4  ;;  %v2289_v19 = vsel %vm10792_vm2, %v8270_v43, %v2288_v61  ;;  %v12022_v33 = vcombine.low %v1806_v23, %v11999_v49  ;;  %15771 = vst [vmem:[#allocation104_spill] sm:$0xff] %v12024_v59 }
 0x295   :  { %15768 = vst [vmem:[#allocation101_spill] sm:$0xff] %v12012_v15  ;;  %v2298_v21 = vsel %vm10792_vm2, %v2290_v10, %v2297_v57  ;;  %v2329_v62 = vrot.slane %v2327_v27, 7  ;;  %v2338_v31 = vrot.slane %v2336_v46, 7  ;;  %v2310_v22 = vor.u32 %v2308_v53, %v2307_v41 }
 0x296   :  { %15769 = vst [vmem:[#allocation102_spill] sm:$0xff] %v12016_v17  ;;  %15770 = vst [vmem:[#allocation103_spill] sm:$0xff] %v12022_v33  ;;  %v12026_v52 = vcombine.low %v2289_v19, %v2298_v21  ;;  %v8271_v10 = vrot.slane %v2300_v4, 11  ;;  %9483 = vmatmul.mubr.bf16.gmra.mxu1 %v12022_v33  ;;  %v2312_v24 = vrot.slane %v2307_v41, 4  ;;  %v15773_v57 = vshll.u32 %v11978_v18, 16 }
 0x297   :  { %v2349_v61 = vshrl.u32 %v1810_v44, 16  ;;  %v12032_v43 = vrot.slane %v2327_v27, 4  ;;  %v12034_v23 = vrot.slane %v2330_v45, 5  ;;  %v2358_v21 = vshrl.u32 %v12024_v59, 16  ;;  %v1805_v4 = vld [vmem:[#allocation2 + $0x1d0] sm:$0xf] }
 0x298   :  { %15772 = vst [vmem:[#allocation105_spill] sm:$0xff] %v12026_v52  ;;  %v2319_v17 = vor.u32 %v15773_v57, %v2316_v35  ;;  %9559 = vmatmul.mubr.bf16.gmra.mxu0 %v12026_v52  ;;  %v12038_v19 = vcombine.low %v1810_v44, %v12024_v59  ;;  %v12040_v2 = vrot.slane %v2336_v46, 4  ;;  %v2311_v53 = vsel %vm10792_vm2, %v8271_v10, %v2310_v22  ;;  %v1814_v57 = vld [vmem:[#allocation2 + $0x1fc] sm:$0xf]  ;;  %v12046_v27 = vld [vmem:[#allocation2 + $0x200] sm:$0xf] }
 0x299   :  { %15774 = vst [vmem:[#allocation106_spill] sm:$0xff] %v12032_v43  ;;  %15775 = vst [vmem:[#allocation107_spill] sm:$0xff] %v12034_v23  ;;  %v2352_v35 = vshll.u32 %v1810_v44, 16  ;;  %v2351_v52 = vrot.slane %v2349_v61, 7  ;;  %v12052_v43 = vrot.slane %v2349_v61, 4  ;;  %v2332_v18 = vor.u32 %v2330_v45, %v2329_v62 }
 0x29a   :  { %15776 = vst [vmem:[#allocation108_spill] sm:$0xff] %v12038_v19  ;;  %15777 = vst [vmem:[#allocation109_spill] sm:$0xff] %v12040_v2  ;;  %v2320_v41 = vsel %vm10792_vm2, %v2312_v24, %v2319_v17  ;;  %9486 = vmatprep.mubr.bf16.mxu1 %v12038_v19  ;;  %v1809_v46 = vld [vmem:[#allocation2 + $0x1e4] sm:$0xf]  ;;  %v2322_v2 = vshrl.u32 %v1805_v4, 16  ;;  %v2334_v10 = vrot.slane %v2329_v62, 4  ;;  %v12061_v61 = vcombine.low %v1814_v57, %v12046_v27 }
 0x29b   :  { %15778 = vst [vmem:[#allocation110_spill] sm:$0xff] %v12046_v27  ;;  %v12048_v33 = vcombine.low %v2311_v53, %v2320_v41  ;;  %15780 = vst [vmem:[#allocation112_spill] sm:$0xff] %v12052_v43  ;;  %v15781_v22 = vshll.u32 %v11999_v49, 16  ;;  %v2360_v44 = vrot.slane %v2358_v21, 7  ;;  %v2371_v24 = vshrl.u32 %v1814_v57, 16 }
 0x29c   :  { %v2374_v53 = vshll.u32 %v1814_v57, 16  ;;  %v2380_v41 = vshrl.u32 %v12046_v27, 16  ;;  %v8272_v15 = vrot.slane %v2322_v2, 11  ;;  %15782 = vst [vmem:[#allocation113_spill] sm:$0xff] %v12061_v61  ;;  %v2344_v4 = vshrl.u32 %v1809_v46, 16 }
 0x29d   :  { %15779 = vst [vmem:[#allocation111_spill] sm:$0xff] %v12048_v33  ;;  %v2341_v17 = vor.u32 %v15781_v22, %v2338_v31  ;;  %9562 = vmatprep.mubr.bf16.mxu0 %v12048_v33  ;;  %v12063_v45 = vld [vmem:[#allocation2 + $0x210] sm:$0xf]  ;;  %v12065_v62 = vrot.slane %v2352_v35, 5  ;;  %v12067_v31 = vrot.slane %v2358_v21, 4  ;;  %v2373_v22 = vrot.slane %v2371_v24, 7 }
 0x29e   :  { %v12070_v33 = vld [vmem:[#allocation2 + $0x214] sm:$0xf]  ;;  %v2333_v2 = vsel %vm10792_vm2, %v8272_v15, %v2332_v18  ;;  %v2382_v43 = vrot.slane %v2380_v41, 7  ;;  %9487 = vmatmul.mubr.bf16.gmra.mxu1 %v12061_v61  ;;  %v8273_v57 = vrot.slane %v2344_v4, 11  ;;  %v12080_v49 = vrot.slane %v2371_v24, 4 }
 0x29f   :  { %v2342_v23 = vsel %vm10792_vm2, %v2334_v10, %v2341_v17  ;;  %15783 = vst [vmem:[#allocation114_spill] sm:$0xff] %v12065_v62  ;;  %15784 = vst [vmem:[#allocation115_spill] sm:$0xff] %v12067_v31  ;;  %v2354_v10 = vor.u32 %v2352_v35, %v2351_v52  ;;  %v2356_v17 = vrot.slane %v2351_v52, 4  ;;  %v15787_v62 = vshll.u32 %v12024_v59, 16  ;;  %v1813_v61 = vld [vmem:[#allocation2 + $0x1f8] sm:$0xf] }
 0x2a0   :  { %15785 = vst [vmem:[#allocation116_spill] sm:$0xff] %v12070_v33  ;;  %v12075_v46 = vcombine.low %v2333_v2, %v2342_v23  ;;  %v2393_v31 = vshrl.u32 %v12063_v45, 16  ;;  %15788 = vst [vmem:[#allocation118_spill] sm:$0xff] %v12080_v49  ;;  %v12082_v19 = vrot.slane %v2374_v53, 5  ;;  %v2402_v15 = vshrl.u32 %v12070_v33, 16 }
 0x2a1   :  { %v2363_v21 = vor.u32 %v15787_v62, %v2360_v44  ;;  %v2355_v18 = vsel %vm10792_vm2, %v8273_v57, %v2354_v10  ;;  %v12088_v23 = vrot.slane %v2380_v41, 4  ;;  %v2396_v35 = vshll.u32 %v12063_v45, 16  ;;  %v1822_v24 = vld [vmem:[#allocation2 + $0x224] sm:$0xf]  ;;  %v1823_v4 = vld [vmem:[#allocation2 + $0x228] sm:$0xf] }
 0x2a2   :  { %15786 = vst [vmem:[#allocation117_spill] sm:$0xff] %v12075_v46  ;;  %15789 = vst [vmem:[#allocation119_spill] sm:$0xff] %v12082_v19  ;;  %9563 = vmatmul.mubr.bf16.gmra.mxu0 %v12075_v46  ;;  %v12095_v44 = vcombine.low %v12063_v45, %v12070_v33  ;;  %v2395_v2 = vrot.slane %v2393_v31, 7  ;;  %v2404_v57 = vrot.slane %v2402_v15, 7  ;;  %v1817_v46 = vld [vmem:[#allocation2 + $0x20c] sm:$0xf]  ;;  %v12106_v10 = vcombine.low %v1822_v24, %v1823_v4 }
 0x2a3   :  { %15790 = vst [vmem:[#allocation120_spill] sm:$0xff] %v12088_v23  ;;  %v2364_v52 = vsel %vm10792_vm2, %v2356_v17, %v2363_v21  ;;  %v2366_v41 = vshrl.u32 %v1813_v61, 16  ;;  %v2376_v23 = vor.u32 %v2374_v53, %v2373_v22  ;;  %v2378_v17 = vrot.slane %v2373_v22, 4 }
 0x2a4   :  { %15791 = vst [vmem:[#allocation121_spill] sm:$0xff] %v12095_v44  ;;  %v12097_v62 = vcombine.low %v2355_v18, %v2364_v52  ;;  %9490 = vmatprep.mubr.bf16.mxu1 %v12095_v44  ;;  %v15793_v21 = vshll.u32 %v12046_v27, 16  ;;  %v2415_v45 = vshrl.u32 %v1822_v24, 16  ;;  %v2418_v49 = vshll.u32 %v1822_v24, 16  ;;  %15794 = vst [vmem:[#allocation123_spill] sm:$0xff] %v12106_v10 }
 0x2a5   :  { %v2424_v59 = vshrl.u32 %v1823_v4, 16  ;;  %v2427_v18 = vshll.u32 %v1823_v4, 16  ;;  %v8274_v52 = vrot.slane %v2366_v41, 11  ;;  %v2388_v20 = vshrl.u32 %v1817_v46, 16  ;;  %v12121_v24 = vld [vmem:[#allocation2 + $0x23c] sm:$0xf] }
 0x2a6   :  { %15792 = vst [vmem:[#allocation122_spill] sm:$0xff] %v12097_v62  ;;  %v2385_v19 = vor.u32 %v15793_v21, %v2382_v43  ;;  %9566 = vmatprep.mubr.bf16.mxu0 %v12097_v62  ;;  %v2417_v44 = vrot.slane %v2415_v45, 7  ;;  %v12108_v53 = vrot.slane %v2415_v45, 4  ;;  %v12110_v22 = vrot.slane %v2418_v49, 5  ;;  %v12112_v43 = vld [vmem:[#allocation2 + $0x238] sm:$0xf]  ;;  %9491 = vmatmul.mubr.bf16.gmra.mxu1 %v12106_v10 }
 0x2a7   :  { %v2426_v61 = vrot.slane %v2424_v59, 7  ;;  %v2377_v21 = vsel %vm10792_vm2, %v8274_v52, %v2376_v23  ;;  %v12117_v41 = vrot.slane %v2427_v18, 5  ;;  %v12119_v62 = vrot.slane %v2424_v59, 4  ;;  %15799 = vst [vmem:[#allocation128_spill] sm:$0xff] %v12121_v24  ;;  %v1821_v27 = vld [vmem:[#allocation2 + $0x220] sm:$0xf] }
 0x2a8   :  { %v2386_v6 = vsel %vm10792_vm2, %v2378_v17, %v2385_v19  ;;  %15795 = vst [vmem:[#allocation124_spill] sm:$0xff] %v12108_v53  ;;  %15796 = vst [vmem:[#allocation125_spill] sm:$0xff] %v12110_v22  ;;  %v8275_v19 = vrot.slane %v2388_v20, 11  ;;  %v12123_v46 = vrot.slane %v2393_v31, 4  ;;  %v12125_v4 = vrot.slane %v2396_v35, 5 }
 0x2a9   :  { %15797 = vst [vmem:[#allocation126_spill] sm:$0xff] %v12117_v41  ;;  %15798 = vst [vmem:[#allocation127_spill] sm:$0xff] %v12119_v62  ;;  %v12127_v17 = vcombine.low %v2377_v21, %v2386_v6  ;;  %v2422_v45 = vrot.slane %v2417_v44, 4  ;;  %v2398_v10 = vor.u32 %v2396_v35, %v2395_v2  ;;  %v2400_v59 = vrot.slane %v2395_v2, 4  ;;  %v1830_v2 = vld [vmem:[#allocation2 + $0x24c] sm:$0xf] }
 0x2aa   :  { %15800 = vst [vmem:[#allocation129_spill] sm:$0xff] %v12123_v46  ;;  %15801 = vst [vmem:[#allocation130_spill] sm:$0xff] %v12125_v4  ;;  %v2429_v20 = vor.u32 %v2427_v18, %v2426_v61  ;;  %v15803_v31 = vshll.u32 %v12070_v33, 16  ;;  %v2437_v4 = vshrl.u32 %v12112_v43, 16  ;;  %v2446_v6 = vshrl.u32 %v12121_v24, 16 }
 0x2ab   :  { %15802 = vst [vmem:[#allocation131_spill] sm:$0xff] %v12127_v17  ;;  %9567 = vmatmul.mubr.bf16.gmra.mxu0 %v12127_v17  ;;  %v2420_v21 = vor.u32 %v2418_v49, %v2417_v44  ;;  %v2399_v48 = vsel %vm10792_vm2, %v8275_v19, %v2398_v10  ;;  %v12142_v23 = vcombine.low %v12112_v43, %v12121_v24  ;;  %v2410_v35 = vshrl.u32 %v1821_v27, 16  ;;  %v1831_v52 = vld [vmem:[#allocation2 + $0x250] sm:$0xf]  ;;  %v1825_v49 = vld [vmem:[#allocation2 + $0x234] sm:$0xf] }
 0x2ac   :  { %v2407_v46 = vor.u32 %v15803_v31, %v2404_v57  ;;  %v12144_v17 = vrot.slane %v2402_v15, 4  ;;  %v2440_v18 = vshll.u32 %v12112_v43, 16  ;;  %v2439_v10 = vrot.slane %v2437_v4, 7 }
 0x2ad   :  { %15804 = vst [vmem:[#allocation132_spill] sm:$0xff] %v12142_v23  ;;  %v2448_v19 = vrot.slane %v2446_v6, 7  ;;  %9494 = vmatprep.mubr.bf16.mxu1 %v12142_v23  ;;  %v8276_v31 = vrot.slane %v2410_v35, 11  ;;  %v2430_v27 = vsel %vm10792_vm2, %v2422_v45, %v2429_v20  ;;  %v2459_v15 = vshrl.u32 %v1830_v2, 16 }
 0x2ae   :  { %15805 = vst [vmem:[#allocation133_spill] sm:$0xff] %v12144_v17  ;;  %v2408_v57 = vsel %vm10792_vm2, %v2400_v59, %v2407_v46  ;;  %v2462_v62 = vshll.u32 %v1830_v2, 16  ;;  %v2468_v41 = vshrl.u32 %v1831_v52, 16  ;;  %v2471_v46 = vshll.u32 %v1831_v52, 16  ;;  %v12164_v17 = vld [vmem:[#allocation2 + $0x260] sm:$0xf] }
 0x2af   :  { %v12150_v44 = vcombine.low %v2399_v48, %v2408_v57  ;;  %v2421_v43 = vsel %vm10792_vm2, %v8276_v31, %v2420_v21  ;;  %v12158_v59 = vcombine.low %v1830_v2, %v1831_v52  ;;  %v2432_v48 = vshrl.u32 %v1825_v49, 16  ;;  %v12173_v52 = vld [vmem:[#allocation2 + $0x264] sm:$0xf] }
 0x2b0   :  { %v12160_v57 = vcombine.low %v2421_v43, %v2430_v27  ;;  %v2461_v61 = vrot.slane %v2459_v15, 7  ;;  %v2470_v23 = vrot.slane %v2468_v41, 7  ;;  %v12162_v35 = vrot.slane %v2459_v15, 4  ;;  %15813 = vst [vmem:[#allocation141_spill] sm:$0xff] %v12173_v52  ;;  %v1829_v15 = vld [vmem:[#allocation2 + $0x248] sm:$0xf] }
 0x2b1   :  { %15806 = vst [vmem:[#allocation134_spill] sm:$0xff] %v12150_v44  ;;  %9570 = vmatprep.mubr.bf16.mxu0 %v12150_v44  ;;  %15807 = vst [vmem:[#allocation135_spill] sm:$0xff] %v12158_v59  ;;  %9495 = vmatmul.mubr.bf16.gmra.mxu1 %v12158_v59  ;;  %v12167_v45 = vrot.slane %v2462_v62, 5  ;;  %v12169_v20 = vrot.slane %v2471_v46, 5  ;;  %v12171_v44 = vrot.slane %v2468_v41, 4  ;;  %v8277_v21 = vrot.slane %v2432_v48, 11 }
 0x2b2   :  { %15808 = vst [vmem:[#allocation136_spill] sm:$0xff] %v12160_v57  ;;  %15809 = vst [vmem:[#allocation137_spill] sm:$0xff] %v12162_v35  ;;  %v12175_v2 = vrot.slane %v2437_v4, 4  ;;  %v2466_v49 = vrot.slane %v2461_v61, 4  ;;  %v2473_v31 = vor.u32 %v2471_v46, %v2470_v23  ;;  %v2442_v27 = vor.u32 %v2440_v18, %v2439_v10 }
 0x2b3   :  { %15810 = vst [vmem:[#allocation138_spill] sm:$0xff] %v12167_v45  ;;  %15811 = vst [vmem:[#allocation139_spill] sm:$0xff] %v12169_v20  ;;  %9571 = vmatmul.mubr.bf16.gmra.mxu0 %v12160_v57  ;;  %v2444_v53 = vrot.slane %v2439_v10, 4  ;;  %v15815_v41 = vshll.u32 %v12121_v24, 16  ;;  %v12184_v22 = vrot.slane %v2440_v18, 5  ;;  %v2481_v57 = vshrl.u32 %v12164_v17, 16 }
 0x2b4   :  { %15812 = vst [vmem:[#allocation140_spill] sm:$0xff] %v12171_v44  ;;  %15814 = vst [vmem:[#allocation142_spill] sm:$0xff] %v12175_v2  ;;  %v2443_v4 = vsel %vm10792_vm2, %v8277_v21, %v2442_v27  ;;  %v2490_v23 = vshrl.u32 %v12173_v52, 16  ;;  %v2464_v46 = vor.u32 %v2462_v62, %v2461_v61  ;;  %v12194_v59 = vcombine.low %v12164_v17, %v12173_v52  ;;  %v1838_v44 = vld [vmem:[#allocation2 + $0x274] sm:$0xf] }
 0x2b5   :  { %v2451_v48 = vor.u32 %v15815_v41, %v2448_v19  ;;  %15816 = vst [vmem:[#allocation143_spill] sm:$0xff] %v12184_v22  ;;  %v2454_v10 = vshrl.u32 %v1829_v15, 16  ;;  %v1839_v19 = vld [vmem:[#allocation2 + $0x278] sm:$0xf]  ;;  %v12196_v18 = vrot.slane %v2446_v6, 4  ;;  %v2483_v21 = vrot.slane %v2481_v57, 7 }
 0x2b6   :  { %15817 = vst [vmem:[#allocation144_spill] sm:$0xff] %v12194_v59  ;;  %v2484_v27 = vshll.u32 %v12164_v17, 16  ;;  %v1833_v20 = vld [vmem:[#allocation2 + $0x25c] sm:$0xf]  ;;  %v2492_v35 = vrot.slane %v2490_v23, 7  ;;  %9498 = vmatprep.mubr.bf16.mxu1 %v12194_v59  ;;  %v2474_v61 = vsel %vm10792_vm2, %v2466_v49, %v2473_v31  ;;  %v2503_v15 = vshrl.u32 %v1838_v44, 16 }
 0x2b7   :  { %v2452_v43 = vsel %vm10792_vm2, %v2444_v53, %v2451_v48  ;;  %15818 = vst [vmem:[#allocation145_spill] sm:$0xff] %v12196_v18  ;;  %v8278_v53 = vrot.slane %v2454_v10, 11  ;;  %v2506_v6 = vshll.u32 %v1838_v44, 16  ;;  %v2512_v48 = vshrl.u32 %v1839_v19, 16  ;;  %v12210_v62 = vld [vmem:[#allocation2 + $0x288] sm:$0xf] }
 0x2b8   :  { %v12198_v41 = vcombine.low %v2443_v4, %v2452_v43  ;;  %v2515_v43 = vshll.u32 %v1839_v19, 16  ;;  %v12208_v17 = vcombine.low %v1838_v44, %v1839_v19  ;;  %v2476_v18 = vshrl.u32 %v1833_v20, 16  ;;  %v12216_v31 = vld [vmem:[#allocation2 + $0x28c] sm:$0xf] }
 0x2b9   :  { %v2465_v4 = vsel %vm10792_vm2, %v8278_v53, %v2464_v46  ;;  %v2486_v45 = vor.u32 %v2484_v27, %v2483_v21  ;;  %v2505_v10 = vrot.slane %v2503_v15, 7  ;;  %v2514_v24 = vrot.slane %v2512_v48, 7  ;;  %v12225_v46 = vld [vmem:[#allocation8 + $0x178] sm:$0xff]  }
 0x2ba   :  { %15819 = vst [vmem:[#allocation146_spill] sm:$0xff] %v12198_v41  ;;  %9574 = vmatprep.mubr.bf16.mxu0 %v12198_v41  ;;  %15820 = vst [vmem:[#allocation147_spill] sm:$0xff] %v12208_v17  ;;  %v12212_v59 = vcombine.low %v2465_v4, %v2474_v61  ;;  %v12214_v49 = vrot.slane %v2503_v15, 4  ;;  %9499 = vmatmul.mubr.bf16.gmra.mxu1 %v12208_v17  ;;  %v12219_v41 = vrot.slane %v2506_v6, 5  ;;  %v12221_v22 = vrot.slane %v2515_v43, 5 }
 0x2bb   :  { %v12223_v44 = vrot.slane %v2512_v48, 4  ;;  %v8279_v20 = vrot.slane %v2476_v18, 11  ;;  %v12227_v19 = vrot.slane %v2481_v57, 4  ;;  %v2510_v53 = vrot.slane %v2505_v10, 4  ;;  %v1837_v4 = vld [vmem:[#allocation2 + $0x270] sm:$0xf]  ;;  %9826 = vmatprep.subr.bf16.mxu0 %v12225_v46 }
 0x2bc   :  { %15821 = vst [vmem:[#allocation148_spill] sm:$0xff] %v12212_v59  ;;  %15822 = vst [vmem:[#allocation149_spill] sm:$0xff] %v12214_v49  ;;  %9575 = vmatmul.mubr.bf16.gmra.mxu0 %v12212_v59  ;;  %v2517_v61 = vor.u32 %v2515_v43, %v2514_v24  ;;  %v2488_v15 = vrot.slane %v2483_v21, 4  ;;  %v15826_v18 = vshll.u32 %v12173_v52, 16  ;;  %v12239_v57 = vrot.slane %v2484_v27, 5  ;;  %v15843_v52 = vld [vmem:[#allocation54_spill] sm:$0xff] }
 0x2bd   :  { %15823 = vst [vmem:[#allocation150_spill] sm:$0xff] %v12219_v41  ;;  %15824 = vst [vmem:[#allocation151_spill] sm:$0xff] %v12221_v22  ;;  %v2487_v48 = vsel %vm10792_vm2, %v8279_v20, %v2486_v45  ;;  %v12241_v59 = vrot.slane %v2490_v23, 4  ;;  %v1846_v43 = vld [vmem:[#allocation2 + $0x29c] sm:$0xf]  ;;  %v2508_v17 = vor.u32 %v2506_v6, %v2505_v10  ;;  %v12249_v45 = vcombine.low %v12210_v62, %v12216_v31 }
 0x2be   :  { %15825 = vst [vmem:[#allocation152_spill] sm:$0xff] %v12223_v44  ;;  %v2495_v33 = vor.u32 %v15826_v18, %v2492_v35  ;;  %v2498_v35 = vshrl.u32 %v1837_v4, 16  ;;  %v1847_v20 = vld [vmem:[#allocation2 + $0x2a0] sm:$0xf]  ;;  %v2518_v21 = vsel %vm10792_vm2, %v2510_v53, %v2517_v61  ;;  %v1841_v24 = vld [vmem:[#allocation2 + $0x284] sm:$0xf] }
 0x2bf   :  { %15827 = vst [vmem:[#allocation153_spill] sm:$0xff] %v12241_v59  ;;  %15828 = vst [vmem:[#allocation154_spill] sm:$0xff] %v12249_v45  ;;  %v15830_v6 = vshrl.u32 %v12210_v62, 16  ;;  %9502 = vmatprep.mubr.bf16.mxu1 %v12249_v45  ;;  %v2547_v44 = vshrl.u32 %v1846_v43, 16  ;;  %v2559_v23 = vshll.u32 %v1847_v20, 16  ;;  %v12263_v27 = vcombine.low %v1846_v43, %v1847_v20 }
 0x2c0   :  { %v2496_v2 = vsel %vm10792_vm2, %v2488_v15, %v2495_v33  ;;  %v15831_v33 = vshrl.u32 %v12216_v31, 16  ;;  %v8280_v4 = vrot.slane %v2498_v35, 11 }
 0x2c1   :  { %v12251_v18 = vcombine.low %v2487_v48, %v2496_v2  ;;  %v2527_v10 = vrot.slane %v15830_v6, 7  ;;  %v2550_v2 = vshll.u32 %v1846_v43, 16  ;;  %v2556_v48 = vshrl.u32 %v1847_v20, 16  ;;  %15832 = vst [vmem:[#allocation156_spill] sm:$0xff] %v12263_v27 }
 0x2c2   :  { %v2536_v15 = vrot.slane %v15831_v33, 7  ;;  %v2509_v53 = vsel %vm10792_vm2, %v8280_v4, %v2508_v17  ;;  %v2549_v61 = vrot.slane %v2547_v44, 7  ;;  %v12267_v22 = vrot.slane %v2547_v44, 4  ;;  %9503 = vmatmul.mubr.bf16.gmra.mxu1 %v12263_v27  ;;  %v1329_v27 = vld [vmem:[#allocation2 + $0x24] sm:$0x1]  ;;  %v15844_v44 = vld [vmem:[#allocation57_spill] sm:$0xff] }
 0x2c3   :  { %15829 = vst [vmem:[#allocation155_spill] sm:$0xff] %v12251_v18  ;;  %9578 = vmatprep.mubr.bf16.mxu0 %v12251_v18  ;;  %v2520_v6 = vshrl.u32 %v1841_v24, 16  ;;  %v12269_v59 = vcombine.low %v2509_v53, %v2518_v21  ;;  %v2558_v33 = vrot.slane %v2556_v48, 7  ;;  %v12272_v35 = vrot.slane %v2550_v2, 5  ;;  %v1845_v18 = vld [vmem:[#allocation2 + $0x298] sm:$0xf] }
 0x2c4   :  { %v12274_v45 = vrot.slane %v2559_v23, 5  ;;  %v2552_v49 = vor.u32 %v2550_v2, %v2549_v61  ;;  %v2554_v43 = vrot.slane %v2549_v61, 4  ;;  %v12276_v20 = vrot.slane %v2556_v48, 4  ;;  %v1239_v53 = vld [vmem:[#allocation2 + $0x10] sm:$0x1] }
 0x2c5   :  { %15833 = vst [vmem:[#allocation157_spill] sm:$0xff] %v12269_v59  ;;  %v8281_v41 = vrot.slane %v2520_v6, 11  ;;  %9579 = vmatmul.mubr.bf16.gmra.mxu0 %v12269_v59  ;;  %v2561_v17 = vor.u32 %v2559_v23, %v2558_v33  ;;  %v15834_v24 = vshll.u32 %v12210_v62, 16  ;;  %v2532_v4 = vrot.slane %v2527_v10, 4  ;;  %v1332_v6 = vld [vmem:[#allocation2 + $0x38] sm:$0x1] }
 0x2c6   :  { %v15835_v2 = vshll.u32 %v12216_v31, 16  ;;  %v2542_v61 = vshrl.u32 %v1845_v18, 16 }
 0x2c7   :  { %v2530_v21 = vor.u32 %v15834_v24, %v2527_v10  ;;  %v2562_v33 = vsel %vm10792_vm2, %v2554_v43, %v2561_v17  ;;  %v15836_v10 = vmov 0  ;;  %v1335_v24 = vld [vmem:[#allocation2 + $0x4c] sm:$0x1]  ;;  %v1330_v43 = vsel %vm12292_vm4, 0, %v1329_v27  ;;  %v1338_v17 = vld [vmem:[#allocation2 + $0x60] sm:$0x1] }
 0x2c8   :  { %v2539_v48 = vor.u32 %v15835_v2, %v2536_v15  ;;  %v15837_v10 = vsel %vm12292_vm4, 4294967295, %v15836_v10  ;;  %v8282_v18 = vrot.slane %v2542_v61, 11  ;;  %v1240_v2 = vsel %vm12292_vm4, 0, %v1239_v53  ;;  %1331 = vst [vmem:[#allocation2 + $0x24] sm:$0x1] %v1330_v43 }
 0x2c9   :  { %v2531_v23 = vsel %vm10792_vm2, %v8281_v41, %v2530_v21  ;;  %15838 = vst [vmem:[#allocation158_spill] sm:$0xff] %v15837_v10  ;;  %v15839_v41 = vmov 0  ;;  %1241 = vst [vmem:[#allocation2 + $0x10] sm:$0x1] %v1240_v2  ;;  %v3622_v61 = vor.u32 %v11564_v55, %v11562_v11  ;;  %v1336_v2 = vsel %vm12292_vm4, 0, %v1335_v24 }
 0x2ca   :  { %v2540_v15 = vsel %vm10792_vm2, %v2532_v4, %v2539_v48  ;;  %v15840_v41 = vsel %vm12300_vm7, 4294967295, %v15839_v41  ;;  %v3597_v4 = vsel %vm12300_vm7, %v15844_v44, %v15843_v52  ;;  %v1333_v48 = vsel %vm12292_vm4, 0, %v1332_v6  ;;  %v1341_v43 = vld [vmem:[#allocation2 + $0x74] sm:$0x1]  ;;  %1337 = vst [vmem:[#allocation2 + $0x4c] sm:$0x1] %v1336_v2 }
 0x2cb   :  { %15841 = vst [vmem:[#allocation159_spill] sm:$0xff] %v15840_v41  ;;  %v12306_v21 = vcombine.low %v2531_v23, %v2540_v15  ;;  %v2553_v27 = vsel %vm10792_vm2, %v8282_v18, %v2552_v49  ;;  %1334 = vst [vmem:[#allocation2 + $0x38] sm:$0x1] %v1333_v48  ;;  %v15845_v23 = vshll.u32 %v11537_v32, 16  ;;  %v3636_v49 = vor.u32 %v11592_v60, %v11575_v37  ;;  %v10258_v44 = vld [vmem:[#allocation8 + $0x130] sm:$0xff]  }
 0x2cc   :  { %v12329_v53 = vcombine.low %v2553_v27, %v2562_v33  ;;  %v15847_v6 = vshll.u32 %v11524_v14, 16  ;;  %v1339_v32 = vsel %vm12292_vm4, 0, %v1338_v17  ;;  %v12339_v11 = vrot.slane %v3622_v61, 4  ;;  %v1344_v17 = vld [vmem:[#allocation2 + $0x88] sm:$0x1] }
 0x2cd   :  { %15842 = vst [vmem:[#allocation160_spill] sm:$0xff] %v12306_v21  ;;  %v12324_v15 = vrot.slane %v15845_v23, 5  ;;  %9582 = vmatprep.mubr.bf16.mxu0 %v12306_v21  ;;  %1340 = vst [vmem:[#allocation2 + $0x60] sm:$0x1] %v1339_v32  ;;  %v3650_v33 = vor.u32 %v11613_v47, %v11605_v39  ;;  %v15848_v24 = vshll.u32 %v11568_v9, 16  ;;  %v12350_v14 = vrot.slane %v3636_v49, 4 }
 0x2ce   :  { %15846 = vst [vmem:[#allocation54_spill] sm:$0xff] %v12329_v53  ;;  %v12335_v18 = vrot.slane %v15847_v6, 5  ;;  %9583 = vmatmul.mubr.bf16.gmra.mxu0 %v12329_v53  ;;  %v1342_v60 = vsel %vm12292_vm4, 0, %v1341_v43  ;;  %v1347_v23 = vld [vmem:[#allocation2 + $0x9c] sm:$0x1]  ;;  %v1345_v49 = vsel %vm12292_vm4, 0, %v1344_v17  ;;  %v3678_v6 = vor.u32 %v11671_v54, %v11665_v5 }
 0x2cf   :  { %v3627_v55 = vor.u32 %v11570_v40, %v12324_v15  ;;  %v12347_v48 = vrot.slane %v15848_v24, 5  ;;  %v3664_v40 = vor.u32 %v11653_v8, %v11635_v29  ;;  %9682 = vmatprep.mubr.bf16.mxu0 %v11572_v16  ;;  %v3625_v9 = vsel %vm12300_vm7, %v12339_v11, %v12324_v15  ;;  %1343 = vst [vmem:[#allocation2 + $0x74] sm:$0x1] %v1342_v60  ;;  %v1720_v2 = vld [vmem:[#allocation2 + $0x24] sm:$0x1] }
 0x2d0   :  { %v3641_v37 = vor.u32 %v11594_v50, %v12335_v18  ;;  %v12363_v47 = vrot.slane %v3650_v33, 4  ;;  %v3639_v29 = vsel %vm12300_vm7, %v12350_v14, %v12335_v18  ;;  %v15849_v16 = vshll.u32 %v11599_v58, 16  ;;  %v1716_v15 = vld [vmem:[#allocation2 + $0x10] sm:$0x1]  ;;  %1346 = vst [vmem:[#allocation2 + $0x88] sm:$0x1] %v1345_v49 }
 0x2d1   :  { %v3628_v39 = vrot.slane %v3627_v55, 4  ;;  %v3655_v50 = vor.u32 %v11615_v7, %v12347_v48  ;;  %v12371_v27 = vrot.slane %v3664_v40, 4  ;;  %v3602_v18 = vshll.u32 %v1716_v15, 16  ;;  %v12391_v33 = vld [vmem:[#allocation8 + $0x170] sm:$0xff]  }
 0x2d2   :  { %v3642_v8 = vrot.slane %v3641_v37, 4  ;;  %v12375_v61 = vrot.slane %v15849_v16, 5  ;;  %v3653_v7 = vsel %vm12300_vm7, %v12363_v47, %v12347_v48  ;;  %v3616_v32 = vshll.u32 %v1720_v2, 16  ;;  %v1724_v58 = vld [vmem:[#allocation2 + $0x38] sm:$0x1] }
 0x2d3   :  { %v3656_v43 = vrot.slane %v3655_v50, 4  ;;  %v3630_v24 = vshll.u32 %v1724_v58, 16  ;;  %v1728_v48 = vld [vmem:[#allocation2 + $0x4c] sm:$0x1]  ;;  %v12393_v14 = vrot.slane %v3678_v6, 4  ;;  %v15850_v5 = vshll.u32 %v11631_v3, 16 }
 0x2d4   :  { %v3667_v11 = vsel %vm12300_vm7, %v12371_v27, %v12375_v61  ;;  %v3669_v55 = vor.u32 %v11655_v51, %v12375_v61  ;;  %v1348_v37 = vsel %vm12292_vm4, 0, %v1347_v23  ;;  %v3604_v60 = vrot.slane %v3602_v18, 5  ;;  %v1732_v47 = vld [vmem:[#allocation2 + $0x60] sm:$0x1]  ;;  %v15851_v2 = vld [vmem:[#allocation58_spill] sm:$0xff] }
 0x2d5   :  { %v12397_v54 = vrot.slane %v15850_v5, 5  ;;  %v3618_v40 = vrot.slane %v3616_v32, 5  ;;  %v3644_v17 = vshll.u32 %v1728_v48, 16  ;;  %1349 = vst [vmem:[#allocation2 + $0x9c] sm:$0x1] %v1348_v37  ;;  %v3632_v51 = vrot.slane %v3630_v24, 5 }
 0x2d6   :  { %v3670_v50 = vrot.slane %v3669_v55, 4  ;;  %v3658_v16 = vshll.u32 %v1732_v47, 16  ;;  %v3605_v23 = vsel %vm12300_vm7, %v15851_v2, %v3604_v60  ;;  %9683 = vmatmul.mubr.bf16.vlgmr.msra.gmra.mxu0 %v11602_v42  ;;  %v1736_v18 = vld [vmem:[#allocation2 + $0x74] sm:$0x1]  ;;  %v3692_v32 = vor.u32 %v11711_v36, %v11693_v1  ;;  %v1350_v1 = vld [vmem:[#allocation2 + $0xb0] sm:$0x1] }
 0x2d7   :  { %v3681_v15 = vsel %vm12300_vm7, %v12393_v14, %v12397_v54  ;;  %v3683_v3 = vor.u32 %v11673_v13, %v12397_v54  ;;  %v3619_v49 = vsel %vm12300_vm7, %v11556_v63, %v3618_v40  ;;  %v3646_v6 = vrot.slane %v3644_v17, 5  ;;  %9686 = vmatprep.mubr.bf16.mxu0 %v11633_v0  ;;  %9827 = vmatpush3.bf16.msra.mxu0 %v12225_v46  ;;  %v1740_v5 = vld [vmem:[#allocation2 + $0x88] sm:$0x1]  ;;  %v10267_v60 = vld [vmem:[#allocation8 + $0x168] sm:$0xff]   ;;  %v10260_v14 = vld [vmem:[#allocation8 + $0x120] sm:$0xff]  }
 0x2d8   :  { %v8363_v13 = vcombine.low %v3597_v4, %v3605_v23  ;;  %v15852_v58 = vsel %vm12300_vm7, %v11554_v26, %v11522_v12  ;;  %v3633_v63 = vsel %vm12300_vm7, %v3628_v39, %v3632_v51  ;;  %v3660_v24 = vrot.slane %v3658_v16, 5  ;;  %v1353_v12 = vld [vmem:[#allocation2 + $0xc4] sm:$0x1]  ;;  %9828 = vmatprep.subr.bf16.mxu0 %v12391_v33  ;;  %v15863_v61 = vld [vmem:[#allocation50_spill] sm:$0xff] }
 0x2d9   :  { %v12426_v55 = vcombine.low %v15852_v58, %v3619_v49  ;;  %v12432_v36 = vcombine.low %v3625_v9, %v3633_v63  ;;  %v3647_v52 = vsel %vm12300_vm7, %v3642_v8, %v3646_v6  ;;  %v3672_v4 = vshll.u32 %v1736_v18, 16  ;;  %v10259_v6 = vld [vmem:[#allocation8 + $0x128] sm:$0xff]   ;;  %v15860_v58 = vld [vmem:[#allocation49_spill] sm:$0xff] }
 0x2da   :  { %v3684_v48 = vrot.slane %v3683_v3, 4  ;;  %9602 = vmatprep.mubr.bf16.mxu1 %v8363_v13  ;;  %v12437_v26 = vcombine.low %v3639_v29, %v3647_v52  ;;  %v3661_v39 = vsel %vm12300_vm7, %v3656_v43, %v3660_v24  ;;  %v3693_v37 = vrot.slane %v3692_v32, 4  ;;  %v10305_v29 = vld [vmem:[#allocation8 + $0x138] sm:$0xff]   ;;  %v1356_v32 = vld [vmem:[#allocation2 + $0xd8] sm:$0x1]  ;;  %v10268_v13 = vld [vmem:[#allocation8 + $0x160] sm:$0xff]  }
 0x2db   :  { %15853 = vst [vmem:[#allocation57_spill] sm:$0xff] %v12432_v36  ;;  %v15855_v46 = vshll.u32 %v11660_v34, 16  ;;  %9603 = vmatmul.mubr.bf16.vlgmr.msra.gmra.mxu1 %v12426_v55  ;;  %v12444_v8 = vcombine.low %v3653_v7, %v3661_v39  ;;  %v3674_v40 = vrot.slane %v3672_v4, 5  ;;  %v3686_v17 = vshll.u32 %v1740_v5, 16  ;;  %9829 = vmatpush3.bf16.msra.mxu0 %v12391_v33  ;;  %v15861_v24 = vld [vmem:[#allocation19_spill] sm:$0xff] }
 0x2dc   :  { %15854 = vst [vmem:[#allocation58_spill] sm:$0xff] %v12437_v26  ;;  %v1351_v47 = vsel %vm12292_vm4, 0, %v1350_v1  ;;  %9747 = vmatpush3.bf16.msra.mxu1 %v10305_v29  ;;  %9606 = vmatprep.mubr.bf16.mxu1 %v12432_v36  ;;  %v1744_v43 = vld [vmem:[#allocation2 + $0x9c] sm:$0x1]  ;;  %v3706_v7 = vor.u32 %v11729_v30, %v11723_v38  ;;  %v15857_v16 = vshll.u32 %v11689_v25, 16  ;;  %v1354_v18 = vsel %vm12292_vm4, 0, %v1353_v12 }
 0x2dd   :  { %v3694_v9 = vrot.slane %v15855_v46, 5  ;;  %15856 = vst [vmem:[#allocation161_spill] sm:$0xff] %v12444_v8  ;;  %1352 = vst [vmem:[#allocation2 + $0xb0] sm:$0x1] %v1351_v47  ;;  %9748 = vmatprep.subr.bf16.mxu1 %v10258_v44  ;;  %v3675_v2 = vsel %vm12300_vm7, %v3670_v50, %v3674_v40  ;;  %v3688_v23 = vrot.slane %v3686_v17, 5  ;;  %v3700_v49 = vshll.u32 %v1744_v43, 16  ;;  %9830 = vmatprep.subr.bf16.mxu0 %v10267_v60 }
 0x2de   :  { %v12456_v3 = vrot.slane %v15857_v16, 5  ;;  %v12468_v25 = vcombine.low %v3667_v11, %v3675_v2  ;;  %v12470_v38 = vrot.slane %v3706_v7, 4  ;;  %v15859_v30 = vld [vmem:[#allocation15_spill] sm:$0xff]  ;;  %1355 = vst [vmem:[#allocation2 + $0xc4] sm:$0x1] %v1354_v18  ;;  %9687 = vmatmul.mubr.bf16.gmra.mxu0 %v15860_v58  ;;  %v15862_v1 = vld [vmem:[#allocation25_spill] sm:$0xff] }
 0x2df   :  { %v3695_v51 = vsel %vm12300_vm7, %v3693_v37, %v3694_v9  ;;  %v3697_v34 = vor.u32 %v11713_v28, %v3694_v9  ;;  %v3689_v33 = vsel %vm12300_vm7, %v3684_v48, %v3688_v23  ;;  %v3702_v63 = vrot.slane %v3700_v49, 5  ;;  %v1359_v4 = vld [vmem:[#allocation2 + $0xec] sm:$0x1]  ;;  %v15871_v29 = vld [vmem:[#allocation21_spill] sm:$0xff]  ;;  %9831 = vmatpush3.bf16.msra.mxu0 %v10267_v60  ;;  %v15876_v49 = vld [vmem:[#allocation27_spill] sm:$0xff] }
 0x2e0   :  { %15858 = vst [vmem:[#allocation162_spill] sm:$0xff] %v12468_v25  ;;  %v3711_v50 = vor.u32 %v15859_v30, %v12456_v3  ;;  %v3720_v27 = vor.u32 %v15862_v1, %v15861_v24  ;;  %v15864_v11 = vshll.u32 %v15863_v61, 16  ;;  %v15865_v12 = vshrl.u32 %v12210_v62, 16  ;;  %v15867_v46 = vld [vmem:[#allocation48_spill] sm:$0xff]  ;;  %9749 = vmatpush3.bf16.msra.mxu1 %v10258_v44  ;;  %v15870_v44 = vld [vmem:[#allocation18_spill] sm:$0xff]  ;;  %9832 = vmatprep.subr.bf16.mxu0 %v10268_v13  ;;  %v15879_v61 = vld [vmem:[#allocation23_spill] sm:$0xff] }
 0x2e1   :  { %v3698_v28 = vrot.slane %v3697_v34, 4  ;;  %v15866_v5 = vshll.u32 %v12210_v62, 16  ;;  %9690 = vmatprep.mubr.bf16.mxu0 %v15867_v46  ;;  %v12497_v48 = vcombine.low %v3681_v15, %v3689_v33  ;;  %v1357_v9 = vsel %vm12292_vm4, 0, %v1356_v32  ;;  %9750 = vmatprep.subr.bf16.mxu1 %v10259_v6  ;;  %v15869_v17 = vld [vmem:[#allocation28_spill] sm:$0xff]  ;;  %v1362_v34 = vld [vmem:[#allocation2 + $0x100] sm:$0x1] }
 0x2e2   :  { %v12481_v52 = vrot.slane %v15864_v11, 5  ;;  %v12485_v39 = vrot.slane %v15865_v12, 4  ;;  %v12503_v62 = vrot.slane %v3720_v27, 4  ;;  %1358 = vst [vmem:[#allocation2 + $0xd8] sm:$0x1] %v1357_v9  ;;  %v3734_v43 = vor.u32 %v15871_v29, %v15870_v44  ;;  %v15873_v15 = vld [vmem:[#allocation14_spill] sm:$0xff] }
 0x2e3   :  { %v12489_v37 = vrot.slane %v15866_v5, 5  ;;  %15868 = vst [vmem:[#allocation15_spill] sm:$0xff] %v12497_v48  ;;  %v3703_v40 = vsel %vm12300_vm7, %v3698_v28, %v3702_v63  ;;  %v15874_v7 = vshll.u32 %v15873_v15, 16  ;;  %v1360_v2 = vsel %vm12292_vm4, 0, %v1359_v4  ;;  %v15875_v23 = vld [vmem:[#allocation24_spill] sm:$0xff]  ;;  %9607 = vmatmul.mubr.bf16.gmra.mxu1 %v12437_v26  ;;  %v15877_v33 = vld [vmem:[#allocation30_spill] sm:$0xff]  ;;  %9833 = vmatpush3.bf16.msra.mxu0 %v10268_v13 }
 0x2e4   :  { %v3725_v47 = vor.u32 %v15869_v17, %v12481_v52  ;;  %v12509_v54 = vcombine.low %v3695_v51, %v3703_v40  ;;  %v3748_v18 = vor.u32 %v15876_v49, %v15875_v23  ;;  %v10269_v32 = vld [vmem:[#allocation8 + $0x158] sm:$0xff]   ;;  %v1748_v28 = vld [vmem:[#allocation2 + $0xb0] sm:$0x1]  ;;  %v3709_v60 = vsel %vm12300_vm7, %v12470_v38, %v12456_v3  ;;  %1361 = vst [vmem:[#allocation2 + $0xec] sm:$0x1] %v1360_v2  ;;  %v15880_v12 = vld [vmem:[#allocation31_spill] sm:$0xff] }
 0x2e5   :  { %v12513_v16 = vrot.slane %v15874_v7, 5  ;;  %v3712_v51 = vrot.slane %v3711_v50, 4  ;;  %v12524_v30 = vrot.slane %v3734_v43, 4  ;;  %v15878_v63 = vshll.u32 %v15877_v33, 16  ;;  %9610 = vmatprep.mubr.bf16.mxu1 %v12444_v8  ;;  %9751 = vmatpush3.bf16.msra.mxu1 %v10259_v6  ;;  %v1365_v50 = vld [vmem:[#allocation2 + $0x114] sm:$0x1] }
 0x2e6   :  { %15872 = vst [vmem:[#allocation19_spill] sm:$0xff] %v12509_v54  ;;  %v3714_v1 = vshll.u32 %v1748_v28, 16  ;;  %v3723_v27 = vsel %vm12300_vm7, %v12503_v62, %v12481_v52  ;;  %v1363_v38 = vsel %vm12292_vm4, 0, %v1362_v34  ;;  %v1752_v11 = vld [vmem:[#allocation2 + $0xc4] sm:$0x1]  ;;  %v12539_v4 = vrot.slane %v3748_v18, 4  ;;  %9752 = vmatprep.subr.bf16.mxu1 %v10260_v14  ;;  %9834 = vmatprep.subr.bf16.mxu0 %v10269_v32 }
 0x2e7   :  { %v12528_v24 = vrot.slane %v15878_v63, 5  ;;  %v3739_v3 = vor.u32 %v15879_v61, %v12513_v16  ;;  %1364 = vst [vmem:[#allocation2 + $0x100] sm:$0x1] %v1363_v38  ;;  %v15881_v9 = vld [vmem:[#allocation35_spill] sm:$0xff]  ;;  %v15882_v40 = vld [vmem:[#allocation70_spill] sm:$0xff]  ;;  %v10261_v62 = vld [vmem:[#allocation8 + $0x118] sm:$0xff]   ;;  %v3737_v15 = vsel %vm12300_vm7, %v12524_v30, %v12513_v16  ;;  %9835 = vmatpush3.bf16.msra.mxu0 %v10269_v32 }
 0x2e8   :  { %v3762_v17 = vor.u32 %v15882_v40, %v15881_v9  ;;  %v15883_v44 = vld [vmem:[#allocation22_spill] sm:$0xff]  ;;  %v3716_v29 = vrot.slane %v3714_v1, 5  ;;  %v3726_v43 = vrot.slane %v3725_v47, 4  ;;  %v3728_v34 = vshll.u32 %v1752_v11, 16  ;;  %v10270_v7 = vld [vmem:[#allocation8 + $0x150] sm:$0xff]   ;;  %v15885_v2 = vld [vmem:[#allocation52_spill] sm:$0xff] }
 0x2e9   :  { %v3753_v5 = vor.u32 %v15880_v12, %v12528_v24  ;;  %v15884_v52 = vshll.u32 %v15883_v44, 16  ;;  %9691 = vmatmul.mubr.bf16.gmra.mxu0 %v15885_v2  ;;  %v3740_v23 = vrot.slane %v3739_v3, 4  ;;  %v15886_v18 = vld [vmem:[#allocation53_spill] sm:$0xff]  ;;  %v1366_v13 = vsel %vm12292_vm4, 0, %v1365_v50  ;;  %v1368_v47 = vld [vmem:[#allocation2 + $0x128] sm:$0x1]  ;;  %9753 = vmatpush3.bf16.msra.mxu1 %v10260_v14 }
 0x2ea   :  { %v12554_v49 = vrot.slane %v3762_v17, 4  ;;  %v15887_v33 = vld [vmem:[#allocation17_spill] sm:$0xff]  ;;  %v3717_v63 = vsel %vm12300_vm7, %v3712_v51, %v3716_v29  ;;  %v3730_v16 = vrot.slane %v3728_v34, 5  ;;  %v1756_v30 = vld [vmem:[#allocation2 + $0xd8] sm:$0x1]  ;;  %v15889_v61 = vld [vmem:[#allocation63_spill] sm:$0xff]  ;;  %v3751_v40 = vsel %vm12300_vm7, %v12539_v4, %v12528_v24  ;;  %9754 = vmatprep.subr.bf16.mxu1 %v10261_v62  ;;  %9836 = vmatprep.subr.bf16.mxu0 %v10270_v7 }
 0x2eb   :  { %v12547_v6 = vrot.slane %v15884_v52, 5  ;;  %9694 = vmatprep.mubr.bf16.mxu0 %v15887_v33  ;;  %1367 = vst [vmem:[#allocation2 + $0x114] sm:$0x1] %v1366_v13  ;;  %v15888_v1 = vld [vmem:[#allocation61_spill] sm:$0xff]  ;;  %v15890_v38 = vld [vmem:[#allocation32_spill] sm:$0xff]  ;;  %v12569_v9 = vcombine.low %v3709_v60, %v3717_v63  ;;  %v3742_v50 = vshll.u32 %v1756_v30, 16  ;;  %9611 = vmatmul.mubr.bf16.gmra.mxu1 %v12468_v25 }
 0x2ec   :  { %v3776_v3 = vor.u32 %v15889_v61, %v15888_v1  ;;  %v15891_v11 = vshll.u32 %v15890_v38, 16  ;;  %v3754_v51 = vrot.slane %v3753_v5, 4  ;;  %v1371_v17 = vld [vmem:[#allocation2 + $0x13c] sm:$0x1]  ;;  %v10262_v44 = vld [vmem:[#allocation8 + $0x110] sm:$0xff]   ;;  %v3731_v52 = vsel %vm12300_vm7, %v3726_v43, %v3730_v16  ;;  %9614 = vmatprep.mubr.bf16.mxu1 %v12497_v48  ;;  %v15896_v16 = vld [vmem:[#allocation64_spill] sm:$0xff]  ;;  %9837 = vmatpush3.bf16.msra.mxu0 %v10270_v7 }
 0x2ed   :  { %v3767_v28 = vor.u32 %v15886_v18, %v12547_v6  ;;  %15892 = vst [vmem:[#allocation25_spill] sm:$0xff] %v12569_v9  ;;  %v1760_v29 = vld [vmem:[#allocation2 + $0xec] sm:$0x1]  ;;  %v3765_v14 = vsel %vm12300_vm7, %v12554_v49, %v12547_v6  ;;  %v1369_v34 = vsel %vm12292_vm4, 0, %v1368_v47  ;;  %v10271_v24 = vld [vmem:[#allocation8 + $0x148] sm:$0xff]   ;;  %v12586_v4 = vcombine.low %v3723_v27, %v3731_v52  ;;  %v15894_v43 = vld [vmem:[#allocation67_spill] sm:$0xff]  ;;  %9755 = vmatpush3.bf16.msra.mxu1 %v10261_v62 }
 0x2ee   :  { %v12567_v12 = vrot.slane %v15891_v11, 5  ;;  %v12581_v60 = vrot.slane %v3776_v3, 4  ;;  %v3744_v32 = vrot.slane %v3742_v50, 5  ;;  %v3756_v5 = vshll.u32 %v1760_v29, 16  ;;  %1370 = vst [vmem:[#allocation2 + $0x128] sm:$0x1] %v1369_v34  ;;  %9756 = vmatprep.subr.bf16.mxu1 %v10262_v44  ;;  %9838 = vmatprep.subr.bf16.mxu0 %v10271_v24 }
 0x2ef   :  { %15893 = vst [vmem:[#allocation50_spill] sm:$0xff] %v12586_v4  ;;  %v15895_v18 = vld [vmem:[#allocation68_spill] sm:$0xff]  ;;  %v1246_v63 = vld [vmem:[#allocation2 + $0x178] sm:$0x1]  ;;  %v1764_v6 = vld [vmem:[#allocation2 + $0x100] sm:$0x1] }
 0x2f0   :  { %v3790_v13 = vor.u32 %v15895_v18, %v15894_v43  ;;  %v3768_v49 = vrot.slane %v3767_v28, 4  ;;  %v3781_v47 = vor.u32 %v15896_v16, %v12567_v12  ;;  %v15897_v30 = vld [vmem:[#allocation60_spill] sm:$0xff]  ;;  %v1372_v27 = vsel %vm12292_vm4, 0, %v1371_v17  ;;  %v10263_v50 = vld [vmem:[#allocation8 + $0x108] sm:$0xff]   ;;  %v15902_v43 = vld [vmem:[#allocation65_spill] sm:$0xff]  ;;  %9839 = vmatpush3.bf16.msra.mxu0 %v10271_v24 }
 0x2f1   :  { %v15898_v1 = vshll.u32 %v15897_v30, 16  ;;  %v3745_v3 = vsel %vm12300_vm7, %v3740_v23, %v3744_v32  ;;  %v3758_v38 = vrot.slane %v3756_v5, 5  ;;  %v3770_v11 = vshll.u32 %v1764_v6, 16  ;;  %1373 = vst [vmem:[#allocation2 + $0x13c] sm:$0x1] %v1372_v27  ;;  %v15900_v17 = vld [vmem:[#allocation78_spill] sm:$0xff]  ;;  %9757 = vmatpush3.bf16.msra.mxu1 %v10262_v44 }
 0x2f2   :  { %v3779_v28 = vsel %vm12300_vm7, %v12581_v60, %v12567_v12  ;;  %v12605_v52 = vcombine.low %v3737_v15, %v3745_v3  ;;  %v12607_v29 = vrot.slane %v3790_v13, 4  ;;  %v15901_v62 = vld [vmem:[#allocation74_spill] sm:$0xff]  ;;  %v15903_v23 = vshll.u32 %v15902_v43, 16  ;;  %v10273_v5 = vld [vmem:[#allocation8 + $0x140] sm:$0xff]   ;;  %v1777_v16 = vld [vmem:[#allocation2 + $0x144] sm:$0xf]  ;;  %9758 = vmatprep.subr.bf16.mxu1 %v10263_v50 }
 0x2f3   :  { %v12595_v61 = vrot.slane %v15898_v1, 5  ;;  %v3804_v34 = vor.u32 %v15901_v62, %v15900_v17  ;;  %v15904_v18 = vld [vmem:[#allocation33_spill] sm:$0xff]  ;;  %v3759_v12 = vsel %vm12300_vm7, %v3754_v51, %v3758_v38  ;;  %v3772_v60 = vrot.slane %v3770_v11, 5  ;;  %v15906_v30 = vld [vmem:[#allocation26_spill] sm:$0xff]  ;;  %v15908_v38 = vld [vmem:[#allocation75_spill] sm:$0xff]  ;;  %9840 = vmatprep.subr.bf16.mxu0 %v10273_v5  ;;  %9615 = vmatmul.mubr.bf16.gmra.mxu1 %v12509_v54 }
 0x2f4   :  { %15899 = vst [vmem:[#allocation28_spill] sm:$0xff] %v12605_v52  ;;  %v12613_v32 = vrot.slane %v15903_v23, 5  ;;  %9695 = vmatmul.mubr.bf16.gmra.mxu0 %v15904_v18  ;;  %v1768_v7 = vld [vmem:[#allocation2 + $0x114] sm:$0x1]  ;;  %v1247_v6 = vsel %vm12292_vm4, 0, %v1246_v63  ;;  %v12623_v1 = vcombine.low %v3751_v40, %v3759_v12  ;;  %v3782_v27 = vrot.slane %v3781_v47, 4  ;;  %9618 = vmatprep.mubr.bf16.mxu1 %v12569_v9 }
 0x2f5   :  { %v15905_v15 = vld [vmem:[#allocation69_spill] sm:$0xff]  ;;  %9698 = vmatprep.mubr.bf16.mxu0 %v15906_v30  ;;  %v3784_v3 = vshll.u32 %v1768_v7, 16  ;;  %v12625_v17 = vrot.slane %v3804_v34, 4  ;;  %1248 = vst [vmem:[#allocation2 + $0x178] sm:$0x1] %v1247_v6  ;;  %v3773_v51 = vsel %vm12300_vm7, %v3768_v49, %v3772_v60  ;;  %v15909_v62 = vld [vmem:[#allocation39_spill] sm:$0xff]  ;;  %v3793_v49 = vsel %vm12300_vm7, %v12607_v29, %v12595_v61  ;;  %9759 = vmatpush3.bf16.msra.mxu1 %v10263_v50 }
 0x2f6   :  { %v3795_v13 = vor.u32 %v15905_v15, %v12595_v61  ;;  %15907 = vst [vmem:[#allocation18_spill] sm:$0xff] %v12623_v1  ;;  %v3809_v11 = vor.u32 %v15908_v38, %v12613_v32  ;;  %v15910_v43 = vld [vmem:[#allocation41_spill] sm:$0xff]  ;;  %v15911_v23 = vld [vmem:[#allocation71_spill] sm:$0xff]  ;;  %v12637_v40 = vld [vmem:[#allocation2 + $0x148] sm:$0xf]  ;;  %v12639_v34 = vcombine.low %v3765_v14, %v3773_v51  ;;  %v4586_v60 = vshrl.u32 %v1777_v16, 16  ;;  %9841 = vmatpush3.bf16.msra.mxu0 %v10273_v5 }
 0x2f7   :  { %v3818_v63 = vor.u32 %v15910_v43, %v15909_v62  ;;  %v15912_v15 = vshll.u32 %v15911_v23, 16  ;;  %v10266_v47 = vld [vmem:[#allocation8 + $0x100] sm:$0xff]   ;;  %v3786_v44 = vrot.slane %v3784_v3, 5  ;;  %v1772_v12 = vld [vmem:[#allocation2 + $0x128] sm:$0x1]  ;;  %v3807_v24 = vsel %vm12300_vm7, %v12625_v17, %v12613_v32 }
 0x2f8   :  { %15913 = vst [vmem:[#allocation21_spill] sm:$0xff] %v12639_v34  ;;  %v3796_v7 = vrot.slane %v3795_v13, 4  ;;  %v3798_v6 = vshll.u32 %v1772_v12, 16  ;;  %v15914_v14 = vld [vmem:[#allocation80_spill] sm:$0xff]  ;;  %v1776_v29 = vld [vmem:[#allocation2 + $0x13c] sm:$0x1]  ;;  %9760 = vmatprep.subr.bf16.mxu1 %v10266_v47 }
 0x2f9   :  { %v12635_v30 = vrot.slane %v15912_v15, 5  ;;  %v12652_v51 = vld [vmem:[#allocation2 + $0x14c] sm:$0xf]  ;;  %v3787_v61 = vsel %vm12300_vm7, %v3782_v27, %v3786_v44  ;;  %v3810_v16 = vrot.slane %v3809_v11, 4  ;;  %v3819_v13 = vrot.slane %v3818_v63, 4  ;;  %v15916_v44 = vld [vmem:[#allocation34_spill] sm:$0xff]  ;;  %9761 = vmatpush3.bf16.msra.mxu1 %v10266_v47 }
 0x2fa   :  { %v1377_v38 = vld [vmem:[#allocation2 + $0x18c] sm:$0x1]  ;;  %v15313_v62 = vshrl.u32 %v12637_v40, 16  ;;  %v12658_v43 = vcombine.low %v3779_v28, %v3787_v61  ;;  %v3800_v32 = vrot.slane %v3798_v6, 5  ;;  %v3812_v17 = vshll.u32 %v1776_v29, 16  ;;  %v15918_v5 = vld [vmem:[#allocation85_spill] sm:$0xff] }
 0x2fb   :  { %v3823_v3 = vor.u32 %v15914_v14, %v12635_v30  ;;  %v12660_v23 = vrot.slane %v4586_v60, 11  ;;  %v12662_v15 = vld [vmem:[#allocation8 + $0x1b8] sm:$0xff]   ;;  %v1378_v6 = vsel %vm12292_vm4, 0, %v1377_v38  ;;  %v1380_v61 = vld [vmem:[#allocation2 + $0x1a0] sm:$0x1]  ;;  %v15921_v63 = vshll.u32 %v12637_v40, 16  ;;  %9619 = vmatmul.mubr.bf16.gmra.mxu1 %v12586_v4 }
 0x2fc   :  { %15915 = vst [vmem:[#allocation14_spill] sm:$0xff] %v12658_v43  ;;  %v4593_v27 = vrot.slane %v15313_v62, 7  ;;  %9699 = vmatmul.mubr.bf16.gmra.mxu0 %v15916_v44  ;;  %v3801_v28 = vsel %vm12300_vm7, %v3796_v7, %v3800_v32  ;;  %v3814_v50 = vrot.slane %v3812_v17, 5  ;;  %v1788_v60 = vld [vmem:[#allocation2 + $0x178] sm:$0x1]  ;;  %v15917_v14 = vld [vmem:[#allocation84_spill] sm:$0xff]  ;;  %9906 = vmatprep.subr.bf16.mxu1 %v12662_v15 }
 0x2fd   :  { %v3824_v12 = vrot.slane %v3823_v3, 4  ;;  %v3832_v3 = vor.u32 %v15918_v5, %v15917_v14  ;;  %v15919_v29 = vld [vmem:[#allocation36_spill] sm:$0xff]  ;;  %v12676_v62 = vcombine.low %v3793_v49, %v3801_v28  ;;  %v3826_v11 = vshll.u32 %v1788_v60, 16  ;;  %1379 = vst [vmem:[#allocation2 + $0x18c] sm:$0x1] %v1378_v6  ;;  %v15923_v14 = vld [vmem:[#allocation77_spill] sm:$0xff]  ;;  %9622 = vmatprep.mubr.bf16.mxu1 %v12605_v52 }
 0x2fe   :  { %9702 = vmatprep.mubr.bf16.mxu0 %v15919_v29  ;;  %v4596_v44 = vor.u32 %v15921_v63, %v4593_v27  ;;  %v15314_v18 = vshll.u32 %v12652_v51, 16  ;;  %v3815_v7 = vsel %vm12300_vm7, %v3810_v16, %v3814_v50  ;;  %v4598_v38 = vrot.slane %v4593_v27, 4  ;;  %v1383_v49 = vld [vmem:[#allocation2 + $0x1b4] sm:$0x1]  ;;  %v15926_v50 = vld [vmem:[#allocation86_spill] sm:$0xff]  ;;  %v15967_v9 = vld [vmem:[#allocation116_spill] sm:$0xff] }
 0x2ff   :  { %15920 = vst [vmem:[#allocation24_spill] sm:$0xff] %v12676_v62  ;;  %v15922_v32 = vshrl.u32 %v12652_v51, 16  ;;  %v15924_v5 = vshll.u32 %v15923_v14, 16  ;;  %v12690_v28 = vcombine.low %v3807_v24, %v3815_v7  ;;  %v3828_v63 = vrot.slane %v3826_v11, 5  ;;  %v15927_v24 = vld [vmem:[#allocation76_spill] sm:$0xff]  ;;  %v15928_v7 = vld [vmem:[#allocation89_spill] sm:$0xff] }
 0x300   :  { %v3833_v60 = vrot.slane %v3832_v3, 4  ;;  %v1381_v47 = vsel %vm12292_vm4, 0, %v1380_v61  ;;  %v3821_v16 = vsel %vm12300_vm7, %v3819_v13, %v12635_v30  ;;  %v3846_v11 = vor.u32 %v15928_v7, %v15927_v24  ;;  %v15929_v61 = vld [vmem:[#allocation82_spill] sm:$0xff]  ;;  %v15931_v13 = vld [vmem:[#allocation93_spill] sm:$0xff] }
 0x301   :  { %v4602_v17 = vrot.slane %v15922_v32, 7  ;;  %v12687_v29 = vrot.slane %v15924_v5, 5  ;;  %15925 = vst [vmem:[#allocation27_spill] sm:$0xff] %v12690_v28  ;;  %1382 = vst [vmem:[#allocation2 + $0x1a0] sm:$0x1] %v1381_v47  ;;  %v3829_v3 = vsel %vm12300_vm7, %v3824_v12, %v3828_v63  ;;  %v15930_v32 = vshll.u32 %v15929_v61, 16 }
 0x302   :  { %v1384_v30 = vsel %vm12292_vm4, 0, %v1383_v49  ;;  %v15933_v47 = vshrl.u32 %v12216_v31, 16  ;;  %v4597_v24 = vsel %vm10792_vm2, %v12660_v23, %v4596_v44  ;;  %v3847_v63 = vrot.slane %v3846_v11, 4  ;;  %v15934_v61 = vld [vmem:[#allocation90_spill] sm:$0xff]  ;;  %v1392_v23 = vld [vmem:[#allocation2 + $0x1f0] sm:$0x1] }
 0x303   :  { %v4605_v27 = vor.u32 %v15314_v18, %v4602_v17  ;;  %v3837_v6 = vor.u32 %v15926_v50, %v12687_v29  ;;  %v12709_v14 = vrot.slane %v15930_v32, 5  ;;  %v15932_v17 = vld [vmem:[#allocation95_spill] sm:$0xff]  ;;  %v1386_v50 = vld [vmem:[#allocation2 + $0x1c8] sm:$0x1]  ;;  %1385 = vst [vmem:[#allocation2 + $0x1b4] sm:$0x1] %v1384_v30  ;;  %v12724_v7 = vcombine.low %v3821_v16, %v3829_v3  ;;  %9623 = vmatmul.mubr.bf16.gmra.mxu1 %v12623_v1 }
 0x304   :  { %v3860_v5 = vor.u32 %v15932_v17, %v15931_v13  ;;  %v12717_v18 = vrot.slane %v15933_v47, 4  ;;  %v3835_v49 = vsel %vm12300_vm7, %v3833_v60, %v12687_v29  ;;  %v15935_v13 = vld [vmem:[#allocation88_spill] sm:$0xff]  ;;  %v1389_v33 = vld [vmem:[#allocation2 + $0x1dc] sm:$0x1]  ;;  %v1387_v16 = vsel %vm12292_vm4, 0, %v1386_v50  ;;  %v15938_v11 = vld [vmem:[#allocation99_spill] sm:$0xff]  ;;  %9626 = vmatprep.mubr.bf16.mxu1 %v12639_v34 }
 0x305   :  { %v4606_v12 = vsel %vm10792_vm2, %v4598_v38, %v4605_v27  ;;  %v3851_v32 = vor.u32 %v15934_v61, %v12709_v14  ;;  %v15936_v17 = vshll.u32 %v15935_v13, 16  ;;  %v15937_v44 = vld [vmem:[#allocation66_spill] sm:$0xff]  ;;  %v1792_v38 = vld [vmem:[#allocation2 + $0x18c] sm:$0x1]  ;;  %v15939_v3 = vld [vmem:[#allocation101_spill] sm:$0xff]  ;;  %v3838_v2 = vrot.slane %v3837_v6, 4 }
 0x306   :  { %9703 = vmatmul.mubr.bf16.gmra.mxu0 %v15937_v44  ;;  %v12736_v27 = vrot.slane %v3860_v5, 4  ;;  %v3874_v29 = vor.u32 %v15939_v3, %v15938_v11  ;;  %v15940_v60 = vld [vmem:[#allocation92_spill] sm:$0xff]  ;;  %v15942_v13 = vld [vmem:[#allocation73_spill] sm:$0xff]  ;;  %v3840_v46 = vshll.u32 %v1792_v38, 16  ;;  %1388 = vst [vmem:[#allocation2 + $0x1c8] sm:$0x1] %v1387_v16  ;;  %v3849_v50 = vsel %vm12300_vm7, %v3847_v63, %v12709_v14 }
 0x307   :  { %v12733_v47 = vrot.slane %v15936_v17, 5  ;;  %v15941_v30 = vshll.u32 %v15940_v60, 16  ;;  %9706 = vmatprep.mubr.bf16.mxu0 %v15942_v13  ;;  %v12747_v17 = vcombine.low %v4597_v24, %v4606_v12  ;;  %v15944_v44 = vld [vmem:[#allocation97_spill] sm:$0xff]  ;;  %v1390_v11 = vsel %vm12292_vm4, 0, %v1389_v33  ;;  %v15945_v3 = vld [vmem:[#allocation106_spill] sm:$0xff]  ;;  %v15946_v60 = vld [vmem:[#allocation107_spill] sm:$0xff] }
 0x308   :  { %v12754_v58 = vrot.slane %v3874_v29, 4  ;;  %v3842_v24 = vrot.slane %v3840_v46, 5  ;;  %v1796_v12 = vld [vmem:[#allocation2 + $0x1a0] sm:$0x1]  ;;  %v15947_v6 = vld [vmem:[#allocation102_spill] sm:$0xff]  ;;  %v1393_v14 = vsel %vm12292_vm4, 0, %v1392_v23 }
 0x309   :  { %v12744_v61 = vrot.slane %v15941_v30, 5  ;;  %15943 = vst [vmem:[#allocation30_spill] sm:$0xff] %v12747_v17  ;;  %v3865_v5 = vor.u32 %v15944_v44, %v12733_v47  ;;  %v3888_v30 = vor.u32 %v15946_v60, %v15945_v3  ;;  %1391 = vst [vmem:[#allocation2 + $0x1dc] sm:$0x1] %v1390_v11  ;;  %v15948_v44 = vld [vmem:[#allocation98_spill] sm:$0xff]  ;;  %v3852_v63 = vrot.slane %v3851_v32, 4 }
 0x30a   :  { %v15949_v16 = vshll.u32 %v15948_v44, 16  ;;  %v3854_v33 = vshll.u32 %v1796_v12, 16  ;;  %v3863_v46 = vsel %vm12300_vm7, %v12736_v27, %v12733_v47  ;;  %1394 = vst [vmem:[#allocation2 + $0x1f0] sm:$0x1] %v1393_v14  ;;  %v1395_v3 = vld [vmem:[#allocation2 + $0x204] sm:$0x1]  ;;  %v3843_v11 = vsel %vm12300_vm7, %v3838_v2, %v3842_v24 }
 0x30b   :  { %v3879_v38 = vor.u32 %v15947_v6, %v12744_v61  ;;  %v3866_v29 = vrot.slane %v3865_v5, 4  ;;  %v1800_v60 = vld [vmem:[#allocation2 + $0x1b4] sm:$0x1]  ;;  %v12776_v6 = vrot.slane %v3888_v30, 4  ;;  %v15950_v23 = vld [vmem:[#allocation112_spill] sm:$0xff]  ;;  %v15951_v44 = vld [vmem:[#allocation114_spill] sm:$0xff]  ;;  %v12784_v42 = vcombine.low %v3835_v49, %v3843_v11  ;;  %9627 = vmatmul.mubr.bf16.gmra.mxu1 %v12658_v43 }
 0x30c   :  { %v12764_v13 = vrot.slane %v15949_v16, 5  ;;  %v3902_v32 = vor.u32 %v15951_v44, %v15950_v23  ;;  %v15952_v12 = vld [vmem:[#allocation104_spill] sm:$0xff]  ;;  %v3856_v47 = vrot.slane %v3854_v33, 5  ;;  %v3868_v27 = vshll.u32 %v1800_v60, 16  ;;  %v15954_v5 = vld [vmem:[#allocation109_spill] sm:$0xff]  ;;  %v15955_v24 = vld [vmem:[#allocation115_spill] sm:$0xff]  ;;  %v12797_v33 = vpop.f32.mrf.mxu1  ;;  %9630 = vmatprep.mubr.bf16.mxu1 %v12676_v62 }
 0x30d   :  { %v15953_v16 = vshll.u32 %v15952_v12, 16  ;;  %v3877_v2 = vsel %vm12300_vm7, %v12754_v58, %v12744_v61  ;;  %v3880_v30 = vrot.slane %v3879_v38, 4  ;;  %v1396_v44 = vsel %vm12292_vm4, 0, %v1395_v3  ;;  %v1398_v12 = vld [vmem:[#allocation2 + $0x218] sm:$0x1]  ;;  %v15956_v49 = vld [vmem:[#allocation79_spill] sm:$0xff] }
 0x30e   :  { %v3893_v14 = vor.u32 %v15954_v5, %v12764_v13  ;;  %9707 = vmatmul.mubr.bf16.gmra.mxu0 %v15956_v49  ;;  %v3857_v11 = vsel %vm12300_vm7, %v3852_v63, %v3856_v47  ;;  %v3870_v60 = vrot.slane %v3868_v27, 5  ;;  %1397 = vst [vmem:[#allocation2 + $0x204] sm:$0x1] %v1396_v44  ;;  %v15957_v5 = vld [vmem:[#allocation118_spill] sm:$0xff]  ;;  %v15958_v58 = vld [vmem:[#allocation119_spill] sm:$0xff]  ;;  %v15961_v1 = vld [vmem:[#allocation81_spill] sm:$0xff]  ;;  %v3891_v63 = vsel %vm12300_vm7, %v12776_v6, %v12764_v13  ;;  %v12814_v44 = vpop.f32.mrf.mxu1 }
 0x30f   :  { %v12782_v0 = vrot.slane %v15953_v16, 5  ;;  %v1804_v16 = vld [vmem:[#allocation2 + $0x1c8] sm:$0x1]  ;;  %v3916_v61 = vor.u32 %v15958_v58, %v15957_v5  ;;  %v15959_v38 = vld [vmem:[#allocation110_spill] sm:$0xff]  ;;  %9710 = vmatprep.mubr.bf16.mxu0 %v15961_v1  ;;  %v12808_v3 = vcombine.low %v3849_v50, %v3857_v11  ;;  %v3903_v47 = vrot.slane %v3902_v32, 4  ;;  %v15964_v13 = vld [vmem:[#allocation129_spill] sm:$0xff] }
 0x310   :  { %v15960_v34 = vshll.u32 %v15959_v38, 16  ;;  %v3882_v49 = vshll.u32 %v1804_v16, 16  ;;  %v1401_v27 = vld [vmem:[#allocation2 + $0x22c] sm:$0x1]  ;;  %v3871_v5 = vsel %vm12300_vm7, %v3866_v29, %v3870_v60  ;;  %v1808_v58 = vld [vmem:[#allocation2 + $0x1dc] sm:$0x1]  ;;  %v12827_v4 = vpop.f32.mrf.mxu1 }
 0x311   :  { %v3907_v23 = vor.u32 %v15955_v24, %v12782_v0  ;;  %15962 = vst [vmem:[#allocation23_spill] sm:$0xff] %v12808_v3  ;;  %v12818_v38 = vrot.slane %v3916_v61, 4  ;;  %v1399_v50 = vsel %vm12292_vm4, 0, %v1398_v12  ;;  %v12822_v11 = vcombine.low %v3863_v46, %v3871_v5  ;;  %v1812_v52 = vld [vmem:[#allocation2 + $0x1f0] sm:$0x1]  ;;  %v15965_v6 = vld [vmem:[#allocation130_spill] sm:$0xff] }
 0x312   :  { %v12805_v24 = vrot.slane %v15960_v34, 5  ;;  %v3894_v34 = vrot.slane %v3893_v14, 4  ;;  %v3884_v16 = vrot.slane %v3882_v49, 5  ;;  %v3896_v1 = vshll.u32 %v1808_v58, 16  ;;  %1400 = vst [vmem:[#allocation2 + $0x218] sm:$0x1] %v1399_v50 }
 0x313   :  { %15963 = vst [vmem:[#allocation31_spill] sm:$0xff] %v12822_v11  ;;  %v3930_v32 = vor.u32 %v15965_v6, %v15964_v13  ;;  %v3908_v29 = vrot.slane %v3907_v23, 4  ;;  %v3910_v14 = vshll.u32 %v1812_v52, 16  ;;  %v15966_v60 = vld [vmem:[#allocation120_spill] sm:$0xff]  ;;  %v15968_v12 = vshll.u32 %v15967_v9, 16  ;;  %v12843_v23 = vpop.f32.mrf.mxu1  ;;  %9631 = vmatmul.mubr.bf16.gmra.mxu1 %v12690_v28 }
 0x314   :  { %v3921_v61 = vor.u32 %v15966_v60, %v12805_v24  ;;  %v1404_v49 = vld [vmem:[#allocation2 + $0x240] sm:$0x1]  ;;  %v3885_v5 = vsel %vm12300_vm7, %v3880_v30, %v3884_v16  ;;  %v3898_v58 = vrot.slane %v3896_v1, 5  ;;  %v3905_v50 = vsel %vm12300_vm7, %v3903_v47, %v12782_v0  ;;  %v15970_v30 = vld [vmem:[#allocation125_spill] sm:$0xff]  ;;  %v15971_v1 = vld [vmem:[#allocation124_spill] sm:$0xff]  ;;  %9634 = vmatprep.mubr.bf16.mxu1 %v12724_v7 }
 0x315   :  { %v12833_v46 = vrot.slane %v15968_v12, 5  ;;  %v1402_v52 = vsel %vm12292_vm4, 0, %v1401_v27  ;;  %v12845_v13 = vcombine.low %v3877_v2, %v3885_v5  ;;  %v3912_v9 = vrot.slane %v3910_v14, 5  ;;  %v1816_v47 = vld [vmem:[#allocation2 + $0x204] sm:$0x1]  ;;  %v15973_v2 = vld [vmem:[#allocation133_spill] sm:$0xff] }
 0x316   :  { %v3919_v6 = vsel %vm12300_vm7, %v12818_v38, %v12805_v24  ;;  %1403 = vst [vmem:[#allocation2 + $0x22c] sm:$0x1] %v1402_v52  ;;  %v15972_v16 = vor.u32 %v15970_v30, %v15971_v1  ;;  %v3899_v0 = vsel %vm12300_vm7, %v3894_v34, %v3898_v58  ;;  %v3931_v27 = vrot.slane %v3930_v32, 4  ;;  %v1407_v5 = vld [vmem:[#allocation2 + $0x254] sm:$0x1]  ;;  %9711 = vmatmul.mubr.bf16.gmra.mxu0 %v12747_v17  ;;  %v12863_v24 = vpop.f32.mrf.mxu1  ;;  %v15975_v32 = vld [vmem:[#allocation94_spill] sm:$0xff]  ;;  %v9524_v58 = vpop.f32.mrf.mxu0 }
 0x317   :  { %15969 = vst [vmem:[#allocation35_spill] sm:$0xff] %v12845_v13  ;;  %v3935_v12 = vor.u32 %v15973_v2, %v12833_v46  ;;  %v1405_v14 = vsel %vm12292_vm4, 0, %v1404_v49  ;;  %v12865_v38 = vcombine.low %v3891_v63, %v3899_v0  ;;  %v3913_v52 = vsel %vm12300_vm7, %v3908_v29, %v3912_v9  ;;  %9714 = vmatprep.mubr.bf16.mxu0 %v15975_v32  ;;  %v15978_v2 = vld [vmem:[#allocation142_spill] sm:$0xff]  ;;  %v15979_v17 = vld [vmem:[#allocation143_spill] sm:$0xff]  ;;  %v15980_v0 = vld [vmem:[#allocation128_spill] sm:$0xff] }
 0x318   :  { %v12854_v60 = vrot.slane %v15972_v16, 4  ;;  %v3922_v30 = vrot.slane %v3921_v61, 4  ;;  %v3924_v34 = vshll.u32 %v1816_v47, 16  ;;  %1406 = vst [vmem:[#allocation2 + $0x240] sm:$0x1] %v1405_v14  ;;  %v12870_v1 = vcombine.low %v3905_v50, %v3913_v52  ;;  %v15977_v16 = vld [vmem:[#allocation126_spill] sm:$0xff]  ;;  %v12885_v9 = vpop.f32.mrf.mxu1 }
 0x319   :  { %15974 = vst [vmem:[#allocation70_spill] sm:$0xff] %v12865_v38  ;;  %v3958_v63 = vor.u32 %v15979_v17, %v15978_v2  ;;  %v15981_v62 = vshll.u32 %v15980_v0, 16  ;;  %v1410_v29 = vld [vmem:[#allocation2 + $0x268] sm:$0x1]  ;;  %v12883_v61 = vadd.f32 %v9524_v58, %v12797_v33  ;;  %v1820_v47 = vld [vmem:[#allocation2 + $0x218] sm:$0x1]  ;;  %v3334_v17 = vpop.f32.mrf.mxu0 }
 0x31a   :  { %15976 = vst [vmem:[#allocation22_spill] sm:$0xff] %v12870_v1  ;;  %v3926_v50 = vrot.slane %v3924_v34, 5  ;;  %v1408_v14 = vsel %vm12292_vm4, 0, %v1407_v5  ;;  %v15983_v52 = vld [vmem:[#allocation138_spill] sm:$0xff]  ;;  %v15984_v32 = vld [vmem:[#allocation137_spill] sm:$0xff]  ;;  %v3936_v2 = vrot.slane %v3935_v12, 4  ;;  %v12901_v5 = vadd.f32 %v3334_v17, %v12814_v44  ;;  %v12903_v34 = vpop.f32.mrf.mxu1 }
 0x31b   :  { %v12880_v43 = vrot.slane %v15981_v62, 5  ;;  %15982 = vst [vmem:[#allocation53_spill] sm:$0xff] %v12883_v61  ;;  %v15985_v49 = vor.u32 %v15983_v52, %v15984_v32  ;;  %v3933_v62 = vsel %vm12300_vm7, %v3931_v27, %v12833_v46  ;;  %v3938_v33 = vshll.u32 %v1820_v47, 16  ;;  %v15986_v58 = vld [vmem:[#allocation145_spill] sm:$0xff]  ;;  %1409 = vst [vmem:[#allocation2 + $0x254] sm:$0x1] %v1408_v14  ;;  %v9525_v47 = vpop.f32.mrf.mxu0  ;;  %9635 = vmatmul.mubr.bf16.gmra.mxu1 %v12784_v42 }
 0x31c   :  { %15987 = vst [vmem:[#allocation61_spill] sm:$0xff] %v12901_v5  ;;  %v15988_v52 = vld [vmem:[#allocation139_spill] sm:$0xff]  ;;  %v1411_v27 = vsel %vm12292_vm4, 0, %v1410_v29  ;;  %v1413_v12 = vld [vmem:[#allocation2 + $0x27c] sm:$0x1]  ;;  %v12920_v5 = vadd.f32 %v9525_v47, %v12827_v4  ;;  %v2888_v46 = vpop.f32.mrf.mxu1  ;;  %v3986_v29 = vor.u32 %v12239_v57, %v12227_v19  ;;  %v15993_v7 = vld [vmem:[#allocation141_spill] sm:$0xff]  ;;  %9638 = vmatprep.mubr.bf16.mxu1 %v12808_v3 }
 0x31d   :  { %v12892_v54 = vrot.slane %v15985_v49, 4  ;;  %v3963_v0 = vor.u32 %v15986_v58, %v12880_v43  ;;  %v3927_v49 = vsel %vm12300_vm7, %v3922_v30, %v3926_v50  ;;  %v3940_v44 = vrot.slane %v3938_v33, 5  ;;  %v1824_v32 = vld [vmem:[#allocation2 + $0x22c] sm:$0x1]  ;;  %v15990_v17 = vld [vmem:[#allocation127_spill] sm:$0xff]  ;;  %v15996_v47 = vld [vmem:[#allocation149_spill] sm:$0xff] }
 0x31e   :  { %v12914_v14 = vcombine.low %v3919_v6, %v3927_v49  ;;  %v15991_v58 = vor.u32 %v15990_v17, %v15977_v16  ;;  %v3959_v50 = vrot.slane %v3958_v63, 4  ;;  %1412 = vst [vmem:[#allocation2 + $0x268] sm:$0x1] %v1411_v27  ;;  %15992 = vst [vmem:[#allocation32_spill] sm:$0xff] %v12920_v5  ;;  %v3952_v61 = vshll.u32 %v1824_v32, 16  ;;  %v3337_v49 = vpop.f32.mrf.mxu0  ;;  %v15995_v27 = vld [vmem:[#allocation150_spill] sm:$0xff] }
 0x31f   :  { %v15994_v28 = vshll.u32 %v15993_v7, 16  ;;  %v1416_v33 = vld [vmem:[#allocation2 + $0x290] sm:$0x1]  ;;  %v3941_v17 = vsel %vm12300_vm7, %v3936_v2, %v3940_v44  ;;  %v3964_v63 = vrot.slane %v3963_v0, 4  ;;  %v1414_v4 = vsel %vm12292_vm4, 0, %v1413_v12  ;;  %v15998_v19 = vld [vmem:[#allocation100_spill] sm:$0xff] }
 0x320   :  { %15989 = vst [vmem:[#allocation63_spill] sm:$0xff] %v12914_v14  ;;  %v3950_v30 = vrot.slane %v15991_v58, 4  ;;  %v1828_v58 = vld [vmem:[#allocation2 + $0x240] sm:$0x1]  ;;  %v15997_v32 = vor.u32 %v15995_v27, %v15996_v47  ;;  %9715 = vmatmul.mubr.bf16.gmra.mxu0 %v15998_v19  ;;  %v12939_v57 = vadd.f32 %v3337_v49, %v12843_v23  ;;  %v12941_v7 = vcombine.low %v3933_v62, %v3941_v17  ;;  %v16000_v0 = vld [vmem:[#allocation105_spill] sm:$0xff]  ;;  %v9528_v44 = vpop.f32.mrf.mxu0 }
 0x321   :  { %v12926_v6 = vrot.slane %v15994_v28, 5  ;;  %v9452_v28 = vpop.f32.mrf.mxu1  ;;  %v3954_v48 = vrot.slane %v3952_v61, 5  ;;  %v3966_v2 = vshll.u32 %v1828_v58, 16  ;;  %1415 = vst [vmem:[#allocation2 + $0x27c] sm:$0x1] %v1414_v4  ;;  %9718 = vmatprep.mubr.bf16.mxu0 %v16000_v0  ;;  %v3961_v12 = vsel %vm12300_vm7, %v3959_v50, %v12880_v43  ;;  %v16001_v27 = vld [vmem:[#allocation153_spill] sm:$0xff] }
 0x322   :  { %v12935_v5 = vrot.slane %v15997_v32, 4  ;;  %15999 = vst [vmem:[#allocation67_spill] sm:$0xff] %v12941_v7  ;;  %v16002_v32 = vld [vmem:[#allocation151_spill] sm:$0xff]  ;;  %v1417_v61 = vsel %vm12292_vm4, 0, %v1416_v33  ;;  %v12956_v62 = vadd.f32 %v9528_v44, %v12863_v24  ;;  %v1832_v43 = vld [vmem:[#allocation2 + $0x254] sm:$0x1]  ;;  %v4014_v50 = vor.u32 %v12489_v37, %v12485_v39 }
 0x323   :  { %v3991_v47 = vor.u32 %v16001_v27, %v12926_v6  ;;  %v2901_v49 = vpop.f32.mrf.mxu1  ;;  %v3955_v17 = vsel %vm12300_vm7, %v3950_v30, %v3954_v48  ;;  %v3968_v58 = vrot.slane %v3966_v2, 5  ;;  %1418 = vst [vmem:[#allocation2 + $0x290] sm:$0x1] %v1417_v61  ;;  %v1419_v4 = vld [vmem:[#allocation2 + $0x2a4] sm:$0x1]  ;;  %v3350_v27 = vpop.f32.mrf.mxu0  ;;  %v16003_v33 = vsel %vm12300_vm7, %v12854_v60, %v15977_v16  ;;  %v16005_v24 = vld [vmem:[#allocation140_spill] sm:$0xff]  ;;  %9639 = vmatmul.mubr.bf16.gmra.mxu1 %v12822_v11 }
 0x324   :  { %v12967_v23 = vcombine.low %v16003_v33, %v3955_v17  ;;  %v16006_v44 = vor.u32 %v16005_v24, %v15988_v52  ;;  %v3980_v48 = vshll.u32 %v1832_v43, 16  ;;  %v3987_v30 = vrot.slane %v3986_v29, 4  ;;  %9642 = vmatprep.mubr.bf16.mxu1 %v12845_v13 }
 0x325   :  { %v12974_v2 = vadd.f32 %v3350_v27, %v12885_v9  ;;  %v9453_v39 = vpop.f32.mrf.mxu1  ;;  %v3969_v37 = vsel %vm12300_vm7, %v3964_v63, %v3968_v58  ;;  %v1836_v61 = vld [vmem:[#allocation2 + $0x268] sm:$0x1]  ;;  %v3992_v19 = vrot.slane %v3991_v47, 4  ;;  %v16007_v60 = vshll.u32 %v12216_v31, 16  ;;  %v9529_v17 = vpop.f32.mrf.mxu0 }
 0x326   :  { %16004 = vst [vmem:[#allocation68_spill] sm:$0xff] %v12967_v23  ;;  %v3978_v0 = vrot.slane %v16006_v44, 4  ;;  %v12981_v33 = vcombine.low %v3961_v12, %v3969_v37  ;;  %v3982_v29 = vrot.slane %v3980_v48, 5  ;;  %v3994_v43 = vshll.u32 %v1836_v61, 16  ;;  %v16010_v37 = vld [vmem:[#allocation111_spill] sm:$0xff] }
 0x327   :  { %v4016_v16 = vrot.slane %v16007_v60, 5  ;;  %v1420_v9 = vsel %vm12292_vm4, 0, %v1419_v4  ;;  %v12986_v27 = vadd.f32 %v9529_v17, %v12903_v34  ;;  %v2904_v24 = vpop.f32.mrf.mxu1  ;;  %v16009_v31 = vor.u32 %v12272_v35, %v12267_v22  ;;  %v3353_v58 = vpop.f32.mrf.mxu0 }
 0x328   :  { %16008 = vst [vmem:[#allocation64_spill] sm:$0xff] %v12981_v33  ;;  %1421 = vst [vmem:[#allocation2 + $0x2a4] sm:$0x1] %v1420_v9  ;;  %v3983_v12 = vsel %vm12300_vm7, %v3978_v0, %v3982_v29  ;;  %v3989_v4 = vsel %vm12300_vm7, %v3987_v30, %v12926_v6  ;;  %v3996_v44 = vrot.slane %v3994_v43, 5  ;;  %v1840_v34 = vld [vmem:[#allocation2 + $0x27c] sm:$0x1]  ;;  %9719 = vmatmul.mubr.bf16.gmra.mxu0 %v16010_v37 }
 0x329   :  { %v4019_v63 = vor.u32 %v12717_v18, %v4016_v16  ;;  %v12992_v47 = vrot.slane %v16009_v31, 4  ;;  %v4015_v48 = vrot.slane %v4014_v50, 4  ;;  %v13000_v18 = vadd.f32 %v3353_v58, %v2888_v46  ;;  %v9456_v61 = vpop.f32.mrf.mxu1  ;;  %v16013_v0 = vld [vmem:[#allocation152_spill] sm:$0xff]  ;;  %v16015_v30 = vld [vmem:[#allocation117_spill] sm:$0xff]  ;;  %v9532_v50 = vpop.f32.mrf.mxu0 }
 0x32a   :  { %v16011_v22 = vsel %vm12300_vm7, %v12892_v54, %v15988_v52  ;;  %v16014_v60 = vor.u32 %v16013_v0, %v16002_v32  ;;  %v4008_v6 = vshll.u32 %v1840_v34, 16  ;;  %9722 = vmatprep.mubr.bf16.mxu0 %v16015_v30  ;;  %v3997_v46 = vsel %vm12300_vm7, %v3992_v19, %v3996_v44  ;;  %v1844_v29 = vld [vmem:[#allocation2 + $0x290] sm:$0x1] }
 0x32b   :  { %v13007_v35 = vcombine.low %v16011_v22, %v3983_v12  ;;  %v4020_v43 = vrot.slane %v4019_v63, 4  ;;  %v4031_v54 = vsel %vm12300_vm7, %v12992_v47, %v12274_v45  ;;  %v13019_v52 = vadd.f32 %v9532_v50, %v9452_v28  ;;  %v2917_v9 = vpop.f32.mrf.mxu1  ;;  %v13023_v34 = vld [vmem:[#allocation2 + $0x2b0] sm:$0xf]  ;;  %v3366_v22 = vpop.f32.mrf.mxu0  ;;  %9643 = vmatmul.mubr.bf16.gmra.mxu1 %v12865_v38 }
 0x32c   :  { %v4006_v17 = vrot.slane %v16014_v60, 4  ;;  %v13021_v31 = vcombine.low %v3989_v4, %v3997_v46  ;;  %v4010_v58 = vrot.slane %v4008_v6, 5  ;;  %v4022_v12 = vshll.u32 %v1844_v29, 16  ;;  %v1374_v44 = vld [vmem:[#allocation2 + $0x150] sm:$0x1]  ;;  %v16026_v46 = vld [vmem:[#allocation131_spill] sm:$0xff]  ;;  %9646 = vmatprep.mubr.bf16.mxu1 %v12870_v1 }
 0x32d   :  { %16012 = vst [vmem:[#allocation60_spill] sm:$0xff] %v13007_v35  ;;  %v4017_v19 = vsel %vm12300_vm7, %v4015_v48, %v4016_v16  ;;  %v13028_v63 = vadd.f32 %v3366_v22, %v2901_v49  ;;  %v9457_v0 = vpop.f32.mrf.mxu1  ;;  %v13032_v4 = vld [vmem:[#allocation2 + $0x2b4] sm:$0xf]  ;;  %v13036_v60 = vcombine.low %v12637_v40, %v12652_v51  ;;  %v9533_v6 = vpop.f32.mrf.mxu0  ;;  %v16017_v49 = vsel %vm12300_vm7, %v12935_v5, %v16002_v32  ;;  %v1422_v32 = vld [vmem:[#allocation2 + $0x2b8] sm:$0x1] }
 0x32e   :  { %16016 = vst [vmem:[#allocation78_spill] sm:$0xff] %v13021_v31  ;;  %v4011_v28 = vsel %vm12300_vm7, %v4006_v17, %v4010_v58  ;;  %v4024_v47 = vrot.slane %v4022_v12, 5  ;;  %v16019_v17 = vor.u32 %v12276_v20, %v12274_v45  ;;  %v13051_v58 = vadd.f32 %v9533_v6, %v9453_v39 }
 0x32f   :  { %v13044_v16 = vcombine.low %v16017_v49, %v4011_v28  ;;  %v1848_v48 = vld [vmem:[#allocation2 + $0x2a4] sm:$0x1]  ;;  %v2920_v12 = vpop.f32.mrf.mxu1  ;;  %v1375_v5 = vsel %vm12292_vm4, 0, %v1374_v44  ;;  %v3369_v28 = vpop.f32.mrf.mxu0  ;;  %v16021_v39 = vshrl.u32 %v12637_v40, 16  ;;  %v16024_v44 = vshll.u32 %v12637_v40, 16 }
 0x330   :  { %v4034_v50 = vrot.slane %v16019_v17, 4  ;;  %v4025_v22 = vsel %vm12300_vm7, %v4020_v43, %v4024_v47  ;;  %v4036_v30 = vshll.u32 %v1848_v48, 16  ;;  %1376 = vst [vmem:[#allocation2 + $0x150] sm:$0x1] %v1375_v5  ;;  %v16022_v17 = vld [vmem:[#allocation122_spill] sm:$0xff]  ;;  %v13064_v29 = vadd.f32 %v3369_v28, %v2904_v24 }
 0x331   :  { %16018 = vst [vmem:[#allocation74_spill] sm:$0xff] %v13044_v16  ;;  %v13057_v49 = vcombine.low %v4017_v19, %v4025_v22  ;;  %v5483_v6 = vrot.slane %v16021_v39, 4  ;;  %9723 = vmatmul.mubr.bf16.gmra.mxu0 %v16022_v17  ;;  %v9460_v43 = vpop.f32.mrf.mxu1  ;;  %v5484_v48 = vrot.slane %v16024_v44, 5  ;;  %v16025_v19 = vshll.u32 %v12652_v51, 16  ;;  %v9536_v45 = vpop.f32.mrf.mxu0 }
 0x332   :  { %16023 = vst [vmem:[#allocation69_spill] sm:$0xff] %v13064_v29  ;;  %v4038_v47 = vrot.slane %v4036_v30, 5  ;;  %9726 = vmatprep.mubr.bf16.mxu0 %v16026_v46  ;;  %v16027_v5 = vshrl.u32 %v12652_v51, 16  ;;  %v13075_v39 = vcombine.low %v13023_v34, %v13032_v4  ;;  %v1423_v24 = vsel %vm12292_vm4, 0, %v1422_v32  ;;  %v16038_v29 = vld [vmem:[#allocation136_spill] sm:$0xff] }
 0x333   :  { %16020 = vst [vmem:[#allocation65_spill] sm:$0xff] %v13057_v49  ;;  %v5487_v22 = vrot.slane %v16025_v19, 5  ;;  %v13079_v30 = vadd.f32 %v9536_v45, %v9456_v61  ;;  %v2933_v40 = vpop.f32.mrf.mxu1  ;;  %v5485_v44 = vor.u32 %v5484_v48, %v5483_v6  ;;  %1424 = vst [vmem:[#allocation2 + $0x2b8] sm:$0x1] %v1423_v24  ;;  %v3382_v19 = vpop.f32.mrf.mxu0  ;;  %v16032_v37 = vshll.u32 %v13023_v34, 16  ;;  %9647 = vmatmul.mubr.bf16.gmra.mxu1 %v12914_v14 }
 0x334   :  { %v5489_v20 = vrot.slane %v16027_v5, 4  ;;  %16028 = vst [vmem:[#allocation75_spill] sm:$0xff] %v13075_v39  ;;  %v4039_v28 = vsel %vm12300_vm7, %v4034_v50, %v4038_v47  ;;  %v16031_v5 = vshrl.u32 %v13023_v34, 16  ;;  %v13090_v61 = vadd.f32 %v3382_v19, %v2917_v9  ;;  %9650 = vmatprep.mubr.bf16.mxu1 %v12941_v7 }
 0x335   :  { %16029 = vst [vmem:[#allocation39_spill] sm:$0xff] %v13079_v30  ;;  %v13083_v46 = vcombine.low %v4031_v54, %v4039_v28  ;;  %v5498_v39 = vrot.slane %v16032_v37, 5  ;;  %v9461_v32 = vpop.f32.mrf.mxu1  ;;  %v5486_v45 = vrot.slane %v5485_v44, 4  ;;  %v16034_v50 = vshll.u32 %v13032_v4, 16 }
 0x336   :  { %v5490_v51 = vor.u32 %v5489_v20, %v5487_v22  ;;  %v5497_v17 = vrot.slane %v16031_v5, 4  ;;  %16033 = vst [vmem:[#allocation71_spill] sm:$0xff] %v13090_v61  ;;  %v16035_v47 = vshrl.u32 %v13032_v4, 16  ;;  %v9537_v20 = vpop.f32.mrf.mxu0 }
 0x337   :  { %16030 = vst [vmem:[#allocation41_spill] sm:$0xff] %v13083_v46  ;;  %v5501_v6 = vrot.slane %v16034_v50, 5  ;;  %v13097_v24 = vadd.f32 %v9537_v20, %v9457_v0  ;;  %v2936_v28 = vpop.f32.mrf.mxu1  ;;  %v1780_v37 = vld [vmem:[#allocation2 + $0x150] sm:$0x1]  ;;  %v5488_v9 = vsel %vm12300_vm7, %v5486_v45, %v5487_v22  ;;  %v16037_v50 = vld [vmem:[#allocation134_spill] sm:$0xff] }
 0x338   :  { %v5503_v54 = vrot.slane %v16035_v47, 4  ;;  %v5499_v48 = vor.u32 %v5498_v39, %v5497_v17  ;;  %v3385_v5 = vpop.f32.mrf.mxu0  ;;  %v5491_v44 = vrot.slane %v5490_v51, 4  ;;  %v5493_v10 = vshll.u32 %v1780_v37, 16 }
 0x339   :  { %16036 = vst [vmem:[#allocation80_spill] sm:$0xff] %v13097_v24  ;;  %9727 = vmatmul.mubr.bf16.gmra.mxu0 %v16037_v50  ;;  %v13102_v30 = vadd.f32 %v3385_v5, %v2920_v12  ;;  %v9464_v47 = vpop.f32.mrf.mxu1  ;;  %v16048_v50 = vshrl.u32 %v13023_v34, 16 }
 0x33a   :  { %v5504_v19 = vor.u32 %v5503_v54, %v5501_v6  ;;  %v5500_v61 = vrot.slane %v5499_v48, 4  ;;  %9730 = vmatprep.mubr.bf16.mxu0 %v16038_v29  ;;  %v9540_v17 = vpop.f32.mrf.mxu0  ;;  %v5495_v0 = vrot.slane %v5493_v10, 5  ;;  %v1852_v39 = vld [vmem:[#allocation2 + $0x2b8] sm:$0x1] }
 0x33b   :  { %v13107_v24 = vadd.f32 %v9540_v17, %v9460_v43  ;;  %v2949_v22 = vpop.f32.mrf.mxu1  ;;  %v5507_v51 = vshll.u32 %v1852_v39, 16  ;;  %9651 = vmatmul.mubr.bf16.gmra.mxu1 %v12967_v23 }
 0x33c   :  { %v5502_v20 = vsel %vm12300_vm7, %v5500_v61, %v5501_v6  ;;  %v5505_v45 = vrot.slane %v5504_v19, 4  ;;  %v3398_v54 = vpop.f32.mrf.mxu0  ;;  %v5496_v48 = vsel %vm12300_vm7, %v5491_v44, %v5495_v0  ;;  %v16041_v44 = vld [vmem:[#allocation146_spill] sm:$0xff]  ;;  %9654 = vmatprep.mubr.bf16.mxu1 %v12981_v33 }
 0x33d   :  { %v13112_v12 = vadd.f32 %v3398_v54, %v2933_v40  ;;  %v9465_v37 = vpop.f32.mrf.mxu1  ;;  %v13114_v5 = vcombine.low %v5488_v9, %v5496_v48  ;;  %v5509_v10 = vrot.slane %v5507_v51, 5  ;;  %v16042_v9 = vld [vmem:[#allocation148_spill] sm:$0xff] }
 0x33e   :  { %v9541_v61 = vpop.f32.mrf.mxu0 }
 0x33f   :  { %16039 = vst [vmem:[#allocation84_spill] sm:$0xff] %v13114_v5  ;;  %v13117_v43 = vadd.f32 %v9541_v61, %v9461_v32  ;;  %v2952_v6 = vpop.f32.mrf.mxu1  ;;  %v5510_v19 = vsel %vm12300_vm7, %v5505_v45, %v5509_v10 }
 0x340   :  { %v3401_v17 = vpop.f32.mrf.mxu0  ;;  %v13121_v39 = vcombine.low %v5502_v20, %v5510_v19 }
 0x341   :  { %9731 = vmatmul.mubr.bf16.gmra.mxu0 %v16041_v44  ;;  %v13124_v40 = vadd.f32 %v3401_v17, %v2936_v28  ;;  %v9468_v0 = vpop.f32.mrf.mxu1  ;;  %v16045_v17 = vld [vmem:[#allocation155_spill] sm:$0xff] }
 0x342   :  { %16040 = vst [vmem:[#allocation85_spill] sm:$0xff] %v13121_v39  ;;  %9734 = vmatprep.mubr.bf16.mxu0 %v16042_v9  ;;  %v9544_v51 = vpop.f32.mrf.mxu0 }
 0x343   :  { %v13127_v54 = vadd.f32 %v9544_v51, %v9464_v47  ;;  %v2965_v48 = vpop.f32.mrf.mxu1  ;;  %v1849_v51 = vld [vmem:[#allocation2 + $0x2ac] sm:$0xf]  ;;  %9655 = vmatmul.mubr.bf16.gmra.mxu1 %v13007_v35 }
 0x344   :  { %v3414_v32 = vpop.f32.mrf.mxu0  ;;  %v4608_v29 = vshrl.u32 %v1849_v51, 16  ;;  %9658 = vmatprep.mubr.bf16.mxu1 %v13021_v31 }
 0x345   :  { %v13130_v61 = vadd.f32 %v3414_v32, %v2949_v22  ;;  %v9469_v45 = vpop.f32.mrf.mxu1 }
 0x346   :  { %v9545_v20 = vpop.f32.mrf.mxu0 }
 0x347   :  { %16043 = vst [vmem:[#allocation77_spill] sm:$0xff] %v13130_v61  ;;  %v13133_v10 = vadd.f32 %v9545_v20, %v9465_v37  ;;  %v2968_v28 = vpop.f32.mrf.mxu1  ;;  %v4615_v37 = vrot.slane %v16048_v50, 7  ;;  %v16049_v20 = vshrl.u32 %v13032_v4, 16  ;;  %v16051_v50 = vshll.u32 %v13023_v34, 16 }
 0x348   :  { %v3417_v19 = vpop.f32.mrf.mxu0 }
 0x349   :  { %16044 = vst [vmem:[#allocation86_spill] sm:$0xff] %v13133_v10  ;;  %9735 = vmatmul.mubr.bf16.gmra.mxu0 %v16045_v17  ;;  %v13136_v41 = vadd.f32 %v3417_v19, %v2952_v6  ;;  %v9472_v47 = vpop.f32.mrf.mxu1  ;;  %v4624_v39 = vrot.slane %v16049_v20, 7  ;;  %v10281_v10 = vld [vmem:[#allocation8 + $0x1f8] sm:$0xff]   ;;  %v8404_v17 = vrot.slane %v4608_v29, 11  ;;  %v16052_v20 = vshll.u32 %v13032_v4, 16 }
 0x34a   :  { %9738 = vmatprep.mubr.bf16.mxu0 %v12269_v59  ;;  %v9548_v9 = vpop.f32.mrf.mxu0  ;;  %9986 = vmatprep.subr.bf16.mxu0 %v10281_v10 }
 0x34b   :  { %16046 = vst [vmem:[#allocation76_spill] sm:$0xff] %v13136_v41  ;;  %v13139_v44 = vadd.f32 %v9548_v9, %v9468_v0  ;;  %v2981_v22 = vpop.f32.mrf.mxu1  ;;  %v4620_v41 = vrot.slane %v4615_v37, 4  ;;  %v4627_v61 = vor.u32 %v16052_v20, %v4624_v39  ;;  %9659 = vmatmul.mubr.bf16.gmra.mxu1 %v13044_v16 }
 0x34c   :  { %v3430_v32 = vpop.f32.mrf.mxu0  ;;  %9662 = vmatprep.mubr.bf16.mxu1 %v13057_v49 }
 0x34d   :  { %16047 = vst [vmem:[#allocation89_spill] sm:$0xff] %v13139_v44  ;;  %v13146_v6 = vadd.f32 %v3430_v32, %v2965_v48  ;;  %v9473_v19 = vpop.f32.mrf.mxu1  ;;  %v4618_v44 = vor.u32 %v16051_v50, %v4615_v37  ;;  %v4628_v34 = vsel %vm10792_vm2, %v4620_v41, %v4627_v61 }
 0x34e   :  { %v9549_v59 = vpop.f32.mrf.mxu0 }
 0x34f   :  { %16050 = vst [vmem:[#allocation82_spill] sm:$0xff] %v13146_v6  ;;  %v13149_v0 = vadd.f32 %v9549_v59, %v9469_v45  ;;  %v2984_v9 = vpop.f32.mrf.mxu1  ;;  %v4619_v29 = vsel %vm10792_vm2, %v8404_v17, %v4618_v44 }
 0x350   :  { %v3433_v51 = vpop.f32.mrf.mxu0 }
 0x351   :  { %9739 = vmatmul.mubr.bf16.gmra.mxu0 %v12306_v21  ;;  %v13156_v48 = vadd.f32 %v3433_v51, %v2968_v28  ;;  %v9476_v32 = vpop.f32.mrf.mxu1  ;;  %v13169_v51 = vcombine.low %v4619_v29, %v4628_v34  ;;  %v16055_v34 = vld [vmem:[#allocation37_spill] sm:$0xff] }
 0x352   :  { %9742 = vmatprep.mubr.bf16.mxu0 %v12329_v53  ;;  %v9552_v6 = vpop.f32.mrf.mxu0 }
 0x353   :  { %v13159_v59 = vadd.f32 %v9552_v6, %v9472_v47  ;;  %v2997_v45 = vpop.f32.mrf.mxu1  ;;  %16053 = vst [vmem:[#allocation93_spill] sm:$0xff] %v13169_v51  ;;  %9663 = vmatmul.mubr.bf16.gmra.mxu1 %v13083_v46 }
 0x354   :  { %v3446_v37 = vpop.f32.mrf.mxu0  ;;  %9762 = vmatprep.mubr.bf16.mxu1 %v16055_v34 }
 0x355   :  { %v13166_v4 = vadd.f32 %v3446_v37, %v2981_v22  ;;  %v9477_v39 = vpop.f32.mrf.mxu1 }
 0x356   :  { %v9553_v28 = vpop.f32.mrf.mxu0 }
 0x357   :  { %v13171_v47 = vadd.f32 %v9553_v28, %v9473_v19  ;;  %v3000_v6 = vpop.f32.mrf.mxu1 }
 0x358   :  { %v3449_v50 = vpop.f32.mrf.mxu0 }
 0x359   :  { %9743 = vmatmul.mubr.bf16.gmra.mxu0 %v13169_v51  ;;  %v13174_v44 = vadd.f32 %v3449_v50, %v2984_v9  ;;  %v9480_v41 = vpop.f32.mrf.mxu1  ;;  %v10282_v50 = vld [vmem:[#allocation8 + $0x1f0] sm:$0xff]  }
 0x35a   :  { %9842 = vmatprep.mubr.bf16.mxu0 %v12426_v55  ;;  %v9556_v61 = vpop.f32.mrf.mxu0 }
 0x35b   :  { %v13177_v17 = vadd.f32 %v9556_v61, %v9476_v32  ;;  %v3013_v22 = vpop.f32.mrf.mxu1 }
 0x35c   :  { %v3462_v20 = vpop.f32.mrf.mxu0 }
 0x35d   :  { %v13180_v29 = vadd.f32 %v3462_v20, %v2997_v45  ;;  %v9481_v19 = vpop.f32.mrf.mxu1  ;;  %v10274_v20 = vld [vmem:[#allocation8 + $0x1b0] sm:$0xff]  }
 0x35e   :  { %v9557_v37 = vpop.f32.mrf.mxu0 }
 0x35f   :  { %16054 = vst [vmem:[#allocation95_spill] sm:$0xff] %v13180_v29  ;;  %v13183_v28 = vadd.f32 %v9557_v37, %v9477_v39  ;;  %v3016_v9 = vpop.f32.mrf.mxu1  ;;  %v10284_v39 = vld [vmem:[#allocation8 + $0x1e8] sm:$0xff]  }
 0x360   :  { %v3465_v51 = vpop.f32.mrf.mxu0  ;;  %v16059_v37 = vld [vmem:[#allocation38_spill] sm:$0xff] }
 0x361   :  { %16056 = vst [vmem:[#allocation90_spill] sm:$0xff] %v13183_v28  ;;  %9843 = vmatmul.mubr.bf16.vlgmr.msra.gmra.mxu0 %v12432_v36  ;;  %v13186_v55 = vadd.f32 %v3465_v51, %v3000_v6  ;;  %v9484_v32 = vpop.f32.mrf.mxu1  ;;  %9763 = vmatmul.mubr.bf16.vlgmr.msra.gmra.mxu1 %v16059_v37  ;;  %v16061_v51 = vld [vmem:[#allocation40_spill] sm:$0xff]  ;;  %v10285_v36 = vld [vmem:[#allocation8 + $0x1e0] sm:$0xff]   ;;  %v16073_v29 = vld [vmem:[#allocation46_spill] sm:$0xff] }
 0x362   :  { %9846 = vmatprep.mubr.bf16.mxu0 %v12437_v26  ;;  %v9560_v61 = vpop.f32.mrf.mxu0  ;;  %9987 = vmatpush3.bf16.msra.mxu0 %v10281_v10 }
 0x363   :  { %16057 = vst [vmem:[#allocation88_spill] sm:$0xff] %v13186_v55  ;;  %v13189_v45 = vadd.f32 %v9560_v61, %v9480_v41  ;;  %v3029_v53 = vpop.f32.mrf.mxu1  ;;  %9988 = vmatprep.subr.bf16.mxu0 %v10282_v50  ;;  %9907 = vmatpush3.bf16.msra.mxu1 %v12662_v15  ;;  %v10275_v41 = vld [vmem:[#allocation8 + $0x1a8] sm:$0xff]  }
 0x364   :  { %v3478_v34 = vpop.f32.mrf.mxu0  ;;  %9766 = vmatprep.mubr.bf16.mxu1 %v16061_v51  ;;  %9908 = vmatprep.subr.bf16.mxu1 %v10274_v20  ;;  %v16066_v55 = vld [vmem:[#allocation42_spill] sm:$0xff] }
 0x365   :  { %16058 = vst [vmem:[#allocation99_spill] sm:$0xff] %v13189_v45  ;;  %v13192_v21 = vadd.f32 %v3478_v34, %v3013_v22  ;;  %v9485_v56 = vpop.f32.mrf.mxu1  ;;  %v10276_v34 = vld [vmem:[#allocation8 + $0x1a0] sm:$0xff]  }
 0x366   :  { %v9561_v6 = vpop.f32.mrf.mxu0  ;;  %9989 = vmatpush3.bf16.msra.mxu0 %v10282_v50 }
 0x367   :  { %16060 = vst [vmem:[#allocation101_spill] sm:$0xff] %v13192_v21  ;;  %v13196_v26 = vadd.f32 %v9561_v6, %v9481_v19  ;;  %v3032_v10 = vpop.f32.mrf.mxu1  ;;  %9990 = vmatprep.subr.bf16.mxu0 %v10284_v39  ;;  %9909 = vmatpush3.bf16.msra.mxu1 %v10274_v20  ;;  %v10286_v6 = vld [vmem:[#allocation8 + $0x1d8] sm:$0xff]  }
 0x368   :  { %v3481_v61 = vpop.f32.mrf.mxu0  ;;  %9910 = vmatprep.subr.bf16.mxu1 %v10275_v41  ;;  %v10278_v20 = vld [vmem:[#allocation8 + $0x198] sm:$0xff]  }
 0x369   :  { %16062 = vst [vmem:[#allocation92_spill] sm:$0xff] %v13196_v26  ;;  %9847 = vmatmul.mubr.bf16.gmra.mxu0 %v12444_v8  ;;  %v13199_v45 = vadd.f32 %v3481_v61, %v3016_v9  ;;  %v9488_v22 = vpop.f32.mrf.mxu1  ;;  %v16064_v26 = vld [vmem:[#allocation43_spill] sm:$0xff] }
 0x36a   :  { %9850 = vmatprep.mubr.bf16.mxu0 %v12468_v25  ;;  %9991 = vmatpush3.bf16.msra.mxu0 %v10284_v39  ;;  %v9564_v19 = vpop.f32.mrf.mxu0  ;;  %v10288_v39 = vld [vmem:[#allocation8 + $0x1d0] sm:$0xff]  }
 0x36b   :  { %16063 = vst [vmem:[#allocation97_spill] sm:$0xff] %v13199_v45  ;;  %v3045_v15 = vpop.f32.mrf.mxu1  ;;  %9992 = vmatprep.subr.bf16.mxu0 %v10285_v36  ;;  %9767 = vmatmul.mubr.bf16.gmra.mxu1 %v16064_v26  ;;  %v13203_v50 = vadd.f32 %v9564_v19, %v9484_v32  ;;  %v16068_v45 = vld [vmem:[#allocation15_spill] sm:$0xff] }
 0x36c   :  { %9770 = vmatprep.mubr.bf16.mxu1 %v16066_v55  ;;  %v3494_v9 = vpop.f32.mrf.mxu0  ;;  %9911 = vmatpush3.bf16.msra.mxu1 %v10275_v41  ;;  %v16070_v32 = vld [vmem:[#allocation19_spill] sm:$0xff] }
 0x36d   :  { %16065 = vst [vmem:[#allocation106_spill] sm:$0xff] %v13203_v50  ;;  %v9489_v21 = vpop.f32.mrf.mxu1  ;;  %v13206_v61 = vadd.f32 %v3494_v9, %v3029_v53  ;;  %9912 = vmatprep.subr.bf16.mxu1 %v10276_v34  ;;  %v10279_v53 = vld [vmem:[#allocation8 + $0x190] sm:$0xff]  }
 0x36e   :  { %9993 = vmatpush3.bf16.msra.mxu0 %v10285_v36  ;;  %v9565_v8 = vpop.f32.mrf.mxu0  ;;  %v10289_v36 = vld [vmem:[#allocation8 + $0x1c8] sm:$0xff]   ;;  %v16072_v9 = vld [vmem:[#allocation47_spill] sm:$0xff] }
 0x36f   :  { %16067 = vst [vmem:[#allocation107_spill] sm:$0xff] %v13206_v61  ;;  %v3048_v25 = vpop.f32.mrf.mxu1  ;;  %9994 = vmatprep.subr.bf16.mxu0 %v10286_v6  ;;  %v13209_v28 = vadd.f32 %v9565_v8, %v9485_v56 }
 0x370   :  { %v3497_v19 = vpop.f32.mrf.mxu0  ;;  %9913 = vmatpush3.bf16.msra.mxu1 %v10276_v34  ;;  %v10280_v34 = vld [vmem:[#allocation8 + $0x188] sm:$0xff]  }
 0x371   :  { %9851 = vmatmul.mubr.bf16.gmra.mxu0 %v16068_v45  ;;  %16069 = vst [vmem:[#allocation102_spill] sm:$0xff] %v13209_v28  ;;  %v9492_v50 = vpop.f32.mrf.mxu1  ;;  %v13212_v55 = vadd.f32 %v3497_v19, %v3032_v10  ;;  %9914 = vmatprep.subr.bf16.mxu1 %v10278_v20  ;;  %v16076_v45 = vld [vmem:[#allocation25_spill] sm:$0xff]  ;;  %v16077_v28 = vld [vmem:[#allocation50_spill] sm:$0xff] }
 0x372   :  { %9854 = vmatprep.mubr.bf16.mxu0 %v16070_v32  ;;  %9995 = vmatpush3.bf16.msra.mxu0 %v10286_v6  ;;  %v9568_v61 = vpop.f32.mrf.mxu0  ;;  %v10291_v6 = vld [vmem:[#allocation8 + $0x1c0] sm:$0xff]  }
 0x373   :  { %16071 = vst [vmem:[#allocation98_spill] sm:$0xff] %v13212_v55  ;;  %v3061_v41 = vpop.f32.mrf.mxu1  ;;  %9996 = vmatprep.subr.bf16.mxu0 %v10288_v39  ;;  %9771 = vmatmul.mubr.bf16.gmra.mxu1 %v16072_v9  ;;  %v13216_v56 = vadd.f32 %v9568_v61, %v9488_v22  ;;  %v10283_v61 = vld [vmem:[#allocation8 + $0x180] sm:$0xff]  }
 0x374   :  { %9774 = vmatprep.mubr.bf16.mxu1 %v16073_v29  ;;  %9915 = vmatpush3.bf16.msra.mxu1 %v10278_v20  ;;  %v3510_v32 = vpop.f32.mrf.mxu0 }
 0x375   :  { %16074 = vst [vmem:[#allocation112_spill] sm:$0xff] %v13216_v56  ;;  %v9493_v8 = vpop.f32.mrf.mxu1  ;;  %9916 = vmatprep.subr.bf16.mxu1 %v10279_v53  ;;  %v13218_v10 = vadd.f32 %v3510_v32, %v3045_v15  ;;  %v16080_v15 = vld [vmem:[#allocation51_spill] sm:$0xff] }
 0x376   :  { %9997 = vmatpush3.bf16.msra.mxu0 %v10288_v39  ;;  %v9569_v55 = vpop.f32.mrf.mxu0 }
 0x377   :  { %16075 = vst [vmem:[#allocation114_spill] sm:$0xff] %v13218_v10  ;;  %v3064_v19 = vpop.f32.mrf.mxu1  ;;  %9998 = vmatprep.subr.bf16.mxu0 %v10289_v36  ;;  %v13222_v9 = vadd.f32 %v9569_v55, %v9489_v21  ;;  %v16081_v10 = vld [vmem:[#allocation13_spill] sm:$0xff]  ;;  %v13230_v55 = vld [vmem:[#allocation8 + $0x238] sm:$0xff]  }
 0x378   :  { %9917 = vmatpush3.bf16.msra.mxu1 %v10279_v53  ;;  %v3513_v22 = vpop.f32.mrf.mxu0 }
 0x379   :  { %9855 = vmatmul.mubr.bf16.gmra.mxu0 %v16076_v45  ;;  %16078 = vst [vmem:[#allocation104_spill] sm:$0xff] %v13222_v9  ;;  %9918 = vmatprep.subr.bf16.mxu1 %v10280_v34  ;;  %v13224_v20 = vadd.f32 %v3513_v22, %v3048_v25  ;;  %v9496_v39 = vpop.f32.mrf.mxu1 }
 0x37a   :  { %9858 = vmatprep.mubr.bf16.mxu0 %v16077_v28  ;;  %9999 = vmatpush3.bf16.msra.mxu0 %v10289_v36  ;;  %v9572_v32 = vpop.f32.mrf.mxu0  ;;  %v16084_v36 = vld [vmem:[#allocation28_spill] sm:$0xff]  ;;  %v16085_v28 = vld [vmem:[#allocation18_spill] sm:$0xff] }
 0x37b   :  { %16079 = vst [vmem:[#allocation109_spill] sm:$0xff] %v13224_v20  ;;  %10000 = vmatprep.subr.bf16.mxu0 %v10291_v6  ;;  %9775 = vmatmul.mubr.bf16.gmra.mxu1 %v16080_v15  ;;  %v13228_v45 = vadd.f32 %v9572_v32, %v9492_v50  ;;  %v3077_v56 = vpop.f32.mrf.mxu1  ;;  %v16088_v32 = vld [vmem:[#allocation16_spill] sm:$0xff] }
 0x37c   :  { %9778 = vmatprep.mubr.bf16.mxu1 %v16081_v10  ;;  %9919 = vmatpush3.bf16.msra.mxu1 %v10280_v34  ;;  %v3526_v21 = vpop.f32.mrf.mxu0 }
 0x37d   :  { %16082 = vst [vmem:[#allocation115_spill] sm:$0xff] %v13228_v45  ;;  %9920 = vmatprep.subr.bf16.mxu1 %v10283_v61  ;;  %v13232_v53 = vadd.f32 %v3526_v21, %v3061_v41  ;;  %v9497_v25 = vpop.f32.mrf.mxu1  ;;  %v16091_v45 = vld [vmem:[#allocation21_spill] sm:$0xff] }
 0x37e   :  { %10001 = vmatpush3.bf16.msra.mxu0 %v10291_v6  ;;  %v9573_v22 = vpop.f32.mrf.mxu0  ;;  %v16089_v6 = vld [vmem:[#allocation20_spill] sm:$0xff] }
 0x37f   :  { %16083 = vst [vmem:[#allocation118_spill] sm:$0xff] %v13232_v53  ;;  %v13236_v20 = vadd.f32 %v9573_v22, %v9493_v8  ;;  %v3080_v9 = vpop.f32.mrf.mxu1  ;;  %v16092_v22 = vld [vmem:[#allocation14_spill] sm:$0xff] }
 0x380   :  { %9921 = vmatpush3.bf16.msra.mxu1 %v10283_v61  ;;  %v3529_v50 = vpop.f32.mrf.mxu0 }
 0x381   :  { %9859 = vmatmul.mubr.bf16.gmra.mxu0 %v16084_v36  ;;  %16086 = vst [vmem:[#allocation119_spill] sm:$0xff] %v13236_v20  ;;  %10066 = vmatprep.subr.bf16.mxu1 %v13230_v55  ;;  %v13239_v34 = vadd.f32 %v3529_v50, %v3064_v19  ;;  %v9500_v41 = vpop.f32.mrf.mxu1  ;;  %v16095_v50 = vld [vmem:[#allocation29_spill] sm:$0xff] }
 0x382   :  { %9862 = vmatprep.mubr.bf16.mxu0 %v16085_v28  ;;  %v9576_v21 = vpop.f32.mrf.mxu0 }
 0x383   :  { %16087 = vst [vmem:[#allocation110_spill] sm:$0xff] %v13239_v34  ;;  %9779 = vmatmul.mubr.bf16.gmra.mxu1 %v16088_v32  ;;  %v13243_v53 = vadd.f32 %v9576_v21, %v9496_v39  ;;  %v3093_v36 = vpop.f32.mrf.mxu1 }
 0x384   :  { %9782 = vmatprep.mubr.bf16.mxu1 %v16089_v6  ;;  %v3542_v8 = vpop.f32.mrf.mxu0  ;;  %v16096_v6 = vld [vmem:[#allocation59_spill] sm:$0xff] }
 0x385   :  { %16090 = vst [vmem:[#allocation129_spill] sm:$0xff] %v13243_v53  ;;  %v13247_v61 = vadd.f32 %v3542_v8, %v3077_v56  ;;  %v9501_v20 = vpop.f32.mrf.mxu1  ;;  %v16098_v53 = vld [vmem:[#allocation24_spill] sm:$0xff] }
 0x386   :  { %v9577_v28 = vpop.f32.mrf.mxu0 }
 0x387   :  { %16093 = vst [vmem:[#allocation130_spill] sm:$0xff] %v13247_v61  ;;  %v13249_v19 = vadd.f32 %v9577_v28, %v9497_v25  ;;  %v3096_v39 = vpop.f32.mrf.mxu1  ;;  %v16101_v28 = vld [vmem:[#allocation62_spill] sm:$0xff] }
 0x388   :  { %v3545_v34 = vpop.f32.mrf.mxu0 }
 0x389   :  { %9863 = vmatmul.mubr.bf16.gmra.mxu0 %v16091_v45  ;;  %16094 = vst [vmem:[#allocation120_spill] sm:$0xff] %v13249_v19  ;;  %v13253_v32 = vadd.f32 %v3545_v34, %v3080_v9  ;;  %v9504_v56 = vpop.f32.mrf.mxu1  ;;  %v16102_v19 = vld [vmem:[#allocation72_spill] sm:$0xff] }
 0x38a   :  { %9866 = vmatprep.mubr.bf16.mxu0 %v16092_v22  ;;  %v9580_v21 = vpop.f32.mrf.mxu0  ;;  %v16099_v22 = vld [vmem:[#allocation27_spill] sm:$0xff] }
 0x38b   :  { %9783 = vmatmul.mubr.bf16.gmra.mxu1 %v16095_v50  ;;  %16097 = vst [vmem:[#allocation116_spill] sm:$0xff] %v13253_v32  ;;  %v13256_v45 = vadd.f32 %v9580_v21, %v9500_v41  ;;  %v3109_v9 = vpop.f32.mrf.mxu1 }
 0x38c   :  { %9786 = vmatprep.mubr.bf16.mxu1 %v16096_v6  ;;  %v3558_v8 = vpop.f32.mrf.mxu0 }
 0x38d   :  { %v13259_v61 = vadd.f32 %v3558_v8, %v3093_v36  ;;  %v9505_v36 = vpop.f32.mrf.mxu1 }
 0x38e   :  { %v9581_v25 = vpop.f32.mrf.mxu0 }
 0x38f   :  { %16100 = vst [vmem:[#allocation125_spill] sm:$0xff] %v13259_v61  ;;  %v13263_v6 = vadd.f32 %v9581_v25, %v9501_v20  ;;  %v16107_v20 = vld [vmem:[#allocation83_spill] sm:$0xff] }
 0x390   :  { %v3561_v34 = vpop.f32.mrf.mxu0 }
 0x391   :  { %9867 = vmatmul.mubr.bf16.gmra.mxu0 %v16098_v53  ;;  %16103 = vst [vmem:[#allocation124_spill] sm:$0xff] %v13263_v6  ;;  %v13265_v32 = vadd.f32 %v3561_v34, %v3096_v39  ;;  %v3112_v39 = vpop.f32.mrf.mxu1 }
 0x392   :  { %9870 = vmatprep.mubr.bf16.mxu0 %v16099_v22  ;;  %v9584_v53 = vpop.f32.mrf.mxu0 }
 0x393   :  { %9787 = vmatmul.mubr.bf16.gmra.mxu1 %v16101_v28  ;;  %16104 = vst [vmem:[#allocation133_spill] sm:$0xff] %v13265_v32  ;;  %v13268_v41 = vadd.f32 %v9584_v53, %v9504_v56  ;;  %v16110_v56 = vld [vmem:[#allocation87_spill] sm:$0xff] }
 0x394   :  { %9790 = vmatprep.mubr.bf16.mxu1 %v16102_v19  ;;  %v3574_v21 = vpop.f32.mrf.mxu0 }
 0x395   :  { %16105 = vst [vmem:[#allocation94_spill] sm:$0xff] %v13268_v41  ;;  %v13271_v8 = vadd.f32 %v3574_v21, %v3109_v9  ;;  %v16111_v21 = vld [vmem:[#allocation53_spill] sm:$0xff]  ;;  %v16112_v41 = vld [vmem:[#allocation91_spill] sm:$0xff] }
 0x396   :  { %v9585_v22 = vpop.f32.mrf.mxu0 }
 0x397   :  { %16106 = vst [vmem:[#allocation126_spill] sm:$0xff] %v13271_v8  ;;  %v13275_v25 = vadd.f32 %v9585_v22, %v9505_v36 }
 0x398   :  { %v3577_v34 = vpop.f32.mrf.mxu0 }
 0x399   :  { %9871 = vmatmul.mubr.bf16.gmra.mxu0 %v13114_v5  ;;  %16108 = vst [vmem:[#allocation142_spill] sm:$0xff] %v13275_v25  ;;  %v13277_v32 = vadd.f32 %v3577_v34, %v3112_v39 }
 0x39a   :  { %9874 = vmatprep.mubr.bf16.mxu0 %v12784_v42  ;;  %v9684_v5 = vpop.f32.mrf.mxu0 }
 0x39b   :  { %9791 = vmatmul.mubr.bf16.gmra.mxu1 %v13036_v60  ;;  %16109 = vst [vmem:[#allocation143_spill] sm:$0xff] %v13277_v32  ;;  %v9604_v53 = vpop.f32.mrf.mxu1 }
 0x39c   :  { %9794 = vmatprep.mubr.bf16.mxu1 %v16107_v20  ;;  %v4735_v42 = vpop.f32.mrf.mxu0  ;;  %v4523_v8 = vadd.f32 %v9604_v53, %v16111_v21  ;;  %v16113_v20 = vld [vmem:[#allocation61_spill] sm:$0xff] }
 0x39d   :  { %v4266_v22 = vpop.f32.mrf.mxu1 }
 0x39e   :  { %v9685_v9 = vpop.f32.mrf.mxu0  ;;  %v4521_v25 = vadd.f32 %v4266_v22, %v16113_v20  ;;  %v13285_v39 = vadd.f32 %v9684_v5, %v4523_v8  ;;  %v16115_v22 = vld [vmem:[#allocation96_spill] sm:$0xff]  ;;  %v16116_v20 = vld [vmem:[#allocation103_spill] sm:$0xff] }
 0x39f   :  { %v9605_v34 = vpop.f32.mrf.mxu1 }
 0x3a0   :  { %v4738_v36 = vpop.f32.mrf.mxu0  ;;  %v13289_v6 = vadd.f32 %v4735_v42, %v4521_v25 }
 0x3a1   :  { %9875 = vmatmul.mubr.bf16.gmra.mxu0 %v12808_v3 }
 0x3a2   :  { %9878 = vmatprep.mubr.bf16.mxu0 %v12822_v11  ;;  %v9688_v32 = vpop.f32.mrf.mxu0  ;;  %v16114_v11 = vld [vmem:[#allocation32_spill] sm:$0xff] }
 0x3a3   :  { %9795 = vmatmul.mubr.bf16.gmra.mxu1 %v16110_v56  ;;  %v4524_v3 = vadd.f32 %v9605_v34, %v16114_v11  ;;  %v4269_v56 = vpop.f32.mrf.mxu1 }
 0x3a4   :  { %9798 = vmatprep.mubr.bf16.mxu1 %v16112_v41  ;;  %v4751_v53 = vpop.f32.mrf.mxu0  ;;  %v4522_v21 = vadd.f32 %v4269_v56, %v12939_v57 }
 0x3a5   :  { %v13293_v41 = vadd.f32 %v9685_v9, %v4524_v3  ;;  %v9608_v61 = vpop.f32.mrf.mxu1 }
 0x3a6   :  { %v9689_v5 = vpop.f32.mrf.mxu0  ;;  %v4527_v8 = vadd.f32 %v9608_v61, %v12956_v62 }
 0x3a7   :  { %v4282_v11 = vpop.f32.mrf.mxu1 }
 0x3a8   :  { %v4754_v25 = vpop.f32.mrf.mxu0  ;;  %v4525_v42 = vadd.f32 %v4282_v11, %v12974_v2  ;;  %v13301_v34 = vadd.f32 %v9688_v32, %v4527_v8  ;;  %v16117_v2 = vld [vmem:[#allocation108_spill] sm:$0xff]  ;;  %v16118_v11 = vld [vmem:[#allocation113_spill] sm:$0xff] }
 0x3a9   :  { %9879 = vmatmul.mubr.bf16.gmra.mxu0 %v12845_v13  ;;  %v13298_v13 = vadd.f32 %v4738_v36, %v4522_v21 }
 0x3aa   :  { %9882 = vmatprep.mubr.bf16.mxu0 %v12865_v38  ;;  %v9609_v38 = vpop.f32.mrf.mxu1  ;;  %v9692_v57 = vpop.f32.mrf.mxu0  ;;  %v13305_v56 = vadd.f32 %v4751_v53, %v4525_v42 }
 0x3ab   :  { %9799 = vmatmul.mubr.bf16.gmra.mxu1 %v16115_v22  ;;  %v4528_v3 = vadd.f32 %v9609_v38, %v12986_v27 }
 0x3ac   :  { %9802 = vmatprep.mubr.bf16.mxu1 %v16116_v20  ;;  %v4285_v62 = vpop.f32.mrf.mxu1  ;;  %v4767_v61 = vpop.f32.mrf.mxu0 }
 0x3ad   :  { %v4526_v9 = vadd.f32 %v4285_v62, %v13000_v18  ;;  %v13309_v36 = vadd.f32 %v9689_v5, %v4528_v3 }
 0x3ae   :  { %v9612_v21 = vpop.f32.mrf.mxu1  ;;  %v9693_v32 = vpop.f32.mrf.mxu0 }
 0x3af   :  { %v4531_v8 = vadd.f32 %v9612_v21, %v13019_v52 }
 0x3b0   :  { %v4298_v38 = vpop.f32.mrf.mxu1  ;;  %v4770_v27 = vpop.f32.mrf.mxu0 }
 0x3b1   :  { %9883 = vmatmul.mubr.bf16.gmra.mxu0 %v12870_v1  ;;  %v13314_v1 = vadd.f32 %v4754_v25, %v4526_v9  ;;  %v4529_v53 = vadd.f32 %v4298_v38, %v13028_v63  ;;  %v13317_v42 = vadd.f32 %v9692_v57, %v4531_v8  ;;  %v16122_v25 = vld [vmem:[#allocation69_spill] sm:$0xff]  ;;  %v16124_v8 = vld [vmem:[#allocation39_spill] sm:$0xff] }
 0x3b2   :  { %9886 = vmatprep.mubr.bf16.mxu0 %v12914_v14  ;;  %v9613_v14 = vpop.f32.mrf.mxu1  ;;  %v16123_v63 = vld [vmem:[#allocation121_spill] sm:$0xff] }
 0x3b3   :  { %9803 = vmatmul.mubr.bf16.gmra.mxu1 %v16117_v2  ;;  %16119 = vst [vmem:[#allocation128_spill] sm:$0xff] %v13314_v1  ;;  %16120 = vst [vmem:[#allocation138_spill] sm:$0xff] %v13317_v42  ;;  %v4532_v5 = vadd.f32 %v9613_v14, %v13051_v58  ;;  %v13321_v3 = vadd.f32 %v4767_v61, %v4529_v53  ;;  %v16125_v42 = vld [vmem:[#allocation123_spill] sm:$0xff] }
 0x3b4   :  { %9806 = vmatprep.mubr.bf16.mxu1 %v16118_v11  ;;  %v9696_v18 = vpop.f32.mrf.mxu0  ;;  %v4301_v52 = vpop.f32.mrf.mxu1  ;;  %v16127_v61 = vld [vmem:[#allocation71_spill] sm:$0xff] }
 0x3b5   :  { %16121 = vst [vmem:[#allocation137_spill] sm:$0xff] %v13321_v3  ;;  %v4530_v9 = vadd.f32 %v4301_v52, %v16122_v25  ;;  %v13325_v21 = vadd.f32 %v9693_v32, %v4532_v5  ;;  %v16128_v32 = vld [vmem:[#allocation80_spill] sm:$0xff] }
 0x3b6   :  { %v4783_v62 = vpop.f32.mrf.mxu0  ;;  %v9616_v1 = vpop.f32.mrf.mxu1 }
 0x3b7   :  { %v4535_v38 = vadd.f32 %v9616_v1, %v16124_v8 }
 0x3b8   :  { %v9697_v57 = vpop.f32.mrf.mxu0  ;;  %v4314_v14 = vpop.f32.mrf.mxu1 }
 0x3b9   :  { %9887 = vmatmul.mubr.bf16.gmra.mxu0 %v12941_v7  ;;  %v13330_v7 = vadd.f32 %v4770_v27, %v4530_v9  ;;  %v4533_v53 = vadd.f32 %v4314_v14, %v16127_v61  ;;  %v16129_v14 = vld [vmem:[#allocation132_spill] sm:$0xff]  ;;  %v16130_v61 = vld [vmem:[#allocation135_spill] sm:$0xff] }
 0x3ba   :  { %9890 = vmatprep.mubr.bf16.mxu0 %v12967_v23  ;;  %v4786_v58 = vpop.f32.mrf.mxu0  ;;  %v13333_v23 = vadd.f32 %v9696_v18, %v4535_v38  ;;  %v9617_v3 = vpop.f32.mrf.mxu1 }
 0x3bb   :  { %9807 = vmatmul.mubr.bf16.gmra.mxu1 %v16123_v63  ;;  %16126 = vst [vmem:[#allocation145_spill] sm:$0xff] %v13330_v7  ;;  %v4536_v5 = vadd.f32 %v9617_v3, %v16128_v32  ;;  %v13337_v25 = vadd.f32 %v4783_v62, %v4533_v53 }
 0x3bc   :  { %9810 = vmatprep.mubr.bf16.mxu1 %v16125_v42  ;;  %v9700_v52 = vpop.f32.mrf.mxu0  ;;  %v4317_v1 = vpop.f32.mrf.mxu1 }
 0x3bd   :  { %v4534_v27 = vadd.f32 %v4317_v1, %v13102_v30  ;;  %v13341_v9 = vadd.f32 %v9697_v57, %v4536_v5 }
 0x3be   :  { %v4799_v8 = vpop.f32.mrf.mxu0  ;;  %v9620_v7 = vpop.f32.mrf.mxu1 }
 0x3bf   :  { %v4539_v38 = vadd.f32 %v9620_v7, %v13107_v24 }
 0x3c0   :  { %v9701_v18 = vpop.f32.mrf.mxu0  ;;  %v4330_v3 = vpop.f32.mrf.mxu1 }
 0x3c1   :  { %9891 = vmatmul.mubr.bf16.gmra.mxu0 %v12981_v33  ;;  %v13346_v33 = vadd.f32 %v4786_v58, %v4534_v27  ;;  %v4537_v53 = vadd.f32 %v4330_v3, %v13112_v12  ;;  %v13349_v32 = vadd.f32 %v9700_v52, %v4539_v38  ;;  %v16133_v12 = vld [vmem:[#allocation144_spill] sm:$0xff]  ;;  %v16134_v3 = vld [vmem:[#allocation147_spill] sm:$0xff] }
 0x3c2   :  { %9894 = vmatprep.mubr.bf16.mxu0 %v13007_v35  ;;  %v4802_v62 = vpop.f32.mrf.mxu0  ;;  %v9621_v35 = vpop.f32.mrf.mxu1 }
 0x3c3   :  { %9811 = vmatmul.mubr.bf16.gmra.mxu1 %v16129_v14  ;;  %v4540_v57 = vadd.f32 %v9621_v35, %v13117_v43  ;;  %v13353_v5 = vadd.f32 %v4799_v8, %v4537_v53  ;;  %v16136_v8 = vld [vmem:[#allocation77_spill] sm:$0xff] }
 0x3c4   :  { %9814 = vmatprep.mubr.bf16.mxu1 %v16130_v61  ;;  %v4333_v7 = vpop.f32.mrf.mxu1 }
 0x3c5   :  { %16131 = vst [vmem:[#allocation139_spill] sm:$0xff] %v13353_v5  ;;  %v4538_v58 = vadd.f32 %v4333_v7, %v13124_v40  ;;  %v13357_v1 = vadd.f32 %v9701_v18, %v4540_v57  ;;  %v16138_v18 = vld [vmem:[#allocation86_spill] sm:$0xff] }
 0x3c6   :  { %v9704_v30 = vpop.f32.mrf.mxu0  ;;  %v9624_v27 = vpop.f32.mrf.mxu1 }
 0x3c7   :  { %16132 = vst [vmem:[#allocation127_spill] sm:$0xff] %v13357_v1  ;;  %v4543_v38 = vadd.f32 %v9624_v27, %v13127_v54 }
 0x3c8   :  { %v4815_v24 = vpop.f32.mrf.mxu0  ;;  %v4346_v35 = vpop.f32.mrf.mxu1 }
 0x3c9   :  { %9895 = vmatmul.mubr.bf16.gmra.mxu0 %v13021_v31  ;;  %v13362_v31 = vadd.f32 %v4802_v62, %v4538_v58  ;;  %v4541_v53 = vadd.f32 %v4346_v35, %v16136_v8  ;;  %v16140_v62 = vld [vmem:[#allocation76_spill] sm:$0xff]  ;;  %v16141_v35 = vld [vmem:[#allocation154_spill] sm:$0xff] }
 0x3ca   :  { %9898 = vmatprep.mubr.bf16.mxu0 %v13044_v16  ;;  %v9705_v52 = vpop.f32.mrf.mxu0  ;;  %v13365_v16 = vadd.f32 %v9704_v30, %v4543_v38  ;;  %v9625_v5 = vpop.f32.mrf.mxu1  ;;  %v16142_v38 = vld [vmem:[#allocation89_spill] sm:$0xff] }
 0x3cb   :  { %9815 = vmatmul.mubr.bf16.gmra.mxu1 %v16133_v12  ;;  %16135 = vst [vmem:[#allocation141_spill] sm:$0xff] %v13362_v31  ;;  %v4544_v57 = vadd.f32 %v9625_v5, %v16138_v18  ;;  %v13369_v7 = vadd.f32 %v4815_v24, %v4541_v53  ;;  %v16145_v53 = vld [vmem:[#allocation82_spill] sm:$0xff] }
 0x3cc   :  { %9818 = vmatprep.mubr.bf16.mxu1 %v16134_v3  ;;  %v4818_v43 = vpop.f32.mrf.mxu0  ;;  %16137 = vst [vmem:[#allocation150_spill] sm:$0xff] %v13365_v16  ;;  %v4349_v54 = vpop.f32.mrf.mxu1  ;;  %v16143_v16 = vld [vmem:[#allocation156_spill] sm:$0xff] }
 0x3cd   :  { %16139 = vst [vmem:[#allocation149_spill] sm:$0xff] %v13369_v7  ;;  %v4542_v58 = vadd.f32 %v4349_v54, %v16140_v62  ;;  %v13373_v31 = vadd.f32 %v9705_v52, %v4544_v57  ;;  %v16146_v52 = vld [vmem:[#allocation85_spill] sm:$0xff] }
 0x3ce   :  { %v9708_v40 = vpop.f32.mrf.mxu0  ;;  %v9628_v1 = vpop.f32.mrf.mxu1 }
 0x3cf   :  { %v4547_v8 = vadd.f32 %v9628_v1, %v16142_v38 }
 0x3d0   :  { %v4831_v27 = vpop.f32.mrf.mxu0  ;;  %v4362_v5 = vpop.f32.mrf.mxu1 }
 0x3d1   :  { %9899 = vmatmul.mubr.bf16.gmra.mxu0 %v13057_v49  ;;  %v13378_v49 = vadd.f32 %v4818_v43, %v4542_v58  ;;  %v4545_v18 = vadd.f32 %v4362_v5, %v16145_v53  ;;  %v16147_v5 = vld [vmem:[#allocation75_spill] sm:$0xff]  ;;  %v16148_v53 = vld [vmem:[#allocation45_spill] sm:$0xff] }
 0x3d2   :  { %9902 = vmatprep.mubr.bf16.mxu0 %v13083_v46  ;;  %v9709_v30 = vpop.f32.mrf.mxu0  ;;  %v13381_v46 = vadd.f32 %v9708_v40, %v4547_v8  ;;  %v9629_v7 = vpop.f32.mrf.mxu1 }
 0x3d3   :  { %9819 = vmatmul.mubr.bf16.gmra.mxu1 %v16141_v35  ;;  %16144 = vst [vmem:[#allocation153_spill] sm:$0xff] %v13378_v49  ;;  %v4548_v57 = vadd.f32 %v9629_v7, %v13149_v0  ;;  %v13385_v62 = vadd.f32 %v4831_v27, %v4545_v18 }
 0x3d4   :  { %9822 = vmatprep.mubr.bf16.mxu1 %v16143_v16  ;;  %v4834_v24 = vpop.f32.mrf.mxu0  ;;  %v4365_v1 = vpop.f32.mrf.mxu1 }
 0x3d5   :  { %v4546_v43 = vadd.f32 %v4365_v1, %v13156_v48  ;;  %v13389_v58 = vadd.f32 %v9709_v30, %v4548_v57 }
 0x3d6   :  { %v9712_v54 = vpop.f32.mrf.mxu0  ;;  %v9632_v49 = vpop.f32.mrf.mxu1 }
 0x3d7   :  { %v4551_v8 = vadd.f32 %v9632_v49, %v13159_v59 }
 0x3d8   :  { %v4847_v38 = vpop.f32.mrf.mxu0  ;;  %v4378_v0 = vpop.f32.mrf.mxu1 }
 0x3d9   :  { %9903 = vmatmul.mubr.bf16.gmra.mxu0 %v16146_v52  ;;  %v13394_v52 = vadd.f32 %v4834_v24, %v4546_v43  ;;  %v13397_v27 = vadd.f32 %v9712_v54, %v4551_v8  ;;  %v10292_v24 = vld [vmem:[#allocation8 + $0x230] sm:$0xff]   ;;  %v16150_v54 = vld [vmem:[#allocation44_spill] sm:$0xff] }
 0x3da   :  { %10002 = vmatprep.mubr.bf16.mxu0 %v16059_v37  ;;  %v9713_v40 = vpop.f32.mrf.mxu0  ;;  %v4549_v37 = vadd.f32 %v4378_v0, %v13166_v4  ;;  %v9633_v18 = vpop.f32.mrf.mxu1  ;;  %v10293_v0 = vld [vmem:[#allocation8 + $0x228] sm:$0xff]  }
 0x3db   :  { %9823 = vmatmul.mubr.bf16.gmra.mxu1 %v16147_v5  ;;  %v4552_v30 = vadd.f32 %v9633_v18, %v13171_v47  ;;  %v16151_v47 = vld [vmem:[#allocation49_spill] sm:$0xff] }
 0x3dc   :  { %9922 = vmatprep.mubr.bf16.mxu1 %v16148_v53  ;;  %v4850_v7 = vpop.f32.mrf.mxu0  ;;  %v13401_v57 = vadd.f32 %v4847_v38, %v4549_v37  ;;  %v4381_v49 = vpop.f32.mrf.mxu1  ;;  %v16153_v37 = vld [vmem:[#allocation95_spill] sm:$0xff] }
 0x3dd   :  { %v4550_v1 = vadd.f32 %v4381_v49, %v13174_v44  ;;  %v13405_v43 = vadd.f32 %v9713_v40, %v4552_v30  ;;  %v16155_v49 = vld [vmem:[#allocation42_spill] sm:$0xff] }
 0x3de   :  { %v9636_v4 = vpop.f32.mrf.mxu1 }
 0x3df   :  { %16149 = vst [vmem:[#allocation151_spill] sm:$0xff] %v13405_v43  ;;  %v4555_v53 = vadd.f32 %v9636_v4, %v13177_v17 }
 0x3e0   :  { %v9716_v48 = vpop.f32.mrf.mxu0 }
 0x3e1   :  { %10003 = vmatmul.mubr.bf16.vlgmr.msra.gmra.mxu0 %v16061_v51  ;;  %v13411_v51 = vadd.f32 %v4850_v7, %v4550_v1  ;;  %v13414_v40 = vadd.f32 %v9716_v48, %v4555_v53  ;;  %v16160_v53 = vld [vmem:[#allocation48_spill] sm:$0xff] }
 0x3e2   :  { %10006 = vmatprep.mubr.bf16.mxu0 %v16064_v26  ;;  %v4863_v59 = vpop.f32.mrf.mxu0  ;;  %v4394_v26 = vpop.f32.mrf.mxu1 }
 0x3e3   :  { %9923 = vmatmul.mubr.bf16.vlgmr.msra.gmra.mxu1 %v16150_v54  ;;  %16152 = vst [vmem:[#allocation140_spill] sm:$0xff] %v13411_v51  ;;  %v4553_v44 = vadd.f32 %v4394_v26, %v16153_v37  ;;  %16154 = vst [vmem:[#allocation152_spill] sm:$0xff] %v13414_v40  ;;  %v16156_v54 = vld [vmem:[#allocation90_spill] sm:$0xff]  ;;  %v16159_v51 = vld [vmem:[#allocation88_spill] sm:$0xff] }
 0x3e4   :  { %v9717_v8 = vpop.f32.mrf.mxu0  ;;  %10067 = vmatpush3.bf16.msra.mxu1 %v13230_v55  ;;  %9926 = vmatprep.mubr.bf16.mxu1 %v16151_v47  ;;  %v9637_v18 = vpop.f32.mrf.mxu1  ;;  %v16158_v55 = vld [vmem:[#allocation47_spill] sm:$0xff]  ;;  %v10294_v47 = vld [vmem:[#allocation8 + $0x220] sm:$0xff]  }
 0x3e5   :  { %10068 = vmatprep.subr.bf16.mxu1 %v10292_v24  ;;  %v4556_v17 = vadd.f32 %v9637_v18, %v16156_v54  ;;  %v13418_v4 = vadd.f32 %v4863_v59, %v4553_v44  ;;  %v16162_v18 = vld [vmem:[#allocation52_spill] sm:$0xff] }
 0x3e6   :  { %v4866_v38 = vpop.f32.mrf.mxu0  ;;  %v4397_v7 = vpop.f32.mrf.mxu1  ;;  %v10296_v54 = vld [vmem:[#allocation8 + $0x218] sm:$0xff]  }
 0x3e7   :  { %16157 = vst [vmem:[#allocation37_spill] sm:$0xff] %v13418_v4  ;;  %v4554_v43 = vadd.f32 %v4397_v7, %v16159_v51  ;;  %v13422_v26 = vadd.f32 %v9717_v8, %v4556_v17  ;;  %v16165_v7 = vld [vmem:[#allocation92_spill] sm:$0xff] }
 0x3e8   :  { %v9720_v30 = vpop.f32.mrf.mxu0  ;;  %10069 = vmatpush3.bf16.msra.mxu1 %v10292_v24  ;;  %v9640_v48 = vpop.f32.mrf.mxu1 }
 0x3e9   :  { %10007 = vmatmul.mubr.bf16.gmra.mxu0 %v16155_v49  ;;  %10070 = vmatprep.subr.bf16.mxu1 %v10293_v0  ;;  %v16161_v49 = vld [vmem:[#allocation99_spill] sm:$0xff]  ;;  %v13427_v59 = vadd.f32 %v4866_v38, %v4554_v43 }
 0x3ea   :  { %10010 = vmatprep.mubr.bf16.mxu0 %v16158_v55  ;;  %v4879_v1 = vpop.f32.mrf.mxu0  ;;  %v4559_v40 = vadd.f32 %v9640_v48, %v16161_v49  ;;  %v4410_v24 = vpop.f32.mrf.mxu1  ;;  %v16163_v55 = vld [vmem:[#allocation101_spill] sm:$0xff] }
 0x3eb   :  { %9927 = vmatmul.mubr.bf16.gmra.mxu1 %v16160_v53  ;;  %v4557_v4 = vadd.f32 %v4410_v24, %v16163_v55  ;;  %v16167_v49 = vld [vmem:[#allocation97_spill] sm:$0xff] }
 0x3ec   :  { %v9721_v37 = vpop.f32.mrf.mxu0  ;;  %9930 = vmatprep.mubr.bf16.mxu1 %v16162_v18  ;;  %10071 = vmatpush3.bf16.msra.mxu1 %v10293_v0  ;;  %v13430_v51 = vadd.f32 %v9720_v30, %v4559_v40  ;;  %v9641_v8 = vpop.f32.mrf.mxu1  ;;  %v10297_v0 = vld [vmem:[#allocation8 + $0x210] sm:$0xff]   ;;  %v16168_v30 = vld [vmem:[#allocation17_spill] sm:$0xff] }
 0x3ed   :  { %10072 = vmatprep.subr.bf16.mxu1 %v10294_v47  ;;  %v4560_v53 = vadd.f32 %v9641_v8, %v16165_v7  ;;  %v13434_v48 = vadd.f32 %v4879_v1, %v4557_v4  ;;  %v16170_v8 = vld [vmem:[#allocation33_spill] sm:$0xff]  ;;  %v16172_v7 = vld [vmem:[#allocation107_spill] sm:$0xff] }
 0x3ee   :  { %v4882_v44 = vpop.f32.mrf.mxu0  ;;  %16164 = vst [vmem:[#allocation38_spill] sm:$0xff] %v13430_v51  ;;  %v4413_v43 = vpop.f32.mrf.mxu1 }
 0x3ef   :  { %16166 = vst [vmem:[#allocation40_spill] sm:$0xff] %v13434_v48  ;;  %v4558_v18 = vadd.f32 %v4413_v43, %v16167_v49  ;;  %v13438_v24 = vadd.f32 %v9721_v37, %v4560_v53  ;;  %v16174_v49 = vld [vmem:[#allocation102_spill] sm:$0xff] }
 0x3f0   :  { %10073 = vmatpush3.bf16.msra.mxu1 %v10294_v47  ;;  %v9644_v40 = vpop.f32.mrf.mxu1  ;;  %v10298_v47 = vld [vmem:[#allocation8 + $0x208] sm:$0xff]  }
 0x3f1   :  { %v9724_v17 = vpop.f32.mrf.mxu0  ;;  %10011 = vmatmul.mubr.bf16.gmra.mxu0 %v16073_v29  ;;  %10074 = vmatprep.subr.bf16.mxu1 %v10296_v54  ;;  %v16169_v29 = vld [vmem:[#allocation106_spill] sm:$0xff]  ;;  %v13443_v4 = vadd.f32 %v4882_v44, %v4558_v18  ;;  %v10299_v18 = vld [vmem:[#allocation8 + $0x200] sm:$0xff]  }
 0x3f2   :  { %10014 = vmatprep.mubr.bf16.mxu0 %v16080_v15  ;;  %v4563_v51 = vadd.f32 %v9644_v40, %v16169_v29  ;;  %v4426_v15 = vpop.f32.mrf.mxu1  ;;  %v16176_v29 = vld [vmem:[#allocation16_spill] sm:$0xff] }
 0x3f3   :  { %v4895_v38 = vpop.f32.mrf.mxu0  ;;  %9931 = vmatmul.mubr.bf16.gmra.mxu1 %v16168_v30  ;;  %16171 = vst [vmem:[#allocation43_spill] sm:$0xff] %v13443_v4  ;;  %v4561_v48 = vadd.f32 %v4426_v15, %v16172_v7 }
 0x3f4   :  { %9934 = vmatprep.mubr.bf16.mxu1 %v16170_v8  ;;  %10075 = vmatpush3.bf16.msra.mxu1 %v10296_v54  ;;  %v13446_v43 = vadd.f32 %v9724_v17, %v4563_v51  ;;  %v9645_v37 = vpop.f32.mrf.mxu1  ;;  %v16177_v8 = vld [vmem:[#allocation98_spill] sm:$0xff] }
 0x3f5   :  { %v9725_v55 = vpop.f32.mrf.mxu0  ;;  %10076 = vmatprep.subr.bf16.mxu1 %v10297_v0  ;;  %v4564_v30 = vadd.f32 %v9645_v37, %v16174_v49  ;;  %v13450_v40 = vadd.f32 %v4895_v38, %v4561_v48  ;;  %v16179_v17 = vld [vmem:[#allocation26_spill] sm:$0xff] }
 0x3f6   :  { %16173 = vst [vmem:[#allocation46_spill] sm:$0xff] %v13446_v43  ;;  %v4429_v44 = vpop.f32.mrf.mxu1  ;;  %v16181_v37 = vld [vmem:[#allocation34_spill] sm:$0xff] }
 0x3f7   :  { %v4898_v1 = vpop.f32.mrf.mxu0  ;;  %16175 = vst [vmem:[#allocation51_spill] sm:$0xff] %v13450_v40  ;;  %v4562_v4 = vadd.f32 %v4429_v44, %v16177_v8  ;;  %v13454_v15 = vadd.f32 %v9725_v55, %v4564_v30  ;;  %v16183_v49 = vld [vmem:[#allocation114_spill] sm:$0xff]  ;;  %v16185_v44 = vld [vmem:[#allocation20_spill] sm:$0xff] }
 0x3f8   :  { %10077 = vmatpush3.bf16.msra.mxu1 %v10297_v0  ;;  %v9648_v51 = vpop.f32.mrf.mxu1  ;;  %v16186_v8 = vld [vmem:[#allocation104_spill] sm:$0xff] }
 0x3f9   :  { %v9728_v53 = vpop.f32.mrf.mxu0  ;;  %10015 = vmatmul.mubr.bf16.gmra.mxu0 %v16081_v10  ;;  %10078 = vmatprep.subr.bf16.mxu1 %v10298_v47  ;;  %16178 = vst [vmem:[#allocation13_spill] sm:$0xff] %v13454_v15  ;;  %v16180_v10 = vld [vmem:[#allocation112_spill] sm:$0xff]  ;;  %v13459_v48 = vadd.f32 %v4898_v1, %v4562_v4 }
 0x3fa   :  { %10018 = vmatprep.mubr.bf16.mxu0 %v16176_v29  ;;  %v4567_v43 = vadd.f32 %v9648_v51, %v16180_v10  ;;  %v4442_v38 = vpop.f32.mrf.mxu1 }
 0x3fb   :  { %v4911_v54 = vpop.f32.mrf.mxu0  ;;  %9935 = vmatmul.mubr.bf16.gmra.mxu1 %v16179_v17  ;;  %16182 = vst [vmem:[#allocation29_spill] sm:$0xff] %v13459_v48  ;;  %v4565_v29 = vadd.f32 %v4442_v38, %v16183_v49  ;;  %v16191_v38 = vld [vmem:[#allocation115_spill] sm:$0xff] }
 0x3fc   :  { %9938 = vmatprep.mubr.bf16.mxu1 %v16181_v37  ;;  %10079 = vmatpush3.bf16.msra.mxu1 %v10298_v47  ;;  %v13462_v40 = vadd.f32 %v9728_v53, %v4567_v43  ;;  %v9649_v55 = vpop.f32.mrf.mxu1  ;;  %v16188_v47 = vld [vmem:[#allocation109_spill] sm:$0xff]  ;;  %v16190_v43 = vld [vmem:[#allocation36_spill] sm:$0xff] }
 0x3fd   :  { %v9729_v7 = vpop.f32.mrf.mxu0  ;;  %10080 = vmatprep.subr.bf16.mxu1 %v10299_v18  ;;  %v4568_v17 = vadd.f32 %v9649_v55, %v16186_v8  ;;  %v13466_v15 = vadd.f32 %v4911_v54, %v4565_v29  ;;  %v13477_v54 = vld [vmem:[#allocation2 + $0x15c] sm:$0xf]  ;;  %v13479_v29 = vld [vmem:[#allocation2 + $0x160] sm:$0xf] }
 0x3fe   :  { %16184 = vst [vmem:[#allocation62_spill] sm:$0xff] %v13462_v40  ;;  %v4445_v4 = vpop.f32.mrf.mxu1  ;;  %v16194_v8 = vld [vmem:[#allocation118_spill] sm:$0xff] }
 0x3ff   :  { %v4914_v0 = vpop.f32.mrf.mxu0  ;;  %16187 = vst [vmem:[#allocation72_spill] sm:$0xff] %v13466_v15  ;;  %v4566_v51 = vadd.f32 %v4445_v4, %v16188_v47  ;;  %v13470_v10 = vadd.f32 %v9729_v7, %v4568_v17 }
 0x400   :  { %10081 = vmatpush3.bf16.msra.mxu1 %v10299_v18  ;;  %v9652_v37 = vpop.f32.mrf.mxu1 }
 0x401   :  { %v9732_v30 = vpop.f32.mrf.mxu0  ;;  %10019 = vmatmul.mubr.bf16.gmra.mxu0 %v16185_v44  ;;  %16189 = vst [vmem:[#allocation83_spill] sm:$0xff] %v13470_v10  ;;  %v4571_v49 = vadd.f32 %v9652_v37, %v16191_v38  ;;  %v16192_v44 = vld [vmem:[#allocation66_spill] sm:$0xff]  ;;  %v13475_v55 = vadd.f32 %v4914_v0, %v4566_v51  ;;  %v16197_v38 = vld [vmem:[#allocation119_spill] sm:$0xff] }
 0x402   :  { %10022 = vmatprep.mubr.bf16.mxu0 %v16095_v50  ;;  %v4458_v50 = vpop.f32.mrf.mxu1  ;;  %v1781_v51 = vld [vmem:[#allocation2 + $0x158] sm:$0xf] }
 0x403   :  { %v4927_v1 = vpop.f32.mrf.mxu0  ;;  %9939 = vmatmul.mubr.bf16.gmra.mxu1 %v16190_v43  ;;  %16193 = vst [vmem:[#allocation53_spill] sm:$0xff] %v13475_v55  ;;  %v4569_v4 = vadd.f32 %v4458_v50, %v16194_v8  ;;  %v13482_v7 = vadd.f32 %v9732_v30, %v4571_v49  ;;  %v16196_v43 = vld [vmem:[#allocation59_spill] sm:$0xff]  ;;  %v16199_v50 = vld [vmem:[#allocation110_spill] sm:$0xff]  ;;  %v5937_v37 = vshrl.u32 %v1781_v51, 16 }
 0x404   :  { %9942 = vmatprep.mubr.bf16.mxu1 %v16192_v44  ;;  %v9653_v17 = vpop.f32.mrf.mxu1 }
 0x405   :  { %v9733_v53 = vpop.f32.mrf.mxu0  ;;  %16195 = vst [vmem:[#allocation61_spill] sm:$0xff] %v13482_v7  ;;  %v4572_v44 = vadd.f32 %v9653_v17, %v16197_v38  ;;  %v13487_v0 = vadd.f32 %v4927_v1, %v4569_v4  ;;  %v16201_v7 = vld [vmem:[#allocation73_spill] sm:$0xff]  ;;  %v16202_v17 = vshrl.u32 %v13477_v54, 16  ;;  %v15368_v4 = vshll.u32 %v13477_v54, 16 }
 0x406   :  { %v4461_v10 = vpop.f32.mrf.mxu1 }
 0x407   :  { %v4930_v18 = vpop.f32.mrf.mxu0  ;;  %16198 = vst [vmem:[#allocation32_spill] sm:$0xff] %v13487_v0  ;;  %v4570_v30 = vadd.f32 %v4461_v10, %v16199_v50  ;;  %v13492_v49 = vadd.f32 %v9733_v53, %v4572_v44  ;;  %v5944_v1 = vrot.slane %v16202_v17, 7  ;;  %v16204_v0 = vld [vmem:[#allocation79_spill] sm:$0xff]  ;;  %v16206_v10 = vshrl.u32 %v13479_v29, 16 }
 0x408   :  { %v9656_v8 = vpop.f32.mrf.mxu1  ;;  %v15369_v44 = vshll.u32 %v13479_v29, 16 }
 0x409   :  { %v9736_v47 = vpop.f32.mrf.mxu0  ;;  %10023 = vmatmul.mubr.bf16.gmra.mxu0 %v16196_v43  ;;  %16200 = vst [vmem:[#allocation96_spill] sm:$0xff] %v13492_v49  ;;  %v13500_v55 = vadd.f32 %v4930_v18, %v4570_v30  ;;  %v5953_v53 = vrot.slane %v16206_v10, 7  ;;  %v16207_v49 = vld [vmem:[#allocation130_spill] sm:$0xff]  ;;  %v5947_v18 = vor.u32 %v15368_v4, %v5944_v1  ;;  %v5949_v10 = vrot.slane %v5944_v1, 4 }
 0x40a   :  { %10026 = vmatprep.mubr.bf16.mxu0 %v16101_v28  ;;  %v16203_v28 = vld [vmem:[#allocation129_spill] sm:$0xff]  ;;  %v4474_v50 = vpop.f32.mrf.mxu1 }
 0x40b   :  { %v4943_v15 = vpop.f32.mrf.mxu0  ;;  %9943 = vmatmul.mubr.bf16.gmra.mxu1 %v16201_v7  ;;  %v4575_v38 = vadd.f32 %v9656_v8, %v16203_v28  ;;  %16205 = vst [vmem:[#allocation103_spill] sm:$0xff] %v13500_v55  ;;  %v4573_v51 = vadd.f32 %v4474_v50, %v16207_v49  ;;  %v8435_v8 = vrot.slane %v5937_v37, 11  ;;  %v5956_v55 = vor.u32 %v15369_v44, %v5953_v53  ;;  %v16213_v37 = vld [vmem:[#allocation81_spill] sm:$0xff] }
 0x40c   :  { %9946 = vmatprep.mubr.bf16.mxu1 %v16204_v0  ;;  %v9657_v17 = vpop.f32.mrf.mxu1  ;;  %v16209_v0 = vld [vmem:[#allocation120_spill] sm:$0xff] }
 0x40d   :  { %v9737_v43 = vpop.f32.mrf.mxu0  ;;  %v13506_v40 = vadd.f32 %v9736_v47, %v4575_v38  ;;  %v4576_v30 = vadd.f32 %v9657_v17, %v16209_v0  ;;  %v13512_v28 = vadd.f32 %v4943_v15, %v4573_v51  ;;  %v16211_v38 = vld [vmem:[#allocation116_spill] sm:$0xff]  ;;  %v8447_v15 = vcombine.low %v13477_v54, %v13479_v29  ;;  %v16214_v51 = vld [vmem:[#allocation30_spill] sm:$0xff] }
 0x40e   :  { %v4477_v47 = vpop.f32.mrf.mxu1  ;;  %v5948_v17 = vsel %vm10792_vm2, %v8435_v8, %v5947_v18 }
 0x40f   :  { %v4946_v7 = vpop.f32.mrf.mxu0  ;;  %16208 = vst [vmem:[#allocation108_spill] sm:$0xff] %v13506_v40  ;;  %16210 = vst [vmem:[#allocation113_spill] sm:$0xff] %v13512_v28  ;;  %v4574_v50 = vadd.f32 %v4477_v47, %v16211_v38  ;;  %v13518_v40 = vadd.f32 %v9737_v43, %v4576_v30  ;;  %v5957_v43 = vsel %vm10792_vm2, %v5949_v10, %v5956_v55  ;;  %v16217_v47 = vld [vmem:[#allocation125_spill] sm:$0xff] }
 0x411   :  { %v9740_v48 = vpop.f32.mrf.mxu0  ;;  %10027 = vmatmul.mubr.bf16.gmra.mxu0 %v16102_v19  ;;  %16212 = vst [vmem:[#allocation69_spill] sm:$0xff] %v13518_v40  ;;  %v9660_v19 = vpop.f32.mrf.mxu1  ;;  %v13525_v53 = vadd.f32 %v4946_v7, %v4574_v50  ;;  %v8437_v40 = vcombine.low %v5948_v17, %v5957_v43  ;;  %v16219_v50 = vld [vmem:[#allocation87_spill] sm:$0xff]  ;;  %v16222_v17 = vld [vmem:[#allocation100_spill] sm:$0xff] }
 0x412   :  { %10030 = vmatprep.mubr.bf16.mxu0 %v13036_v60  ;;  %v4579_v1 = vadd.f32 %v9660_v19, %v13256_v45  ;;  %v16218_v45 = vld [vmem:[#allocation124_spill] sm:$0xff] }
 0x413   :  { %v4959_v49 = vpop.f32.mrf.mxu0  ;;  %9947 = vmatmul.mubr.bf16.gmra.mxu1 %v16213_v37  ;;  %16215 = vst [vmem:[#allocation121_spill] sm:$0xff] %v13525_v53  ;;  %v4490_v0 = vpop.f32.mrf.mxu1 }
 0x414   :  { %9950 = vmatprep.mubr.bf16.mxu1 %v16214_v51  ;;  %v4577_v38 = vadd.f32 %v4490_v0, %v16217_v47  ;;  %v13532_v37 = vadd.f32 %v9740_v48, %v4579_v1  ;;  %v16220_v51 = vld [vmem:[#allocation133_spill] sm:$0xff]  ;;  %v16221_v1 = vld [vmem:[#allocation94_spill] sm:$0xff] }
 0x415   :  { %v9741_v4 = vpop.f32.mrf.mxu0  ;;  %v9661_v44 = vpop.f32.mrf.mxu1  ;;  %v16261_v47 = vld [vmem:[#allocation58_spill] sm:$0xff] }
 0x416   :  { %v4580_v19 = vadd.f32 %v9661_v44, %v16218_v45  ;;  %v13535_v7 = vadd.f32 %v4959_v49, %v4577_v38  ;;  %v1254_v44 = vld [vmem:[#allocation2 + $0x164] sm:$0x1]  ;;  %v16225_v45 = vld [vmem:[#allocation126_spill] sm:$0xff] }
 0x417   :  { %v4962_v30 = vpop.f32.mrf.mxu0  ;;  %v4493_v8 = vpop.f32.mrf.mxu1  ;;  %v1255_v38 = vsel %vm12292_vm4, 0, %v1254_v44 }
 0x418   :  { %v4578_v55 = vadd.f32 %v4493_v8, %v16220_v51  ;;  %v13539_v10 = vadd.f32 %v9741_v4, %v4580_v19  ;;  %1256 = vst [vmem:[#allocation2 + $0x164] sm:$0x1] %v1255_v38  ;;  %v16226_v19 = vld [vmem:[#allocation91_spill] sm:$0xff] }
 0x419   :  { %v9744_v28 = vpop.f32.mrf.mxu0  ;;  %10031 = vmatmul.mubr.bf16.gmra.mxu0 %v8447_v15  ;;  %v9664_v53 = vpop.f32.mrf.mxu1 }
 0x41a   :  { %10034 = vmatprep.mubr.bf16.mxu0 %v16219_v50  ;;  %v4583_v0 = vadd.f32 %v9664_v53, %v16221_v1  ;;  %v13543_v15 = vadd.f32 %v4962_v30, %v4578_v55  ;;  %v16227_v53 = vld [vmem:[#allocation142_spill] sm:$0xff] }
 0x41b   :  { %v4975_v18 = vpop.f32.mrf.mxu0  ;;  %9951 = vmatmul.mubr.bf16.gmra.mxu1 %v8437_v40  ;;  %v4506_v49 = vpop.f32.mrf.mxu1 }
 0x41c   :  { %9954 = vmatprep.mubr.bf16.mxu1 %v16222_v17  ;;  %16223 = vst [vmem:[#allocation39_spill] sm:$0xff] %v13543_v15  ;;  %v4581_v50 = vadd.f32 %v4506_v49, %v16225_v45  ;;  %v13548_v8 = vadd.f32 %v9744_v28, %v4583_v0  ;;  %v16228_v17 = vld [vmem:[#allocation143_spill] sm:$0xff]  ;;  %v16229_v28 = vld [vmem:[#allocation105_spill] sm:$0xff] }
 0x41d   :  { %v9745_v48 = vpop.f32.mrf.mxu0  ;;  %v9665_v4 = vpop.f32.mrf.mxu1  ;;  %v16230_v45 = vld [vmem:[#allocation111_spill] sm:$0xff] }
 0x41e   :  { %v4584_v51 = vadd.f32 %v9665_v4, %v16227_v53  ;;  %v13552_v1 = vadd.f32 %v4975_v18, %v4581_v50 }
 0x41f   :  { %v4978_v43 = vpop.f32.mrf.mxu0  ;;  %v4509_v30 = vpop.f32.mrf.mxu1 }
 0x420   :  { %v4582_v15 = vadd.f32 %v4509_v30, %v16228_v17  ;;  %v13556_v44 = vadd.f32 %v9745_v48, %v4584_v51 }
 0x421   :  { %v9844_v40 = vpop.f32.mrf.mxu0  ;;  %10035 = vmatmul.mubr.bf16.gmra.mxu0 %v16226_v19  ;;  %v9764_v49 = vpop.f32.mrf.mxu1 }
 0x422   :  { %10038 = vmatprep.mubr.bf16.mxu0 %v16115_v22  ;;  %v5421_v38 = vadd.f32 %v9764_v49, %v13285_v39  ;;  %v13561_v19 = vadd.f32 %v4978_v43, %v4582_v15 }
 0x423   :  { %v5617_v55 = vpop.f32.mrf.mxu0  ;;  %9955 = vmatmul.mubr.bf16.gmra.mxu1 %v16229_v28  ;;  %v5164_v18 = vpop.f32.mrf.mxu1 }
 0x424   :  { %9958 = vmatprep.mubr.bf16.mxu1 %v16230_v45  ;;  %v5419_v22 = vadd.f32 %v5164_v18, %v13289_v6  ;;  %v13564_v4 = vadd.f32 %v9844_v40, %v5421_v38  ;;  %v16231_v6 = vld [vmem:[#allocation117_spill] sm:$0xff]  ;;  %v16232_v38 = vld [vmem:[#allocation122_spill] sm:$0xff] }
 0x425   :  { %v9845_v0 = vpop.f32.mrf.mxu0  ;;  %v9765_v53 = vpop.f32.mrf.mxu1 }
 0x426   :  { %v5422_v48 = vadd.f32 %v9765_v53, %v13293_v41  ;;  %v13568_v51 = vadd.f32 %v5617_v55, %v5419_v22 }
 0x427   :  { %v5620_v50 = vpop.f32.mrf.mxu0  ;;  %v5167_v39 = vpop.f32.mrf.mxu1 }
 0x428   :  { %v5420_v15 = vadd.f32 %v5167_v39, %v13298_v13  ;;  %v13572_v43 = vadd.f32 %v9845_v0, %v5422_v48 }
 0x429   :  { %v9848_v30 = vpop.f32.mrf.mxu0  ;;  %10039 = vmatmul.mubr.bf16.gmra.mxu0 %v16116_v20 }
 0x42a   :  { %10042 = vmatprep.mubr.bf16.mxu0 %v16117_v2  ;;  %v13577_v20 = vadd.f32 %v5620_v50, %v5420_v15  ;;  %v16233_v50 = vld [vmem:[#allocation128_spill] sm:$0xff] }
 0x42b   :  { %v5633_v17 = vpop.f32.mrf.mxu0  ;;  %v9768_v49 = vpop.f32.mrf.mxu1  ;;  %9959 = vmatmul.mubr.bf16.gmra.mxu1 %v16231_v6 }
 0x42c   :  { %v5425_v28 = vadd.f32 %v9768_v49, %v13301_v34  ;;  %9962 = vmatprep.mubr.bf16.mxu1 %v16232_v38  ;;  %v16235_v49 = vld [vmem:[#allocation138_spill] sm:$0xff]  ;;  %v16237_v38 = vld [vmem:[#allocation137_spill] sm:$0xff] }
 0x42d   :  { %v9849_v40 = vpop.f32.mrf.mxu0  ;;  %v5180_v41 = vpop.f32.mrf.mxu1 }
 0x42e   :  { %v5423_v2 = vadd.f32 %v5180_v41, %v13305_v56  ;;  %v13580_v45 = vadd.f32 %v9848_v30, %v5425_v28  ;;  %v16234_v56 = vld [vmem:[#allocation131_spill] sm:$0xff]  ;;  %v16236_v28 = vld [vmem:[#allocation134_spill] sm:$0xff] }
 0x42f   :  { %v5636_v55 = vpop.f32.mrf.mxu0  ;;  %v9769_v18 = vpop.f32.mrf.mxu1 }
 0x430   :  { %v5426_v0 = vadd.f32 %v9769_v18, %v13309_v36  ;;  %v13584_v22 = vadd.f32 %v5633_v17, %v5423_v2 }
 0x431   :  { %v9852_v13 = vpop.f32.mrf.mxu0  ;;  %10043 = vmatmul.mubr.bf16.gmra.mxu0 %v16118_v11  ;;  %v5183_v34 = vpop.f32.mrf.mxu1 }
 0x432   :  { %10046 = vmatprep.mubr.bf16.mxu0 %v16123_v63  ;;  %v5424_v48 = vadd.f32 %v5183_v34, %v16233_v50  ;;  %v13588_v39 = vadd.f32 %v9849_v40, %v5426_v0 }
 0x433   :  { %v5649_v53 = vpop.f32.mrf.mxu0  ;;  %v9772_v15 = vpop.f32.mrf.mxu1  ;;  %9963 = vmatmul.mubr.bf16.gmra.mxu1 %v16234_v56 }
 0x434   :  { %v5429_v6 = vadd.f32 %v9772_v15, %v16235_v49  ;;  %9966 = vmatprep.mubr.bf16.mxu1 %v16236_v28  ;;  %v13593_v11 = vadd.f32 %v5636_v55, %v5424_v48  ;;  %v16238_v55 = vld [vmem:[#allocation145_spill] sm:$0xff]  ;;  %v16239_v49 = vld [vmem:[#allocation136_spill] sm:$0xff]  ;;  %v16240_v28 = vld [vmem:[#allocation146_spill] sm:$0xff] }
 0x435   :  { %v9853_v30 = vpop.f32.mrf.mxu0  ;;  %v5196_v36 = vpop.f32.mrf.mxu1 }
 0x436   :  { %v5427_v63 = vadd.f32 %v5196_v36, %v16237_v38  ;;  %v13596_v41 = vadd.f32 %v9852_v13, %v5429_v6 }
 0x437   :  { %v5652_v17 = vpop.f32.mrf.mxu0  ;;  %v9773_v2 = vpop.f32.mrf.mxu1 }
 0x438   :  { %v5430_v40 = vadd.f32 %v9773_v2, %v13325_v21  ;;  %v13600_v0 = vadd.f32 %v5649_v53, %v5427_v63 }
 0x439   :  { %v9856_v18 = vpop.f32.mrf.mxu0  ;;  %10047 = vmatmul.mubr.bf16.gmra.mxu0 %v16125_v42  ;;  %v5199_v34 = vpop.f32.mrf.mxu1 }
 0x43a   :  { %10050 = vmatprep.mubr.bf16.mxu0 %v16129_v14  ;;  %v5428_v48 = vadd.f32 %v5199_v34, %v16238_v55  ;;  %v13604_v15 = vadd.f32 %v9853_v30, %v5430_v40 }
 0x43b   :  { %v5665_v50 = vpop.f32.mrf.mxu0  ;;  %v9776_v56 = vpop.f32.mrf.mxu1  ;;  %9967 = vmatmul.mubr.bf16.gmra.mxu1 %v16239_v49  ;;  %v13629_v49 = vld [vmem:[#allocation2 + $0x2c8] sm:$0xf] }
 0x43c   :  { %v5433_v6 = vadd.f32 %v9776_v56, %v13333_v23  ;;  %9970 = vmatprep.mubr.bf16.mxu1 %v16240_v28  ;;  %v13609_v42 = vadd.f32 %v5652_v17, %v5428_v48  ;;  %v16242_v56 = vld [vmem:[#allocation155_spill] sm:$0xff] }
 0x43d   :  { %v9857_v13 = vpop.f32.mrf.mxu0  ;;  %v5212_v21 = vpop.f32.mrf.mxu1 }
 0x43e   :  { %v5431_v14 = vadd.f32 %v5212_v21, %v13337_v25  ;;  %v13612_v36 = vadd.f32 %v9856_v18, %v5433_v6  ;;  %v16241_v25 = vld [vmem:[#allocation148_spill] sm:$0xff]  ;;  %v16243_v6 = vld [vmem:[#allocation139_spill] sm:$0xff] }
 0x43f   :  { %v5668_v53 = vpop.f32.mrf.mxu0  ;;  %v9777_v38 = vpop.f32.mrf.mxu1 }
 0x440   :  { %v5434_v30 = vadd.f32 %v9777_v38, %v13341_v9  ;;  %v13616_v2 = vadd.f32 %v5665_v50, %v5431_v14  ;;  %v13627_v9 = vld [vmem:[#allocation2 + $0x2c4] sm:$0xf] }
 0x441   :  { %v9860_v63 = vpop.f32.mrf.mxu0  ;;  %10051 = vmatmul.mubr.bf16.gmra.mxu0 %v16130_v61  ;;  %v5215_v23 = vpop.f32.mrf.mxu1  ;;  %v16245_v14 = vld [vmem:[#allocation127_spill] sm:$0xff] }
 0x442   :  { %10054 = vmatprep.mubr.bf16.mxu0 %v16133_v12  ;;  %v5432_v17 = vadd.f32 %v5215_v23, %v13346_v33  ;;  %v13620_v34 = vadd.f32 %v9857_v13, %v5434_v30  ;;  %v1853_v30 = vld [vmem:[#allocation2 + $0x2c0] sm:$0xf] }
 0x443   :  { %v5681_v40 = vpop.f32.mrf.mxu0  ;;  %v9780_v55 = vpop.f32.mrf.mxu1  ;;  %9971 = vmatmul.mubr.bf16.gmra.mxu1 %v16241_v25  ;;  %v16247_v25 = vld [vmem:[#allocation141_spill] sm:$0xff] }
 0x444   :  { %v5437_v48 = vadd.f32 %v9780_v55, %v13349_v32  ;;  %9974 = vmatprep.mubr.bf16.mxu1 %v16242_v56  ;;  %v13625_v61 = vadd.f32 %v5668_v53, %v5432_v17  ;;  %v15370_v32 = vshrl.u32 %v13627_v9, 16 }
 0x445   :  { %v9861_v18 = vpop.f32.mrf.mxu0  ;;  %v5228_v50 = vpop.f32.mrf.mxu1 }
 0x446   :  { %v5435_v33 = vadd.f32 %v5228_v50, %v16243_v6  ;;  %v13632_v13 = vadd.f32 %v9860_v63, %v5437_v48  ;;  %v16249_v50 = vld [vmem:[#allocation157_spill] sm:$0xff]  ;;  %v5959_v6 = vshrl.u32 %v1853_v30, 16 }
 0x447   :  { %v5684_v12 = vpop.f32.mrf.mxu0  ;;  %v9781_v28 = vpop.f32.mrf.mxu1 }
 0x448   :  { %16244 = vst [vmem:[#allocation123_spill] sm:$0xff] %v13632_v13  ;;  %v5438_v38 = vadd.f32 %v9781_v28, %v16245_v14  ;;  %v13637_v53 = vadd.f32 %v5681_v40, %v5435_v33  ;;  %v5966_v40 = vrot.slane %v15370_v32, 7  ;;  %v15371_v33 = vshll.u32 %v13627_v9, 16  ;;  %v16251_v14 = vld [vmem:[#allocation160_spill] sm:$0xff] }
 0x449   :  { %v9864_v21 = vpop.f32.mrf.mxu0  ;;  %10055 = vmatmul.mubr.bf16.gmra.mxu0 %v16134_v3  ;;  %v5231_v17 = vpop.f32.mrf.mxu1 }
 0x44a   :  { %16246 = vst [vmem:[#allocation71_spill] sm:$0xff] %v13637_v53  ;;  %10058 = vmatprep.mubr.bf16.mxu0 %v16141_v35  ;;  %v5436_v63 = vadd.f32 %v5231_v17, %v16247_v25  ;;  %v13642_v48 = vadd.f32 %v9861_v18, %v5438_v38  ;;  %v16250_v35 = vld [vmem:[#allocation150_spill] sm:$0xff]  ;;  %v16252_v17 = vshrl.u32 %v13629_v49, 16  ;;  %v15372_v38 = vshll.u32 %v13629_v49, 16 }
 0x44b   :  { %v5697_v55 = vpop.f32.mrf.mxu0  ;;  %v9784_v56 = vpop.f32.mrf.mxu1  ;;  %9975 = vmatmul.mubr.bf16.gmra.mxu1 %v16249_v50 }
 0x44c   :  { %16248 = vst [vmem:[#allocation80_spill] sm:$0xff] %v13642_v48  ;;  %v5441_v28 = vadd.f32 %v9784_v56, %v16250_v35  ;;  %9978 = vmatprep.mubr.bf16.mxu1 %v16251_v14  ;;  %v13650_v23 = vadd.f32 %v5684_v12, %v5436_v63  ;;  %v5975_v18 = vrot.slane %v16252_v17, 7  ;;  %v16253_v48 = vld [vmem:[#allocation149_spill] sm:$0xff]  ;;  %v8436_v56 = vrot.slane %v5959_v6, 11  ;;  %v16256_v6 = vld [vmem:[#allocation54_spill] sm:$0xff] }
 0x44d   :  { %v9865_v3 = vpop.f32.mrf.mxu0  ;;  %v5244_v25 = vpop.f32.mrf.mxu1  ;;  %v5969_v12 = vor.u32 %v15371_v33, %v5966_v40  ;;  %v5971_v14 = vrot.slane %v5966_v40, 4 }
 0x44e   :  { %v5439_v30 = vadd.f32 %v5244_v25, %v16253_v48  ;;  %v13656_v53 = vadd.f32 %v9864_v21, %v5441_v28  ;;  %v5978_v17 = vor.u32 %v15372_v38, %v5975_v18  ;;  %v16255_v28 = vld [vmem:[#allocation153_spill] sm:$0xff] }
 0x44f   :  { %v5700_v50 = vpop.f32.mrf.mxu0  ;;  %v9785_v32 = vpop.f32.mrf.mxu1 }
 0x450   :  { %16254 = vst [vmem:[#allocation132_spill] sm:$0xff] %v13656_v53  ;;  %v5442_v63 = vadd.f32 %v9785_v32, %v13373_v31  ;;  %v13662_v35 = vadd.f32 %v5697_v55, %v5439_v30  ;;  %v8448_v31 = vcombine.low %v13627_v9, %v13629_v49  ;;  %v16257_v55 = vld [vmem:[#allocation93_spill] sm:$0xff] }
 0x451   :  { %v9868_v13 = vpop.f32.mrf.mxu0  ;;  %10059 = vmatmul.mubr.bf16.gmra.mxu0 %v16143_v16  ;;  %v5247_v21 = vpop.f32.mrf.mxu1 }
 0x452   :  { %10062 = vmatprep.mubr.bf16.mxu0 %v16147_v5  ;;  %v5440_v25 = vadd.f32 %v5247_v21, %v16255_v28  ;;  %v13668_v53 = vadd.f32 %v9865_v3, %v5442_v63  ;;  %v5970_v5 = vsel %vm10792_vm2, %v8436_v56, %v5969_v12  ;;  %v5979_v3 = vsel %vm10792_vm2, %v5971_v14, %v5978_v17 }
 0x453   :  { %v5713_v48 = vpop.f32.mrf.mxu0  ;;  %v9788_v16 = vpop.f32.mrf.mxu1  ;;  %9979 = vmatmul.mubr.bf16.gmra.mxu1 %v16256_v6  ;;  %v8438_v6 = vcombine.low %v5970_v5, %v5979_v3  ;;  %v16259_v3 = vld [vmem:[#allocation151_spill] sm:$0xff] }
 0x454   :  { %v5445_v32 = vadd.f32 %v9788_v16, %v13381_v46  ;;  %9982 = vmatprep.mubr.bf16.mxu1 %v16257_v55  ;;  %v13675_v40 = vadd.f32 %v5700_v50, %v5440_v25 }
 0x455   :  { %v9869_v33 = vpop.f32.mrf.mxu0  ;;  %v5260_v18 = vpop.f32.mrf.mxu1 }
 0x456   :  { %v5443_v63 = vadd.f32 %v5260_v18, %v13385_v62  ;;  %v13682_v21 = vadd.f32 %v9868_v13, %v5445_v32  ;;  %v16258_v13 = vld [vmem:[#allocation57_spill] sm:$0xff] }
 0x457   :  { %v5716_v30 = vpop.f32.mrf.mxu0  ;;  %v9789_v28 = vpop.f32.mrf.mxu1 }
 0x458   :  { %v5446_v46 = vadd.f32 %v9789_v28, %v13389_v58  ;;  %v13685_v50 = vadd.f32 %v5713_v48, %v5443_v63  ;;  %v16260_v28 = vld [vmem:[#allocation140_spill] sm:$0xff] }
 0x459   :  { %v9872_v38 = vpop.f32.mrf.mxu0  ;;  %10063 = vmatmul.mubr.bf16.gmra.mxu0 %v8448_v31  ;;  %v5263_v25 = vpop.f32.mrf.mxu1  ;;  %v1261_v31 = vld [vmem:[#allocation2 + $0x2cc] sm:$0x1] }
 0x45a   :  { %v5444_v56 = vadd.f32 %v5263_v25, %v13394_v52  ;;  %v13688_v60 = vadd.f32 %v9869_v33, %v5446_v46  ;;  %v1262_v48 = vsel %vm12292_vm4, 0, %v1261_v31 }
 0x45b   :  { %v5729_v16 = vpop.f32.mrf.mxu0  ;;  %v9792_v12 = vpop.f32.mrf.mxu1  ;;  %9983 = vmatmul.mubr.bf16.gmra.mxu1 %v8438_v6  ;;  %1263 = vst [vmem:[#allocation2 + $0x2cc] sm:$0x1] %v1262_v48 }
 0x45c   :  { %v5449_v62 = vadd.f32 %v9792_v12, %v13397_v27  ;;  %10082 = vmatprep.mubr.bf16.mxu1 %v16258_v13  ;;  %v13692_v17 = vadd.f32 %v5716_v30, %v5444_v56  ;;  %v16263_v12 = vld [vmem:[#allocation161_spill] sm:$0xff] }
 0x45d   :  { %v9873_v14 = vpop.f32.mrf.mxu0  ;;  %v5276_v32 = vpop.f32.mrf.mxu1 }
 0x45e   :  { %v5447_v55 = vadd.f32 %v5276_v32, %v13401_v57  ;;  %v13697_v52 = vadd.f32 %v9872_v38, %v5449_v62  ;;  %v16262_v57 = vld [vmem:[#allocation152_spill] sm:$0xff] }
 0x45f   :  { %v5732_v58 = vpop.f32.mrf.mxu0  ;;  %v9793_v33 = vpop.f32.mrf.mxu1 }
 0x460   :  { %v5450_v18 = vadd.f32 %v9793_v33, %v16259_v3  ;;  %v13700_v27 = vadd.f32 %v5729_v16, %v5447_v55  ;;  %v16265_v16 = vld [vmem:[#allocation37_spill] sm:$0xff] }
 0x461   :  { %v9876_v5 = vpop.f32.mrf.mxu0  ;;  %v5279_v63 = vpop.f32.mrf.mxu1 }
 0x462   :  { %v5448_v6 = vadd.f32 %v5279_v63, %v16260_v28  ;;  %v13703_v46 = vadd.f32 %v9873_v14, %v5450_v18 }
 0x463   :  { %v5745_v30 = vpop.f32.mrf.mxu0  ;;  %v9796_v25 = vpop.f32.mrf.mxu1  ;;  %10083 = vmatmul.mubr.bf16.vlgmr.msra.gmra.mxu1 %v16261_v47 }
 0x464   :  { %v5453_v38 = vadd.f32 %v9796_v25, %v16262_v57  ;;  %10086 = vmatprep.mubr.bf16.mxu1 %v16263_v12  ;;  %v13708_v62 = vadd.f32 %v5732_v58, %v5448_v6  ;;  %v16269_v6 = vld [vmem:[#allocation162_spill] sm:$0xff] }
 0x465   :  { %v9877_v56 = vpop.f32.mrf.mxu0  ;;  %v5292_v13 = vpop.f32.mrf.mxu1  ;;  %v16270_v57 = vld [vmem:[#allocation38_spill] sm:$0xff] }
 0x466   :  { %16264 = vst [vmem:[#allocation135_spill] sm:$0xff] %v13708_v62  ;;  %v5451_v32 = vadd.f32 %v5292_v13, %v16265_v16  ;;  %v13711_v48 = vadd.f32 %v9876_v5, %v5453_v38  ;;  %v16271_v5 = vld [vmem:[#allocation15_spill] sm:$0xff] }
 0x467   :  { %v5748_v31 = vpop.f32.mrf.mxu0  ;;  %v9797_v55 = vpop.f32.mrf.mxu1 }
 0x468   :  { %16266 = vst [vmem:[#allocation144_spill] sm:$0xff] %v13711_v48  ;;  %v5454_v14 = vadd.f32 %v9797_v55, %v13422_v26  ;;  %v13714_v3 = vadd.f32 %v5745_v30, %v5451_v32  ;;  %v16273_v30 = vld [vmem:[#allocation40_spill] sm:$0xff]  ;;  %v16316_v48 = vld [vmem:[#allocation113_spill] sm:$0xff] }
 0x469   :  { %v9880_v33 = vpop.f32.mrf.mxu0  ;;  %v5295_v18 = vpop.f32.mrf.mxu1 }
 0x46a   :  { %16267 = vst [vmem:[#allocation147_spill] sm:$0xff] %v13714_v3  ;;  %v5452_v28 = vadd.f32 %v5295_v18, %v13427_v59  ;;  %v13717_v25 = vadd.f32 %v9877_v56, %v5454_v14 }
 0x46b   :  { %v5761_v63 = vpop.f32.mrf.mxu0  ;;  %v9800_v58 = vpop.f32.mrf.mxu1  ;;  %10087 = vmatmul.mubr.bf16.gmra.mxu1 %v16269_v6 }
 0x46c   :  { %16268 = vst [vmem:[#allocation77_spill] sm:$0xff] %v13717_v25  ;;  %v5457_v12 = vadd.f32 %v9800_v58, %v16270_v57  ;;  %10090 = vmatprep.mubr.bf16.mxu1 %v16271_v5  ;;  %v13722_v38 = vadd.f32 %v5748_v31, %v5452_v28  ;;  %v16276_v25 = vld [vmem:[#allocation43_spill] sm:$0xff] }
 0x46d   :  { %v9881_v47 = vpop.f32.mrf.mxu0  ;;  %v5308_v13 = vpop.f32.mrf.mxu1  ;;  %v16278_v28 = vld [vmem:[#allocation19_spill] sm:$0xff] }
 0x46e   :  { %16272 = vst [vmem:[#allocation86_spill] sm:$0xff] %v13722_v38  ;;  %v5455_v16 = vadd.f32 %v5308_v13, %v16273_v30  ;;  %v13725_v32 = vadd.f32 %v9880_v33, %v5457_v12  ;;  %v16279_v38 = vld [vmem:[#allocation46_spill] sm:$0xff]  ;;  %v16280_v33 = vld [vmem:[#allocation25_spill] sm:$0xff] }
 0x46f   :  { %v5764_v26 = vpop.f32.mrf.mxu0  ;;  %v9801_v55 = vpop.f32.mrf.mxu1 }
 0x470   :  { %16274 = vst [vmem:[#allocation76_spill] sm:$0xff] %v13725_v32  ;;  %v5458_v56 = vadd.f32 %v9801_v55, %v13438_v24  ;;  %v13728_v14 = vadd.f32 %v5761_v63, %v5455_v16  ;;  %v16282_v63 = vld [vmem:[#allocation51_spill] sm:$0xff]  ;;  %v16286_v32 = vld [vmem:[#allocation29_spill] sm:$0xff] }
 0x471   :  { %v9884_v59 = vpop.f32.mrf.mxu0  ;;  %v5311_v18 = vpop.f32.mrf.mxu1 }
 0x472   :  { %16275 = vst [vmem:[#allocation154_spill] sm:$0xff] %v13728_v14  ;;  %v5456_v58 = vadd.f32 %v5311_v18, %v16276_v25  ;;  %v13731_v57 = vadd.f32 %v9881_v47, %v5458_v56  ;;  %v16284_v47 = vld [vmem:[#allocation13_spill] sm:$0xff] }
 0x473   :  { %v5777_v6 = vpop.f32.mrf.mxu0  ;;  %v9804_v31 = vpop.f32.mrf.mxu1  ;;  %10091 = vmatmul.mubr.bf16.gmra.mxu1 %v16278_v28 }
 0x474   :  { %16277 = vst [vmem:[#allocation89_spill] sm:$0xff] %v13731_v57  ;;  %v5461_v13 = vadd.f32 %v9804_v31, %v16279_v38  ;;  %10094 = vmatprep.mubr.bf16.mxu1 %v16280_v33  ;;  %v13736_v12 = vadd.f32 %v5764_v26, %v5456_v58  ;;  %v16288_v58 = vld [vmem:[#allocation50_spill] sm:$0xff] }
 0x475   :  { %v9885_v5 = vpop.f32.mrf.mxu0  ;;  %v5324_v30 = vpop.f32.mrf.mxu1 }
 0x476   :  { %16281 = vst [vmem:[#allocation156_spill] sm:$0xff] %v13736_v12  ;;  %v5459_v16 = vadd.f32 %v5324_v30, %v16282_v63  ;;  %v13739_v55 = vadd.f32 %v9884_v59, %v5461_v13  ;;  %v16289_v12 = vld [vmem:[#allocation62_spill] sm:$0xff]  ;;  %v16290_v59 = vld [vmem:[#allocation28_spill] sm:$0xff] }
 0x477   :  { %v5780_v24 = vpop.f32.mrf.mxu0  ;;  %v9805_v14 = vpop.f32.mrf.mxu1 }
 0x478   :  { %16283 = vst [vmem:[#allocation82_spill] sm:$0xff] %v13739_v55  ;;  %v5462_v56 = vadd.f32 %v9805_v14, %v16284_v47  ;;  %v13742_v18 = vadd.f32 %v5777_v6, %v5459_v16  ;;  %v16292_v6 = vld [vmem:[#allocation72_spill] sm:$0xff]  ;;  %v16296_v55 = vld [vmem:[#allocation53_spill] sm:$0xff] }
 0x479   :  { %v9888_v25 = vpop.f32.mrf.mxu0  ;;  %v5327_v28 = vpop.f32.mrf.mxu1 }
 0x47a   :  { %16285 = vst [vmem:[#allocation75_spill] sm:$0xff] %v13742_v18  ;;  %v5460_v38 = vadd.f32 %v5327_v28, %v16286_v32  ;;  %v13745_v31 = vadd.f32 %v9885_v5, %v5462_v56  ;;  %v16294_v5 = vld [vmem:[#allocation83_spill] sm:$0xff] }
 0x47b   :  { %v5793_v57 = vpop.f32.mrf.mxu0  ;;  %v9808_v26 = vpop.f32.mrf.mxu1  ;;  %10095 = vmatmul.mubr.bf16.gmra.mxu1 %v16288_v58 }
 0x47c   :  { %16287 = vst [vmem:[#allocation45_spill] sm:$0xff] %v13745_v31  ;;  %v5465_v30 = vadd.f32 %v9808_v26, %v16289_v12  ;;  %10098 = vmatprep.mubr.bf16.mxu1 %v16290_v59  ;;  %v13750_v13 = vadd.f32 %v5780_v24, %v5460_v38  ;;  %v16298_v38 = vld [vmem:[#allocation18_spill] sm:$0xff] }
 0x47d   :  { %v9889_v33 = vpop.f32.mrf.mxu0  ;;  %v5340_v63 = vpop.f32.mrf.mxu1 }
 0x47e   :  { %16291 = vst [vmem:[#allocation44_spill] sm:$0xff] %v13750_v13  ;;  %v5463_v16 = vadd.f32 %v5340_v63, %v16292_v6  ;;  %v13753_v47 = vadd.f32 %v9888_v25, %v5465_v30  ;;  %v16299_v13 = vld [vmem:[#allocation61_spill] sm:$0xff] }
 0x47f   :  { %v5796_v14 = vpop.f32.mrf.mxu0  ;;  %v9809_v18 = vpop.f32.mrf.mxu1  ;;  %v16300_v25 = vld [vmem:[#allocation21_spill] sm:$0xff] }
 0x480   :  { %16293 = vst [vmem:[#allocation49_spill] sm:$0xff] %v13753_v47  ;;  %v5466_v56 = vadd.f32 %v9809_v18, %v16294_v5  ;;  %v13756_v28 = vadd.f32 %v5793_v57, %v5463_v16  ;;  %v16302_v57 = vld [vmem:[#allocation32_spill] sm:$0xff] }
 0x481   :  { %v9892_v32 = vpop.f32.mrf.mxu0  ;;  %v5343_v58 = vpop.f32.mrf.mxu1 }
 0x482   :  { %16295 = vst [vmem:[#allocation95_spill] sm:$0xff] %v13756_v28  ;;  %v5464_v12 = vadd.f32 %v5343_v58, %v16296_v55  ;;  %v13759_v26 = vadd.f32 %v9889_v33, %v5466_v56  ;;  %v16304_v33 = vshrl.u32 %v13477_v54, 16  ;;  %v16305_v58 = vshll.u32 %v13477_v54, 16  ;;  %v16312_v54 = vld [vmem:[#allocation14_spill] sm:$0xff] }
 0x483   :  { %v5809_v31 = vpop.f32.mrf.mxu0  ;;  %v9812_v24 = vpop.f32.mrf.mxu1  ;;  %10099 = vmatmul.mubr.bf16.gmra.mxu1 %v16298_v38 }
 0x484   :  { %16297 = vst [vmem:[#allocation42_spill] sm:$0xff] %v13759_v26  ;;  %v5469_v63 = vadd.f32 %v9812_v24, %v16299_v13  ;;  %10102 = vmatprep.mubr.bf16.mxu1 %v16300_v25  ;;  %v13764_v30 = vadd.f32 %v5796_v14, %v5464_v12  ;;  %v6834_v56 = vrot.slane %v16304_v33, 4  ;;  %v6835_v38 = vrot.slane %v16305_v58, 5  ;;  %v16306_v26 = vld [vmem:[#allocation96_spill] sm:$0xff] }
 0x485   :  { %v9893_v59 = vpop.f32.mrf.mxu0  ;;  %v5356_v6 = vpop.f32.mrf.mxu1  ;;  %v16308_v14 = vshll.u32 %v13479_v29, 16  ;;  %v16309_v25 = vshrl.u32 %v13479_v29, 16 }
 0x486   :  { %16301 = vst [vmem:[#allocation90_spill] sm:$0xff] %v13764_v30  ;;  %v5467_v16 = vadd.f32 %v5356_v6, %v16302_v57  ;;  %v13767_v5 = vadd.f32 %v9892_v32, %v5469_v63  ;;  %v1784_v57 = vld [vmem:[#allocation2 + $0x164] sm:$0x1] }
 0x487   :  { %v5812_v18 = vpop.f32.mrf.mxu0  ;;  %v9813_v28 = vpop.f32.mrf.mxu1  ;;  %v6838_v12 = vrot.slane %v16308_v14, 5  ;;  %v6840_v6 = vrot.slane %v16309_v25, 4  ;;  %v6844_v25 = vshll.u32 %v1784_v57, 16 }
 0x488   :  { %16303 = vst [vmem:[#allocation47_spill] sm:$0xff] %v13767_v5  ;;  %v5470_v13 = vadd.f32 %v9813_v28, %v16306_v26  ;;  %v13774_v24 = vadd.f32 %v5809_v31, %v5467_v16  ;;  %v16310_v5 = vld [vmem:[#allocation103_spill] sm:$0xff]  ;;  %v6836_v28 = vor.u32 %v6835_v38, %v6834_v56  ;;  %v16313_v31 = vld [vmem:[#allocation108_spill] sm:$0xff] }
 0x489   :  { %v9896_v55 = vpop.f32.mrf.mxu0  ;;  %v5359_v32 = vpop.f32.mrf.mxu1  ;;  %v16314_v16 = vld [vmem:[#allocation24_spill] sm:$0xff]  ;;  %v6841_v29 = vor.u32 %v6840_v6, %v6838_v12 }
 0x48a   :  { %16307 = vst [vmem:[#allocation88_spill] sm:$0xff] %v13774_v24  ;;  %v5468_v30 = vadd.f32 %v5359_v32, %v16310_v5  ;;  %v13781_v47 = vadd.f32 %v9893_v59, %v5470_v13  ;;  %v6837_v32 = vrot.slane %v6836_v28, 4 }
 0x48b   :  { %v5825_v63 = vpop.f32.mrf.mxu0  ;;  %v9816_v33 = vpop.f32.mrf.mxu1  ;;  %10103 = vmatmul.mubr.bf16.gmra.mxu1 %v16312_v54  ;;  %v16317_v54 = vld [vmem:[#allocation69_spill] sm:$0xff]  ;;  %v6842_v38 = vrot.slane %v6841_v29, 4 }
 0x48c   :  { %16311 = vst [vmem:[#allocation48_spill] sm:$0xff] %v13781_v47  ;;  %v5473_v26 = vadd.f32 %v9816_v33, %v16313_v31  ;;  %10106 = vmatprep.mubr.bf16.mxu1 %v16314_v16  ;;  %v13786_v14 = vadd.f32 %v5812_v18, %v5468_v30  ;;  %v6846_v33 = vrot.slane %v6844_v25, 5  ;;  %v16318_v18 = vld [vmem:[#allocation121_spill] sm:$0xff] }
 0x48d   :  { %v9897_v58 = vpop.f32.mrf.mxu0  ;;  %v5372_v24 = vpop.f32.mrf.mxu1 }
 0x48e   :  { %16315 = vst [vmem:[#allocation99_spill] sm:$0xff] %v13786_v14  ;;  %v5471_v62 = vadd.f32 %v5372_v24, %v16316_v48  ;;  %v13789_v5 = vadd.f32 %v9896_v55, %v5473_v26  ;;  %v16319_v14 = vld [vmem:[#allocation27_spill] sm:$0xff]  ;;  %v16320_v24 = vld [vmem:[#allocation84_spill] sm:$0xff]  ;;  %v6847_v26 = vsel %vm12300_vm7, %v6842_v38, %v6846_v33 }
 0x48f   :  { %v5828_v3 = vpop.f32.mrf.mxu0  ;;  %v9817_v59 = vpop.f32.mrf.mxu1 }
 0x490   :  { %v5474_v47 = vadd.f32 %v9817_v59, %v16317_v54  ;;  %v13792_v56 = vadd.f32 %v5825_v63, %v5471_v62  ;;  %v6839_v63 = vsel %vm12300_vm7, %v6837_v32, %v6838_v12 }
 0x491   :  { %v9900_v13 = vpop.f32.mrf.mxu0  ;;  %v5375_v31 = vpop.f32.mrf.mxu1  ;;  %v8457_v59 = vcombine.low %v6839_v63, %v6847_v26 }
 0x492   :  { %v5472_v6 = vadd.f32 %v5375_v31, %v16318_v18  ;;  %v13795_v57 = vadd.f32 %v9897_v58, %v5474_v47 }
 0x493   :  { %v5841_v30 = vpop.f32.mrf.mxu0  ;;  %v9820_v16 = vpop.f32.mrf.mxu1  ;;  %10107 = vmatmul.mubr.bf16.gmra.mxu1 %v16319_v14 }
 0x494   :  { %v5477_v55 = vadd.f32 %v9820_v16, %v13532_v37  ;;  %10110 = vmatprep.mubr.bf16.mxu1 %v16320_v24  ;;  %v13800_v28 = vadd.f32 %v5828_v3, %v5472_v6  ;;  %v16322_v6 = vld [vmem:[#allocation39_spill] sm:$0xff] }
 0x495   :  { %v9901_v48 = vpop.f32.mrf.mxu0  ;;  %v5388_v29 = vpop.f32.mrf.mxu1 }
 0x496   :  { %v5475_v47 = vadd.f32 %v5388_v29, %v13535_v7  ;;  %v13807_v58 = vadd.f32 %v9900_v13, %v5477_v55  ;;  %v16323_v13 = vld [vmem:[#allocation23_spill] sm:$0xff] }
 0x497   :  { %v5844_v25 = vpop.f32.mrf.mxu0  ;;  %v9821_v14 = vpop.f32.mrf.mxu1 }
 0x498   :  { %v5478_v37 = vadd.f32 %v9821_v14, %v13539_v10  ;;  %v13810_v31 = vadd.f32 %v5841_v30, %v5475_v47 }
 0x499   :  { %v9904_v54 = vpop.f32.mrf.mxu0  ;;  %v5391_v3 = vpop.f32.mrf.mxu1 }
 0x49a   :  { %v5476_v12 = vadd.f32 %v5391_v3, %v16322_v6  ;;  %v13813_v32 = vadd.f32 %v9901_v48, %v5478_v37 }
 0x49b   :  { %v5857_v18 = vpop.f32.mrf.mxu0  ;;  %v9824_v38 = vpop.f32.mrf.mxu1  ;;  %10111 = vmatmul.mubr.bf16.gmra.mxu1 %v8457_v59  ;;  %v16324_v59 = vld [vmem:[#allocation31_spill] sm:$0xff] }
 0x49c   :  { %v5481_v7 = vadd.f32 %v9824_v38, %v13548_v8  ;;  %10114 = vmatprep.mubr.bf16.mxu1 %v16323_v13  ;;  %v13817_v16 = vadd.f32 %v5844_v25, %v5476_v12 }
 0x49d   :  { %v9905_v33 = vpop.f32.mrf.mxu0  ;;  %v5404_v55 = vpop.f32.mrf.mxu1 }
 0x49e   :  { %v5479_v10 = vadd.f32 %v5404_v55, %v13552_v1  ;;  %v13820_v30 = vadd.f32 %v9904_v54, %v5481_v7  ;;  %v16325_v1 = vld [vmem:[#allocation35_spill] sm:$0xff]  ;;  %v16326_v7 = vld [vmem:[#allocation70_spill] sm:$0xff] }
 0x49f   :  { %v5860_v24 = vpop.f32.mrf.mxu0  ;;  %v9825_v63 = vpop.f32.mrf.mxu1  ;;  %v16327_v55 = vld [vmem:[#allocation22_spill] sm:$0xff] }
 0x4a0   :  { %v5482_v26 = vadd.f32 %v9825_v63, %v13556_v44  ;;  %v13823_v48 = vadd.f32 %v5857_v18, %v5479_v10 }
 0x4a1   :  { %v5407_v29 = vpop.f32.mrf.mxu1  ;;  %v13825_v47 = vpop.f32.mrf.mxu0 }
 0x4a2   :  { %v5480_v8 = vadd.f32 %v5407_v29, %v13561_v19  ;;  %v13828_v14 = vadd.f32 %v9905_v33, %v5482_v26 }
 0x4a3   :  { %v9924_v25 = vpop.f32.mrf.mxu1  ;;  %10115 = vmatmul.mubr.bf16.gmra.mxu1 %v16324_v59  ;;  %v13837_v3 = vpop.f32.mrf.mxu0  ;;  %v16329_v59 = vld [vmem:[#allocation67_spill] sm:$0xff] }
 0x4a4   :  { %v13832_v37 = vadd.f32 %v9924_v25, %v13564_v4  ;;  %10118 = vmatprep.mubr.bf16.mxu1 %v16325_v1  ;;  %v13835_v54 = vadd.f32 %v5860_v24, %v5480_v8  ;;  %v16328_v8 = vld [vmem:[#allocation63_spill] sm:$0xff] }
 0x4a5   :  { %v6086_v44 = vpop.f32.mrf.mxu1  ;;  %v13845_v38 = vpop.f32.mrf.mxu0 }
 0x4a6   :  { %v13840_v18 = vadd.f32 %v6086_v44, %v13568_v51 }
 0x4a7   :  { %v9925_v6 = vpop.f32.mrf.mxu1  ;;  %v13855_v24 = vpop.f32.mrf.mxu0 }
 0x4a8   :  { %v13843_v19 = vadd.f32 %v9925_v6, %v13572_v43 }
 0x4a9   :  { %v6089_v12 = vpop.f32.mrf.mxu1  ;;  %v13863_v26 = vpop.f32.mrf.mxu0 }
 0x4aa   :  { %v13848_v4 = vadd.f32 %v6089_v12, %v13577_v20 }
 0x4ab   :  { %v9928_v33 = vpop.f32.mrf.mxu1  ;;  %10119 = vmatmul.mubr.bf16.gmra.mxu1 %v16326_v7  ;;  %v16331_v7 = vld [vmem:[#allocation68_spill] sm:$0xff] }
 0x4ac   :  { %v13852_v13 = vadd.f32 %v9928_v33, %v13580_v45  ;;  %10122 = vmatprep.mubr.bf16.mxu1 %v16327_v55 }
 0x4ad   :  { %v6102_v51 = vpop.f32.mrf.mxu1 }
 0x4ae   :  { %v13858_v43 = vadd.f32 %v6102_v51, %v13584_v22  ;;  %v13873_v22 = vpop.f32.mrf.mxu0  ;;  %v16333_v51 = vld [vmem:[#allocation64_spill] sm:$0xff] }
 0x4af   :  { %v9929_v10 = vpop.f32.mrf.mxu1 }
 0x4b0   :  { %v13861_v63 = vadd.f32 %v9929_v10, %v13588_v39 }
 0x4b1   :  { %v6105_v20 = vpop.f32.mrf.mxu1 }
 0x4b2   :  { %v13866_v29 = vadd.f32 %v6105_v20, %v13593_v11  ;;  %v13881_v11 = vpop.f32.mrf.mxu0 }
 0x4b3   :  { %v9932_v45 = vpop.f32.mrf.mxu1  ;;  %10123 = vmatmul.mubr.bf16.gmra.mxu1 %v16328_v8 }
 0x4b4   :  { %v13870_v25 = vadd.f32 %v9932_v45, %v13596_v41  ;;  %10126 = vmatprep.mubr.bf16.mxu1 %v16329_v59 }
 0x4b5   :  { %v6118_v1 = vpop.f32.mrf.mxu1 }
 0x4b6   :  { %v13876_v39 = vadd.f32 %v6118_v1, %v13600_v0  ;;  %v13891_v0 = vpop.f32.mrf.mxu0  ;;  %v16337_v1 = vld [vmem:[#allocation60_spill] sm:$0xff] }
 0x4b7   :  { %v9933_v44 = vpop.f32.mrf.mxu1 }
 0x4b8   :  { %v13879_v6 = vadd.f32 %v9933_v44, %v13604_v15  ;;  %v16338_v44 = vld [vmem:[#allocation123_spill] sm:$0xff] }
 0x4b9   :  { %v6121_v12 = vpop.f32.mrf.mxu1 }
 0x4ba   :  { %16330 = vst [vmem:[#allocation52_spill] sm:$0xff] %v13879_v6  ;;  %v13884_v33 = vadd.f32 %v6121_v12, %v13609_v42  ;;  %v13899_v42 = vpop.f32.mrf.mxu0 }
 0x4bb   :  { %v9936_v41 = vpop.f32.mrf.mxu1  ;;  %10127 = vmatmul.mubr.bf16.gmra.mxu1 %v16331_v7 }
 0x4bc   :  { %v13888_v55 = vadd.f32 %v9936_v41, %v13612_v36  ;;  %10130 = vmatprep.mubr.bf16.mxu1 %v16333_v51  ;;  %v16340_v41 = vld [vmem:[#allocation78_spill] sm:$0xff]  ;;  %v16341_v51 = vld [vmem:[#allocation71_spill] sm:$0xff] }
 0x4bd   :  { %v6134_v10 = vpop.f32.mrf.mxu1 }
 0x4be   :  { %16332 = vst [vmem:[#allocation101_spill] sm:$0xff] %v13888_v55  ;;  %v13894_v15 = vadd.f32 %v6134_v10, %v13616_v2  ;;  %v13909_v2 = vpop.f32.mrf.mxu0 }
 0x4bf   :  { %v9937_v20 = vpop.f32.mrf.mxu1 }
 0x4c0   :  { %16334 = vst [vmem:[#allocation92_spill] sm:$0xff] %v13894_v15  ;;  %v13897_v45 = vadd.f32 %v9937_v20, %v13620_v34  ;;  %v16343_v20 = vshrl.u32 %v13627_v9, 16  ;;  %v16351_v15 = vld [vmem:[#allocation74_spill] sm:$0xff] }
 0x4c1   :  { %v6137_v8 = vpop.f32.mrf.mxu1 }
 0x4c2   :  { %16335 = vst [vmem:[#allocation97_spill] sm:$0xff] %v13897_v45  ;;  %v13902_v59 = vadd.f32 %v6137_v8, %v13625_v61  ;;  %v6848_v45 = vrot.slane %v16343_v20, 4  ;;  %v16344_v61 = vld [vmem:[#allocation80_spill] sm:$0xff] }
 0x4c3   :  { %v9940_v36 = vpop.f32.mrf.mxu1  ;;  %10131 = vmatmul.mubr.bf16.gmra.mxu1 %v16337_v1  ;;  %v16346_v1 = vshll.u32 %v13627_v9, 16  ;;  %v16353_v9 = vld [vmem:[#allocation65_spill] sm:$0xff] }
 0x4c4   :  { %16336 = vst [vmem:[#allocation17_spill] sm:$0xff] %v13902_v59  ;;  %v13906_v12 = vadd.f32 %v9940_v36, %v16338_v44  ;;  %10134 = vmatprep.mubr.bf16.mxu1 %v16340_v41  ;;  %v16347_v36 = vshll.u32 %v13629_v49, 16  ;;  %v16348_v41 = vshrl.u32 %v13629_v49, 16  ;;  %v13925_v59 = vpop.f32.mrf.mxu0 }
 0x4c5   :  { %v6150_v7 = vpop.f32.mrf.mxu1  ;;  %v6849_v55 = vrot.slane %v16346_v1, 5  ;;  %16349 = vst [vmem:[#allocation102_spill] sm:$0xff] %v13925_v59 }
 0x4c6   :  { %16339 = vst [vmem:[#allocation106_spill] sm:$0xff] %v13906_v12  ;;  %v13912_v34 = vadd.f32 %v6150_v7, %v16341_v51  ;;  %v6852_v44 = vrot.slane %v16347_v36, 5  ;;  %v6854_v12 = vrot.slane %v16348_v41, 4  ;;  %v1856_v51 = vld [vmem:[#allocation2 + $0x2cc] sm:$0x1]  ;;  %v13935_v49 = vpop.f32.mrf.mxu0 }
 0x4c7   :  { %v9941_v10 = vpop.f32.mrf.mxu1  ;;  %v6850_v1 = vor.u32 %v6849_v55, %v6848_v45 }
 0x4c8   :  { %16342 = vst [vmem:[#allocation33_spill] sm:$0xff] %v13912_v34  ;;  %v13917_v8 = vadd.f32 %v9941_v10, %v16344_v61  ;;  %v16352_v10 = vld [vmem:[#allocation132_spill] sm:$0xff]  ;;  %v6855_v36 = vor.u32 %v6854_v12, %v6852_v44  ;;  %v16355_v12 = vld [vmem:[#allocation41_spill] sm:$0xff] }
 0x4c9   :  { %v6153_v7 = vpop.f32.mrf.mxu1 }
 0x4ca   :  { %16345 = vst [vmem:[#allocation107_spill] sm:$0xff] %v13917_v8  ;;  %v13928_v34 = vadd.f32 %v6153_v7, %v13650_v23  ;;  %v6858_v8 = vshll.u32 %v1856_v51, 16  ;;  %v6851_v7 = vrot.slane %v6850_v1, 4 }
 0x4cb   :  { %v9944_v20 = vpop.f32.mrf.mxu1  ;;  %10135 = vmatmul.mubr.bf16.gmra.mxu1 %v16351_v15  ;;  %v6856_v15 = vrot.slane %v6855_v36, 4 }
 0x4cc   :  { %16350 = vst [vmem:[#allocation16_spill] sm:$0xff] %v13928_v34  ;;  %v13932_v61 = vadd.f32 %v9944_v20, %v16352_v10  ;;  %10138 = vmatprep.mubr.bf16.mxu1 %v16353_v9  ;;  %v6860_v34 = vrot.slane %v6858_v8, 5  ;;  %v13943_v20 = vpop.f32.mrf.mxu0 }
 0x4cd   :  { %v6166_v41 = vpop.f32.mrf.mxu1 }
 0x4ce   :  { %v13938_v59 = vadd.f32 %v6166_v41, %v13662_v35  ;;  %v16357_v35 = vld [vmem:[#allocation85_spill] sm:$0xff]  ;;  %v13957_v8 = vpop.f32.mrf.mxu0 }
 0x4cf   :  { %v9945_v6 = vpop.f32.mrf.mxu1 }
 0x4d0   :  { %v13941_v23 = vadd.f32 %v9945_v6, %v13668_v53  ;;  %v6853_v53 = vsel %vm12300_vm7, %v6851_v7, %v6852_v44  ;;  %v6861_v6 = vsel %vm12300_vm7, %v6856_v15, %v6860_v34 }
 0x4d1   :  { %v6169_v10 = vpop.f32.mrf.mxu1  ;;  %v8458_v36 = vcombine.low %v6853_v53, %v6861_v6 }
 0x4d2   :  { %16354 = vst [vmem:[#allocation98_spill] sm:$0xff] %v13941_v23  ;;  %v13946_v55 = vadd.f32 %v6169_v10, %v13675_v40  ;;  %v16401_v23 = vld [vmem:[#allocation88_spill] sm:$0xff] }
 0x4d3   :  { %v9948_v45 = vpop.f32.mrf.mxu1  ;;  %10139 = vmatmul.mubr.bf16.gmra.mxu1 %v16355_v12 }
 0x4d4   :  { %v13950_v51 = vadd.f32 %v9948_v45, %v13682_v21  ;;  %10142 = vmatprep.mubr.bf16.mxu1 %v16357_v35  ;;  %v13965_v21 = vpop.f32.mrf.mxu0 }
 0x4d5   :  { %v6182_v9 = vpop.f32.mrf.mxu1 }
 0x4d6   :  { %16356 = vst [vmem:[#allocation26_spill] sm:$0xff] %v13950_v51  ;;  %v13960_v40 = vadd.f32 %v6182_v9, %v13685_v50  ;;  %v13973_v34 = vpop.f32.mrf.mxu0  ;;  %v16366_v9 = vld [vmem:[#allocation144_spill] sm:$0xff]  ;;  %v16384_v51 = vld [vmem:[#allocation75_spill] sm:$0xff] }
 0x4d7   :  { %v9949_v1 = vpop.f32.mrf.mxu1 }
 0x4d8   :  { %16358 = vst [vmem:[#allocation112_spill] sm:$0xff] %v13960_v40  ;;  %v13963_v41 = vadd.f32 %v9949_v1, %v13688_v60  ;;  %v13981_v12 = vpop.f32.mrf.mxu0  ;;  %v16393_v40 = vld [vmem:[#allocation95_spill] sm:$0xff] }
 0x4d9   :  { %v6185_v10 = vpop.f32.mrf.mxu1 }
 0x4da   :  { %16359 = vst [vmem:[#allocation34_spill] sm:$0xff] %v13963_v41  ;;  %v13968_v45 = vadd.f32 %v6185_v10, %v13692_v17  ;;  %v16364_v17 = vld [vmem:[#allocation135_spill] sm:$0xff]  ;;  %v13989_v1 = vpop.f32.mrf.mxu0  ;;  %v16380_v41 = vld [vmem:[#allocation156_spill] sm:$0xff] }
 0x4db   :  { %v9952_v44 = vpop.f32.mrf.mxu1  ;;  %10143 = vmatmul.mubr.bf16.gmra.mxu1 %v8458_v36  ;;  %v16368_v10 = vld [vmem:[#allocation147_spill] sm:$0xff] }
 0x4dc   :  { %16360 = vst [vmem:[#allocation114_spill] sm:$0xff] %v13968_v45  ;;  %v13971_v62 = vadd.f32 %v9952_v44, %v13697_v52  ;;  %v16389_v45 = vld [vmem:[#allocation44_spill] sm:$0xff] }
 0x4dd   :  { %v6198_v50 = vpop.f32.mrf.mxu1 }
 0x4de   :  { %16361 = vst [vmem:[#allocation20_spill] sm:$0xff] %v13971_v62  ;;  %v13976_v7 = vadd.f32 %v6198_v50, %v13700_v27  ;;  %v16370_v50 = vld [vmem:[#allocation77_spill] sm:$0xff]  ;;  %v16372_v62 = vld [vmem:[#allocation86_spill] sm:$0xff] }
 0x4df   :  { %v9953_v15 = vpop.f32.mrf.mxu1 }
 0x4e0   :  { %16362 = vst [vmem:[#allocation104_spill] sm:$0xff] %v13976_v7  ;;  %v13979_v60 = vadd.f32 %v9953_v15, %v13703_v46  ;;  %v13997_v15 = vpop.f32.mrf.mxu0  ;;  %v16376_v7 = vld [vmem:[#allocation154_spill] sm:$0xff] }
 0x4e1   :  { %v6201_v35 = vpop.f32.mrf.mxu1 }
 0x4e2   :  { %16363 = vst [vmem:[#allocation109_spill] sm:$0xff] %v13979_v60  ;;  %v13984_v53 = vadd.f32 %v6201_v35, %v16364_v17 }
 0x4e3   :  { %v9956_v6 = vpop.f32.mrf.mxu1 }
 0x4e4   :  { %16365 = vst [vmem:[#allocation36_spill] sm:$0xff] %v13984_v53  ;;  %v13987_v52 = vadd.f32 %v9956_v6, %v16366_v9  ;;  %v16374_v53 = vld [vmem:[#allocation76_spill] sm:$0xff]  ;;  %v14005_v9 = vpop.f32.mrf.mxu0 }
 0x4e5   :  { %v6214_v36 = vpop.f32.mrf.mxu1 }
 0x4e6   :  { %16367 = vst [vmem:[#allocation115_spill] sm:$0xff] %v13987_v52  ;;  %v13992_v27 = vadd.f32 %v6214_v36, %v16368_v10 }
 0x4e7   :  { %v9957_v44 = vpop.f32.mrf.mxu1 }
 0x4e8   :  { %16369 = vst [vmem:[#allocation66_spill] sm:$0xff] %v13992_v27  ;;  %v13995_v46 = vadd.f32 %v9957_v44, %v16370_v50  ;;  %v16378_v27 = vld [vmem:[#allocation89_spill] sm:$0xff]  ;;  %v14013_v50 = vpop.f32.mrf.mxu0 }
 0x4e9   :  { %v6217_v60 = vpop.f32.mrf.mxu1 }
 0x4ea   :  { %16371 = vst [vmem:[#allocation118_spill] sm:$0xff] %v13995_v46  ;;  %v14000_v35 = vadd.f32 %v6217_v60, %v16372_v62 }
 0x4eb   :  { %v9960_v17 = vpop.f32.mrf.mxu1 }
 0x4ec   :  { %16373 = vst [vmem:[#allocation59_spill] sm:$0xff] %v14000_v35  ;;  %v14003_v6 = vadd.f32 %v9960_v17, %v16374_v53  ;;  %v16382_v35 = vld [vmem:[#allocation82_spill] sm:$0xff]  ;;  %v14021_v17 = vpop.f32.mrf.mxu0 }
 0x4ed   :  { %v6230_v52 = vpop.f32.mrf.mxu1 }
 0x4ee   :  { %16375 = vst [vmem:[#allocation119_spill] sm:$0xff] %v14003_v6  ;;  %v14008_v36 = vadd.f32 %v6230_v52, %v16376_v7 }
 0x4ef   :  { %v9961_v10 = vpop.f32.mrf.mxu1 }
 0x4f0   :  { %16377 = vst [vmem:[#allocation110_spill] sm:$0xff] %v14008_v36  ;;  %v14011_v44 = vadd.f32 %v9961_v10, %v16378_v27  ;;  %v16386_v36 = vld [vmem:[#allocation45_spill] sm:$0xff]  ;;  %v14029_v10 = vpop.f32.mrf.mxu0 }
 0x4f1   :  { %v6233_v46 = vpop.f32.mrf.mxu1  ;;  %16388 = vst [vmem:[#allocation116_spill] sm:$0xff] %v14029_v10  ;;  %v16398_v10 = vld [vmem:[#allocation90_spill] sm:$0xff] }
 0x4f2   :  { %16379 = vst [vmem:[#allocation73_spill] sm:$0xff] %v14011_v44  ;;  %v14016_v62 = vadd.f32 %v6233_v46, %v16380_v41 }
 0x4f3   :  { %v9964_v60 = vpop.f32.mrf.mxu1 }
 0x4f4   :  { %16381 = vst [vmem:[#allocation129_spill] sm:$0xff] %v14016_v62  ;;  %v14019_v53 = vadd.f32 %v9964_v60, %v16382_v35  ;;  %v16391_v62 = vld [vmem:[#allocation49_spill] sm:$0xff]  ;;  %v14037_v60 = vpop.f32.mrf.mxu0 }
 0x4f5   :  { %v6246_v6 = vpop.f32.mrf.mxu1 }
 0x4f6   :  { %16383 = vst [vmem:[#allocation79_spill] sm:$0xff] %v14019_v53  ;;  %v14024_v7 = vadd.f32 %v6246_v6, %v16384_v51 }
 0x4f7   :  { %v9965_v52 = vpop.f32.mrf.mxu1 }
 0x4f8   :  { %16385 = vst [vmem:[#allocation130_spill] sm:$0xff] %v14024_v7  ;;  %v14027_v27 = vadd.f32 %v9965_v52, %v16386_v36  ;;  %v16395_v7 = vld [vmem:[#allocation42_spill] sm:$0xff]  ;;  %v14045_v52 = vpop.f32.mrf.mxu0 }
 0x4f9   :  { %v6249_v44 = vpop.f32.mrf.mxu1  ;;  %16397 = vst [vmem:[#allocation124_spill] sm:$0xff] %v14045_v52  ;;  %v16404_v52 = vld [vmem:[#allocation99_spill] sm:$0xff] }
 0x4fa   :  { %16387 = vst [vmem:[#allocation120_spill] sm:$0xff] %v14027_v27  ;;  %v14032_v41 = vadd.f32 %v6249_v44, %v16389_v45 }
 0x4fb   :  { %v9968_v46 = vpop.f32.mrf.mxu1 }
 0x4fc   :  { %16390 = vst [vmem:[#allocation81_spill] sm:$0xff] %v14032_v41  ;;  %v14035_v35 = vadd.f32 %v9968_v46, %v16391_v62  ;;  %v16399_v41 = vld [vmem:[#allocation47_spill] sm:$0xff]  ;;  %v14053_v46 = vpop.f32.mrf.mxu0 }
 0x4fd   :  { %v6262_v53 = vpop.f32.mrf.mxu1 }
 0x4fe   :  { %16392 = vst [vmem:[#allocation30_spill] sm:$0xff] %v14035_v35  ;;  %v14040_v51 = vadd.f32 %v6262_v53, %v16393_v40 }
 0x4ff   :  { %v9969_v6 = vpop.f32.mrf.mxu1 }
 0x500   :  { %16394 = vst [vmem:[#allocation55_spill] sm:$0xff] %v14040_v51  ;;  %v14043_v36 = vadd.f32 %v9969_v6, %v16395_v7  ;;  %v16402_v51 = vld [vmem:[#allocation48_spill] sm:$0xff]  ;;  %v14061_v6 = vpop.f32.mrf.mxu0 }
 0x501   :  { %v6265_v27 = vpop.f32.mrf.mxu1 }
 0x502   :  { %16396 = vst [vmem:[#allocation125_spill] sm:$0xff] %v14043_v36  ;;  %v14048_v45 = vadd.f32 %v6265_v27, %v16398_v10 }
 0x503   :  { %v9972_v44 = vpop.f32.mrf.mxu1 }
 0x504   :  { %v14051_v62 = vadd.f32 %v9972_v44, %v16399_v41  ;;  %v14069_v44 = vpop.f32.mrf.mxu0 }
 0x505   :  { %v6278_v35 = vpop.f32.mrf.mxu1 }
 0x506   :  { %16400 = vst [vmem:[#allocation87_spill] sm:$0xff] %v14051_v62  ;;  %v14056_v40 = vadd.f32 %v6278_v35, %v16401_v23 }
 0x507   :  { %v9973_v53 = vpop.f32.mrf.mxu1 }
 0x508   :  { %v14059_v7 = vadd.f32 %v9973_v53, %v16402_v51  ;;  %v14077_v53 = vpop.f32.mrf.mxu0 }
 0x509   :  { %v6281_v36 = vpop.f32.mrf.mxu1 }
 0x50a   :  { %16403 = vst [vmem:[#allocation133_spill] sm:$0xff] %v14059_v7  ;;  %v14064_v27 = vadd.f32 %v6281_v36, %v16404_v52 }
 0x50b   :  { %v9976_v10 = vpop.f32.mrf.mxu1 }
 0x50c   :  { %v14067_v41 = vadd.f32 %v9976_v10, %v13789_v5  ;;  %v14085_v10 = vpop.f32.mrf.mxu0 }
 0x50d   :  { %v6294_v62 = vpop.f32.mrf.mxu1 }
 0x50e   :  { %16405 = vst [vmem:[#allocation94_spill] sm:$0xff] %v14067_v41  ;;  %v14072_v23 = vadd.f32 %v6294_v62, %v13792_v56 }
 0x50f   :  { %v9977_v35 = vpop.f32.mrf.mxu1 }
 0x510   :  { %v14075_v51 = vadd.f32 %v9977_v35, %v13795_v57  ;;  %v14093_v35 = vpop.f32.mrf.mxu0 }
 0x511   :  { %v6297_v7 = vpop.f32.mrf.mxu1 }
 0x512   :  { %16406 = vst [vmem:[#allocation100_spill] sm:$0xff] %v14075_v51  ;;  %v14080_v36 = vadd.f32 %v6297_v7, %v13800_v28 }
 0x513   :  { %v9980_v52 = vpop.f32.mrf.mxu1 }
 0x514   :  { %v14083_v5 = vadd.f32 %v9980_v52, %v13807_v58  ;;  %v14101_v52 = vpop.f32.mrf.mxu0 }
 0x515   :  { %v6310_v41 = vpop.f32.mrf.mxu1 }
 0x516   :  { %16407 = vst [vmem:[#allocation158_spill] sm:$0xff] %v14083_v5  ;;  %v14088_v56 = vadd.f32 %v6310_v41, %v13810_v31 }
 0x517   :  { %v9981_v62 = vpop.f32.mrf.mxu1 }
 0x518   :  { %v14091_v57 = vadd.f32 %v9981_v62, %v13813_v32  ;;  %v14109_v62 = vpop.f32.mrf.mxu0 }
 0x519   :  { %v6313_v51 = vpop.f32.mrf.mxu1 }
 0x51a   :  { %16408 = vst [vmem:[#allocation126_spill] sm:$0xff] %v14091_v57  ;;  %v14096_v28 = vadd.f32 %v6313_v51, %v13817_v16 }
 0x51b   :  { %v9984_v7 = vpop.f32.mrf.mxu1 }
 0x51c   :  { %16409 = vst [vmem:[#allocation91_spill] sm:$0xff] %v14096_v28  ;;  %v14099_v58 = vadd.f32 %v9984_v7, %v13820_v30  ;;  %v14114_v28 = vpop.f32.mrf.mxu0 }
 0x51d   :  { %v6326_v5 = vpop.f32.mrf.mxu1 }
 0x51e   :  { %16410 = vst [vmem:[#allocation142_spill] sm:$0xff] %v14099_v58  ;;  %v14104_v31 = vadd.f32 %v6326_v5, %v13823_v48  ;;  %v6770_v58 = vadd.f32 %v13837_v3, %v13840_v18  ;;  %v6771_v48 = vadd.f32 %v13855_v24, %v13848_v4  ;;  %v14120_v5 = vpop.f32.mrf.mxu0  ;;  %v6774_v24 = vadd.f32 %v13873_v22, %v13858_v43 }
 0x51f   :  { %v9985_v41 = vpop.f32.mrf.mxu1 }
 0x520   :  { %16411 = vst [vmem:[#allocation143_spill] sm:$0xff] %v14104_v31  ;;  %v14107_v32 = vadd.f32 %v9985_v41, %v13828_v14  ;;  %v6772_v41 = vadd.f32 %v13825_v47, %v13832_v37  ;;  %v14134_v18 = vpop.f32.mrf.mxu0 }
 0x521   :  { %v6329_v57 = vpop.f32.mrf.mxu1 }
 0x522   :  { %16412 = vst [vmem:[#allocation105_spill] sm:$0xff] %v14107_v32  ;;  %v14112_v16 = vadd.f32 %v6329_v57, %v13835_v54 }
 0x523   :  { %v10084_v51 = vpop.f32.mrf.mxu1 }
 0x524   :  { %16413 = vst [vmem:[#allocation111_spill] sm:$0xff] %v14112_v16  ;;  %v6773_v16 = vadd.f32 %v13845_v38, %v13843_v19  ;;  %v14130_v31 = vadd.f32 %v10084_v51, %v6772_v41  ;;  %v14146_v51 = vpop.f32.mrf.mxu0 }
 0x525   :  { %v6968_v30 = vpop.f32.mrf.mxu1 }
 0x526   :  { %v14124_v32 = vadd.f32 %v6968_v30, %v6770_v58  ;;  %v6775_v30 = vadd.f32 %v13891_v0, %v13866_v29  ;;  %v14158_v0 = vpop.f32.mrf.mxu0 }
 0x527   :  { %v10085_v7 = vpop.f32.mrf.mxu1 }
 0x528   :  { %v14138_v47 = vadd.f32 %v10085_v7, %v6773_v16  ;;  %v6777_v7 = vadd.f32 %v13881_v11, %v13861_v63  ;;  %v14170_v11 = vpop.f32.mrf.mxu0 }
 0x529   :  { %v6971_v14 = vpop.f32.mrf.mxu1 }
 0x52a   :  { %v14126_v54 = vadd.f32 %v6971_v14, %v6771_v48  ;;  %v6776_v14 = vadd.f32 %v13863_v26, %v13852_v13 }
 0x52b   :  { %v10088_v57 = vpop.f32.mrf.mxu1 }
 0x52c   :  { %v7287_v3 = vadd.f32 %v14126_v54, %v14124_v32  ;;  %v14155_v41 = vadd.f32 %v10088_v57, %v6776_v14  ;;  %v16421_v14 = vld [vmem:[#allocation102_spill] sm:$0xff] }
 0x52d   :  { %v6984_v4 = vpop.f32.mrf.mxu1 }
 0x52e   :  { %v7288_v37 = vadd.f32 %v7287_v3, %v14130_v31  ;;  %v14143_v19 = vadd.f32 %v6984_v4, %v6774_v24  ;;  %16416 = vst [vmem:[#allocation128_spill] sm:$0xff] %v14155_v41  ;;  %v6778_v4 = vadd.f32 %v13909_v2, %v13876_v39 }
 0x52f   :  { %v10089_v58 = vpop.f32.mrf.mxu1 }
 0x530   :  { %16414 = vst [vmem:[#allocation117_spill] sm:$0xff] %v14143_v19  ;;  %v7289_v38 = vadd.f32 %v7288_v37, %v14138_v47  ;;  %v14162_v24 = vadd.f32 %v10089_v58, %v6777_v7  ;;  %v6779_v37 = vadd.f32 %v13935_v49, %v13884_v33  ;;  %v14182_v49 = vpop.f32.mrf.mxu0 }
 0x531   :  { %v6987_v48 = vpop.f32.mrf.mxu1 }
 0x532   :  { %v7290_v43 = vadd.f32 %v7289_v38, %v14143_v19  ;;  %v14151_v22 = vadd.f32 %v6987_v48, %v6775_v30  ;;  %16417 = vst [vmem:[#allocation131_spill] sm:$0xff] %v14162_v24  ;;  %v6780_v38 = vadd.f32 %v13899_v42, %v13870_v25  ;;  %v16420_v48 = vld [vmem:[#allocation52_spill] sm:$0xff] }
 0x533   :  { %v10092_v16 = vpop.f32.mrf.mxu1 }
 0x534   :  { %16415 = vst [vmem:[#allocation122_spill] sm:$0xff] %v14151_v22  ;;  %v7291_v29 = vadd.f32 %v7290_v43, %v14151_v22  ;;  %v6781_v43 = vadd.f32 %v16421_v14, %v16420_v48  ;;  %v14179_v7 = vadd.f32 %v10092_v16, %v6780_v38  ;;  %v14194_v38 = vpop.f32.mrf.mxu0  ;;  %v16427_v48 = vld [vmem:[#allocation101_spill] sm:$0xff] }
 0x535   :  { %v7000_v3 = vpop.f32.mrf.mxu1  ;;  %v6784_v14 = vadd.f32 %v13943_v20, %v16427_v48 }
 0x536   :  { %v7292_v13 = vadd.f32 %v7291_v29, %v14155_v41  ;;  %v14167_v30 = vadd.f32 %v7000_v3, %v6778_v4  ;;  %16422 = vst [vmem:[#allocation137_spill] sm:$0xff] %v14179_v7  ;;  %v16423_v3 = vld [vmem:[#allocation92_spill] sm:$0xff] }
 0x537   :  { %v10093_v26 = vpop.f32.mrf.mxu1  ;;  %v6782_v4 = vadd.f32 %v13957_v8, %v16423_v3 }
 0x538   :  { %16418 = vst [vmem:[#allocation138_spill] sm:$0xff] %v14167_v30  ;;  %v7293_v63 = vadd.f32 %v7292_v13, %v14162_v24  ;;  %v14186_v13 = vadd.f32 %v10093_v26, %v6781_v43 }
 0x539   :  { %v7003_v57 = vpop.f32.mrf.mxu1 }
 0x53a   :  { %v7294_v39 = vadd.f32 %v7293_v63, %v14167_v30  ;;  %v14175_v2 = vadd.f32 %v7003_v57, %v6779_v37  ;;  %16424 = vst [vmem:[#allocation145_spill] sm:$0xff] %v14186_v13  ;;  %v16425_v37 = vld [vmem:[#allocation17_spill] sm:$0xff] }
 0x53b   :  { %v10096_v58 = vpop.f32.mrf.mxu1  ;;  %v6783_v63 = vadd.f32 %v13973_v34, %v16425_v37 }
 0x53c   :  { %16419 = vst [vmem:[#allocation134_spill] sm:$0xff] %v14175_v2  ;;  %v7295_v33 = vadd.f32 %v7294_v39, %v14175_v2  ;;  %v14203_v24 = vadd.f32 %v10096_v58, %v6784_v14 }
 0x53d   :  { %v7016_v29 = vpop.f32.mrf.mxu1 }
 0x53e   :  { %v7296_v25 = vadd.f32 %v7295_v33, %v14179_v7  ;;  %v14191_v57 = vadd.f32 %v7016_v29, %v6782_v4  ;;  %v16429_v33 = vld [vmem:[#allocation97_spill] sm:$0xff]  ;;  %16430 = vst [vmem:[#allocation148_spill] sm:$0xff] %v14203_v24  ;;  %v14206_v29 = vpop.f32.mrf.mxu0 }
 0x53f   :  { %v10097_v42 = vpop.f32.mrf.mxu1  ;;  %v6785_v3 = vadd.f32 %v13965_v21, %v16429_v33 }
 0x540   :  { %16426 = vst [vmem:[#allocation136_spill] sm:$0xff] %v14191_v57  ;;  %v7297_v16 = vadd.f32 %v7296_v25, %v14186_v13  ;;  %v16431_v25 = vld [vmem:[#allocation33_spill] sm:$0xff]  ;;  %v14218_v58 = vpop.f32.mrf.mxu0 }
 0x541   :  { %v7019_v39 = vpop.f32.mrf.mxu1  ;;  %v6786_v37 = vadd.f32 %v13989_v1, %v16431_v25  ;;  %v14210_v41 = vadd.f32 %v10097_v42, %v6785_v3 }
 0x542   :  { %v7298_v8 = vadd.f32 %v7297_v16, %v14191_v57  ;;  %v14199_v26 = vadd.f32 %v7019_v39, %v6783_v63  ;;  %v16433_v16 = vld [vmem:[#allocation16_spill] sm:$0xff] }
 0x543   :  { %v10100_v43 = vpop.f32.mrf.mxu1  ;;  %16432 = vst [vmem:[#allocation155_spill] sm:$0xff] %v14210_v41  ;;  %v6787_v39 = vadd.f32 %v14005_v9, %v16433_v16 }
 0x544   :  { %16428 = vst [vmem:[#allocation146_spill] sm:$0xff] %v14199_v26  ;;  %v7299_v34 = vadd.f32 %v7298_v8, %v14199_v26  ;;  %v16435_v8 = vld [vmem:[#allocation106_spill] sm:$0xff] }
 0x545   :  { %v7032_v4 = vpop.f32.mrf.mxu1  ;;  %v6788_v33 = vadd.f32 %v13981_v12, %v16435_v8 }
 0x546   :  { %v7300_v20 = vadd.f32 %v7299_v34, %v14203_v24  ;;  %v14215_v48 = vadd.f32 %v7032_v4, %v6786_v37  ;;  %v16437_v34 = vld [vmem:[#allocation107_spill] sm:$0xff]  ;;  %v14230_v4 = vpop.f32.mrf.mxu0 }
 0x547   :  { %v10101_v63 = vpop.f32.mrf.mxu1  ;;  %v6789_v25 = vadd.f32 %v13997_v15, %v16437_v34  ;;  %v14227_v24 = vadd.f32 %v10100_v43, %v6788_v33  ;;  %v6792_v33 = vadd.f32 %v14013_v50, %v13932_v61  ;;  %v16442_v34 = vld [vmem:[#allocation116_spill] sm:$0xff] }
 0x548   :  { %16434 = vst [vmem:[#allocation139_spill] sm:$0xff] %v14215_v48  ;;  %v7301_v21 = vadd.f32 %v7300_v20, %v14210_v41  ;;  %v6790_v20 = vadd.f32 %v14021_v17, %v13938_v59  ;;  %v14242_v43 = vpop.f32.mrf.mxu0 }
 0x549   :  { %v7035_v14 = vpop.f32.mrf.mxu1  ;;  %v14234_v16 = vadd.f32 %v10101_v63, %v6789_v25 }
 0x54a   :  { %v7302_v1 = vadd.f32 %v7301_v21, %v14215_v48  ;;  %v14223_v42 = vadd.f32 %v7035_v14, %v6787_v39  ;;  %v6791_v21 = vadd.f32 %v14037_v60, %v13946_v55  ;;  %v14254_v60 = vpop.f32.mrf.mxu0 }
 0x54b   :  { %v10104_v3 = vpop.f32.mrf.mxu1  ;;  %16438 = vst [vmem:[#allocation141_spill] sm:$0xff] %v14234_v16 }
 0x54c   :  { %16436 = vst [vmem:[#allocation127_spill] sm:$0xff] %v14223_v42  ;;  %v7303_v9 = vadd.f32 %v7302_v1, %v14223_v42  ;;  %v16441_v1 = vld [vmem:[#allocation98_spill] sm:$0xff] }
 0x54d   :  { %v7048_v37 = vpop.f32.mrf.mxu1  ;;  %v6793_v25 = vadd.f32 %v16442_v34, %v16441_v1  ;;  %v16448_v1 = vld [vmem:[#allocation26_spill] sm:$0xff]  ;;  %v16449_v34 = vld [vmem:[#allocation124_spill] sm:$0xff] }
 0x54e   :  { %v7304_v12 = vadd.f32 %v7303_v9, %v14227_v24  ;;  %v14239_v14 = vadd.f32 %v7048_v37, %v6790_v20  ;;  %v14251_v9 = vadd.f32 %v10104_v3, %v6792_v33  ;;  %v16444_v20 = vld [vmem:[#allocation112_spill] sm:$0xff]  ;;  %v14266_v33 = vpop.f32.mrf.mxu0 }
 0x54f   :  { %v10105_v39 = vpop.f32.mrf.mxu1 }
 0x550   :  { %16439 = vst [vmem:[#allocation157_spill] sm:$0xff] %v14239_v14  ;;  %v7305_v15 = vadd.f32 %v7304_v12, %v14234_v16  ;;  %16443 = vst [vmem:[#allocation160_spill] sm:$0xff] %v14251_v9  ;;  %v6794_v12 = vadd.f32 %v14053_v46, %v16444_v20  ;;  %v14258_v41 = vadd.f32 %v10105_v39, %v6793_v25 }
 0x551   :  { %v7051_v8 = vpop.f32.mrf.mxu1 }
 0x552   :  { %v7306_v59 = vadd.f32 %v7305_v15, %v14239_v14  ;;  %v14247_v17 = vadd.f32 %v7051_v8, %v6791_v21  ;;  %16445 = vst [vmem:[#allocation149_spill] sm:$0xff] %v14258_v41  ;;  %v16446_v21 = vld [vmem:[#allocation114_spill] sm:$0xff] }
 0x553   :  { %v10108_v63 = vpop.f32.mrf.mxu1  ;;  %v6795_v15 = vadd.f32 %v14069_v44, %v16446_v21 }
 0x554   :  { %16440 = vst [vmem:[#allocation150_spill] sm:$0xff] %v14247_v17  ;;  %v7307_v55 = vadd.f32 %v7306_v59, %v14247_v17  ;;  %v6796_v17 = vadd.f32 %v16449_v34, %v16448_v1 }
 0x555   :  { %v7064_v37 = vpop.f32.mrf.mxu1 }
 0x556   :  { %v7308_v61 = vadd.f32 %v7307_v55, %v14251_v9  ;;  %v14263_v8 = vadd.f32 %v7064_v37, %v6794_v12  ;;  %v16451_v55 = vld [vmem:[#allocation34_spill] sm:$0xff]  ;;  %v14275_v9 = vadd.f32 %v10108_v63, %v6796_v17  ;;  %v14278_v37 = vpop.f32.mrf.mxu0 }
 0x557   :  { %v10109_v50 = vpop.f32.mrf.mxu1  ;;  %v6797_v20 = vadd.f32 %v14061_v6, %v16451_v55 }
 0x558   :  { %16447 = vst [vmem:[#allocation153_spill] sm:$0xff] %v14263_v8  ;;  %v7309_v3 = vadd.f32 %v7308_v61, %v14258_v41  ;;  %16452 = vst [vmem:[#allocation93_spill] sm:$0xff] %v14275_v9  ;;  %v16453_v61 = vld [vmem:[#allocation104_spill] sm:$0xff]  ;;  %v14290_v17 = vpop.f32.mrf.mxu0 }
 0x559   :  { %v7067_v59 = vpop.f32.mrf.mxu1  ;;  %v6798_v21 = vadd.f32 %v14085_v10, %v16453_v61  ;;  %v14282_v41 = vadd.f32 %v10109_v50, %v6797_v20 }
 0x55a   :  { %v7310_v46 = vadd.f32 %v7309_v3, %v14263_v8  ;;  %v14271_v39 = vadd.f32 %v7067_v59, %v6795_v15  ;;  %v16455_v59 = vld [vmem:[#allocation36_spill] sm:$0xff] }
 0x55b   :  { %v10112_v25 = vpop.f32.mrf.mxu1  ;;  %16454 = vst [vmem:[#allocation57_spill] sm:$0xff] %v14282_v41  ;;  %v6799_v1 = vadd.f32 %v14101_v52, %v16455_v59 }
 0x55c   :  { %16450 = vst [vmem:[#allocation54_spill] sm:$0xff] %v14271_v39  ;;  %v7311_v44 = vadd.f32 %v7310_v46, %v14271_v39  ;;  %v16457_v46 = vld [vmem:[#allocation20_spill] sm:$0xff] }
 0x55d   :  { %v7080_v12 = vpop.f32.mrf.mxu1  ;;  %v6800_v55 = vadd.f32 %v14077_v53, %v16457_v46 }
 0x55e   :  { %v7312_v3 = vadd.f32 %v7311_v44, %v14275_v9  ;;  %v14287_v34 = vadd.f32 %v7080_v12, %v6798_v21  ;;  %v16458_v44 = vld [vmem:[#allocation109_spill] sm:$0xff]  ;;  %v14302_v12 = vpop.f32.mrf.mxu0 }
 0x55f   :  { %v10113_v15 = vpop.f32.mrf.mxu1  ;;  %v6801_v61 = vadd.f32 %v14093_v35, %v16458_v44  ;;  %v14299_v9 = vadd.f32 %v10112_v25, %v6800_v55 }
 0x560   :  { %16456 = vst [vmem:[#allocation151_spill] sm:$0xff] %v14287_v34  ;;  %v7313_v6 = vadd.f32 %v7312_v3, %v14282_v41  ;;  %v16460_v3 = vld [vmem:[#allocation66_spill] sm:$0xff]  ;;  %v14314_v25 = vpop.f32.mrf.mxu0 }
 0x561   :  { %v7083_v63 = vpop.f32.mrf.mxu1  ;;  %16459 = vst [vmem:[#allocation140_spill] sm:$0xff] %v14299_v9  ;;  %v6802_v59 = vadd.f32 %v14114_v28, %v16460_v3  ;;  %v14306_v41 = vadd.f32 %v10113_v15, %v6801_v61 }
 0x562   :  { %v7314_v10 = vadd.f32 %v7313_v6, %v14287_v34  ;;  %v14295_v50 = vadd.f32 %v7083_v63, %v6799_v1  ;;  %v16462_v6 = vld [vmem:[#allocation59_spill] sm:$0xff] }
 0x563   :  { %v10116_v20 = vpop.f32.mrf.mxu1  ;;  %16461 = vst [vmem:[#allocation58_spill] sm:$0xff] %v14306_v41  ;;  %v6803_v63 = vadd.f32 %v14134_v18, %v16462_v6 }
 0x564   :  { %v7315_v52 = vadd.f32 %v7314_v10, %v14295_v50  ;;  %v16464_v10 = vld [vmem:[#allocation115_spill] sm:$0xff] }
 0x565   :  { %v7096_v21 = vpop.f32.mrf.mxu1  ;;  %v6804_v44 = vadd.f32 %v14109_v62, %v16464_v10 }
 0x566   :  { %v7316_v53 = vadd.f32 %v7315_v52, %v14299_v9  ;;  %v14311_v46 = vadd.f32 %v7096_v21, %v6802_v59  ;;  %v16466_v52 = vld [vmem:[#allocation118_spill] sm:$0xff]  ;;  %v6710_v21 = vpop.f32.mrf.mxu0 }
 0x567   :  { %v10117_v1 = vpop.f32.mrf.mxu1  ;;  %v6805_v3 = vadd.f32 %v14120_v5, %v16466_v52  ;;  %v14323_v9 = vadd.f32 %v10116_v20, %v6804_v44 }
 0x568   :  { %16463 = vst [vmem:[#allocation152_spill] sm:$0xff] %v14311_v46  ;;  %v7317_v35 = vadd.f32 %v7316_v53, %v14306_v41  ;;  %v16468_v53 = vld [vmem:[#allocation110_spill] sm:$0xff]  ;;  %v14336_v20 = vpop.f32.mrf.mxu0 }
 0x569   :  { %v7099_v55 = vpop.f32.mrf.mxu1  ;;  %16467 = vst [vmem:[#allocation37_spill] sm:$0xff] %v14323_v9  ;;  %v6806_v6 = vadd.f32 %v14158_v0, %v16468_v53  ;;  %v14328_v41 = vadd.f32 %v10117_v1, %v6805_v3 }
 0x56a   :  { %v7318_v28 = vadd.f32 %v7317_v35, %v14311_v46  ;;  %v14319_v15 = vadd.f32 %v7099_v55, %v6803_v63  ;;  %v16470_v63 = vld [vmem:[#allocation129_spill] sm:$0xff] }
 0x56b   :  { %v10120_v61 = vpop.f32.mrf.mxu1  ;;  %16469 = vst [vmem:[#allocation162_spill] sm:$0xff] %v14328_v41  ;;  %v6807_v55 = vadd.f32 %v14182_v49, %v16470_v63 }
 0x56c   :  { %16465 = vst [vmem:[#allocation161_spill] sm:$0xff] %v14319_v15  ;;  %v7319_v18 = vadd.f32 %v7318_v28, %v14319_v15  ;;  %v16471_v28 = vld [vmem:[#allocation119_spill] sm:$0xff] }
 0x56d   :  { %v7112_v59 = vpop.f32.mrf.mxu1  ;;  %v6808_v52 = vadd.f32 %v14146_v51, %v16471_v28 }
 0x56e   :  { %v7320_v62 = vadd.f32 %v7319_v18, %v14323_v9  ;;  %v14333_v10 = vadd.f32 %v7112_v59, %v6806_v6  ;;  %v16473_v18 = vld [vmem:[#allocation73_spill] sm:$0xff]  ;;  %v6723_v59 = vpop.f32.mrf.mxu0 }
 0x56f   :  { %v10121_v35 = vpop.f32.mrf.mxu1  ;;  %v6809_v53 = vadd.f32 %v14170_v11, %v16473_v18  ;;  %v14345_v9 = vadd.f32 %v10120_v61, %v6808_v52 }
 0x570   :  { %v7321_v5 = vadd.f32 %v7320_v62, %v14328_v41  ;;  %v16474_v62 = vld [vmem:[#allocation130_spill] sm:$0xff]  ;;  %v10057_v61 = vpop.f32.mrf.mxu0 }
 0x571   :  { %v7115_v44 = vpop.f32.mrf.mxu1  ;;  %v6810_v63 = vadd.f32 %v14206_v29, %v16474_v62  ;;  %v14350_v41 = vadd.f32 %v10121_v35, %v6809_v53  ;;  %v16479_v53 = vld [vmem:[#allocation120_spill] sm:$0xff] }
 0x572   :  { %v7322_v0 = vadd.f32 %v7321_v5, %v14333_v10  ;;  %v14341_v1 = vadd.f32 %v7115_v44, %v6807_v55  ;;  %v16476_v55 = vld [vmem:[#allocation81_spill] sm:$0xff] }
 0x573   :  { %v10124_v3 = vpop.f32.mrf.mxu1  ;;  %16475 = vst [vmem:[#allocation15_spill] sm:$0xff] %v14350_v41  ;;  %v6811_v44 = vadd.f32 %v14230_v4, %v16476_v55 }
 0x574   :  { %16472 = vst [vmem:[#allocation38_spill] sm:$0xff] %v14341_v1  ;;  %v7323_v49 = vadd.f32 %v7322_v0, %v14341_v1  ;;  %v16477_v0 = vld [vmem:[#allocation79_spill] sm:$0xff] }
 0x575   :  { %v7128_v6 = vpop.f32.mrf.mxu1  ;;  %v6812_v18 = vadd.f32 %v14194_v38, %v16477_v0 }
 0x576   :  { %v7324_v51 = vadd.f32 %v7323_v49, %v14345_v9  ;;  %v14355_v28 = vadd.f32 %v7128_v6, %v6810_v63  ;;  %v6813_v49 = vadd.f32 %v14218_v58, %v16479_v53  ;;  %v6726_v6 = vpop.f32.mrf.mxu0 }
 0x577   :  { %v10125_v5 = vpop.f32.mrf.mxu1  ;;  %v14365_v62 = vadd.f32 %v10124_v3, %v6812_v18 }
 0x578   :  { %v7325_v11 = vadd.f32 %v7324_v51, %v14350_v41  ;;  %v16481_v51 = vld [vmem:[#allocation55_spill] sm:$0xff]  ;;  %v14370_v41 = vadd.f32 %v10125_v5, %v6813_v49  ;;  %v10060_v3 = vpop.f32.mrf.mxu0  ;;  %v16485_v49 = vld [vmem:[#allocation125_spill] sm:$0xff] }
 0x579   :  { %v7131_v52 = vpop.f32.mrf.mxu1  ;;  %16480 = vst [vmem:[#allocation43_spill] sm:$0xff] %v14365_v62  ;;  %v6814_v55 = vadd.f32 %v14254_v60, %v16481_v51 }
 0x57a   :  { %v7326_v1 = vadd.f32 %v7325_v11, %v14355_v28  ;;  %v14361_v29 = vadd.f32 %v7131_v52, %v6811_v44  ;;  %16482 = vst [vmem:[#allocation19_spill] sm:$0xff] %v14370_v41  ;;  %v6815_v44 = vadd.f32 %v14278_v37, %v14048_v45  ;;  %v6739_v37 = vpop.f32.mrf.mxu0 }
 0x57b   :  { %v10128_v35 = vpop.f32.mrf.mxu1 }
 0x57c   :  { %16478 = vst [vmem:[#allocation40_spill] sm:$0xff] %v14361_v29  ;;  %v7327_v4 = vadd.f32 %v7326_v1, %v14361_v29  ;;  %v16483_v1 = vld [vmem:[#allocation30_spill] sm:$0xff] }
 0x57d   :  { %v7144_v63 = vpop.f32.mrf.mxu1  ;;  %v6816_v18 = vadd.f32 %v14242_v43, %v16483_v1 }
 0x57e   :  { %v7328_v38 = vadd.f32 %v7327_v4, %v14365_v62  ;;  %v14375_v52 = vadd.f32 %v7144_v63, %v6814_v55  ;;  %v6817_v4 = vadd.f32 %v14266_v33, %v16485_v49  ;;  %v6818_v55 = vadd.f32 %v14302_v12, %v14056_v40  ;;  %v16491_v12 = vld [vmem:[#allocation133_spill] sm:$0xff] }
 0x57f   :  { %v10129_v11 = vpop.f32.mrf.mxu1  ;;  %v14385_v51 = vadd.f32 %v10128_v35, %v6816_v18  ;;  %v10061_v35 = vpop.f32.mrf.mxu0  ;;  %v16489_v18 = vld [vmem:[#allocation87_spill] sm:$0xff] }
 0x580   :  { %v7329_v58 = vadd.f32 %v7328_v38, %v14370_v41  ;;  %v14390_v38 = vadd.f32 %v10129_v11, %v6817_v4  ;;  %v6821_v11 = vadd.f32 %v14314_v25, %v16491_v12 }
 0x581   :  { %v7147_v0 = vpop.f32.mrf.mxu1  ;;  %16486 = vst [vmem:[#allocation25_spill] sm:$0xff] %v14385_v51 }
 0x582   :  { %v7330_v53 = vadd.f32 %v7329_v58, %v14375_v52  ;;  %v14381_v60 = vadd.f32 %v7147_v0, %v6815_v44  ;;  %16487 = vst [vmem:[#allocation51_spill] sm:$0xff] %v14390_v38  ;;  %v6819_v44 = vadd.f32 %v6710_v21, %v14064_v27  ;;  %v6742_v21 = vpop.f32.mrf.mxu0 }
 0x583   :  { %v10132_v5 = vpop.f32.mrf.mxu1 }
 0x584   :  { %16484 = vst [vmem:[#allocation46_spill] sm:$0xff] %v14381_v60  ;;  %v7331_v45 = vadd.f32 %v7330_v53, %v14381_v60  ;;  %v6820_v53 = vadd.f32 %v14290_v17, %v16489_v18  ;;  %v10064_v25 = vpop.f32.mrf.mxu0  ;;  %v16492_v18 = vld [vmem:[#allocation94_spill] sm:$0xff] }
 0x585   :  { %v7160_v63 = vpop.f32.mrf.mxu1 }
 0x586   :  { %v7332_v43 = vadd.f32 %v7331_v45, %v14385_v51  ;;  %v14394_v0 = vadd.f32 %v7160_v63, %v6818_v55  ;;  %v14404_v4 = vadd.f32 %v10132_v5, %v6820_v53  ;;  %v6822_v63 = vadd.f32 %v6723_v59, %v14072_v23  ;;  %v16494_v59 = vld [vmem:[#allocation100_spill] sm:$0xff] }
 0x587   :  { %v10133_v58 = vpop.f32.mrf.mxu1  ;;  %v6824_v53 = vadd.f32 %v14336_v20, %v16492_v18  ;;  %v16497_v18 = vld [vmem:[#allocation91_spill] sm:$0xff] }
 0x588   :  { %16488 = vst [vmem:[#allocation13_spill] sm:$0xff] %v14394_v0  ;;  %v7333_v33 = vadd.f32 %v7332_v43, %v14390_v38  ;;  %v14408_v55 = vadd.f32 %v10133_v58, %v6821_v11  ;;  %v6825_v58 = vadd.f32 %v10057_v61, %v16494_v59 }
 0x589   :  { %v7163_v1 = vpop.f32.mrf.mxu1 }
 0x58a   :  { %v7334_v49 = vadd.f32 %v7333_v33, %v14394_v0  ;;  %v14400_v60 = vadd.f32 %v7163_v1, %v6819_v44  ;;  %v6823_v44 = vadd.f32 %v6726_v6, %v14080_v36  ;;  %v6755_v6 = vpop.f32.mrf.mxu0 }
 0x58b   :  { %v10136_v40 = vpop.f32.mrf.mxu1 }
 0x58c   :  { %16490 = vst [vmem:[#allocation29_spill] sm:$0xff] %v14400_v60  ;;  %v7335_v27 = vadd.f32 %v7334_v49, %v14400_v60  ;;  %v14421_v11 = vadd.f32 %v10136_v40, %v6824_v53  ;;  %v10065_v61 = vpop.f32.mrf.mxu0  ;;  %v16499_v53 = vld [vmem:[#allocation158_spill] sm:$0xff] }
 0x58d   :  { %v7176_v45 = vpop.f32.mrf.mxu1  ;;  %v6828_v59 = vadd.f32 %v10060_v3, %v16499_v53  ;;  %v16505_v53 = vld [vmem:[#allocation111_spill] sm:$0xff] }
 0x58e   :  { %v7336_v17 = vadd.f32 %v7335_v27, %v14404_v4  ;;  %v14412_v33 = vadd.f32 %v7176_v45, %v6822_v63  ;;  %16495 = vst [vmem:[#allocation62_spill] sm:$0xff] %v14421_v11  ;;  %v6826_v45 = vadd.f32 %v6739_v37, %v14088_v56  ;;  %v16501_v37 = vld [vmem:[#allocation126_spill] sm:$0xff] }
 0x58f   :  { %v10137_v43 = vpop.f32.mrf.mxu1 }
 0x590   :  { %v7337_v1 = vadd.f32 %v7336_v17, %v14408_v55  ;;  %v14425_v63 = vadd.f32 %v10137_v43, %v6825_v58  ;;  %v6829_v43 = vadd.f32 %v10061_v35, %v16501_v37 }
 0x591   :  { %v7179_v5 = vpop.f32.mrf.mxu1 }
 0x592   :  { %v7338_v49 = vadd.f32 %v7337_v1, %v14412_v33  ;;  %v14418_v12 = vadd.f32 %v7179_v5, %v6823_v44  ;;  %16496 = vst [vmem:[#allocation28_spill] sm:$0xff] %v14425_v63  ;;  %v6827_v1 = vadd.f32 %v6742_v21, %v16497_v18  ;;  %v6758_v21 = vpop.f32.mrf.mxu0 }
 0x593   :  { %v10140_v23 = vpop.f32.mrf.mxu1 }
 0x594   :  { %16493 = vst [vmem:[#allocation50_spill] sm:$0xff] %v14418_v12  ;;  %v7339_v36 = vadd.f32 %v7338_v49, %v14418_v12  ;;  %v14437_v58 = vadd.f32 %v10140_v23, %v6828_v59  ;;  %v16506_v23 = vld [vmem:[#allocation142_spill] sm:$0xff] }
 0x595   :  { %v7192_v27 = vpop.f32.mrf.mxu1  ;;  %v6832_v59 = vadd.f32 %v10064_v25, %v16506_v23 }
 0x596   :  { %v7340_v17 = vadd.f32 %v7339_v36, %v14421_v11  ;;  %v14429_v44 = vadd.f32 %v7192_v27, %v6826_v45  ;;  %16502 = vst [vmem:[#allocation53_spill] sm:$0xff] %v14437_v58  ;;  %v16503_v45 = vld [vmem:[#allocation143_spill] sm:$0xff]  ;;  %v16507_v11 = vld [vmem:[#allocation105_spill] sm:$0xff] }
 0x597   :  { %v10141_v20 = vpop.f32.mrf.mxu1  ;;  %v6830_v18 = vadd.f32 %v6755_v6, %v16503_v45  ;;  %v6833_v6 = vadd.f32 %v10065_v61, %v16507_v11 }
 0x598   :  { %16498 = vst [vmem:[#allocation72_spill] sm:$0xff] %v14429_v44  ;;  %v7341_v5 = vadd.f32 %v7340_v17, %v14425_v63  ;;  %v14441_v17 = vadd.f32 %v10141_v20, %v6829_v43 }
 0x599   :  { %v7195_v40 = vpop.f32.mrf.mxu1 }
 0x59a   :  { %v7342_v49 = vadd.f32 %v7341_v5, %v14429_v44  ;;  %v14434_v12 = vadd.f32 %v7195_v40, %v6827_v1  ;;  %16504 = vst [vmem:[#allocation18_spill] sm:$0xff] %v14441_v17  ;;  %v6831_v5 = vadd.f32 %v6758_v21, %v16505_v53 }
 0x59b   :  { %v10144_v56 = vpop.f32.mrf.mxu1 }
 0x59c   :  { %16500 = vst [vmem:[#allocation83_spill] sm:$0xff] %v14434_v12  ;;  %v7343_v36 = vadd.f32 %v7342_v49, %v14434_v12  ;;  %v14453_v20 = vadd.f32 %v10144_v56, %v6832_v59 }
 0x59d   :  { %v7208_v27 = vpop.f32.mrf.mxu1 }
 0x59e   :  { %v7344_v63 = vadd.f32 %v7343_v36, %v14437_v58  ;;  %v14445_v1 = vadd.f32 %v7208_v27, %v6830_v18 }
 0x59f   :  { %v10145_v3 = vpop.f32.mrf.mxu1 }
 0x5a0   :  { %v7345_v40 = vadd.f32 %v7344_v63, %v14441_v17  ;;  %v14456_v36 = vadd.f32 %v10145_v3, %v6833_v6 }
 0x5a1   :  { %v7211_v35 = vpop.f32.mrf.mxu1 }
 0x5a2   :  { %v7346_v49 = vadd.f32 %v7345_v40, %v14445_v1  ;;  %v14450_v37 = vadd.f32 %v7211_v35, %v6831_v5 }
 0x5a4   :  { %v7347_v43 = vadd.f32 %v7346_v49, %v14450_v37 }
 0x5a6   :  { %v7348_v21 = vadd.f32 %v7347_v43, %v14453_v20 }
 0x5a8   :  { %v7349_v27 = vadd.f32 %v7348_v21, %v14456_v36 }
 0x5aa   :  { %v7350_v63 = vrot.slane %v7349_v27, 4 }
 0x5ac   :  { %v7351_v45 = vadd.f32 %v7350_v63, %v7349_v27 }
 0x5ae   :  { %v7352_v18 = vrot.slane %v7351_v45, 2 }
 0x5b0   :  { %v7353_v25 = vadd.f32 %v7352_v18, %v7351_v45 }
 0x5b2   :  { %v7354_v53 = vrot.slane %v7353_v25, 1 }
 0x5b4   :  { %v7355_v40 = vadd.f32 %v7354_v53, %v7353_v25 }
 0x5b6   :  { %v14460_v5 = vmul.f32 0.001953125, %v7355_v40 }
 0x5b8   :  { %v7357_v11 = vsub.f32 %v14124_v32, %v14460_v5  ;;  %v7358_v61 = vsub.f32 %v14126_v54, %v14460_v5  ;;  %v7359_v56 = vsub.f32 %v14130_v31, %v14460_v5  ;;  %v7360_v3 = vsub.f32 %v14138_v47, %v14460_v5 }
 0x5b9   :  { %v7361_v59 = vsub.f32 %v14143_v19, %v14460_v5  ;;  %v7387_v43 = vsub.f32 %v14167_v30, %v14460_v5  ;;  %v7388_v21 = vsub.f32 %v14175_v2, %v14460_v5  ;;  %v7389_v27 = vsub.f32 %v14179_v7, %v14460_v5 }
 0x5ba   :  { %v7365_v35 = vmul.f32 %v7357_v11, %v7357_v11  ;;  %v7366_v23 = vmul.f32 %v7358_v61, %v7358_v61  ;;  %v7367_v49 = vmul.f32 %v7359_v56, %v7359_v56  ;;  %v7362_v63 = vsub.f32 %v14151_v22, %v14460_v5  ;;  %v16508_v11 = vld [vmem:[#allocation128_spill] sm:$0xff]  ;;  %v16509_v56 = vld [vmem:[#allocation131_spill] sm:$0xff] }
 0x5bb   :  { %v7368_v45 = vmul.f32 %v7360_v3, %v7360_v3  ;;  %v7390_v25 = vsub.f32 %v14186_v13, %v14460_v5  ;;  %v7395_v53 = vmul.f32 %v7387_v43, %v7387_v43  ;;  %v7396_v40 = vmul.f32 %v7388_v21, %v7388_v21 }
 0x5bc   :  { %v7373_v6 = vadd.f32 %v7366_v23, %v7365_v35  ;;  %v7363_v61 = vsub.f32 %v16508_v11, %v14460_v5  ;;  %v7364_v35 = vsub.f32 %v16509_v56, %v14460_v5  ;;  %v7369_v23 = vmul.f32 %v7361_v59, %v7361_v59 }
 0x5bd   :  { %v7391_v7 = vsub.f32 %v14191_v57, %v14460_v5  ;;  %v7397_v30 = vmul.f32 %v7389_v27, %v7389_v27  ;;  %v7403_v22 = vadd.f32 %v7396_v40, %v7395_v53  ;;  %v7392_v3 = vsub.f32 %v14199_v26, %v14460_v5  ;;  %v16510_v27 = vld [vmem:[#allocation148_spill] sm:$0xff] }
 0x5be   :  { %v7374_v18 = vadd.f32 %v7373_v6, %v7367_v49  ;;  %v7417_v49 = vsub.f32 %v14215_v48, %v14460_v5  ;;  %v7418_v6 = vsub.f32 %v14223_v42, %v14460_v5  ;;  %v7419_v43 = vsub.f32 %v14227_v24, %v14460_v5 }
 0x5bf   :  { %v7370_v21 = vmul.f32 %v7362_v63, %v7362_v63  ;;  %v7371_v13 = vmul.f32 %v7363_v61, %v7363_v61  ;;  %v7393_v53 = vsub.f32 %v16510_v27, %v14460_v5  ;;  %v7399_v56 = vmul.f32 %v7391_v7, %v7391_v7 }
 0x5c0   :  { %v7375_v2 = vadd.f32 %v7374_v18, %v7368_v45  ;;  %v7398_v45 = vmul.f32 %v7390_v25, %v7390_v25  ;;  %v7404_v18 = vadd.f32 %v7403_v22, %v7397_v30  ;;  %v7425_v40 = vmul.f32 %v7417_v49, %v7417_v49 }
 0x5c1   :  { %v7426_v57 = vmul.f32 %v7418_v6, %v7418_v6  ;;  %v7420_v48 = vsub.f32 %v14234_v16, %v14460_v5  ;;  %v7372_v42 = vmul.f32 %v7364_v35, %v7364_v35  ;;  %v7400_v19 = vmul.f32 %v7392_v3, %v7392_v3  ;;  %v16512_v6 = vld [vmem:[#allocation150_spill] sm:$0xff]  ;;  %v16515_v16 = vld [vmem:[#allocation57_spill] sm:$0xff] }
 0x5c2   :  { %v7376_v59 = vadd.f32 %v7375_v2, %v7369_v23  ;;  %v7405_v11 = vadd.f32 %v7404_v18, %v7398_v45  ;;  %v7421_v63 = vsub.f32 %v14239_v14, %v14460_v5  ;;  %v7427_v2 = vmul.f32 %v7419_v43, %v7419_v43  ;;  %v16511_v23 = vld [vmem:[#allocation155_spill] sm:$0xff] }
 0x5c3   :  { %v7433_v30 = vadd.f32 %v7426_v57, %v7425_v40  ;;  %v7447_v61 = vsub.f32 %v14263_v8, %v14460_v5  ;;  %v7394_v49 = vsub.f32 %v16511_v23, %v14460_v5  ;;  %v7401_v7 = vmul.f32 %v7393_v53, %v7393_v53 }
 0x5c4   :  { %v7377_v26 = vadd.f32 %v7376_v59, %v7370_v21  ;;  %v7406_v22 = vadd.f32 %v7405_v11, %v7399_v56  ;;  %v7422_v21 = vsub.f32 %v16512_v6, %v14460_v5  ;;  %v7448_v35 = vsub.f32 %v14271_v39, %v14460_v5 }
 0x5c5   :  { %v7428_v45 = vmul.f32 %v7420_v48, %v7420_v48  ;;  %v7434_v43 = vadd.f32 %v7433_v30, %v7427_v2  ;;  %v7455_v56 = vmul.f32 %v7447_v61, %v7447_v61  ;;  %v7429_v8 = vmul.f32 %v7421_v63, %v7421_v63 }
 0x5c6   :  { %v7378_v25 = vadd.f32 %v7377_v26, %v7371_v13  ;;  %v7407_v59 = vadd.f32 %v7406_v22, %v7400_v19  ;;  %v16513_v13 = vld [vmem:[#allocation160_spill] sm:$0xff]  ;;  %v16514_v26 = vld [vmem:[#allocation93_spill] sm:$0xff]  ;;  %v7456_v18 = vmul.f32 %v7448_v35, %v7448_v35  ;;  %v7402_v6 = vmul.f32 %v7394_v49, %v7394_v49 }
 0x5c7   :  { %v7423_v57 = vsub.f32 %v16513_v13, %v14460_v5  ;;  %v7449_v11 = vsub.f32 %v16514_v26, %v14460_v5  ;;  %v7435_v14 = vadd.f32 %v7434_v43, %v7428_v45  ;;  %v7450_v39 = vsub.f32 %v16515_v16, %v14460_v5  ;;  %v16516_v19 = vld [vmem:[#allocation149_spill] sm:$0xff] }
 0x5c8   :  { %v7379_v3 = vadd.f32 %v7378_v25, %v7372_v42  ;;  %v7408_v53 = vadd.f32 %v7407_v59, %v7401_v7  ;;  %v7424_v48 = vsub.f32 %v16516_v19, %v14460_v5  ;;  %v7430_v42 = vmul.f32 %v7422_v21, %v7422_v21 }
 0x5c9   :  { %v7436_v2 = vadd.f32 %v7435_v14, %v7429_v8  ;;  %v7451_v25 = vsub.f32 %v14287_v34, %v14460_v5  ;;  %v7457_v22 = vmul.f32 %v7449_v11, %v7449_v11  ;;  %v7463_v30 = vadd.f32 %v7456_v18, %v7455_v56  ;;  %v16517_v11 = vld [vmem:[#allocation140_spill] sm:$0xff]  ;;  %v16518_v18 = vld [vmem:[#allocation37_spill] sm:$0xff] }
 0x5ca   :  { %v7380_v40 = vrot.slane %v7379_v3, 4  ;;  %v7477_v61 = vsub.f32 %v14311_v46, %v14460_v5  ;;  %v7478_v63 = vsub.f32 %v14319_v15, %v14460_v5  ;;  %v7409_v7 = vadd.f32 %v7408_v53, %v7402_v6 }
 0x5cb   :  { %v7431_v35 = vmul.f32 %v7423_v57, %v7423_v57  ;;  %v7437_v59 = vadd.f32 %v7436_v2, %v7430_v42  ;;  %v7452_v45 = vsub.f32 %v14295_v50, %v14460_v5  ;;  %v7458_v21 = vmul.f32 %v7450_v39, %v7450_v39 }
 0x5cc   :  { %v7381_v49 = vadd.f32 %v7380_v40, %v7379_v3  ;;  %v7464_v14 = vadd.f32 %v7463_v30, %v7457_v22  ;;  %v7432_v8 = vmul.f32 %v7424_v48, %v7424_v48  ;;  %v7453_v56 = vsub.f32 %v16517_v11, %v14460_v5  ;;  %v16519_v40 = vld [vmem:[#allocation58_spill] sm:$0xff] }
 0x5cd   :  { %v7438_v43 = vadd.f32 %v7437_v59, %v7431_v35  ;;  %v7479_v46 = vsub.f32 %v16518_v18, %v14460_v5  ;;  %v7459_v34 = vmul.f32 %v7451_v25, %v7451_v25  ;;  %v7485_v15 = vmul.f32 %v7477_v61, %v7477_v61  ;;  %v16520_v48 = vld [vmem:[#allocation162_spill] sm:$0xff] }
 0x5ce   :  { %v7465_v16 = vadd.f32 %v7464_v14, %v7458_v21  ;;  %v7486_v3 = vmul.f32 %v7478_v63, %v7478_v63  ;;  %v7382_v6 = vrot.slane %v7381_v49, 2  ;;  %v7410_v57 = vrot.slane %v7409_v7, 4 }
 0x5cf   :  { %v7454_v53 = vsub.f32 %v16519_v40, %v14460_v5  ;;  %v7439_v42 = vadd.f32 %v7438_v43, %v7432_v8  ;;  %v7460_v39 = vmul.f32 %v7452_v45, %v7452_v45  ;;  %v7480_v22 = vsub.f32 %v16520_v48, %v14460_v5 }
 0x5d0   :  { %v7466_v2 = vadd.f32 %v7465_v16, %v7459_v34  ;;  %v7461_v30 = vmul.f32 %v7453_v56, %v7453_v56  ;;  %v7481_v35 = vsub.f32 %v14333_v10, %v14460_v5  ;;  %v7487_v59 = vmul.f32 %v7479_v46, %v7479_v46  ;;  %v16521_v16 = vld [vmem:[#allocation38_spill] sm:$0xff] }
 0x5d1   :  { %v7493_v21 = vadd.f32 %v7486_v3, %v7485_v15  ;;  %v7507_v61 = vsub.f32 %v14355_v28, %v14460_v5  ;;  %v7508_v63 = vsub.f32 %v14361_v29, %v14460_v5  ;;  %v7383_v14 = vadd.f32 %v7382_v6, %v7381_v49  ;;  %v16522_v6 = vld [vmem:[#allocation15_spill] sm:$0xff] }
 0x5d2   :  { %v7467_v25 = vadd.f32 %v7466_v2, %v7460_v39  ;;  %v7411_v8 = vadd.f32 %v7410_v57, %v7409_v7  ;;  %v7462_v45 = vmul.f32 %v7454_v53, %v7454_v53  ;;  %v7482_v34 = vsub.f32 %v16521_v16, %v14460_v5 }
 0x5d3   :  { %v7440_v43 = vrot.slane %v7439_v42, 4  ;;  %v7488_v48 = vmul.f32 %v7480_v22, %v7480_v22  ;;  %v7494_v18 = vadd.f32 %v7493_v21, %v7487_v59  ;;  %v7483_v46 = vsub.f32 %v14345_v9, %v14460_v5 }
 0x5d4   :  { %v7468_v56 = vadd.f32 %v7467_v25, %v7461_v30  ;;  %v7489_v15 = vmul.f32 %v7481_v35, %v7481_v35  ;;  %v7509_v3 = vsub.f32 %v14365_v62, %v14460_v5  ;;  %v7515_v29 = vmul.f32 %v7507_v61, %v7507_v61 }
 0x5d5   :  { %v7495_v2 = vadd.f32 %v7494_v18, %v7488_v48  ;;  %v7516_v49 = vmul.f32 %v7508_v63, %v7508_v63  ;;  %v7412_v7 = vrot.slane %v7411_v8, 2  ;;  %v7484_v57 = vsub.f32 %v16522_v6, %v14460_v5 }
 0x5d6   :  { %v7469_v39 = vadd.f32 %v7468_v56, %v7462_v45  ;;  %v7510_v53 = vsub.f32 %v14370_v41, %v14460_v5  ;;  %v7384_v22 = vrot.slane %v7383_v14, 1  ;;  %v7441_v30 = vadd.f32 %v7440_v43, %v7439_v42  ;;  %v16523_v41 = vld [vmem:[#allocation46_spill] sm:$0xff] }
 0x5d7   :  { %v7490_v59 = vmul.f32 %v7482_v34, %v7482_v34  ;;  %v7496_v25 = vadd.f32 %v7495_v2, %v7489_v15  ;;  %v7491_v21 = vmul.f32 %v7483_v46, %v7483_v46  ;;  %v7511_v35 = vsub.f32 %v14375_v52, %v14460_v5 }
 0x5d8   :  { %v7517_v62 = vmul.f32 %v7509_v3, %v7509_v3  ;;  %v7523_v45 = vadd.f32 %v7516_v49, %v7515_v29  ;;  %v7470_v18 = vrot.slane %v7469_v39, 4  ;;  %v7537_v61 = vsub.f32 %v14394_v0, %v14460_v5 }
 0x5d9   :  { %v7497_v48 = vadd.f32 %v7496_v25, %v7490_v59  ;;  %v7538_v63 = vsub.f32 %v14400_v60, %v14460_v5  ;;  %v7413_v56 = vadd.f32 %v7412_v7, %v7411_v8  ;;  %v7512_v42 = vsub.f32 %v16523_v41, %v14460_v5 }
 0x5da   :  { %v7518_v34 = vmul.f32 %v7510_v53, %v7510_v53  ;;  %v7524_v43 = vadd.f32 %v7523_v45, %v7517_v62  ;;  %v7442_v46 = vrot.slane %v7441_v30, 2  ;;  %v7492_v15 = vmul.f32 %v7484_v57, %v7484_v57 }
 0x5db   :  { %v7498_v2 = vadd.f32 %v7497_v48, %v7491_v21  ;;  %v7513_v29 = vsub.f32 %v14385_v51, %v14460_v5  ;;  %v7514_v3 = vsub.f32 %v14390_v38, %v14460_v5  ;;  %v7519_v49 = vmul.f32 %v7511_v35, %v7511_v35 }
 0x5dc   :  { %v7525_v59 = vadd.f32 %v7524_v43, %v7518_v34  ;;  %v7539_v25 = vsub.f32 %v14404_v4, %v14460_v5  ;;  %v7471_v8 = vadd.f32 %v7470_v18, %v7469_v39  ;;  %v7545_v60 = vmul.f32 %v7537_v61, %v7537_v61 }
 0x5dd   :  { %v7499_v7 = vadd.f32 %v7498_v2, %v7492_v15  ;;  %v7546_v0 = vmul.f32 %v7538_v63, %v7538_v63  ;;  %v7385_v53 = vadd.f32 %v7384_v22, %v7383_v14  ;;  %v7520_v62 = vmul.f32 %v7512_v42, %v7512_v42  ;;  %v16524_v42 = vld [vmem:[#allocation50_spill] sm:$0xff] }
 0x5de   :  { %v7526_v45 = vadd.f32 %v7525_v59, %v7519_v49  ;;  %v7540_v57 = vsub.f32 %v14408_v55, %v14460_v5  ;;  %v7414_v21 = vrot.slane %v7413_v56, 1  ;;  %v7521_v51 = vmul.f32 %v7513_v29, %v7513_v29 }
 0x5df   :  { %v7500_v48 = vrot.slane %v7499_v7, 4  ;;  %v7541_v35 = vsub.f32 %v14412_v33, %v14460_v5  ;;  %v7547_v43 = vmul.f32 %v7539_v25, %v7539_v25  ;;  %v7553_v38 = vadd.f32 %v7546_v0, %v7545_v60  ;;  %v16525_v25 = vld [vmem:[#allocation62_spill] sm:$0xff] }
 0x5e0   :  { %v7527_v34 = vadd.f32 %v7526_v45, %v7520_v62  ;;  %v7567_v39 = vsub.f32 %v14429_v44, %v14460_v5  ;;  %v7443_v18 = vadd.f32 %v7442_v46, %v7441_v30  ;;  %v7472_v61 = vrot.slane %v7471_v8, 2 }
 0x5e1   :  { %v7522_v14 = vmul.f32 %v7514_v3, %v7514_v3  ;;  %v7568_v22 = vsub.f32 %v14434_v12, %v14460_v5  ;;  %v7542_v15 = vsub.f32 %v16524_v42, %v14460_v5  ;;  %v7548_v2 = vmul.f32 %v7540_v57, %v7540_v57 }
 0x5e2   :  { %v7528_v63 = vadd.f32 %v7527_v34, %v7521_v51  ;;  %v7554_v29 = vadd.f32 %v7553_v38, %v7547_v43  ;;  %v7415_v49 = vadd.f32 %v7414_v21, %v7413_v56  ;;  %v7501_v59 = vadd.f32 %v7500_v48, %v7499_v7  ;;  %v16526_v51 = vld [vmem:[#allocation28_spill] sm:$0xff] }
 0x5e3   :  { %v7543_v60 = vsub.f32 %v16525_v25, %v14460_v5  ;;  %v7569_v0 = vsub.f32 %v14437_v58, %v14460_v5  ;;  %v7549_v46 = vmul.f32 %v7541_v35, %v7541_v35  ;;  %v7575_v62 = vmul.f32 %v7567_v39, %v7567_v39 }
 0x5e4   :  { %v7529_v30 = vadd.f32 %v7528_v63, %v7522_v14  ;;  %v7555_v3 = vadd.f32 %v7554_v29, %v7548_v2  ;;  %v7444_v45 = vrot.slane %v7443_v18, 1  ;;  %v7544_v34 = vsub.f32 %v16526_v51, %v14460_v5 }
 0x5e5   :  { %v7570_v57 = vsub.f32 %v14441_v17, %v14460_v5  ;;  %v7576_v38 = vmul.f32 %v7568_v22, %v7568_v22  ;;  %v7473_v56 = vadd.f32 %v7472_v61, %v7471_v8  ;;  %v7550_v21 = vmul.f32 %v7542_v15, %v7542_v15 }
 0x5e6   :  { %v7530_v7 = vrot.slane %v7529_v30, 4  ;;  %v7556_v48 = vadd.f32 %v7555_v3, %v7549_v46  ;;  %v7502_v43 = vrot.slane %v7501_v59, 2  ;;  %v7571_v58 = vsub.f32 %v14445_v1, %v14460_v5 }
 0x5e7   :  { %v7577_v14 = vmul.f32 %v7569_v0, %v7569_v0  ;;  %v7583_v35 = vadd.f32 %v7576_v38, %v7575_v62  ;;  %v7416_v63 = vadd.f32 %v7415_v49, %v7385_v53  ;;  %v7551_v2 = vmul.f32 %v7543_v60, %v7543_v60 }
 0x5e8   :  { %v7531_v39 = vadd.f32 %v7530_v7, %v7529_v30  ;;  %v7557_v29 = vadd.f32 %v7556_v48, %v7550_v21  ;;  %v7445_v12 = vadd.f32 %v7444_v45, %v7443_v18  ;;  %v7572_v44 = vsub.f32 %v14450_v37, %v14460_v5 }
 0x5e9   :  { %v7578_v17 = vmul.f32 %v7570_v57, %v7570_v57  ;;  %v7584_v22 = vadd.f32 %v7583_v35, %v7577_v14  ;;  %v7474_v8 = vrot.slane %v7473_v56, 1  ;;  %v7552_v61 = vmul.f32 %v7544_v34, %v7544_v34 }
 0x5ea   :  { %v7558_v15 = vadd.f32 %v7557_v29, %v7551_v2  ;;  %v7573_v46 = vsub.f32 %v14453_v20, %v14460_v5  ;;  %v7503_v3 = vadd.f32 %v7502_v43, %v7501_v59  ;;  %v7532_v51 = vrot.slane %v7531_v39, 2 }
 0x5eb   :  { %v7579_v0 = vmul.f32 %v7571_v58, %v7571_v58  ;;  %v7585_v62 = vadd.f32 %v7584_v22, %v7578_v17  ;;  %v7446_v49 = vadd.f32 %v7445_v12, %v7416_v63  ;;  %v7574_v18 = vsub.f32 %v14456_v36, %v14460_v5 }
 0x5ec   :  { %v7559_v53 = vadd.f32 %v7558_v15, %v7552_v61  ;;  %v7580_v60 = vmul.f32 %v7572_v44, %v7572_v44  ;;  %v7475_v45 = vadd.f32 %v7474_v8, %v7473_v56  ;;  %v7504_v38 = vrot.slane %v7503_v3, 1 }
 0x5ed   :  { %v7586_v30 = vadd.f32 %v7585_v62, %v7579_v0  ;;  %v7533_v7 = vadd.f32 %v7532_v51, %v7531_v39  ;;  %v7581_v34 = vmul.f32 %v7573_v46, %v7573_v46  ;;  %v7582_v35 = vmul.f32 %v7574_v18, %v7574_v18 }
 0x5ee   :  { %v7560_v57 = vrot.slane %v7559_v53, 4  ;;  %v7476_v14 = vadd.f32 %v7475_v45, %v7446_v49  ;;  %v7505_v58 = vadd.f32 %v7504_v38, %v7503_v3  ;;  %v7598_v3 = vld [vmem:[%s15085_s5] sm:$0x1]  ;;  %s10398_s5 = smov [#allocation9]  }
 0x5ef   :  { %v7587_v21 = vadd.f32 %v7586_v30, %v7580_v60  ;;  %v7534_v17 = vrot.slane %v7533_v7, 1  ;;  %v7602_v30 = vld [vmem:[%s15086_s6] sm:$0x1]  ;;  %s8134_s6 = sshll.u32 %s10398_s5, 4  ;;  %s8135_s6 = int_to_ptr.vmem [resolvable:$true] %s8134_s6 }
 0x5f0   :  { %v7561_v48 = vadd.f32 %v7560_v57, %v7559_v53  ;;  %v7506_v63 = vadd.f32 %v7505_v58, %v7476_v14  ;;  %v16527_v57 = vld [vmem:[#allocation56_spill] sm:$0xff]  ;;  %s10366_s21 = scalar_lea.vmem %s8135_s6, 4096  ;;  %p10371_p2 = scmp.lt.s32.totalorder %s8135_s6, %s8135_s6 }
 0x5f1   :  { %v7588_v59 = vadd.f32 %v7587_v21, %v7581_v34  ;;  %v7535_v22 = vadd.f32 %v7534_v17, %v7533_v7  ;;  %p10367_p1 = scmp.ne.s32.totalorder %s8135_s6, %s10366_s21  ;;  %p10372_p3 = scmp.lt.s32.totalorder %s10366_s21, %s10366_s21 }
 0x5f2   :  { %v7562_v43 = vrot.slane %v7561_v48, 2 }
 0x5f3   :  { %v7589_v2 = vadd.f32 %v7588_v59, %v7582_v35  ;;  %v7536_v56 = vadd.f32 %v7535_v22, %v7506_v63  ;;  %p10373_p4 = por %p10372_p3, %p10371_p2 }
 0x5f4   :  { %v7563_v12 = vadd.f32 %v7562_v43, %v7561_v48 }
 0x5f5   :  { %v7590_v29 = vrot.slane %v7589_v2, 4  ;;  %p10374_p5 = pnand %p10373_p4, %p10367_p1 }
 0x5f6   :  { %v7564_v44 = vrot.slane %v7563_v12, 1 }
 0x5f7   :  { %v7591_v61 = vadd.f32 %v7590_v29, %v7589_v2  ;;  %v16534_v29 = vld [vmem:[#allocation137_spill] sm:$0xff] }
 0x5f8   :  { %v7565_v15 = vadd.f32 %v7564_v44, %v7563_v12  ;;  %v16533_v12 = vld [vmem:[#allocation134_spill] sm:$0xff]  ;;  %v16535_v44 = vld [vmem:[#allocation145_spill] sm:$0xff] }
 0x5f9   :  { %v7592_v8 = vrot.slane %v7591_v61, 2 }
 0x5fa   :  { %v7566_v39 = vadd.f32 %v7565_v15, %v7536_v56  ;;  %v16536_v15 = vld [vmem:[#allocation136_spill] sm:$0xff] }
 0x5fb   :  { %v7593_v51 = vadd.f32 %v7592_v8, %v7591_v61 }
 0x5fd   :  { %v7594_v46 = vrot.slane %v7593_v51, 1 }
 0x5ff   :  { %v7595_v0 = vadd.f32 %v7594_v46, %v7593_v51 }
 0x601   :  { %v7596_v62 = vadd.f32 %v7595_v0, %v7566_v39  ;;  %v16537_v39 = vld [vmem:[#allocation146_spill] sm:$0xff] }
 0x603   :  { %v7597_v53 = vmul.f32 0.001953125, %v7596_v62 }
 0x605   :  { %v7599_v49 = vadd.f32 1e-05, %v7597_v53  ;;  %v16538_v53 = vld [vmem:[#allocation139_spill] sm:$0xff] }
 0x607   :  { %10303 = vrsqrt.f32 %v7599_v49 }
 0x614   :  { %v10304_v18 = vpop.eup %10303 }
 0x615   :  { %v7601_v60 = vmul.f32 %v10304_v18, %v7598_v3  ;;  %v16539_v3 = vld [vmem:[#allocation127_spill] sm:$0xff] }
 0x617   :  { %v7603_v45 = vmul.f32 %v7601_v60, %v14460_v5  ;;  %v14598_v38 = vrot.slane %v7601_v60, %v16527_v57 }
 0x619   :  { %v7604_v7 = vsub.f32 %v7602_v30, %v7603_v45  ;;  %v7671_v34 = vmul.f32 %v14598_v38, %v14445_v1  ;;  %v7672_v21 = vmul.f32 %v14598_v38, %v14450_v37  ;;  %v14606_v48 = vmul.f32 %v14598_v38, %v14124_v32  ;;  %v16528_v1 = vld [vmem:[#allocation117_spill] sm:$0xff]  ;;  %v16529_v32 = vld [vmem:[#allocation122_spill] sm:$0xff] }
 0x61a   :  { %v14610_v14 = vmul.f32 %v14598_v38, %v14126_v54  ;;  %v14614_v5 = vmul.f32 %v14598_v38, %v14130_v31  ;;  %v14618_v35 = vmul.f32 %v14598_v38, %v14138_v47  ;;  %v14622_v59 = vmul.f32 %v14598_v38, %v16528_v1  ;;  %v16530_v54 = vld [vmem:[#allocation128_spill] sm:$0xff]  ;;  %v16531_v31 = vld [vmem:[#allocation131_spill] sm:$0xff]  ;;  %v16532_v47 = vld [vmem:[#allocation138_spill] sm:$0xff] }
 0x61b   :  { %v14625_v37 = vrot.slane %v7604_v7, %v16527_v57  ;;  %v14629_v43 = vmul.f32 %v14598_v38, %v16529_v32  ;;  %v14633_v58 = vmul.f32 %v14598_v38, %v16530_v54  ;;  %v14637_v17 = vmul.f32 %v14598_v38, %v16531_v31  ;;  %v16543_v54 = vld [vmem:[#allocation153_spill] sm:$0xff] }
 0x61c   :  { %v14641_v2 = vmul.f32 %v14598_v38, %v16532_v47  ;;  %v14645_v63 = vmul.f32 %v14598_v38, %v16533_v12  ;;  %v14649_v22 = vmul.f32 %v14598_v38, %v16534_v29  ;;  %v14653_v61 = vmul.f32 %v14598_v38, %v16535_v44  ;;  %v16545_v47 = vld [vmem:[#allocation54_spill] sm:$0xff]  ;;  %v16548_v44 = vld [vmem:[#allocation57_spill] sm:$0xff] }
 0x61d   :  { %v7741_v56 = vadd.f32 %v14625_v37, %v7671_v34  ;;  %v7742_v8 = vadd.f32 %v14625_v37, %v7672_v21  ;;  %v14659_v51 = vmul.f32 %v14598_v38, %v16536_v15  ;;  %v14663_v46 = vmul.f32 %v14598_v38, %v16537_v39  ;;  %v16542_v34 = vld [vmem:[#allocation150_spill] sm:$0xff]  ;;  %v16554_v39 = vld [vmem:[#allocation152_spill] sm:$0xff] }
 0x61e   :  { %v14667_v0 = vmul.f32 %v14598_v38, %v16510_v27  ;;  %v14671_v62 = vmul.f32 %v14598_v38, %v16511_v23  ;;  %v14675_v49 = vmul.f32 %v14598_v38, %v16538_v53  ;;  %v14679_v18 = vmul.f32 %v14598_v38, %v16539_v3  ;;  %v16540_v27 = vld [vmem:[#allocation141_spill] sm:$0xff] }
 0x61f   :  { %v7805_v60 = vmax.f32 %v7741_v56, 0.0  ;;  %v7806_v30 = vmax.f32 %v7742_v8, 0.0  ;;  %v14683_v45 = vmul.f32 %v14598_v38, %v14227_v24  ;;  %v14687_v57 = vmul.f32 %v14598_v38, %v16540_v27  ;;  %v16541_v23 = vld [vmem:[#allocation157_spill] sm:$0xff]  ;;  %v16550_v56 = vld [vmem:[#allocation151_spill] sm:$0xff] }
 0x620   :  { %v14691_v7 = vmul.f32 %v14598_v38, %v16541_v23  ;;  %v14695_v21 = vmul.f32 %v14598_v38, %v16542_v34  ;;  %v14699_v1 = vmul.f32 %v14598_v38, %v16513_v13  ;;  %v14703_v24 = vmul.f32 %v14598_v38, %v16516_v19  ;;  %v16555_v3 = vld [vmem:[#allocation161_spill] sm:$0xff]  ;;  %v16557_v23 = vld [vmem:[#allocation162_spill] sm:$0xff] }
 0x621   :  { %v8892_v32 = vpack.c.bf16 %v7806_v30, %v7805_v60  ;;  %v14707_v31 = vmul.f32 %v14598_v38, %v16543_v54  ;;  %v14711_v12 = vmul.f32 %v14598_v38, %v16545_v47  ;;  %v14715_v29 = vmul.f32 %v14598_v38, %v16514_v26  ;;  %v16556_v30 = vld [vmem:[#allocation37_spill] sm:$0xff]  ;;  %v16558_v47 = vld [vmem:[#allocation40_spill] sm:$0xff] }
 0x622   :  { %v14719_v13 = vmul.f32 %v14598_v38, %v16548_v44  ;;  %v14723_v19 = vmul.f32 %v14598_v38, %v16550_v56  ;;  %v14727_v8 = vmul.f32 %v14598_v38, %v14295_v50  ;;  %v14731_v15 = vmul.f32 %v14598_v38, %v16517_v11  ;;  %v16559_v56 = vld [vmem:[#allocation43_spill] sm:$0xff] }
 0x623   :  { %16544 = vst [vmem:[#allocation61_spill] sm:$0xff] %v14707_v31  ;;  %16546 = vst [vmem:[#allocation21_spill] sm:$0xff] %v14711_v12  ;;  %v7642_v26 = vmul.f32 %v14598_v38, %v16519_v40  ;;  %v7643_v53 = vmul.f32 %v14598_v38, %v16554_v39  ;;  %v7644_v60 = vmul.f32 %v14598_v38, %v16555_v3  ;;  %v16560_v3 = vld [vmem:[#allocation19_spill] sm:$0xff]  ;;  %v16568_v12 = vld [vmem:[#allocation53_spill] sm:$0xff] }
 0x624   :  { %16547 = vst [vmem:[#allocation32_spill] sm:$0xff] %v14715_v29  ;;  %16549 = vst [vmem:[#allocation96_spill] sm:$0xff] %v14719_v13  ;;  %v7645_v27 = vmul.f32 %v14598_v38, %v16556_v30  ;;  %v7646_v50 = vmul.f32 %v14598_v38, %v16557_v23  ;;  %v7647_v11 = vmul.f32 %v14598_v38, %v14333_v10  ;;  %v16561_v30 = vld [vmem:[#allocation25_spill] sm:$0xff]  ;;  %v16562_v23 = vld [vmem:[#allocation51_spill] sm:$0xff] }
 0x625   :  { %16551 = vst [vmem:[#allocation103_spill] sm:$0xff] %v14723_v19  ;;  %16552 = vst [vmem:[#allocation14_spill] sm:$0xff] %v14727_v8  ;;  %v7648_v34 = vmul.f32 %v14598_v38, %v16521_v16  ;;  %v7649_v40 = vmul.f32 %v14598_v38, %v14345_v9  ;;  %v7651_v54 = vmul.f32 %v14598_v38, %v14355_v28  ;;  %v16564_v8 = vld [vmem:[#allocation29_spill] sm:$0xff]  ;;  %v16565_v19 = vld [vmem:[#allocation28_spill] sm:$0xff] }
 0x626   :  { %16553 = vst [vmem:[#allocation108_spill] sm:$0xff] %v14731_v15  ;;  %8944 = vst [vmem:[#allocation9 + $0xf0] sm:$0xff] %v8892_v32   ;;  %v7650_v32 = vmul.f32 %v14598_v38, %v16522_v6  ;;  %v7652_v44 = vmul.f32 %v14598_v38, %v16558_v47  ;;  %v7653_v39 = vmul.f32 %v14598_v38, %v16559_v56  ;;  %v16563_v15 = vld [vmem:[#allocation13_spill] sm:$0xff]  ;;  %v16566_v13 = vld [vmem:[#allocation72_spill] sm:$0xff] }
 0x627   :  { %v7654_v10 = vmul.f32 %v14598_v38, %v16560_v3  ;;  %v7655_v16 = vmul.f32 %v14598_v38, %v14375_v52  ;;  %v7656_v9 = vmul.f32 %v14598_v38, %v16523_v41  ;;  %v7657_v6 = vmul.f32 %v14598_v38, %v16561_v30  ;;  %v16567_v29 = vld [vmem:[#allocation83_spill] sm:$0xff]  ;;  %v16569_v31 = vld [vmem:[#allocation18_spill] sm:$0xff] }
 0x628   :  { %v7658_v28 = vmul.f32 %v14598_v38, %v16562_v23  ;;  %v7659_v47 = vmul.f32 %v14598_v38, %v16563_v15  ;;  %v7660_v56 = vmul.f32 %v14598_v38, %v16564_v8  ;;  %v7661_v3 = vmul.f32 %v14598_v38, %v14404_v4 }
 0x629   :  { %v7662_v52 = vmul.f32 %v14598_v38, %v14408_v55  ;;  %v7663_v41 = vmul.f32 %v14598_v38, %v14412_v33  ;;  %v7664_v30 = vmul.f32 %v14598_v38, %v16524_v42  ;;  %v7665_v23 = vmul.f32 %v14598_v38, %v16525_v25 }
 0x62a   :  { %v7666_v15 = vmul.f32 %v14598_v38, %v16565_v19  ;;  %v7667_v8 = vmul.f32 %v14598_v38, %v16566_v13  ;;  %v7668_v4 = vmul.f32 %v14598_v38, %v16567_v29  ;;  %v7669_v55 = vmul.f32 %v14598_v38, %v16568_v12 }
 0x62b   :  { %v7670_v33 = vmul.f32 %v14598_v38, %v16569_v31  ;;  %v7673_v42 = vmul.f32 %v14598_v38, %v14453_v20  ;;  %v7674_v25 = vmul.f32 %v14598_v38, %v14456_v36  ;;  %v14797_v19 = vadd.f32 %v14625_v37, %v14606_v48  ;;  %v16577_v29 = vld [vmem:[#allocation32_spill] sm:$0xff] }
 0x62c   :  { %v14801_v13 = vadd.f32 %v14625_v37, %v14610_v14  ;;  %v14805_v12 = vadd.f32 %v14625_v37, %v14614_v5  ;;  %v14809_v31 = vadd.f32 %v14625_v37, %v14618_v35  ;;  %v14813_v20 = vadd.f32 %v14625_v37, %v14622_v59 }
 0x62d   :  { %v14817_v36 = vadd.f32 %v14625_v37, %v14629_v43  ;;  %v14821_v38 = vadd.f32 %v14625_v37, %v14633_v58  ;;  %v14825_v48 = vadd.f32 %v14625_v37, %v14637_v17  ;;  %v14829_v14 = vadd.f32 %v14625_v37, %v14641_v2 }
 0x62e   :  { %v14833_v5 = vadd.f32 %v14625_v37, %v14645_v63  ;;  %v14837_v35 = vadd.f32 %v14625_v37, %v14649_v22  ;;  %v14841_v59 = vadd.f32 %v14625_v37, %v14653_v61  ;;  %v14845_v43 = vadd.f32 %v14625_v37, %v14659_v51 }
 0x62f   :  { %v14849_v58 = vadd.f32 %v14625_v37, %v14663_v46  ;;  %v14853_v17 = vadd.f32 %v14625_v37, %v14667_v0  ;;  %v14857_v2 = vadd.f32 %v14625_v37, %v14671_v62  ;;  %v14861_v63 = vadd.f32 %v14625_v37, %v14675_v49 }
 0x630   :  { %v14865_v22 = vadd.f32 %v14625_v37, %v14679_v18  ;;  %v14869_v61 = vadd.f32 %v14625_v37, %v14683_v45  ;;  %v14873_v51 = vadd.f32 %v14625_v37, %v14687_v57  ;;  %v14877_v46 = vadd.f32 %v14625_v37, %v14691_v7  ;;  %v16573_v18 = vld [vmem:[#allocation61_spill] sm:$0xff] }
 0x631   :  { %v14881_v0 = vadd.f32 %v14625_v37, %v14695_v21  ;;  %v14885_v62 = vadd.f32 %v14625_v37, %v14699_v1  ;;  %v14889_v49 = vadd.f32 %v14625_v37, %v14703_v24  ;;  %v14893_v45 = vadd.f32 %v14625_v37, %v16573_v18  ;;  %v16575_v57 = vld [vmem:[#allocation21_spill] sm:$0xff] }
 0x632   :  { %v14897_v7 = vadd.f32 %v14625_v37, %v16575_v57  ;;  %v14901_v21 = vadd.f32 %v14625_v37, %v16577_v29  ;;  %v14923_v29 = vadd.f32 %v14625_v37, %v7643_v53  ;;  %v14944_v53 = vadd.f32 %v14625_v37, %v7650_v32 }
 0x633   :  { %16570 = vst [vmem:[#allocation24_spill] sm:$0xff] %v14881_v0  ;;  %16571 = vst [vmem:[#allocation113_spill] sm:$0xff] %v14885_v62  ;;  %v16578_v0 = vld [vmem:[#allocation96_spill] sm:$0xff]  ;;  %v16579_v62 = vld [vmem:[#allocation103_spill] sm:$0xff]  ;;  %v14965_v32 = vadd.f32 %v14625_v37, %v7657_v6  ;;  %v14986_v6 = vadd.f32 %v14625_v37, %v7664_v30  ;;  %v15007_v30 = vadd.f32 %v14625_v37, %v7673_v42  ;;  %v7752_v42 = vmax.f32 %v14825_v48, 0.0 }
 0x634   :  { %16572 = vst [vmem:[#allocation69_spill] sm:$0xff] %v14889_v49  ;;  %16574 = vst [vmem:[#allocation121_spill] sm:$0xff] %v14893_v45  ;;  %v14905_v1 = vadd.f32 %v14625_v37, %v16578_v0  ;;  %v14909_v24 = vadd.f32 %v14625_v37, %v16579_v62  ;;  %v16581_v49 = vld [vmem:[#allocation14_spill] sm:$0xff]  ;;  %v16582_v45 = vld [vmem:[#allocation108_spill] sm:$0xff]  ;;  %v14926_v0 = vadd.f32 %v14625_v37, %v7644_v60  ;;  %v7763_v48 = vmax.f32 %v14869_v61, 0.0 }
 0x635   :  { %16576 = vst [vmem:[#allocation27_spill] sm:$0xff] %v14897_v7  ;;  %v14913_v18 = vadd.f32 %v14625_v37, %v16581_v49  ;;  %v14917_v57 = vadd.f32 %v14625_v37, %v16582_v45  ;;  %v14920_v7 = vadd.f32 %v14625_v37, %v7642_v26  ;;  %v14929_v62 = vadd.f32 %v14625_v37, %v7645_v27 }
 0x636   :  { %16580 = vst [vmem:[#allocation84_spill] sm:$0xff] %v14909_v24  ;;  %v14932_v24 = vadd.f32 %v14625_v37, %v7646_v50  ;;  %v14935_v49 = vadd.f32 %v14625_v37, %v7647_v11  ;;  %v14938_v45 = vadd.f32 %v14625_v37, %v7648_v34  ;;  %v14941_v26 = vadd.f32 %v14625_v37, %v7649_v40 }
 0x637   :  { %v14947_v60 = vadd.f32 %v14625_v37, %v7651_v54  ;;  %v14950_v27 = vadd.f32 %v14625_v37, %v7652_v44  ;;  %v14953_v50 = vadd.f32 %v14625_v37, %v7653_v39  ;;  %v14956_v11 = vadd.f32 %v14625_v37, %v7654_v10  ;;  %16589 = vst [vmem:[#allocation22_spill] sm:$0xff] %v15007_v30 }
 0x638   :  { %v14959_v34 = vadd.f32 %v14625_v37, %v7655_v16  ;;  %v14962_v40 = vadd.f32 %v14625_v37, %v7656_v9  ;;  %v14968_v54 = vadd.f32 %v14625_v37, %v7658_v28  ;;  %v14971_v44 = vadd.f32 %v14625_v37, %v7659_v47 }
 0x639   :  { %v14974_v39 = vadd.f32 %v14625_v37, %v7660_v56  ;;  %v14977_v10 = vadd.f32 %v14625_v37, %v7661_v3  ;;  %v14980_v16 = vadd.f32 %v14625_v37, %v7662_v52  ;;  %v14983_v9 = vadd.f32 %v14625_v37, %v7663_v41 }
 0x63a   :  { %v14989_v28 = vadd.f32 %v14625_v37, %v7665_v23  ;;  %v14992_v47 = vadd.f32 %v14625_v37, %v7666_v15  ;;  %v14995_v56 = vadd.f32 %v14625_v37, %v7667_v8  ;;  %v14998_v3 = vadd.f32 %v14625_v37, %v7668_v4 }
 0x63b   :  { %v15001_v52 = vadd.f32 %v14625_v37, %v7669_v55  ;;  %v15004_v41 = vadd.f32 %v14625_v37, %v7670_v33  ;;  %v15010_v23 = vadd.f32 %v14625_v37, %v7674_v25  ;;  %v7745_v15 = vmax.f32 %v14797_v19, 0.0 }
 0x63c   :  { %16583 = vst [vmem:[#allocation159_spill] sm:$0xff] %v14989_v28  ;;  %16584 = vst [vmem:[#allocation39_spill] sm:$0xff] %v14992_v47  ;;  %v7746_v8 = vmax.f32 %v14801_v13, 0.0  ;;  %v7748_v4 = vmax.f32 %v14809_v31, 0.0  ;;  %v7749_v55 = vmax.f32 %v14813_v20, 0.0  ;;  %v7751_v33 = vmax.f32 %v14821_v38, 0.0 }
 0x63d   :  { %16585 = vst [vmem:[#allocation23_spill] sm:$0xff] %v14995_v56  ;;  %16586 = vst [vmem:[#allocation31_spill] sm:$0xff] %v14998_v3  ;;  %v7747_v56 = vmax.f32 %v14805_v12, 0.0  ;;  %v7753_v30 = vmax.f32 %v14829_v14, 0.0  ;;  %v7754_v37 = vmax.f32 %v14833_v5, 0.0  ;;  %v7755_v25 = vmax.f32 %v14837_v35, 0.0 }
 0x63e   :  { %16587 = vst [vmem:[#allocation35_spill] sm:$0xff] %v15001_v52  ;;  %16588 = vst [vmem:[#allocation70_spill] sm:$0xff] %v15004_v41  ;;  %v7750_v52 = vmax.f32 %v14817_v36, 0.0  ;;  %v7756_v19 = vmax.f32 %v14841_v59, 0.0  ;;  %v7757_v13 = vmax.f32 %v14845_v43, 0.0  ;;  %v7758_v12 = vmax.f32 %v14849_v58, 0.0 }
 0x63f   :  { %16590 = vst [vmem:[#allocation63_spill] sm:$0xff] %v15010_v23  ;;  %v7759_v31 = vmax.f32 %v14853_v17, 0.0  ;;  %v7760_v20 = vmax.f32 %v14857_v2, 0.0  ;;  %v7761_v36 = vmax.f32 %v14861_v63, 0.0  ;;  %v7762_v38 = vmax.f32 %v14865_v22, 0.0  ;;  %v16591_v35 = vld [vmem:[#allocation24_spill] sm:$0xff] }
 0x640   :  { %v7764_v14 = vmax.f32 %v14873_v51, 0.0  ;;  %v7765_v5 = vmax.f32 %v14877_v46, 0.0  ;;  %v7766_v59 = vmax.f32 %v16591_v35, 0.0  ;;  %v16592_v23 = vld [vmem:[#allocation113_spill] sm:$0xff]  ;;  %v16595_v47 = vld [vmem:[#allocation27_spill] sm:$0xff]  ;;  %v7771_v63 = vmax.f32 %v14901_v21, 0.0 }
 0x641   :  { %v7767_v43 = vmax.f32 %v16592_v23, 0.0  ;;  %v16593_v41 = vld [vmem:[#allocation69_spill] sm:$0xff]  ;;  %v7770_v2 = vmax.f32 %v16595_v47, 0.0  ;;  %v7772_v22 = vmax.f32 %v14905_v1, 0.0  ;;  %v16596_v28 = vld [vmem:[#allocation84_spill] sm:$0xff]  ;;  %v7774_v51 = vmax.f32 %v14913_v18, 0.0 }
 0x642   :  { %v7768_v58 = vmax.f32 %v16593_v41, 0.0  ;;  %v16594_v3 = vld [vmem:[#allocation121_spill] sm:$0xff]  ;;  %v7773_v61 = vmax.f32 %v16596_v28, 0.0  ;;  %v7775_v46 = vmax.f32 %v14917_v57, 0.0  ;;  %v7776_v35 = vmax.f32 %v14920_v7, 0.0 }
 0x643   :  { %v7769_v17 = vmax.f32 %v16594_v3, 0.0  ;;  %v7777_v23 = vmax.f32 %v14923_v29, 0.0  ;;  %v7778_v41 = vmax.f32 %v14926_v0, 0.0  ;;  %v7779_v3 = vmax.f32 %v14929_v62, 0.0 }
 0x644   :  { %v7780_v47 = vmax.f32 %v14932_v24, 0.0  ;;  %v7781_v21 = vmax.f32 %v14935_v49, 0.0  ;;  %v7782_v1 = vmax.f32 %v14938_v45, 0.0  ;;  %v7783_v28 = vmax.f32 %v14941_v26, 0.0 }
 0x645   :  { %v7784_v18 = vmax.f32 %v14944_v53, 0.0  ;;  %v7785_v57 = vmax.f32 %v14947_v60, 0.0  ;;  %v7786_v7 = vmax.f32 %v14950_v27, 0.0  ;;  %v7787_v29 = vmax.f32 %v14953_v50, 0.0 }
 0x646   :  { %v7788_v0 = vmax.f32 %v14956_v11, 0.0  ;;  %v7789_v62 = vmax.f32 %v14959_v34, 0.0  ;;  %v7790_v24 = vmax.f32 %v14962_v40, 0.0  ;;  %v7791_v49 = vmax.f32 %v14965_v32, 0.0  ;;  %v16597_v34 = vld [vmem:[#allocation159_spill] sm:$0xff] }
 0x647   :  { %v7792_v45 = vmax.f32 %v14968_v54, 0.0  ;;  %v7793_v26 = vmax.f32 %v14971_v44, 0.0  ;;  %v7794_v53 = vmax.f32 %v14974_v39, 0.0  ;;  %v7795_v60 = vmax.f32 %v14977_v10, 0.0  ;;  %v16598_v32 = vld [vmem:[#allocation39_spill] sm:$0xff] }
 0x648   :  { %v7796_v27 = vmax.f32 %v14980_v16, 0.0  ;;  %v7797_v50 = vmax.f32 %v14983_v9, 0.0  ;;  %v7798_v11 = vmax.f32 %v14986_v6, 0.0  ;;  %v7799_v40 = vmax.f32 %v16597_v34, 0.0  ;;  %v16599_v44 = vld [vmem:[#allocation23_spill] sm:$0xff]  ;;  %v16602_v34 = vld [vmem:[#allocation70_spill] sm:$0xff] }
 0x649   :  { %v7800_v54 = vmax.f32 %v16598_v32, 0.0  ;;  %v7801_v39 = vmax.f32 %v16599_v44, 0.0  ;;  %v16600_v10 = vld [vmem:[#allocation31_spill] sm:$0xff]  ;;  %v7804_v32 = vmax.f32 %v16602_v34, 0.0  ;;  %v16603_v44 = vld [vmem:[#allocation22_spill] sm:$0xff] }
 0x64a   :  { %v7802_v16 = vmax.f32 %v16600_v10, 0.0  ;;  %v16601_v9 = vld [vmem:[#allocation35_spill] sm:$0xff]  ;;  %v7807_v10 = vmax.f32 %v16603_v44, 0.0  ;;  %v8742_v44 = vpack.c.bf16 %v7746_v8, %v7745_v15  ;;  %v8752_v8 = vpack.c.bf16 %v7750_v52, %v7749_v55 }
 0x64b   :  { %v7803_v6 = vmax.f32 %v16601_v9, 0.0  ;;  %v16604_v9 = vld [vmem:[#allocation63_spill] sm:$0xff]  ;;  %v8757_v15 = vpack.c.bf16 %v7752_v42, %v7751_v33  ;;  %v8772_v52 = vpack.c.bf16 %v7758_v12, %v7757_v13  ;;  %v8777_v55 = vpack.c.bf16 %v7760_v20, %v7759_v31 }
 0x64c   :  { %v7808_v34 = vmax.f32 %v16604_v9, 0.0  ;;  %v8747_v9 = vpack.c.bf16 %v7748_v4, %v7747_v56  ;;  %v8762_v4 = vpack.c.bf16 %v7754_v37, %v7753_v30  ;;  %8743 = vst [vmem:[#allocation9] sm:$0xff] %v8742_v44   ;;  %v8767_v56 = vpack.c.bf16 %v7756_v19, %v7755_v25  ;;  %8916 = vst [vmem:[#allocation9 + $0x10] sm:$0xff] %v8752_v8  }
 0x64d   :  { %v8782_v33 = vpack.c.bf16 %v7762_v38, %v7761_v36  ;;  %8917 = vst [vmem:[#allocation9 + $0x18] sm:$0xff] %v8757_v15   ;;  %v8787_v42 = vpack.c.bf16 %v7764_v14, %v7763_v48  ;;  %v8792_v30 = vpack.c.bf16 %v7766_v59, %v7765_v5  ;;  %v8797_v37 = vpack.c.bf16 %v7768_v58, %v7767_v43 }
 0x64e   :  { %8915 = vst [vmem:[#allocation9 + $0x8] sm:$0xff] %v8747_v9   ;;  %8918 = vst [vmem:[#allocation9 + $0x20] sm:$0xff] %v8762_v4   ;;  %v8802_v44 = vpack.c.bf16 %v7770_v2, %v7769_v17  ;;  %v8807_v19 = vpack.c.bf16 %v7772_v22, %v7771_v63  ;;  %v8812_v25 = vpack.c.bf16 %v7774_v51, %v7773_v61 }
 0x64f   :  { %8919 = vst [vmem:[#allocation9 + $0x28] sm:$0xff] %v8767_v56   ;;  %8920 = vst [vmem:[#allocation9 + $0x30] sm:$0xff] %v8772_v52   ;;  %v8817_v12 = vpack.c.bf16 %v7776_v35, %v7775_v46  ;;  %v8822_v13 = vpack.c.bf16 %v7778_v41, %v7777_v23  ;;  %v8827_v31 = vpack.c.bf16 %v7780_v47, %v7779_v3 }
 0x650   :  { %8921 = vst [vmem:[#allocation9 + $0x38] sm:$0xff] %v8777_v55   ;;  %8922 = vst [vmem:[#allocation9 + $0x40] sm:$0xff] %v8782_v33   ;;  %v8832_v20 = vpack.c.bf16 %v7782_v1, %v7781_v21  ;;  %v8837_v36 = vpack.c.bf16 %v7784_v18, %v7783_v28  ;;  %v8842_v38 = vpack.c.bf16 %v7786_v7, %v7785_v57 }
 0x651   :  { %8923 = vst [vmem:[#allocation9 + $0x48] sm:$0xff] %v8787_v42   ;;  %8924 = vst [vmem:[#allocation9 + $0x50] sm:$0xff] %v8792_v30   ;;  %v8847_v48 = vpack.c.bf16 %v7788_v0, %v7787_v29  ;;  %v8852_v14 = vpack.c.bf16 %v7790_v24, %v7789_v62  ;;  %v8857_v5 = vpack.c.bf16 %v7792_v45, %v7791_v49 }
 0x652   :  { %8925 = vst [vmem:[#allocation9 + $0x58] sm:$0xff] %v8797_v37   ;;  %8926 = vst [vmem:[#allocation9 + $0x60] sm:$0xff] %v8802_v44   ;;  %v8862_v59 = vpack.c.bf16 %v7794_v53, %v7793_v26  ;;  %v8867_v43 = vpack.c.bf16 %v7796_v27, %v7795_v60  ;;  %v8872_v58 = vpack.c.bf16 %v7798_v11, %v7797_v50 }
 0x653   :  { %8927 = vst [vmem:[#allocation9 + $0x68] sm:$0xff] %v8807_v19   ;;  %8928 = vst [vmem:[#allocation9 + $0x70] sm:$0xff] %v8812_v25   ;;  %v8877_v17 = vpack.c.bf16 %v7800_v54, %v7799_v40  ;;  %v8882_v2 = vpack.c.bf16 %v7802_v16, %v7801_v39  ;;  %v8887_v63 = vpack.c.bf16 %v7804_v32, %v7803_v6 }
 0x654   :  { %8929 = vst [vmem:[#allocation9 + $0x78] sm:$0xff] %v8817_v12   ;;  %8930 = vst [vmem:[#allocation9 + $0x80] sm:$0xff] %v8822_v13   ;;  %v8897_v22 = vpack.c.bf16 %v7808_v34, %v7807_v10 }
 0x655   :  { %8931 = vst [vmem:[#allocation9 + $0x88] sm:$0xff] %v8827_v31   ;;  %8932 = vst [vmem:[#allocation9 + $0x90] sm:$0xff] %v8832_v20  }
 0x656   :  { %8933 = vst [vmem:[#allocation9 + $0x98] sm:$0xff] %v8837_v36   ;;  %8934 = vst [vmem:[#allocation9 + $0xa0] sm:$0xff] %v8842_v38  }
 0x657   :  { %8935 = vst [vmem:[#allocation9 + $0xa8] sm:$0xff] %v8847_v48   ;;  %8936 = vst [vmem:[#allocation9 + $0xb0] sm:$0xff] %v8852_v14  }
 0x658   :  { %8937 = vst [vmem:[#allocation9 + $0xb8] sm:$0xff] %v8857_v5   ;;  %8938 = vst [vmem:[#allocation9 + $0xc0] sm:$0xff] %v8862_v59  }
 0x659   :  { %8939 = vst [vmem:[#allocation9 + $0xc8] sm:$0xff] %v8867_v43   ;;  %8940 = vst [vmem:[#allocation9 + $0xd0] sm:$0xff] %v8872_v58  }
 0x65a   :  { %8941 = vst [vmem:[#allocation9 + $0xd8] sm:$0xff] %v8877_v17   ;;  %8942 = vst [vmem:[#allocation9 + $0xe0] sm:$0xff] %v8882_v2  }
 0x65b   :  { %8943 = vst [vmem:[#allocation9 + $0xe8] sm:$0xff] %v8887_v63   ;;  %8945 = vst [vmem:[#allocation9 + $0xf8] sm:$0xff] %v8897_v22  }
 0x65c   :  { %10377 = shalt.err (!%p10374_p5)
}
 0x65d   :  { %8140 = dma.vmem_to_hbm [thread:$0]  %s8135_s6, 4096, %s15087_s7, [#allocation5], %s10394_s29, %s10394_s29, %s10395_s30  }
 0x65e   :  { %10390 = dma.done.wait [#allocation5], 4096  }
 0x65f   :  { %10391 = vsyncadd [#allocation5], 4294963200 }
 0x660   :  { %8144 = vsyncpa [#allocation4], 1 }
 0x661   :  { %8145 = vsyncpa [#allocation7], 1 }
 0x662   :  { %8146 = vsyncpa [#allocation5], 1 }

</bundles_post_ra>
